<compile_context>
chip_gen: v7x
topology: tpu7x:2x2x1
jax: 0.10.0
libtpu: 0.0.40
codegen_flags: <defaults>
</compile_context>

<pallas_src>
import functools

import jax
import jax.numpy as jnp
from jax.experimental import pallas as pl
from jax.experimental.pallas import tpu as pltpu


# ---------------------------------------------------------------------------
# Kernel 1: fused conv1 -> ReLU -> pool -> conv2 -> ReLU -> pool
# (single grid step, batch folded into the matmul M dimension)
# ---------------------------------------------------------------------------
def fused_conv_kernel(x_ref, w1_ref, b1_ref, w2_ref, b2_ref, o_ref,
                      pad1_ref, pad2_ref, cols_ref):
    # x_ref:   (B, H, W, 1)          f32   NHWC input
    # w1_ref:  (9, 1, C1)            f32   conv1 taps (t = 3*dy + dx)
    # b1_ref:  (1, C1)               f32
    # w2_ref:  (9*C1, C2)            bf16  conv2 im2col weights (row = t*C1 + cin)
    # b2_ref:  (1, C2)               f32
    # o_ref:   (B, H//4, W//4, C2)   bf16
    # pad1_ref: VMEM (B, H+2,    W+2,    1 )  f32   conv1 halo pad
    # pad2_ref: VMEM (B, H//2+2, W//2+2, C1)  f32   conv2 halo pad
    # cols_ref: VMEM (B*(H//2)*(W//2), 9*C1)  f32   conv2 im2col slab
    B, Hp, Wp, _ = pad1_ref.shape
    H, W = Hp - 2, Wp - 2
    C1 = pad2_ref.shape[3]
    H2, W2 = H // 2, W // 2
    C2 = o_ref.shape[3]
    H4, W4 = H2 // 2, W2 // 2

    # ---- conv1 (Cin = 1): 9 broadcast multiply-adds on the VPU -------------
    pad1_ref[...] = jnp.zeros_like(pad1_ref)
    pad1_ref[:, 1:H + 1, 1:W + 1, :] = x_ref[...]
    xp1 = pad1_ref[...]

    acc1 = jnp.zeros((B, H, W, C1), jnp.float32)
    for t in range(9):
        dy, dx = t // 3, t % 3
        acc1 = acc1 + xp1[:, dy:dy + H, dx:dx + W, :] * w1_ref[t]
    y1 = jnp.maximum(acc1 + b1_ref[...], 0.0)

    # ---- maxpool 2x2 stride 2 ----------------------------------------------
    yw = y1.reshape(B, H, W2, 2, C1)
    yw = jnp.maximum(yw[:, :, :, 0, :], yw[:, :, :, 1, :])        # (B,H,W2,C1)
    yh = yw.reshape(B, H2, 2, W2, C1)
    p1 = jnp.maximum(yh[:, :, 0, :, :], yh[:, :, 1, :, :])        # (B,H2,W2,C1)

    # ---- conv2: im2col slab -> one MXU matmul (K = 9*C1) --------------------
    pad2_ref[...] = jnp.zeros_like(pad2_ref)
    pad2_ref[:, 1:H2 + 1, 1:W2 + 1, :] = p1
    xp2 = pad2_ref[...]

    M = B * H2 * W2
    for t in range(9):
        dy, dx = t // 3, t % 3
        cols_ref[:, t * C1:(t + 1) * C1] = (
            xp2[:, dy:dy + H2, dx:dx + W2, :].reshape(M, C1))

    acc2 = jnp.dot(cols_ref[...].astype(jnp.bfloat16), w2_ref[...],
                   preferred_element_type=jnp.float32)            # (M, C2)
    y2 = jnp.maximum(acc2 + b2_ref[...], 0.0).reshape(B, H2, W2, C2)

    # ---- maxpool 2x2 stride 2 ----------------------------------------------
    zw = y2.reshape(B, H2, W4, 2, C2)
    zw = jnp.maximum(zw[:, :, :, 0, :], zw[:, :, :, 1, :])        # (B,H2,W4,C2)
    zh = zw.reshape(B, H4, 2, W4, C2)
    p2 = jnp.maximum(zh[:, :, 0, :, :], zh[:, :, 1, :, :])        # (B,H4,W4,C2)

    o_ref[...] = p2.astype(o_ref.dtype)


def fused_conv_relu_pool(x_nhwc, w1_taps, b1, w2_cols, b2):
    """x_nhwc: (B,H,W,1) f32; w1_taps: (9,1,C1) f32; w2_cols: (9*C1,C2) bf16."""
    B, H, W, _ = x_nhwc.shape
    C1 = w1_taps.shape[2]
    C2 = w2_cols.shape[1]
    assert H % 4 == 0 and W % 4 == 0
    H2, W2, H4, W4 = H // 2, W // 2, H // 4, W // 4

    return pl.pallas_call(
        fused_conv_kernel,
        out_shape=jax.ShapeDtypeStruct((B, H4, W4, C2), jnp.bfloat16),
        grid=(1,),
        in_specs=[
            pl.BlockSpec((B, H, W, 1), lambda i: (0, 0, 0, 0)),
            pl.BlockSpec((9, 1, C1), lambda i: (0, 0, 0)),
            pl.BlockSpec((1, C1), lambda i: (0, 0)),
            pl.BlockSpec((9 * C1, C2), lambda i: (0, 0)),
            pl.BlockSpec((1, C2), lambda i: (0, 0)),
        ],
        out_specs=pl.BlockSpec((B, H4, W4, C2), lambda i: (0, 0, 0, 0)),
        scratch_shapes=[
            pltpu.VMEM((B, H + 2, W + 2, 1), jnp.float32),
            pltpu.VMEM((B, H2 + 2, W2 + 2, C1), jnp.float32),
            pltpu.VMEM((B * H2 * W2, 9 * C1), jnp.float32),
        ],
        compiler_params=pltpu.CompilerParams(
            dimension_semantics=("arbitrary",),
            vmem_limit_bytes=32 * 1024 * 1024),
    )(x_nhwc, w1_taps, b1, w2_cols, b2)


# ---------------------------------------------------------------------------
# Kernel 2: MLP head fc1 -> ReLU -> fc2, K-tiled with an f32 VMEM accumulator
# (fc2 output padded to a lane-dense 128 columns; wrapper slices back)
# ---------------------------------------------------------------------------
def mlp_kernel(x_ref, w1_ref, b1_ref, w2_ref, b2_ref, o_ref, h_acc):
    k = pl.program_id(0)

    @pl.when(k == 0)
    def _():
        h_acc[...] = jnp.zeros_like(h_acc)

    h_acc[...] += jnp.dot(x_ref[...].astype(jnp.bfloat16), w1_ref[...],
                          preferred_element_type=jnp.float32)

    @pl.when(k == pl.num_programs(0) - 1)
    def _():
        h = jnp.maximum(h_acc[...] + b1_ref[...], 0.0)
        o = jnp.dot(h.astype(jnp.bfloat16), w2_ref[...],
                    preferred_element_type=jnp.float32)
        o_ref[...] = (o + b2_ref[...]).astype(o_ref.dtype)


def _pick_block_k(K, cap=4096):
    """Largest multiple-of-128 divisor of K that is <= cap (falls back to K)."""
    cap = min(cap, K)
    best = None
    for bk in range(128, cap + 1, 128):
        if K % bk == 0:
            best = bk
    return best if best is not None else K


def mlp_head(x_flat, fc1_w, fc1_b, fc2_w, fc2_b, *, max_block_k=4096):
    B, K = x_flat.shape
    Dh = fc1_w.shape[1]
    Np = fc2_w.shape[1]
    block_k = _pick_block_k(K, max_block_k)
    assert K % block_k == 0
    nk = K // block_k

    return pl.pallas_call(
        mlp_kernel,
        out_shape=jax.ShapeDtypeStruct((B, Np), jnp.float32),
        grid=(nk,),
        in_specs=[
            pl.BlockSpec((B, block_k), lambda k: (0, k)),
            pl.BlockSpec((block_k, Dh), lambda k: (k, 0)),
            pl.BlockSpec((1, Dh), lambda k: (0, 0)),
            pl.BlockSpec((Dh, Np), lambda k: (0, 0)),
            pl.BlockSpec((1, Np), lambda k: (0, 0)),
        ],
        out_specs=pl.BlockSpec((B, Np), lambda k: (0, 0)),
        scratch_shapes=[pltpu.VMEM((B, Dh), jnp.float32)],
        compiler_params=pltpu.CompilerParams(
            dimension_semantics=("arbitrary",),
            vmem_limit_bytes=32 * 1024 * 1024),
    )(x_flat, fc1_w, fc1_b, fc2_w, fc2_b)


# ---------------------------------------------------------------------------
# One-time parameter preparation (layout / ordering / dtype only)
# ---------------------------------------------------------------------------
def prepare_params(params, *, h4, w4):
    C1 = params["conv1_w"].shape[3]
    C2 = params["conv2_w"].shape[3]
    Dh = params["fc1_w"].shape[1]
    num_classes = params["fc2_w"].shape[1]
    n_pad = ((num_classes + 127) // 128) * 128

    # fc1 rows: torch flattens NCHW (c, y, x); the kernel flattens NHWC
    # (y, x, c).  Permute the rows once so the flatten is a free reshape.
    fc1_w = params["fc1_w"].reshape(C2, h4, w4, Dh)
    fc1_w = jnp.transpose(fc1_w, (1, 2, 0, 3)).reshape(h4 * w4 * C2, Dh)

    return {
        "w1": params["conv1_w"].reshape(9, 1, C1).astype(jnp.float32),
        "b1": params["conv1_b"].reshape(1, C1).astype(jnp.float32),
        "w2": params["conv2_w"].reshape(9 * C1, C2).astype(jnp.bfloat16),
        "b2": params["conv2_b"].reshape(1, C2).astype(jnp.float32),
        "fc1_w": fc1_w.astype(jnp.bfloat16),
        "fc1_b": params["fc1_b"].reshape(1, Dh).astype(jnp.float32),
        "fc2_w": jnp.pad(params["fc2_w"],
                         ((0, 0), (0, n_pad - num_classes))).astype(jnp.bfloat16),
        "fc2_b": jnp.pad(params["fc2_b"],
                         (0, n_pad - num_classes)).reshape(1, n_pad)
                    .astype(jnp.float32),
    }


# ---------------------------------------------------------------------------
# Full forward pass (glue: two free reshapes, one slice)
# ---------------------------------------------------------------------------
@functools.partial(jax.jit, static_argnames=("num_classes",))
def emotion_forward(x_nchw, prep, *, num_classes):
    B, _, H, W = x_nchw.shape
    # Cin == 1, so NCHW -> NHWC is a pure reshape (no transpose op emitted).
    x = x_nchw.reshape(B, H, W, 1)
    y = fused_conv_relu_pool(x, prep["w1"], prep["b1"],
                             prep["w2"], prep["b2"])            # (B,H/4,W/4,64) bf16
    flat = y.reshape(B, -1)            # NHWC flatten; fc1_w rows already permuted
    logits = mlp_head(flat, prep["fc1_w"], prep["fc1_b"],
                      prep["fc2_w"], prep["fc2_b"])             # (B, 128)
    return logits[:, :num_classes]


# ---------------------------------------------------------------------------
# Pure-JAX reference (f32, original parameter layout) for correctness checking
# ---------------------------------------------------------------------------
def emotion_forward_reference(x_nchw, params):
    x = jnp.transpose(x_nchw, (0, 2, 3, 1))

    def stage(x, w_hwio, b):
        y = jax.lax.conv_general_dilated(
            x, w_hwio, (1, 1), "SAME",
            dimension_numbers=("NHWC", "HWIO", "NHWC"))
        y = jax.nn.relu(y + b)
        return jax.lax.reduce_window(
            y, -jnp.inf, jax.lax.max, (1, 2, 2, 1), (1, 2, 2, 1), "VALID")

    y = stage(x, params["conv1_w"], params["conv1_b"])
    y = stage(y, params["conv2_w"], params["conv2_b"])
    y = jnp.transpose(y, (0, 3, 1, 2)).reshape(x_nchw.shape[0], -1)
    h = jax.nn.relu(y @ params["fc1_w"] + params["fc1_b"])
    return h @ params["fc2_w"] + params["fc2_b"]


# ---------------------------------------------------------------------------
if __name__ == "__main__":
    B, H, W = 2, 16, 16
    num_classes = 8
    in_features = 64 * (H // 4) * (W // 4)  # analogue of 64*16*250 at full size

    keys = jax.random.split(jax.random.PRNGKey(0), 9)
    params = {
        "conv1_w": jax.random.normal(keys[0], (3, 3, 1, 32), jnp.float32) * 0.10,
        "conv1_b": jax.random.normal(keys[1], (32,), jnp.float32) * 0.10,
        "conv2_w": jax.random.normal(keys[2], (3, 3, 32, 64), jnp.float32) * 0.05,
        "conv2_b": jax.random.normal(keys[3], (64,), jnp.float32) * 0.05,
        "fc1_w": jax.random.normal(keys[4], (in_features, 128), jnp.float32) * 0.02,
        "fc1_b": jax.random.normal(keys[5], (128,), jnp.float32) * 0.02,
        "fc2_w": jax.random.normal(keys[6], (128, num_classes), jnp.float32) * 0.05,
        "fc2_b": jax.random.normal(keys[7], (num_classes,), jnp.float32) * 0.05,
    }

    x = jax.random.normal(keys[8], (B, 1, H, W), jnp.float32)  # NCHW like torch

    prep = jax.tree_util.tree_map(
        jax.block_until_ready, prepare_params(params, h4=H // 4, w4=W // 4))

    out = jax.block_until_ready(emotion_forward(x, prep, num_classes=num_classes))
    ref = jax.block_until_ready(emotion_forward_reference(x, params))

    assert out.shape == (B, num_classes), out.shape
    # bf16 MXU inputs / bf16 intermediate -> tolerance loosened vs. pure f32.
    assert jnp.allclose(out, ref, atol=2e-2, rtol=2e-2), (
        float(jnp.max(jnp.abs(out - ref))))

    # TODO(synk): the original module's debug print() calls are host-side side
    # effects and are intentionally not reproduced.
    print("KERNEL_OK")
</pallas_src>

<mosaic_0001>
module attributes {stable_mosaic.version = 11 : i64} {
  func.func @fused_conv_kernel(%arg0: i32, %arg1: memref<2x16x16x1xf32, #tpu.memory_space<vmem>>, %arg2: memref<9x1x32xf32, #tpu.memory_space<vmem>>, %arg3: memref<1x32xf32, #tpu.memory_space<vmem>>, %arg4: memref<288x64xbf16, #tpu.memory_space<vmem>>, %arg5: memref<1x64xf32, #tpu.memory_space<vmem>>, %arg6: memref<2x4x4x64xbf16, #tpu.memory_space<vmem>>, %arg7: memref<2x18x18x1xf32, #tpu.memory_space<vmem>>, %arg8: memref<2x10x10x32xf32, #tpu.memory_space<vmem>>, %arg9: memref<128x288xf32, #tpu.memory_space<vmem>>) attributes {dimension_semantics = [#tpu.dimension_semantics<arbitrary>], iteration_bounds = array<i64: 1>, scalar_prefetch = 0 : i64, scratch_operands = 3 : i64, tpu.core_type = #tpu.core_type<tc>, window_params = [{pipeline_mode = #tpu.pipeline_mode<synchronous>, transform_indices = @transform_0, window_bounds = array<i64: 2, 16, 16, 1>}, {pipeline_mode = #tpu.pipeline_mode<synchronous>, transform_indices = @transform_1, window_bounds = array<i64: 9, 1, 32>}, {pipeline_mode = #tpu.pipeline_mode<synchronous>, transform_indices = @transform_2, window_bounds = array<i64: 1, 32>}, {pipeline_mode = #tpu.pipeline_mode<synchronous>, transform_indices = @transform_3, window_bounds = array<i64: 288, 64>}, {pipeline_mode = #tpu.pipeline_mode<synchronous>, transform_indices = @transform_4, window_bounds = array<i64: 1, 64>}, {pipeline_mode = #tpu.pipeline_mode<synchronous>, transform_indices = @transform_5, window_bounds = array<i64: 2, 4, 4, 64>}]} {
    %cst = arith.constant 0.000000e+00 : f32
    %0 = vector.broadcast %cst : f32 to vector<2x18x18x1xf32>
    %c0 = arith.constant 0 : index
    %c0_0 = arith.constant 0 : index
    %c0_1 = arith.constant 0 : index
    %c0_2 = arith.constant 0 : index
    %1 = vector.load %arg7[%c0, %c0_0, %c0_1, %c0_2] : memref<2x18x18x1xf32, #tpu.memory_space<vmem>>, vector<2x18x18x1xf32>
    tpu.vector_store %arg7[%c0, %c0_0, %c0_1, %c0_2], %0 {strides = array<i32>} : memref<2x18x18x1xf32, #tpu.memory_space<vmem>>, vector<2x18x18x1xf32>,
    %c0_3 = arith.constant 0 : index
    %c0_4 = arith.constant 0 : index
    %c0_5 = arith.constant 0 : index
    %c0_6 = arith.constant 0 : index
    %2 = vector.load %arg1[%c0_3, %c0_4, %c0_5, %c0_6] : memref<2x16x16x1xf32, #tpu.memory_space<vmem>>, vector<2x16x16x1xf32>
    %c0_7 = arith.constant 0 : index
    %c1 = arith.constant 1 : index
    %c1_8 = arith.constant 1 : index
    %c0_9 = arith.constant 0 : index
    %3 = vector.load %arg7[%c0_7, %c1, %c1_8, %c0_9] : memref<2x18x18x1xf32, #tpu.memory_space<vmem>>, vector<2x16x16x1xf32>
    tpu.vector_store %arg7[%c0_7, %c1, %c1_8, %c0_9], %2 {strides = array<i32>} : memref<2x18x18x1xf32, #tpu.memory_space<vmem>>, vector<2x16x16x1xf32>,
    %c0_10 = arith.constant 0 : index
    %c0_11 = arith.constant 0 : index
    %c0_12 = arith.constant 0 : index
    %c0_13 = arith.constant 0 : index
    %4 = vector.load %arg7[%c0_10, %c0_11, %c0_12, %c0_13] : memref<2x18x18x1xf32, #tpu.memory_space<vmem>>, vector<2x18x18x1xf32>
    %cst_14 = arith.constant 0.000000e+00 : f32
    %5 = vector.broadcast %cst_14 : f32 to vector<2x16x16x32xf32>
    %6 = vector.extract_strided_slice %4 {offsets = [0, 0, 0, 0], sizes = [2, 16, 16, 1], strides = [1, 1, 1, 1]} : vector<2x18x18x1xf32> to vector<2x16x16x1xf32>
    %c0_15 = arith.constant 0 : index
    %c0_16 = arith.constant 0 : index
    %c0_17 = arith.constant 0 : index
    %7 = vector.load %arg2[%c0_15, %c0_16, %c0_17] : memref<9x1x32xf32, #tpu.memory_space<vmem>>, vector<1x1x32xf32>
    %8 = vector.shape_cast %7 : vector<1x1x32xf32> to vector<1x32xf32>
    %9 = vector.shape_cast %8 : vector<1x32xf32> to vector<1x1x1x32xf32>
    %10 = vector.broadcast %6 : vector<2x16x16x1xf32> to vector<2x16x16x32xf32>
    %11 = vector.broadcast %9 : vector<1x1x1x32xf32> to vector<2x16x16x32xf32>
    %12 = arith.mulf %10, %11 : vector<2x16x16x32xf32>
    %13 = arith.addf %5, %12 : vector<2x16x16x32xf32>
    %14 = vector.extract_strided_slice %4 {offsets = [0, 0, 1, 0], sizes = [2, 16, 16, 1], strides = [1, 1, 1, 1]} : vector<2x18x18x1xf32> to vector<2x16x16x1xf32>
    %c1_18 = arith.constant 1 : index
    %c0_19 = arith.constant 0 : index
    %c0_20 = arith.constant 0 : index
    %15 = vector.load %arg2[%c1_18, %c0_19, %c0_20] : memref<9x1x32xf32, #tpu.memory_space<vmem>>, vector<1x1x32xf32>
    %16 = vector.shape_cast %15 : vector<1x1x32xf32> to vector<1x32xf32>
    %17 = vector.shape_cast %16 : vector<1x32xf32> to vector<1x1x1x32xf32>
    %18 = vector.broadcast %14 : vector<2x16x16x1xf32> to vector<2x16x16x32xf32>
    %19 = vector.broadcast %17 : vector<1x1x1x32xf32> to vector<2x16x16x32xf32>
    %20 = arith.mulf %18, %19 : vector<2x16x16x32xf32>
    %21 = arith.addf %13, %20 : vector<2x16x16x32xf32>
    %22 = vector.extract_strided_slice %4 {offsets = [0, 0, 2, 0], sizes = [2, 16, 16, 1], strides = [1, 1, 1, 1]} : vector<2x18x18x1xf32> to vector<2x16x16x1xf32>
    %c2 = arith.constant 2 : index
    %c0_21 = arith.constant 0 : index
    %c0_22 = arith.constant 0 : index
    %23 = vector.load %arg2[%c2, %c0_21, %c0_22] : memref<9x1x32xf32, #tpu.memory_space<vmem>>, vector<1x1x32xf32>
    %24 = vector.shape_cast %23 : vector<1x1x32xf32> to vector<1x32xf32>
    %25 = vector.shape_cast %24 : vector<1x32xf32> to vector<1x1x1x32xf32>
    %26 = vector.broadcast %22 : vector<2x16x16x1xf32> to vector<2x16x16x32xf32>
    %27 = vector.broadcast %25 : vector<1x1x1x32xf32> to vector<2x16x16x32xf32>
    %28 = arith.mulf %26, %27 : vector<2x16x16x32xf32>
    %29 = arith.addf %21, %28 : vector<2x16x16x32xf32>
    %30 = vector.extract_strided_slice %4 {offsets = [0, 1, 0, 0], sizes = [2, 16, 16, 1], strides = [1, 1, 1, 1]} : vector<2x18x18x1xf32> to vector<2x16x16x1xf32>
    %c3 = arith.constant 3 : index
    %c0_23 = arith.constant 0 : index
    %c0_24 = arith.constant 0 : index
    %31 = vector.load %arg2[%c3, %c0_23, %c0_24] : memref<9x1x32xf32, #tpu.memory_space<vmem>>, vector<1x1x32xf32>
    %32 = vector.shape_cast %31 : vector<1x1x32xf32> to vector<1x32xf32>
    %33 = vector.shape_cast %32 : vector<1x32xf32> to vector<1x1x1x32xf32>
    %34 = vector.broadcast %30 : vector<2x16x16x1xf32> to vector<2x16x16x32xf32>
    %35 = vector.broadcast %33 : vector<1x1x1x32xf32> to vector<2x16x16x32xf32>
    %36 = arith.mulf %34, %35 : vector<2x16x16x32xf32>
    %37 = arith.addf %29, %36 : vector<2x16x16x32xf32>
    %38 = vector.extract_strided_slice %4 {offsets = [0, 1, 1, 0], sizes = [2, 16, 16, 1], strides = [1, 1, 1, 1]} : vector<2x18x18x1xf32> to vector<2x16x16x1xf32>
    %c4 = arith.constant 4 : index
    %c0_25 = arith.constant 0 : index
    %c0_26 = arith.constant 0 : index
    %39 = vector.load %arg2[%c4, %c0_25, %c0_26] : memref<9x1x32xf32, #tpu.memory_space<vmem>>, vector<1x1x32xf32>
    %40 = vector.shape_cast %39 : vector<1x1x32xf32> to vector<1x32xf32>
    %41 = vector.shape_cast %40 : vector<1x32xf32> to vector<1x1x1x32xf32>
    %42 = vector.broadcast %38 : vector<2x16x16x1xf32> to vector<2x16x16x32xf32>
    %43 = vector.broadcast %41 : vector<1x1x1x32xf32> to vector<2x16x16x32xf32>
    %44 = arith.mulf %42, %43 : vector<2x16x16x32xf32>
    %45 = arith.addf %37, %44 : vector<2x16x16x32xf32>
    %46 = vector.extract_strided_slice %4 {offsets = [0, 1, 2, 0], sizes = [2, 16, 16, 1], strides = [1, 1, 1, 1]} : vector<2x18x18x1xf32> to vector<2x16x16x1xf32>
    %c5 = arith.constant 5 : index
    %c0_27 = arith.constant 0 : index
    %c0_28 = arith.constant 0 : index
    %47 = vector.load %arg2[%c5, %c0_27, %c0_28] : memref<9x1x32xf32, #tpu.memory_space<vmem>>, vector<1x1x32xf32>
    %48 = vector.shape_cast %47 : vector<1x1x32xf32> to vector<1x32xf32>
    %49 = vector.shape_cast %48 : vector<1x32xf32> to vector<1x1x1x32xf32>
    %50 = vector.broadcast %46 : vector<2x16x16x1xf32> to vector<2x16x16x32xf32>
    %51 = vector.broadcast %49 : vector<1x1x1x32xf32> to vector<2x16x16x32xf32>
    %52 = arith.mulf %50, %51 : vector<2x16x16x32xf32>
    %53 = arith.addf %45, %52 : vector<2x16x16x32xf32>
    %54 = vector.extract_strided_slice %4 {offsets = [0, 2, 0, 0], sizes = [2, 16, 16, 1], strides = [1, 1, 1, 1]} : vector<2x18x18x1xf32> to vector<2x16x16x1xf32>
    %c6 = arith.constant 6 : index
    %c0_29 = arith.constant 0 : index
    %c0_30 = arith.constant 0 : index
    %55 = vector.load %arg2[%c6, %c0_29, %c0_30] : memref<9x1x32xf32, #tpu.memory_space<vmem>>, vector<1x1x32xf32>
    %56 = vector.shape_cast %55 : vector<1x1x32xf32> to vector<1x32xf32>
    %57 = vector.shape_cast %56 : vector<1x32xf32> to vector<1x1x1x32xf32>
    %58 = vector.broadcast %54 : vector<2x16x16x1xf32> to vector<2x16x16x32xf32>
    %59 = vector.broadcast %57 : vector<1x1x1x32xf32> to vector<2x16x16x32xf32>
    %60 = arith.mulf %58, %59 : vector<2x16x16x32xf32>
    %61 = arith.addf %53, %60 : vector<2x16x16x32xf32>
    %62 = vector.extract_strided_slice %4 {offsets = [0, 2, 1, 0], sizes = [2, 16, 16, 1], strides = [1, 1, 1, 1]} : vector<2x18x18x1xf32> to vector<2x16x16x1xf32>
    %c7 = arith.constant 7 : index
    %c0_31 = arith.constant 0 : index
    %c0_32 = arith.constant 0 : index
    %63 = vector.load %arg2[%c7, %c0_31, %c0_32] : memref<9x1x32xf32, #tpu.memory_space<vmem>>, vector<1x1x32xf32>
    %64 = vector.shape_cast %63 : vector<1x1x32xf32> to vector<1x32xf32>
    %65 = vector.shape_cast %64 : vector<1x32xf32> to vector<1x1x1x32xf32>
    %66 = vector.broadcast %62 : vector<2x16x16x1xf32> to vector<2x16x16x32xf32>
    %67 = vector.broadcast %65 : vector<1x1x1x32xf32> to vector<2x16x16x32xf32>
    %68 = arith.mulf %66, %67 : vector<2x16x16x32xf32>
    %69 = arith.addf %61, %68 : vector<2x16x16x32xf32>
    %70 = vector.extract_strided_slice %4 {offsets = [0, 2, 2, 0], sizes = [2, 16, 16, 1], strides = [1, 1, 1, 1]} : vector<2x18x18x1xf32> to vector<2x16x16x1xf32>
    %c8 = arith.constant 8 : index
    %c0_33 = arith.constant 0 : index
    %c0_34 = arith.constant 0 : index
    %71 = vector.load %arg2[%c8, %c0_33, %c0_34] : memref<9x1x32xf32, #tpu.memory_space<vmem>>, vector<1x1x32xf32>
    %72 = vector.shape_cast %71 : vector<1x1x32xf32> to vector<1x32xf32>
    %73 = vector.shape_cast %72 : vector<1x32xf32> to vector<1x1x1x32xf32>
    %74 = vector.broadcast %70 : vector<2x16x16x1xf32> to vector<2x16x16x32xf32>
    %75 = vector.broadcast %73 : vector<1x1x1x32xf32> to vector<2x16x16x32xf32>
    %76 = arith.mulf %74, %75 : vector<2x16x16x32xf32>
    %77 = arith.addf %69, %76 : vector<2x16x16x32xf32>
    %c0_35 = arith.constant 0 : index
    %c0_36 = arith.constant 0 : index
    %78 = vector.load %arg3[%c0_35, %c0_36] : memref<1x32xf32, #tpu.memory_space<vmem>>, vector<1x32xf32>
    %79 = vector.shape_cast %78 : vector<1x32xf32> to vector<1x1x1x32xf32>
    %80 = vector.broadcast %79 : vector<1x1x1x32xf32> to vector<2x16x16x32xf32>
    %81 = arith.addf %77, %80 : vector<2x16x16x32xf32>
    %cst_37 = arith.constant 0.000000e+00 : f32
    %82 = vector.broadcast %cst_37 : f32 to vector<2x16x16x32xf32>
    %83 = arith.maximumf %81, %82 : vector<2x16x16x32xf32>
    %84 = vector.shape_cast %83 : vector<2x16x16x32xf32> to vector<2x16x8x2x32xf32>
    %85 = vector.extract_strided_slice %84 {offsets = [0, 0, 0, 0, 0], sizes = [2, 16, 8, 1, 32], strides = [1, 1, 1, 1, 1]} : vector<2x16x8x2x32xf32> to vector<2x16x8x1x32xf32>
    %86 = vector.shape_cast %85 : vector<2x16x8x1x32xf32> to vector<2x16x8x32xf32>
    %87 = vector.extract_strided_slice %84 {offsets = [0, 0, 0, 1, 0], sizes = [2, 16, 8, 1, 32], strides = [1, 1, 1, 1, 1]} : vector<2x16x8x2x32xf32> to vector<2x16x8x1x32xf32>
    %88 = vector.shape_cast %87 : vector<2x16x8x1x32xf32> to vector<2x16x8x32xf32>
    %89 = arith.maximumf %86, %88 : vector<2x16x8x32xf32>
    %90 = vector.shape_cast %89 : vector<2x16x8x32xf32> to vector<2x8x2x8x32xf32>
    %91 = vector.extract_strided_slice %90 {offsets = [0, 0, 0, 0, 0], sizes = [2, 8, 1, 8, 32], strides = [1, 1, 1, 1, 1]} : vector<2x8x2x8x32xf32> to vector<2x8x1x8x32xf32>
    %92 = vector.shape_cast %91 : vector<2x8x1x8x32xf32> to vector<2x8x8x32xf32>
    %93 = vector.extract_strided_slice %90 {offsets = [0, 0, 1, 0, 0], sizes = [2, 8, 1, 8, 32], strides = [1, 1, 1, 1, 1]} : vector<2x8x2x8x32xf32> to vector<2x8x1x8x32xf32>
    %94 = vector.shape_cast %93 : vector<2x8x1x8x32xf32> to vector<2x8x8x32xf32>
    %95 = arith.maximumf %92, %94 : vector<2x8x8x32xf32>
    %cst_38 = arith.constant 0.000000e+00 : f32
    %96 = vector.broadcast %cst_38 : f32 to vector<2x10x10x32xf32>
    %c0_39 = arith.constant 0 : index
    %c0_40 = arith.constant 0 : index
    %c0_41 = arith.constant 0 : index
    %c0_42 = arith.constant 0 : index
    %97 = vector.load %arg8[%c0_39, %c0_40, %c0_41, %c0_42] : memref<2x10x10x32xf32, #tpu.memory_space<vmem>>, vector<2x10x10x32xf32>
    tpu.vector_store %arg8[%c0_39, %c0_40, %c0_41, %c0_42], %96 {strides = array<i32>} : memref<2x10x10x32xf32, #tpu.memory_space<vmem>>, vector<2x10x10x32xf32>,
    %c0_43 = arith.constant 0 : index
    %c1_44 = arith.constant 1 : index
    %c1_45 = arith.constant 1 : index
    %c0_46 = arith.constant 0 : index
    %98 = vector.load %arg8[%c0_43, %c1_44, %c1_45, %c0_46] : memref<2x10x10x32xf32, #tpu.memory_space<vmem>>, vector<2x8x8x32xf32>
    tpu.vector_store %arg8[%c0_43, %c1_44, %c1_45, %c0_46], %95 {strides = array<i32>} : memref<2x10x10x32xf32, #tpu.memory_space<vmem>>, vector<2x8x8x32xf32>,
    %c0_47 = arith.constant 0 : index
    %c0_48 = arith.constant 0 : index
    %c0_49 = arith.constant 0 : index
    %c0_50 = arith.constant 0 : index
    %99 = vector.load %arg8[%c0_47, %c0_48, %c0_49, %c0_50] : memref<2x10x10x32xf32, #tpu.memory_space<vmem>>, vector<2x10x10x32xf32>
    %100 = vector.extract_strided_slice %99 {offsets = [0, 0, 0, 0], sizes = [2, 8, 8, 32], strides = [1, 1, 1, 1]} : vector<2x10x10x32xf32> to vector<2x8x8x32xf32>
    %101 = vector.shape_cast %100 : vector<2x8x8x32xf32> to vector<128x32xf32>
    %c0_51 = arith.constant 0 : index
    %c0_52 = arith.constant 0 : index
    %102 = vector.load %arg9[%c0_51, %c0_52] : memref<128x288xf32, #tpu.memory_space<vmem>>, vector<128x32xf32>
    tpu.vector_store %arg9[%c0_51, %c0_52], %101 {strides = array<i32>} : memref<128x288xf32, #tpu.memory_space<vmem>>, vector<128x32xf32>,
    %103 = vector.extract_strided_slice %99 {offsets = [0, 0, 1, 0], sizes = [2, 8, 8, 32], strides = [1, 1, 1, 1]} : vector<2x10x10x32xf32> to vector<2x8x8x32xf32>
    %104 = vector.shape_cast %103 : vector<2x8x8x32xf32> to vector<128x32xf32>
    %c0_53 = arith.constant 0 : index
    %c32 = arith.constant 32 : index
    %105 = vector.load %arg9[%c0_53, %c32] : memref<128x288xf32, #tpu.memory_space<vmem>>, vector<128x32xf32>
    tpu.vector_store %arg9[%c0_53, %c32], %104 {strides = array<i32>} : memref<128x288xf32, #tpu.memory_space<vmem>>, vector<128x32xf32>,
    %106 = vector.extract_strided_slice %99 {offsets = [0, 0, 2, 0], sizes = [2, 8, 8, 32], strides = [1, 1, 1, 1]} : vector<2x10x10x32xf32> to vector<2x8x8x32xf32>
    %107 = vector.shape_cast %106 : vector<2x8x8x32xf32> to vector<128x32xf32>
    %c0_54 = arith.constant 0 : index
    %c64 = arith.constant 64 : index
    %108 = vector.load %arg9[%c0_54, %c64] : memref<128x288xf32, #tpu.memory_space<vmem>>, vector<128x32xf32>
    tpu.vector_store %arg9[%c0_54, %c64], %107 {strides = array<i32>} : memref<128x288xf32, #tpu.memory_space<vmem>>, vector<128x32xf32>,
    %109 = vector.extract_strided_slice %99 {offsets = [0, 1, 0, 0], sizes = [2, 8, 8, 32], strides = [1, 1, 1, 1]} : vector<2x10x10x32xf32> to vector<2x8x8x32xf32>
    %110 = vector.shape_cast %109 : vector<2x8x8x32xf32> to vector<128x32xf32>
    %c0_55 = arith.constant 0 : index
    %c96 = arith.constant 96 : index
    %111 = vector.load %arg9[%c0_55, %c96] : memref<128x288xf32, #tpu.memory_space<vmem>>, vector<128x32xf32>
    tpu.vector_store %arg9[%c0_55, %c96], %110 {strides = array<i32>} : memref<128x288xf32, #tpu.memory_space<vmem>>, vector<128x32xf32>,
    %112 = vector.extract_strided_slice %99 {offsets = [0, 1, 1, 0], sizes = [2, 8, 8, 32], strides = [1, 1, 1, 1]} : vector<2x10x10x32xf32> to vector<2x8x8x32xf32>
    %113 = vector.shape_cast %112 : vector<2x8x8x32xf32> to vector<128x32xf32>
    %c0_56 = arith.constant 0 : index
    %c128 = arith.constant 128 : index
    %114 = vector.load %arg9[%c0_56, %c128] : memref<128x288xf32, #tpu.memory_space<vmem>>, vector<128x32xf32>
    tpu.vector_store %arg9[%c0_56, %c128], %113 {strides = array<i32>} : memref<128x288xf32, #tpu.memory_space<vmem>>, vector<128x32xf32>,
    %115 = vector.extract_strided_slice %99 {offsets = [0, 1, 2, 0], sizes = [2, 8, 8, 32], strides = [1, 1, 1, 1]} : vector<2x10x10x32xf32> to vector<2x8x8x32xf32>
    %116 = vector.shape_cast %115 : vector<2x8x8x32xf32> to vector<128x32xf32>
    %c0_57 = arith.constant 0 : index
    %c160 = arith.constant 160 : index
    %117 = vector.load %arg9[%c0_57, %c160] : memref<128x288xf32, #tpu.memory_space<vmem>>, vector<128x32xf32>
    tpu.vector_store %arg9[%c0_57, %c160], %116 {strides = array<i32>} : memref<128x288xf32, #tpu.memory_space<vmem>>, vector<128x32xf32>,
    %118 = vector.extract_strided_slice %99 {offsets = [0, 2, 0, 0], sizes = [2, 8, 8, 32], strides = [1, 1, 1, 1]} : vector<2x10x10x32xf32> to vector<2x8x8x32xf32>
    %119 = vector.shape_cast %118 : vector<2x8x8x32xf32> to vector<128x32xf32>
    %c0_58 = arith.constant 0 : index
    %c192 = arith.constant 192 : index
    %120 = vector.load %arg9[%c0_58, %c192] : memref<128x288xf32, #tpu.memory_space<vmem>>, vector<128x32xf32>
    tpu.vector_store %arg9[%c0_58, %c192], %119 {strides = array<i32>} : memref<128x288xf32, #tpu.memory_space<vmem>>, vector<128x32xf32>,
    %121 = vector.extract_strided_slice %99 {offsets = [0, 2, 1, 0], sizes = [2, 8, 8, 32], strides = [1, 1, 1, 1]} : vector<2x10x10x32xf32> to vector<2x8x8x32xf32>
    %122 = vector.shape_cast %121 : vector<2x8x8x32xf32> to vector<128x32xf32>
    %c0_59 = arith.constant 0 : index
    %c224 = arith.constant 224 : index
    %123 = vector.load %arg9[%c0_59, %c224] : memref<128x288xf32, #tpu.memory_space<vmem>>, vector<128x32xf32>
    tpu.vector_store %arg9[%c0_59, %c224], %122 {strides = array<i32>} : memref<128x288xf32, #tpu.memory_space<vmem>>, vector<128x32xf32>,
    %124 = vector.extract_strided_slice %99 {offsets = [0, 2, 2, 0], sizes = [2, 8, 8, 32], strides = [1, 1, 1, 1]} : vector<2x10x10x32xf32> to vector<2x8x8x32xf32>
    %125 = vector.shape_cast %124 : vector<2x8x8x32xf32> to vector<128x32xf32>
    %c0_60 = arith.constant 0 : index
    %c256 = arith.constant 256 : index
    %126 = vector.load %arg9[%c0_60, %c256] : memref<128x288xf32, #tpu.memory_space<vmem>>, vector<128x32xf32>
    tpu.vector_store %arg9[%c0_60, %c256], %125 {strides = array<i32>} : memref<128x288xf32, #tpu.memory_space<vmem>>, vector<128x32xf32>,
    %c0_61 = arith.constant 0 : index
    %c0_62 = arith.constant 0 : index
    %127 = vector.load %arg9[%c0_61, %c0_62] : memref<128x288xf32, #tpu.memory_space<vmem>>, vector<128x288xf32>
    %128 = arith.truncf %127 : vector<128x288xf32> to vector<128x288xbf16>
    %c0_63 = arith.constant 0 : index
    %c0_64 = arith.constant 0 : index
    %129 = vector.load %arg4[%c0_63, %c0_64] : memref<288x64xbf16, #tpu.memory_space<vmem>>, vector<288x64xbf16>
    %cst_65 = arith.constant dense<0.000000e+00> : vector<128x64xf32>
    %130 = tpu.matmul %128, %129, %cst_65 {dimension_numbers = #tpu.dot_dimension_numbers<[1], [0], [0], [1], [0, 0, 1, 1], [], []>} : vector<128x288xbf16>, vector<288x64xbf16>, vector<128x64xf32> -> vector<128x64xf32>
    %c0_66 = arith.constant 0 : index
    %c0_67 = arith.constant 0 : index
    %131 = vector.load %arg5[%c0_66, %c0_67] : memref<1x64xf32, #tpu.memory_space<vmem>>, vector<1x64xf32>
    %132 = vector.broadcast %131 : vector<1x64xf32> to vector<128x64xf32>
    %133 = arith.addf %130, %132 : vector<128x64xf32>
    %cst_68 = arith.constant 0.000000e+00 : f32
    %134 = vector.broadcast %cst_68 : f32 to vector<128x64xf32>
    %135 = arith.maximumf %133, %134 : vector<128x64xf32>
    %136 = vector.shape_cast %135 : vector<128x64xf32> to vector<2x8x8x64xf32>
    %137 = vector.shape_cast %136 : vector<2x8x8x64xf32> to vector<2x8x4x2x64xf32>
    %138 = vector.extract_strided_slice %137 {offsets = [0, 0, 0, 0, 0], sizes = [2, 8, 4, 1, 64], strides = [1, 1, 1, 1, 1]} : vector<2x8x4x2x64xf32> to vector<2x8x4x1x64xf32>
    %139 = vector.shape_cast %138 : vector<2x8x4x1x64xf32> to vector<2x8x4x64xf32>
    %140 = vector.extract_strided_slice %137 {offsets = [0, 0, 0, 1, 0], sizes = [2, 8, 4, 1, 64], strides = [1, 1, 1, 1, 1]} : vector<2x8x4x2x64xf32> to vector<2x8x4x1x64xf32>
    %141 = vector.shape_cast %140 : vector<2x8x4x1x64xf32> to vector<2x8x4x64xf32>
    %142 = arith.maximumf %139, %141 : vector<2x8x4x64xf32>
    %143 = vector.shape_cast %142 : vector<2x8x4x64xf32> to vector<2x4x2x4x64xf32>
    %144 = vector.extract_strided_slice %143 {offsets = [0, 0, 0, 0, 0], sizes = [2, 4, 1, 4, 64], strides = [1, 1, 1, 1, 1]} : vector<2x4x2x4x64xf32> to vector<2x4x1x4x64xf32>
    %145 = vector.shape_cast %144 : vector<2x4x1x4x64xf32> to vector<2x4x4x64xf32>
    %146 = vector.extract_strided_slice %143 {offsets = [0, 0, 1, 0, 0], sizes = [2, 4, 1, 4, 64], strides = [1, 1, 1, 1, 1]} : vector<2x4x2x4x64xf32> to vector<2x4x1x4x64xf32>
    %147 = vector.shape_cast %146 : vector<2x4x1x4x64xf32> to vector<2x4x4x64xf32>
    %148 = arith.maximumf %145, %147 : vector<2x4x4x64xf32>
    %149 = arith.truncf %148 : vector<2x4x4x64xf32> to vector<2x4x4x64xbf16>
    %c0_69 = arith.constant 0 : index
    %c0_70 = arith.constant 0 : index
    %c0_71 = arith.constant 0 : index
    %c0_72 = arith.constant 0 : index
    %150 = vector.load %arg6[%c0_69, %c0_70, %c0_71, %c0_72] : memref<2x4x4x64xbf16, #tpu.memory_space<vmem>>, vector<2x4x4x64xbf16>
    tpu.vector_store %arg6[%c0_69, %c0_70, %c0_71, %c0_72], %149 {strides = array<i32>} : memref<2x4x4x64xbf16, #tpu.memory_space<vmem>>, vector<2x4x4x64xbf16>,
    return
  }
  func.func @transform_0(%arg0: i32) -> (i32, i32, i32, i32) {
    %c0_i32 = arith.constant 0 : i32
    %c0_i32_0 = arith.constant 0 : i32
    %c0_i32_1 = arith.constant 0 : i32
    %c0_i32_2 = arith.constant 0 : i32
    %c0_i32_3 = arith.constant 0 : i32
    return %c0_i32, %c0_i32_0, %c0_i32_1, %c0_i32_2 : i32, i32, i32, i32
  }
  func.func @transform_1(%arg0: i32) -> (i32, i32, i32) {
    %c0_i32 = arith.constant 0 : i32
    %c0_i32_0 = arith.constant 0 : i32
    %c0_i32_1 = arith.constant 0 : i32
    %c0_i32_2 = arith.constant 0 : i32
    return %c0_i32, %c0_i32_0, %c0_i32_1 : i32, i32, i32
  }
  func.func @transform_2(%arg0: i32) -> (i32, i32) {
    %c0_i32 = arith.constant 0 : i32
    %c0_i32_0 = arith.constant 0 : i32
    %c0_i32_1 = arith.constant 0 : i32
    return %c0_i32, %c0_i32_0 : i32, i32
  }
  func.func @transform_3(%arg0: i32) -> (i32, i32) {
    %c0_i32 = arith.constant 0 : i32
    %c0_i32_0 = arith.constant 0 : i32
    %c0_i32_1 = arith.constant 0 : i32
    return %c0_i32, %c0_i32_0 : i32, i32
  }
  func.func @transform_4(%arg0: i32) -> (i32, i32) {
    %c0_i32 = arith.constant 0 : i32
    %c0_i32_0 = arith.constant 0 : i32
    %c0_i32_1 = arith.constant 0 : i32
    return %c0_i32, %c0_i32_0 : i32, i32
  }
  func.func @transform_5(%arg0: i32) -> (i32, i32, i32, i32) {
    %c0_i32 = arith.constant 0 : i32
    %c0_i32_0 = arith.constant 0 : i32
    %c0_i32_1 = arith.constant 0 : i32
    %c0_i32_2 = arith.constant 0 : i32
    %c0_i32_3 = arith.constant 0 : i32
    return %c0_i32, %c0_i32_0, %c0_i32_1, %c0_i32_2 : i32, i32, i32, i32
  }
}

module attributes {stable_mosaic.version = 11 : i64} {
  func.func @mlp_kernel(%arg0: i32, %arg1: memref<2x1024xbf16, #tpu.memory_space<vmem>>, %arg2: memref<1024x128xbf16, #tpu.memory_space<vmem>>, %arg3: memref<1x128xf32, #tpu.memory_space<vmem>>, %arg4: memref<128x128xbf16, #tpu.memory_space<vmem>>, %arg5: memref<1x128xf32, #tpu.memory_space<vmem>>, %arg6: memref<2x128xf32, #tpu.memory_space<vmem>>, %arg7: memref<2x128xf32, #tpu.memory_space<vmem>>) attributes {dimension_semantics = [#tpu.dimension_semantics<arbitrary>], iteration_bounds = array<i64: 1>, scalar_prefetch = 0 : i64, scratch_operands = 1 : i64, tpu.core_type = #tpu.core_type<tc>, window_params = [{transform_indices = @transform_0, window_bounds = array<i64: 2, 1024>}, {transform_indices = @transform_1, window_bounds = array<i64: 1024, 128>}, {pipeline_mode = #tpu.pipeline_mode<synchronous>, transform_indices = @transform_2, window_bounds = array<i64: 1, 128>}, {pipeline_mode = #tpu.pipeline_mode<synchronous>, transform_indices = @transform_3, window_bounds = array<i64: 128, 128>}, {pipeline_mode = #tpu.pipeline_mode<synchronous>, transform_indices = @transform_4, window_bounds = array<i64: 1, 128>}, {pipeline_mode = #tpu.pipeline_mode<synchronous>, transform_indices = @transform_5, window_bounds = array<i64: 2, 128>}]} {
    %c0_i32 = arith.constant 0 : i32
    %0 = arith.cmpi eq, %arg0, %c0_i32 : i32
    %1 = arith.extui %0 : i1 to i32
    %c0_i32_0 = arith.constant 0 : i32
    %2 = arith.cmpi ne, %1, %c0_i32_0 : i32
    scf.if %2 {
      %cst_10 = arith.constant 0.000000e+00 : f32
      %12 = vector.broadcast %cst_10 : f32 to vector<2x128xf32>
      %c0_11 = arith.constant 0 : index
      %c0_12 = arith.constant 0 : index
      %13 = vector.load %arg7[%c0_11, %c0_12] : memref<2x128xf32, #tpu.memory_space<vmem>>, vector<2x128xf32>
      tpu.vector_store %arg7[%c0_11, %c0_12], %12 {strides = array<i32>} : memref<2x128xf32, #tpu.memory_space<vmem>>, vector<2x128xf32>,
    } else {
    }
    %c0 = arith.constant 0 : index
    %c0_1 = arith.constant 0 : index
    %3 = vector.load %arg7[%c0, %c0_1] : memref<2x128xf32, #tpu.memory_space<vmem>>, vector<2x128xf32>
    %c0_2 = arith.constant 0 : index
    %c0_3 = arith.constant 0 : index
    %4 = vector.load %arg1[%c0_2, %c0_3] : memref<2x1024xbf16, #tpu.memory_space<vmem>>, vector<2x1024xbf16>
    %c0_4 = arith.constant 0 : index
    %c0_5 = arith.constant 0 : index
    %5 = vector.load %arg2[%c0_4, %c0_5] : memref<1024x128xbf16, #tpu.memory_space<vmem>>, vector<1024x128xbf16>
    %cst = arith.constant dense<0.000000e+00> : vector<2x128xf32>
    %6 = tpu.matmul %4, %5, %cst {dimension_numbers = #tpu.dot_dimension_numbers<[1], [0], [0], [1], [0, 0, 1, 1], [], []>} : vector<2x1024xbf16>, vector<1024x128xbf16>, vector<2x128xf32> -> vector<2x128xf32>
    %7 = arith.addf %3, %6 : vector<2x128xf32>
    %c0_6 = arith.constant 0 : index
    %c0_7 = arith.constant 0 : index
    %8 = vector.load %arg7[%c0_6, %c0_7] : memref<2x128xf32, #tpu.memory_space<vmem>>, vector<2x128xf32>
    tpu.vector_store %arg7[%c0_6, %c0_7], %7 {strides = array<i32>} : memref<2x128xf32, #tpu.memory_space<vmem>>, vector<2x128xf32>,
    %c0_i32_8 = arith.constant 0 : i32
    %9 = arith.cmpi eq, %arg0, %c0_i32_8 : i32
    %10 = arith.extui %9 : i1 to i32
    %c0_i32_9 = arith.constant 0 : i32
    %11 = arith.cmpi ne, %10, %c0_i32_9 : i32
    scf.if %11 {
      %c0_10 = arith.constant 0 : index
      %c0_11 = arith.constant 0 : index
      %12 = vector.load %arg7[%c0_10, %c0_11] : memref<2x128xf32, #tpu.memory_space<vmem>>, vector<2x128xf32>
      %c0_12 = arith.constant 0 : index
      %c0_13 = arith.constant 0 : index
      %13 = vector.load %arg3[%c0_12, %c0_13] : memref<1x128xf32, #tpu.memory_space<vmem>>, vector<1x128xf32>
      %14 = vector.broadcast %13 : vector<1x128xf32> to vector<2x128xf32>
      %15 = arith.addf %12, %14 : vector<2x128xf32>
      %cst_14 = arith.constant 0.000000e+00 : f32
      %16 = vector.broadcast %cst_14 : f32 to vector<2x128xf32>
      %17 = arith.maximumf %15, %16 : vector<2x128xf32>
      %18 = arith.truncf %17 : vector<2x128xf32> to vector<2x128xbf16>
      %c0_15 = arith.constant 0 : index
      %c0_16 = arith.constant 0 : index
      %19 = vector.load %arg4[%c0_15, %c0_16] : memref<128x128xbf16, #tpu.memory_space<vmem>>, vector<128x128xbf16>
      %cst_17 = arith.constant dense<0.000000e+00> : vector<2x128xf32>
      %20 = tpu.matmul %18, %19, %cst_17 {dimension_numbers = #tpu.dot_dimension_numbers<[1], [0], [0], [1], [0, 0, 1, 1], [], []>} : vector<2x128xbf16>, vector<128x128xbf16>, vector<2x128xf32> -> vector<2x128xf32>
      %c0_18 = arith.constant 0 : index
      %c0_19 = arith.constant 0 : index
      %21 = vector.load %arg5[%c0_18, %c0_19] : memref<1x128xf32, #tpu.memory_space<vmem>>, vector<1x128xf32>
      %22 = vector.broadcast %21 : vector<1x128xf32> to vector<2x128xf32>
      %23 = arith.addf %20, %22 : vector<2x128xf32>
      %c0_20 = arith.constant 0 : index
      %c0_21 = arith.constant 0 : index
      %24 = vector.load %arg6[%c0_20, %c0_21] : memref<2x128xf32, #tpu.memory_space<vmem>>, vector<2x128xf32>
      tpu.vector_store %arg6[%c0_20, %c0_21], %23 {strides = array<i32>} : memref<2x128xf32, #tpu.memory_space<vmem>>, vector<2x128xf32>,
    } else {
    }
    return
  }
  func.func @transform_0(%arg0: i32) -> (i32, i32) {
    %c0_i32 = arith.constant 0 : i32
    %c0_i32_0 = arith.constant 0 : i32
    return %c0_i32, %arg0 : i32, i32
  }
  func.func @transform_1(%arg0: i32) -> (i32, i32) {
    %c0_i32 = arith.constant 0 : i32
    %c0_i32_0 = arith.constant 0 : i32
    return %arg0, %c0_i32 : i32, i32
  }
  func.func @transform_2(%arg0: i32) -> (i32, i32) {
    %c0_i32 = arith.constant 0 : i32
    %c0_i32_0 = arith.constant 0 : i32
    %c0_i32_1 = arith.constant 0 : i32
    return %c0_i32, %c0_i32_0 : i32, i32
  }
  func.func @transform_3(%arg0: i32) -> (i32, i32) {
    %c0_i32 = arith.constant 0 : i32
    %c0_i32_0 = arith.constant 0 : i32
    %c0_i32_1 = arith.constant 0 : i32
    return %c0_i32, %c0_i32_0 : i32, i32
  }
  func.func @transform_4(%arg0: i32) -> (i32, i32) {
    %c0_i32 = arith.constant 0 : i32
    %c0_i32_0 = arith.constant 0 : i32
    %c0_i32_1 = arith.constant 0 : i32
    return %c0_i32, %c0_i32_0 : i32, i32
  }
  func.func @transform_5(%arg0: i32) -> (i32, i32) {
    %c0_i32 = arith.constant 0 : i32
    %c0_i32_0 = arith.constant 0 : i32
    %c0_i32_1 = arith.constant 0 : i32
    return %c0_i32, %c0_i32_0 : i32, i32
  }
}

</mosaic_0001>

<bundles_post_ra>
// kernel: emotion_forward.3
= control target key start
LH: loop header
LB: loop body
LE: loop exit
PB: predicated region body
PF: predicated region fallthrough
CT: control target
= control target key end

     0   :  { %v162_v28 = vlaneseq  ;;  %v1193_v36 = vmov 1966171168   ;;  %s1477_s0 = inlined_call_operand.vmem [shape: bf16[2,1024], index: 0, kind: input, shape index: {}]   ;;  %s1478_s1 = inlined_call_operand.vmem [shape: bf16[1024,128], index: 1, kind: input, shape index: {}]   ;;  %s1479_s2 = inlined_call_operand.vmem [shape: f32[1,128], index: 2, kind: input, shape index: {}]   ;;  %s1480_s3 = inlined_call_operand.vmem [shape: bf16[128,128], index: 3, kind: input, shape index: {}]   ;;  %s1481_s4 = inlined_call_operand.vmem [shape: f32[1,128], index: 4, kind: input, shape index: {}]   ;;  %s1482_s5 = inlined_call_operand.hbm [shape: f32[2,128], index: 5, kind: output, shape index: {}]  }
   0x1   :  { %v1096_v0 = vld [vmem:[%s1478_s1 + $0x40] sm:$0xff]   ;;  %v1100_v4 = vld [vmem:[%s1478_s1 + $0x48] sm:$0xff]   ;;  %v1104_v8 = vld [vmem:[%s1478_s1 + $0x50] sm:$0xff]   ;;  %v160_v37 = vunpack.c.l.s4 %v1193_v36 }
   0x2   :  { %v1097_v1 = vld [vmem:[%s1478_s1 + $0xc0] sm:$0xff]   ;;  %975 = vmatprep.subr.bf16.mxu0 %v1096_v0  ;;  %v1101_v5 = vld [vmem:[%s1478_s1 + $0xc8] sm:$0xff]   ;;  %v1105_v9 = vld [vmem:[%s1478_s1 + $0xd0] sm:$0xff]   ;;  %v163_v33 = vshrl.u32 %v162_v28, 7 }
   0x3   :  { %v1098_v2 = vld [vmem:[%s1478_s1] sm:$0xff]   ;;  %997 = vmatprep.subr.bf16.mxu1 %v1097_v1  ;;  %v1102_v6 = vld [vmem:[%s1478_s1 + $0x8] sm:$0xff]   ;;  %v1106_v10 = vld [vmem:[%s1478_s1 + $0x10] sm:$0xff]   ;;  %v161_v40 = vunpack.c.0.s8 %v160_v37 }
   0x4   :  { %v1099_v3 = vld [vmem:[%s1478_s1 + $0x80] sm:$0xff]   ;;  %976 = vmatpush3.bf16.msra.mxu0 %v1098_v2  ;;  %v1103_v7 = vld [vmem:[%s1478_s1 + $0x88] sm:$0xff]   ;;  %v1107_v11 = vld [vmem:[%s1478_s1 + $0x90] sm:$0xff]  }
   0x5   :  { %998 = vmatpush3.bf16.msra.mxu1 %v1099_v3  ;;  %977 = vmatprep.subr.bf16.mxu0 %v1100_v4  ;;  %v1108_v12 = vld [vmem:[%s1478_s1 + $0x58] sm:$0xff]   ;;  %v1112_v16 = vld [vmem:[%s1478_s1 + $0x60] sm:$0xff]   ;;  %v1116_v20 = vld [vmem:[%s1478_s1 + $0x68] sm:$0xff]   ;;  %v1332_v41 = vsub.s32 %v161_v40, %v163_v33 }
   0x6   :  { %999 = vmatprep.subr.bf16.mxu1 %v1101_v5  ;;  %v1109_v13 = vld [vmem:[%s1478_s1 + $0xd8] sm:$0xff]   ;;  %v1113_v17 = vld [vmem:[%s1478_s1 + $0xe0] sm:$0xff]   ;;  %v1117_v21 = vld [vmem:[%s1478_s1 + $0xe8] sm:$0xff]  }
   0x7   :  { %v1110_v14 = vld [vmem:[%s1478_s1 + $0x18] sm:$0xff]   ;;  %v1114_v18 = vld [vmem:[%s1478_s1 + $0x20] sm:$0xff]   ;;  %v1118_v22 = vld [vmem:[%s1478_s1 + $0x28] sm:$0xff]  }
   0x8   :  { %978 = vmatpush3.bf16.msra.mxu0 %v1102_v6  ;;  %v1111_v15 = vld [vmem:[%s1478_s1 + $0x98] sm:$0xff]   ;;  %v1115_v19 = vld [vmem:[%s1478_s1 + $0xa0] sm:$0xff]   ;;  %v1119_v23 = vld [vmem:[%s1478_s1 + $0xa8] sm:$0xff]  }
   0x9   :  { %1000 = vmatpush3.bf16.msra.mxu1 %v1103_v7  ;;  %979 = vmatprep.subr.bf16.mxu0 %v1104_v8  ;;  %v1120_v24 = vld [vmem:[%s1478_s1 + $0x70] sm:$0xff]   ;;  %v1124_v29 = vld [vmem:[%s1478_s1 + $0x78] sm:$0xff]   ;;  %v28_v34 = vld [vmem:[%s1477_s0] sm:$0xff] }
   0xa   :  { %1001 = vmatprep.subr.bf16.mxu1 %v1105_v9  ;;  %v1121_v25 = vld [vmem:[%s1478_s1 + $0xf0] sm:$0xff]   ;;  %v1125_v30 = vld [vmem:[%s1478_s1 + $0xf8] sm:$0xff]   ;;  %v1129_v35 = vld [vmem:[%s1478_s1 + $0x140] sm:$0xff]   ;;  %v158_v39 = vcombine.high %v28_v34, %v28_v34  ;;  %v165_v42 = vrot.slane %v28_v34, %v1332_v41 }
   0xb   :  { %v1122_v26 = vld [vmem:[%s1478_s1 + $0x30] sm:$0xff]   ;;  %v1126_v31 = vld [vmem:[%s1478_s1 + $0x38] sm:$0xff]   ;;  %v1130_v38 = vld [vmem:[%s1478_s1 + $0x1c0] sm:$0xff]  }
   0xc   :  { %980 = vmatpush3.bf16.msra.mxu0 %v1106_v10  ;;  %v1123_v27 = vld [vmem:[%s1478_s1 + $0xb0] sm:$0xff]   ;;  %v1127_v32 = vld [vmem:[%s1478_s1 + $0xb8] sm:$0xff]   ;;  %v1336_v43 = vrot.slane %v158_v39, %v1332_v41  ;;  %v173_v44 = vcombine.high %v165_v42, %v165_v42  ;;  %v181_v45 = vrot.slane %v165_v42, %v1332_v41  ;;  %v1131_v47 = vld [vmem:[%s1478_s1 + $0x100] sm:$0xff]  }
   0xd   :  { %1002 = vmatpush3.bf16.msra.mxu1 %v1107_v11  ;;  %981 = vmatprep.subr.bf16.mxu0 %v1108_v12  ;;  %v1132_v49 = vld [vmem:[%s1478_s1 + $0x180] sm:$0xff]   ;;  %v1133_v52 = vld [vmem:[%s1478_s1 + $0x148] sm:$0xff]   ;;  %v1137_v58 = vld [vmem:[%s1478_s1 + $0x150] sm:$0xff]  }
   0xe   :  { %1003 = vmatprep.subr.bf16.mxu1 %v1109_v13  ;;  %v174_v46 = vcombine.high %v1336_v43, %v1336_v43  ;;  %v195_v48 = vrot.slane %v173_v44, %v1332_v41  ;;  %v203_v51 = vcombine.high %v181_v45, %v181_v45  ;;  %v1134_v54 = vld [vmem:[%s1478_s1 + $0x1c8] sm:$0xff]   ;;  %v1138_v59 = vld [vmem:[%s1478_s1 + $0x1d0] sm:$0xff]   ;;  %v1141_v62 = vld [vmem:[%s1478_s1 + $0x158] sm:$0xff]  }
   0xf   :  { %v1135_v55 = vld [vmem:[%s1478_s1 + $0x108] sm:$0xff]   ;;  %v1139_v60 = vld [vmem:[%s1478_s1 + $0x110] sm:$0xff]   ;;  %v1142_v63 = vld [vmem:[%s1478_s1 + $0x1d8] sm:$0xff]  }
  0x10   :  { %982 = vmatpush3.bf16.msra.mxu0 %v1110_v14  ;;  %v202_v50 = vrot.slane %v174_v46, %v1332_v41  ;;  %631 = vmatprep.mubr.bf16.mxu0 %v195_v48  ;;  %v205_v53 = vcombine.high %v195_v48, %v195_v48  ;;  %v1136_v57 = vld [vmem:[%s1478_s1 + $0x188] sm:$0xff]   ;;  %v1140_v61 = vld [vmem:[%s1478_s1 + $0x190] sm:$0xff]   ;;  %v1143_v0 = vld [vmem:[%s1478_s1 + $0x118] sm:$0xff]  }
  0x11   :  { %1004 = vmatpush3.bf16.msra.mxu1 %v1111_v15  ;;  %983 = vmatprep.subr.bf16.mxu0 %v1112_v16  ;;  %v1144_v1 = vld [vmem:[%s1478_s1 + $0x198] sm:$0xff]   ;;  %v1145_v2 = vld [vmem:[%s1478_s1 + $0x160] sm:$0xff]   ;;  %v1149_v6 = vld [vmem:[%s1478_s1 + $0x168] sm:$0xff]  }
  0x12   :  { %1005 = vmatprep.subr.bf16.mxu1 %v1113_v17  ;;  %v206_v56 = vcombine.high %v202_v50, %v202_v50  ;;  %671 = vmatprep.mubr.bf16.mxu1 %v205_v53  ;;  %v1146_v3 = vld [vmem:[%s1478_s1 + $0x1e0] sm:$0xff]   ;;  %v1150_v7 = vld [vmem:[%s1478_s1 + $0x1e8] sm:$0xff]   ;;  %v1153_v10 = vld [vmem:[%s1478_s1 + $0x170] sm:$0xff]  }
  0x13   :  { %v1147_v4 = vld [vmem:[%s1478_s1 + $0x120] sm:$0xff]   ;;  %v1151_v8 = vld [vmem:[%s1478_s1 + $0x128] sm:$0xff]   ;;  %v1154_v11 = vld [vmem:[%s1478_s1 + $0x1f0] sm:$0xff]  }
  0x14   :  { %984 = vmatpush3.bf16.msra.mxu0 %v1114_v18  ;;  %v1148_v5 = vld [vmem:[%s1478_s1 + $0x1a0] sm:$0xff]   ;;  %v1152_v9 = vld [vmem:[%s1478_s1 + $0x1a8] sm:$0xff]   ;;  %v1155_v12 = vld [vmem:[%s1478_s1 + $0x130] sm:$0xff]  }
  0x15   :  { %1006 = vmatpush3.bf16.msra.mxu1 %v1115_v19  ;;  %985 = vmatprep.subr.bf16.mxu0 %v1116_v20  ;;  %v1157_v13 = vld [vmem:[%s1478_s1 + $0x178] sm:$0xff]   ;;  %v1156_v14 = vld [vmem:[%s1478_s1 + $0x1b0] sm:$0xff]  }
  0x16   :  { %1007 = vmatprep.subr.bf16.mxu1 %v1117_v21 }
  0x18   :  { %986 = vmatpush3.bf16.msra.mxu0 %v1118_v22 }
  0x19   :  { %1008 = vmatpush3.bf16.msra.mxu1 %v1119_v23  ;;  %987 = vmatprep.subr.bf16.mxu0 %v1120_v24 }
  0x1a   :  { %1009 = vmatprep.subr.bf16.mxu1 %v1121_v25 }
  0x1c   :  { %988 = vmatpush3.bf16.msra.mxu0 %v1122_v26 }
  0x1d   :  { %1010 = vmatpush3.bf16.msra.mxu1 %v1123_v27  ;;  %989 = vmatprep.subr.bf16.mxu0 %v1124_v29 }
  0x1e   :  { %1011 = vmatprep.subr.bf16.mxu1 %v1125_v30 }
  0x20   :  { %990 = vmatpush3.bf16.msra.mxu0 %v1126_v31 }
  0x21   :  { %1012 = vmatpush3.bf16.msra.mxu1 %v1127_v32  ;;  %1019 = vmatprep.subr.bf16.mxu0 %v1129_v35 }
  0x22   :  { %1041 = vmatprep.subr.bf16.mxu1 %v1130_v38 }
  0x23   :  { %632 = vmatmul.mubr.bf16.vlgmr.msra.gmra.mrb[0].mxu0 %v181_v45 }
  0x24   :  { %1020 = vmatpush3.bf16.msra.mxu0 %v1131_v47  ;;  %672 = vmatmul.mubr.bf16.vlgmr.msra.gmra.mrb[0].mxu1 %v203_v51 }
  0x25   :  { %1021 = vmatprep.subr.bf16.mxu0 %v1133_v52  ;;  %1042 = vmatpush3.bf16.msra.mxu1 %v1132_v49 }
  0x26   :  { %711 = vmatprep.mubr.bf16.mxu0 %v202_v50  ;;  %1043 = vmatprep.subr.bf16.mxu1 %v1134_v54 }
  0x27   :  { %751 = vmatprep.mubr.bf16.mxu1 %v206_v56 }
  0x28   :  { %1022 = vmatpush3.bf16.msra.mxu0 %v1135_v55 }
  0x29   :  { %1023 = vmatprep.subr.bf16.mxu0 %v1137_v58  ;;  %1044 = vmatpush3.bf16.msra.mxu1 %v1136_v57 }
  0x2a   :  { %1045 = vmatprep.subr.bf16.mxu1 %v1138_v59 }
  0x2c   :  { %1024 = vmatpush3.bf16.msra.mxu0 %v1139_v60 }
  0x2d   :  { %1025 = vmatprep.subr.bf16.mxu0 %v1141_v62  ;;  %1046 = vmatpush3.bf16.msra.mxu1 %v1140_v61 }
  0x2e   :  { %1047 = vmatprep.subr.bf16.mxu1 %v1142_v63 }
  0x30   :  { %1026 = vmatpush3.bf16.msra.mxu0 %v1143_v0 }
  0x31   :  { %1027 = vmatprep.subr.bf16.mxu0 %v1145_v2  ;;  %1048 = vmatpush3.bf16.msra.mxu1 %v1144_v1 }
  0x32   :  { %1049 = vmatprep.subr.bf16.mxu1 %v1146_v3 }
  0x34   :  { %1028 = vmatpush3.bf16.msra.mxu0 %v1147_v4 }
  0x35   :  { %1029 = vmatprep.subr.bf16.mxu0 %v1149_v6  ;;  %1050 = vmatpush3.bf16.msra.mxu1 %v1148_v5 }
  0x36   :  { %1051 = vmatprep.subr.bf16.mxu1 %v1150_v7 }
  0x38   :  { %1030 = vmatpush3.bf16.msra.mxu0 %v1151_v8 }
  0x39   :  { %1031 = vmatprep.subr.bf16.mxu0 %v1153_v10  ;;  %1052 = vmatpush3.bf16.msra.mxu1 %v1152_v9 }
  0x3a   :  { %10 = vsyncpa [#allocation4], 0  ;;  %1053 = vmatprep.subr.bf16.mxu1 %v1154_v11  ;;  %v1158_v15 = vld [vmem:[%s1478_s1 + $0x1f8] sm:$0xff]   ;;  %v188_v17 = vrot.slane %v1336_v43, %v1332_v41  ;;  %v1161_v20 = vld [vmem:[%s1480_s3] sm:$0xff]   ;;  %v1194_v21 = vmov 0.0   ;;  %vm1195_vm0 = vmmov 0  }
  0x3b   :  { %v1159_v16 = vld [vmem:[%s1478_s1 + $0x138] sm:$0xff]   ;;  %26 = vst [vmem:[#allocation2] sm:$0x3] %v1194_v21  ;;  %v1162_v22 = vld [vmem:[%s1480_s3 + $0x8] sm:$0xff]   ;;  %v1163_v23 = vld [vmem:[%s1480_s3 + $0x10] sm:$0xff]   ;;  %s1196_s0 = smov [#allocation3]  }
  0x3c   :  { %1032 = vmatpush3.bf16.msra.mxu0 %v1155_v12  ;;  %v1160_v18 = vld [vmem:[%s1478_s1 + $0x1b8] sm:$0xff]   ;;  %v204_v19 = vcombine.high %v188_v17, %v188_v17  ;;  %v1165_v25 = vld [vmem:[%s1480_s3 + $0x20] sm:$0xff]   ;;  %v1166_v26 = vld [vmem:[%s1480_s3 + $0x28] sm:$0xff]   ;;  %s893_s13 = sshll.u32 %s1196_s0, 4  ;;  %s894_s13 = int_to_ptr.vmem [resolvable:$true] %s893_s13 }
  0x3d   :  { %1033 = vmatprep.subr.bf16.mxu0 %v1157_v13  ;;  %1054 = vmatpush3.bf16.msra.mxu1 %v1156_v14  ;;  %v1164_v24 = vld [vmem:[%s1480_s3 + $0x18] sm:$0xff]   ;;  %v1167_v27 = vld [vmem:[%s1480_s3 + $0x30] sm:$0xff]   ;;  %v965_v54 = vld [vmem:[%s1479_s2] ss:$0 sm:$0xff]  ;;  %s1169_s14 = scalar_lea.vmem %s894_s13, 32  ;;  %p1174_p1 = scmp.lt.s32.totalorder %s894_s13, %s894_s13 }
  0x3e   :  { %1055 = vmatprep.subr.bf16.mxu1 %v1158_v15  ;;  %v1168_v28 = vld [vmem:[%s1480_s3 + $0x38] sm:$0xff]   ;;  %v966_v59 = vld [vmem:[%s1481_s4] ss:$0 sm:$0xff]  ;;  %p1170_p0 = scmp.ne.s32.totalorder %s894_s13, %s1169_s14  ;;  %p1175_p2 = scmp.lt.s32.totalorder %s1169_s14, %s1169_s14 }
  0x40   :  { %1034 = vmatpush3.bf16.msra.mxu0 %v1159_v16  ;;  %p1176_p3 = por %p1175_p2, %p1174_p1 }
  0x41   :  { %1056 = vmatpush3.bf16.msra.mxu1 %v1160_v18  ;;  %1072 = vmatprep.subr.bf16.mxu0 %v1194_v21 }
  0x42   :  { %v27_v50 = vld [vmem:[#allocation2] sm:$0x3]  ;;  %p1177_p4 = pnand %p1176_p3, %p1170_p0 }
  0x43   :  { %712 = vmatmul.mubr.bf16.vlgmr.msra.gmra.mrb[4].mxu0 %v188_v17 }
  0x44   :  { %752 = vmatmul.mubr.bf16.vlgmr.msra.gmra.mrb[4].mxu1 %v204_v19  ;;  %1073 = vmatpush3.bf16.msra.mxu0 %v1161_v20 }
  0x45   :  { %1074 = vmatprep.subr.bf16.mxu0 %v1194_v21  ;;  %1088 = vmatprep.mubr.msk.bf16.mxu0 %vm1195_vm0, %v1194_v21 }
  0x48   :  { %1075 = vmatpush3.bf16.msra.mxu0 %v1162_v22 }
  0x49   :  { %1076 = vmatprep.subr.bf16.mxu0 %v1194_v21 }
  0x4c   :  { %1077 = vmatpush3.bf16.msra.mxu0 %v1163_v23 }
  0x4d   :  { %1078 = vmatprep.subr.bf16.mxu0 %v1194_v21 }
  0x50   :  { %1079 = vmatpush3.bf16.msra.mxu0 %v1164_v24 }
  0x51   :  { %1080 = vmatprep.subr.bf16.mxu0 %v1194_v21 }
  0x54   :  { %1081 = vmatpush3.bf16.msra.mxu0 %v1165_v25 }
  0x55   :  { %1082 = vmatprep.subr.bf16.mxu0 %v1194_v21 }
  0x58   :  { %1083 = vmatpush3.bf16.msra.mxu0 %v1166_v26 }
  0x59   :  { %1084 = vmatprep.subr.bf16.mxu0 %v1194_v21 }
  0x5c   :  { %1085 = vmatpush3.bf16.msra.mxu0 %v1167_v27 }
  0x5d   :  { %1086 = vmatprep.subr.bf16.mxu0 %v1194_v21 }
  0x60   :  { %1087 = vmatpush3.bf16.msra.mxu0 %v1168_v28 }
  0xf6   :  { %v991_v29 = vpop.f32.mrb[0].mxu0 }
  0xf7   :  { %v992_v30 = vpop.f32.mrb[1].mxu0  ;;  %v1013_v31 = vpop.f32.mrb[0].mxu1 }
  0xf8   :  { %v993_v32 = vadd.f32 %v992_v30, %v991_v29  ;;  %v994_v33 = vpop.f32.mrb[2].mxu0  ;;  %v1014_v34 = vpop.f32.mrb[1].mxu1 }
  0xf9   :  { %v995_v35 = vpop.f32.mrb[3].mxu0  ;;  %v1015_v36 = vadd.f32 %v1014_v34, %v1013_v31  ;;  %v1016_v37 = vpop.f32.mrb[2].mxu1 }
  0xfa   :  { %v1017_v38 = vpop.f32.mrb[3].mxu1 }
  0xfb   :  { %v674_v39 = vadd.f32 %v1015_v36, %v993_v32 }
 0x116   :  { %v1035_v40 = vpop.f32.mrb[4].mxu0 }
 0x117   :  { %v1036_v41 = vpop.f32.mrb[5].mxu0  ;;  %v1057_v42 = vpop.f32.mrb[4].mxu1 }
 0x118   :  { %v1037_v43 = vadd.f32 %v1036_v41, %v1035_v40  ;;  %v1038_v44 = vpop.f32.mrb[6].mxu0  ;;  %v1058_v45 = vpop.f32.mrb[5].mxu1 }
 0x119   :  { %v1039_v46 = vpop.f32.mrb[7].mxu0  ;;  %v1059_v48 = vadd.f32 %v1058_v45, %v1057_v42  ;;  %v1060_v49 = vpop.f32.mrb[6].mxu1 }
 0x11a   :  { %v714_v47 = vadd.f32 %v1037_v43, %v674_v39  ;;  %v1061_v51 = vpop.f32.mrb[7].mxu1 }
 0x11c   :  { %v754_v52 = vadd.f32 %v1059_v48, %v714_v47 }
 0x11e   :  { %v759_v53 = vadd.f32 %v754_v52, %v27_v50 }
 0x120   :  { %760 = vst [vmem:[#allocation2] sm:$0x3] %v759_v53 }
 0x127   :  { %v764_v55 = vld [vmem:[#allocation2] sm:$0x3] }
 0x128   :  { %v772_v56 = vadd.f32 %v965_v54, %v764_v55 }
 0x12a   :  { %v773_v57 = vmax.f32 %v772_v56, 0.0 }
 0x12c   :  { %v774_v58 = vpack.c.bf16 %v773_v57, %v773_v57 }
 0x12e   :  { %1089 = vmatmul.mubr.bf16.vlgmr.msra.gmra.mrb[8].mxu0 %v774_v58 }
 0x201   :  { %v880_v60 = vpop.f32.mrb[8].mxu0 }
 0x202   :  { %v881_v61 = vadd.f32 %v966_v59, %v880_v60  ;;  %v1090_v62 = vpop.f32.mrb[9].mxu0 }
 0x203   :  { %v883_v63 = vpop.f32.mrb[10].mxu0 }
 0x204   :  { %886 = vst [vmem:[#allocation3] sm:$0x3] %v881_v61  ;;  %v1091_v0 = vpop.f32.mrb[11].mxu0 }
 0x205   :  { %1180 = shalt.err (!%p1177_p4)
}
 0x206   :  { %s1181_s4 = scalar_lea.hbm %s1482_s5, 32 }
 0x207   :  { %p1182_p5 = scmp.ne.s32.totalorder %s1482_s5, %s1181_s4  ;;  %p1185_p6 = scmp.lt.u32.totalorder %s1181_s4, %s1482_s5 }
 0x209   :  { %p1187_p7 = pnand %p1185_p6, %p1182_p5 }
 0x20b   :  { %1190 = shalt.err (!%p1187_p7)
}
 0x20c   :  { %896 = dma.vmem_to_hbm [thread:$0]  %s894_s13, 32, %s1482_s5, [#allocation4]  }
 0x20d   :  { %1191 = dma.done.wait [#allocation4], 32  }
 0x20e   :  { %1192 = vsyncadd [#allocation4], 4294967264 }
 0x20f   :  { %900 = vsyncpa [#allocation4], 1 }

// kernel: emotion_forward.2
= control target key start
LH: loop header
LB: loop body
LE: loop exit
PB: predicated region body
PF: predicated region fallthrough
CT: control target
= control target key end

     0   :  { %vm21_vm0 = vcmask 7168   ;;  %vm24_vm1 = vcmask 1024   ;;  %v10779_v0 = vmov 0   ;;  %v17607_v1 = vmov 0.0   ;;  %s10783_s14 = smov 64   ;;  %s10784_s19 = smov 96   ;;  %s17601_s0 = inlined_call_operand.vmem [shape: f32[2,16,16,1], index: 0, kind: input, shape index: {}]   ;;  %s17602_s1 = inlined_call_operand.vmem [shape: f32[9,1,32], index: 1, kind: input, shape index: {}]   ;;  %s17603_s2 = inlined_call_operand.vmem [shape: f32[1,32], index: 2, kind: input, shape index: {}]   ;;  %s17604_s3 = inlined_call_operand.vmem [shape: bf16[288,64], index: 3, kind: input, shape index: {}]   ;;  %s17605_s4 = inlined_call_operand.vmem [shape: f32[1,64], index: 4, kind: input, shape index: {}]   ;;  %s17606_s5 = inlined_call_operand.vmem [shape: bf16[2,4,4,64], index: 5, kind: output, shape index: {}]  }
   0x1   :  { %10696 = vset.pattern.permute.xlu0 %v10779_v0  ;;  %10697 = vset.pattern.permute.xlu1 %v10779_v0  ;;  %22 = vst.msk [vmem:[#allocation2] sm:$0xff] %vm21_vm0, %v17607_v1  ;;  %23 = vst.msk [vmem:[#allocation2 + $0x8] sm:$0xff] %vm21_vm0, %v17607_v1  ;;  %v131_v2 = vld [vmem:[%s17601_s0] sm:$0xff]  ;;  %v132_v3 = vld [vmem:[%s17601_s0 + $0x8] sm:$0xff]  ;;  %vm1183_vm2 = vcmask 1046528   ;;  %vm1672_vm3 = vcmask 1045504  }
   0x2   :  { %26 = vst.msk [vmem:[#allocation2 + $0x18] sm:$0xff] %vm21_vm0, %v17607_v1  ;;  %27 = vst.msk [vmem:[#allocation2 + $0x20] sm:$0xff] %vm21_vm0, %v17607_v1  ;;  %v133_v4 = vld [vmem:[%s17601_s0 + $0x10] sm:$0xff]  ;;  %v134_v5 = vld [vmem:[%s17601_s0 + $0x18] sm:$0xff]  ;;  %vm7622_vm4 = vcmask 1041409   ;;  %vm7624_vm5 = vcmask 1042434  }
   0x3   :  { %29 = vst.msk [vmem:[#allocation2 + $0x30] sm:$0xff] %vm21_vm0, %v17607_v1  ;;  %30 = vst.msk [vmem:[#allocation2 + $0x38] sm:$0xff] %vm21_vm0, %v17607_v1  ;;  %v135_v6 = vld [vmem:[%s17601_s0 + $0x20] sm:$0xff]  ;;  %v136_v7 = vld [vmem:[%s17601_s0 + $0x28] sm:$0xff]  ;;  %vm7626_vm6 = vcmask 1043459   ;;  %vm7628_vm7 = vcmask 1044484  }
   0x4   :  { %32 = vst.msk [vmem:[#allocation2 + $0x48] sm:$0xff] %vm21_vm0, %v17607_v1  ;;  %33 = vst.msk [vmem:[#allocation2 + $0x50] sm:$0xff] %vm21_vm0, %v17607_v1  ;;  %v137_v8 = vld [vmem:[%s17601_s0 + $0x30] sm:$0xff]  ;;  %v138_v9 = vld [vmem:[%s17601_s0 + $0x38] sm:$0xff]  ;;  %vm7630_vm8 = vcmask 1045509   ;;  %vm7632_vm9 = vcmask 1046534  }
   0x5   :  { %35 = vst.msk [vmem:[#allocation2 + $0x60] sm:$0xff] %vm21_vm0, %v17607_v1  ;;  %36 = vst.msk [vmem:[#allocation2 + $0x68] sm:$0xff] %vm21_vm0, %v17607_v1  ;;  %v139_v10 = vld [vmem:[%s17601_s0 + $0x40] sm:$0xff]  ;;  %v140_v11 = vld [vmem:[%s17601_s0 + $0x48] sm:$0xff]  ;;  %vm7634_vm10 = vcmask 1047559   ;;  %vm6940_vm11 = vcmask 261120  }
   0x6   :  { %38 = vst.msk [vmem:[#allocation2 + $0x78] sm:$0xff] %vm21_vm0, %v17607_v1  ;;  %39 = vst.msk [vmem:[#allocation2 + $0x80] sm:$0xff] %vm21_vm0, %v17607_v1  ;;  %v141_v12 = vld [vmem:[%s17601_s0 + $0x50] sm:$0xff]  ;;  %v142_v13 = vld [vmem:[%s17601_s0 + $0x58] sm:$0xff]  ;;  %vm6942_vm12 = vcmask 254976   ;;  %vm7958_vm13 = vcmask 523520  }
   0x7   :  { %41 = vst.msk [vmem:[#allocation2 + $0x90] sm:$0xff] %vm21_vm0, %v17607_v1  ;;  %42 = vst.msk [vmem:[#allocation2 + $0x98] sm:$0xff] %vm21_vm0, %v17607_v1  ;;  %v143_v14 = vld [vmem:[%s17601_s0 + $0x60] sm:$0xff]  ;;  %v144_v15 = vld [vmem:[%s17601_s0 + $0x68] sm:$0xff]  ;;  %vm8071_vm14 = vcmask 785920   ;;  %vm8138_vm15 = vcmask 1048320  }
   0x8   :  { %44 = vst.msk [vmem:[#allocation2 + $0xa8] sm:$0xff] %vm21_vm0, %v17607_v1  ;;  %45 = vst.msk [vmem:[#allocation2 + $0xb0] sm:$0xff] %vm21_vm0, %v17607_v1  ;;  %v145_v16 = vld [vmem:[%s17601_s0 + $0x70] sm:$0xff]  ;;  %v146_v17 = vld [vmem:[%s17601_s0 + $0x78] sm:$0xff] }
   0x9   :  { %47 = vst.msk [vmem:[#allocation2 + $0xc0] sm:$0xff] %vm21_vm0, %v17607_v1  ;;  %48 = vst.msk [vmem:[#allocation2 + $0xc8] sm:$0xff] %vm21_vm0, %v17607_v1  ;;  %v147_v18 = vld [vmem:[%s17601_s0 + $0x80] sm:$0xff]  ;;  %v148_v19 = vld [vmem:[%s17601_s0 + $0x88] sm:$0xff] }
   0xa   :  { %50 = vst.msk [vmem:[#allocation2 + $0xd8] sm:$0xff] %vm21_vm0, %v17607_v1  ;;  %51 = vst.msk [vmem:[#allocation2 + $0xe0] sm:$0xff] %vm21_vm0, %v17607_v1  ;;  %v149_v20 = vld [vmem:[%s17601_s0 + $0x90] sm:$0xff]  ;;  %v150_v21 = vld [vmem:[%s17601_s0 + $0x98] sm:$0xff] }
   0xb   :  { %53 = vst.msk [vmem:[#allocation2 + $0xf0] sm:$0xff] %vm21_vm0, %v17607_v1  ;;  %54 = vst.msk [vmem:[#allocation2 + $0xf8] sm:$0xff] %vm21_vm0, %v17607_v1  ;;  %v151_v22 = vld [vmem:[%s17601_s0 + $0xa0] sm:$0xff]  ;;  %v152_v24 = vld [vmem:[%s17601_s0 + $0xa8] sm:$0xff] }
   0xc   :  { %56 = vst.msk [vmem:[#allocation2 + $0x108] sm:$0xff] %vm21_vm0, %v17607_v1  ;;  %57 = vst.msk [vmem:[#allocation2 + $0x110] sm:$0xff] %vm21_vm0, %v17607_v1  ;;  %v260_v23 = vld [vmem:[#allocation2] sm:$0xff]  ;;  %v261_v26 = vld [vmem:[#allocation2 + $0x8] sm:$0xff] }
   0xd   :  { %59 = vst.msk [vmem:[#allocation2 + $0x120] sm:$0xff] %vm21_vm0, %v17607_v1  ;;  %60 = vst.msk [vmem:[#allocation2 + $0x128] sm:$0xff] %vm21_vm0, %v17607_v1  ;;  %371 = vperm.xlu0 %10696, %v260_v23   ;;  %v153_v31 = vld [vmem:[%s17601_s0 + $0xb0] sm:$0xff]  ;;  %v154_v32 = vld [vmem:[%s17601_s0 + $0xb8] sm:$0xff] }
   0xe   :  { %62 = vst.msk [vmem:[#allocation2 + $0x138] sm:$0xff] %vm21_vm0, %v17607_v1  ;;  %63 = vst.msk [vmem:[#allocation2 + $0x140] sm:$0xff] %vm21_vm0, %v17607_v1  ;;  %v155_v33 = vld [vmem:[%s17601_s0 + $0xc0] sm:$0xff]  ;;  %v156_v34 = vld [vmem:[%s17601_s0 + $0xc8] sm:$0xff] }
   0xf   :  { %65 = vst.msk [vmem:[#allocation2 + $0x150] sm:$0xff] %vm21_vm0, %v17607_v1  ;;  %66 = vst.msk [vmem:[#allocation2 + $0x158] sm:$0xff] %vm21_vm0, %v17607_v1  ;;  %v157_v35 = vld [vmem:[%s17601_s0 + $0xd0] sm:$0xff]  ;;  %v158_v36 = vld [vmem:[%s17601_s0 + $0xd8] sm:$0xff] }
  0x10   :  { %68 = vst.msk [vmem:[#allocation2 + $0x168] sm:$0xff] %vm21_vm0, %v17607_v1  ;;  %69 = vst.msk [vmem:[#allocation2 + $0x170] sm:$0xff] %vm21_vm0, %v17607_v1  ;;  %v159_v37 = vld [vmem:[%s17601_s0 + $0xe0] sm:$0xff]  ;;  %v160_v38 = vld [vmem:[%s17601_s0 + $0xe8] sm:$0xff] }
  0x11   :  { %71 = vst.msk [vmem:[#allocation2 + $0x180] sm:$0xff] %vm21_vm0, %v17607_v1  ;;  %72 = vst.msk [vmem:[#allocation2 + $0x188] sm:$0xff] %vm21_vm0, %v17607_v1  ;;  %376 = vperm.xlu0 %10696, %v261_v26   ;;  %v163_v40 = vld [vmem:[%s17601_s0 + $0x100] sm:$0xff]  ;;  %v164_v42 = vld [vmem:[%s17601_s0 + $0x108] sm:$0xff] }
  0x12   :  { %74 = vst.msk [vmem:[#allocation2 + $0x198] sm:$0xff] %vm21_vm0, %v17607_v1  ;;  %75 = vst.msk [vmem:[#allocation2 + $0x1a0] sm:$0xff] %vm21_vm0, %v17607_v1  ;;  %v165_v43 = vld [vmem:[%s17601_s0 + $0x110] sm:$0xff]  ;;  %v178_v45 = vld [vmem:[%s17601_s0 + $0x178] sm:$0xff] }
  0x13   :  { %77 = vst.msk [vmem:[#allocation2 + $0x1b0] sm:$0xff] %vm21_vm0, %v17607_v1  ;;  %78 = vst.msk [vmem:[#allocation2 + $0x1b8] sm:$0xff] %vm21_vm0, %v17607_v1  ;;  %v177_v44 = vld [vmem:[%s17601_s0 + $0x170] sm:$0xff]  ;;  %v179_v46 = vld [vmem:[%s17601_s0 + $0x180] sm:$0xff] }
  0x14   :  { %80 = vst.msk [vmem:[#allocation2 + $0x1c8] sm:$0xff] %vm21_vm0, %v17607_v1  ;;  %81 = vst.msk [vmem:[#allocation2 + $0x1d0] sm:$0xff] %vm21_vm0, %v17607_v1  ;;  %v180_v47 = vld [vmem:[%s17601_s0 + $0x188] sm:$0xff]  ;;  %v181_v48 = vld [vmem:[%s17601_s0 + $0x190] sm:$0xff] }
  0x15   :  { %83 = vst.msk [vmem:[#allocation2 + $0x1e0] sm:$0xff] %vm21_vm0, %v17607_v1  ;;  %84 = vst.msk [vmem:[#allocation2 + $0x1e8] sm:$0xff] %vm21_vm0, %v17607_v1  ;;  %v182_v49 = vld [vmem:[%s17601_s0 + $0x198] sm:$0xff]  ;;  %v183_v50 = vld [vmem:[%s17601_s0 + $0x1a0] sm:$0xff] }
  0x16   :  { %86 = vst.msk [vmem:[#allocation2 + $0x1f8] sm:$0xff] %vm21_vm0, %v17607_v1  ;;  %87 = vst.msk [vmem:[#allocation2 + $0x200] sm:$0xff] %vm21_vm0, %v17607_v1  ;;  %v184_v52 = vld [vmem:[%s17601_s0 + $0x1a8] sm:$0xff]  ;;  %v173_v55 = vld [vmem:[%s17601_s0 + $0x150] sm:$0xff] }
  0x17   :  { %89 = vst.msk [vmem:[#allocation2 + $0x210] sm:$0xff] %vm21_vm0, %v17607_v1  ;;  %90 = vst.msk [vmem:[#allocation2 + $0x218] sm:$0xff] %vm21_vm0, %v17607_v1  ;;  %v174_v58 = vld [vmem:[%s17601_s0 + $0x158] sm:$0xff]  ;;  %v175_v59 = vld [vmem:[%s17601_s0 + $0x160] sm:$0xff] }
  0x18   :  { %92 = vst.msk [vmem:[#allocation2 + $0x228] sm:$0xff] %vm21_vm0, %v17607_v1  ;;  %93 = vst.msk [vmem:[#allocation2 + $0x230] sm:$0xff] %vm21_vm0, %v17607_v1  ;;  %v176_v60 = vld [vmem:[%s17601_s0 + $0x168] sm:$0xff]  ;;  %v185_v61 = vld [vmem:[%s17601_s0 + $0x1b0] sm:$0xff] }
  0x19   :  { %95 = vst.msk [vmem:[#allocation2 + $0x240] sm:$0xff] %vm21_vm0, %v17607_v1  ;;  %96 = vst.msk [vmem:[#allocation2 + $0x248] sm:$0xff] %vm21_vm0, %v17607_v1  ;;  %v186_v62 = vld [vmem:[%s17601_s0 + $0x1b8] sm:$0xff]  ;;  %v187_v63 = vld [vmem:[%s17601_s0 + $0x1c0] sm:$0xff] }
  0x1a   :  { %98 = vst.msk [vmem:[#allocation2 + $0x258] sm:$0xff] %vm21_vm0, %v17607_v1  ;;  %99 = vst.msk [vmem:[#allocation2 + $0x260] sm:$0xff] %vm21_vm0, %v17607_v1  ;;  %v188_v0 = vld [vmem:[%s17601_s0 + $0x1c8] sm:$0xff]  ;;  %v167_v26 = vld [vmem:[%s17601_s0 + $0x120] sm:$0xff] }
  0x1b   :  { %101 = vst.msk [vmem:[#allocation2 + $0x270] sm:$0xff] %vm21_vm0, %v17607_v1  ;;  %102 = vst.msk [vmem:[#allocation2 + $0x278] sm:$0xff] %vm21_vm0, %v17607_v1 }
  0x1c   :  { %104 = vst.msk [vmem:[#allocation2 + $0x288] sm:$0xff] %vm21_vm0, %v17607_v1  ;;  %105 = vst.msk [vmem:[#allocation2 + $0x290] sm:$0xff] %vm21_vm0, %v17607_v1 }
  0x1d   :  { %107 = vst.msk [vmem:[#allocation2 + $0x2a0] sm:$0xff] %vm21_vm0, %v17607_v1  ;;  %108 = vst.msk [vmem:[#allocation2 + $0x2a8] sm:$0xff] %vm21_vm0, %v17607_v1 }
  0x1e   :  { %110 = vst.msk [vmem:[#allocation2 + $0x2b8] sm:$0xff] %vm21_vm0, %v17607_v1  ;;  %111 = vst.msk [vmem:[#allocation2 + $0x2c0] sm:$0xff] %vm21_vm0, %v17607_v1 }
  0x1f   :  { %113 = vst.msk [vmem:[#allocation2 + $0x2d0] sm:$0xff] %vm21_vm0, %v17607_v1  ;;  %114 = vst.msk [vmem:[#allocation2 + $0x2d8] sm:$0xff] %vm21_vm0, %v17607_v1 }
  0x20   :  { %116 = vst.msk [vmem:[#allocation2 + $0x2e8] sm:$0xff] %vm21_vm0, %v17607_v1  ;;  %117 = vst.msk [vmem:[#allocation2 + $0x2f0] sm:$0xff] %vm21_vm0, %v17607_v1 }
  0x21   :  { %119 = vst.msk [vmem:[#allocation2 + $0x300] sm:$0xff] %vm21_vm0, %v17607_v1  ;;  %120 = vst.msk [vmem:[#allocation2 + $0x308] sm:$0xff] %vm21_vm0, %v17607_v1 }
  0x22   :  { %122 = vst.msk [vmem:[#allocation2 + $0x318] sm:$0xff] %vm21_vm0, %v17607_v1  ;;  %123 = vst.msk [vmem:[#allocation2 + $0x320] sm:$0xff] %vm21_vm0, %v17607_v1 }
  0x23   :  { %125 = vst.msk [vmem:[#allocation2 + $0x330] sm:$0xff] %vm21_vm0, %v17607_v1  ;;  %126 = vst.msk [vmem:[#allocation2 + $0x338] sm:$0xff] %vm21_vm0, %v17607_v1 }
  0x24   :  { %128 = vst.msk [vmem:[#allocation2 + $0x348] sm:$0xff] %vm21_vm0, %v17607_v1  ;;  %129 = vst.msk [vmem:[#allocation2 + $0x350] sm:$0xff] %vm21_vm0, %v17607_v1 }
  0x25   :  { %28 = vst.msk [vmem:[#allocation2 + $0x28] sm:$0x3] %vm24_vm1, %v17607_v1  ;;  %25 = vst.msk [vmem:[#allocation2 + $0x10] sm:$0x3] %vm24_vm1, %v17607_v1 }
  0x26   :  { %31 = vst.msk [vmem:[#allocation2 + $0x40] sm:$0x3] %vm24_vm1, %v17607_v1  ;;  %34 = vst.msk [vmem:[#allocation2 + $0x58] sm:$0x3] %vm24_vm1, %v17607_v1 }
  0x27   :  { %37 = vst.msk [vmem:[#allocation2 + $0x70] sm:$0x3] %vm24_vm1, %v17607_v1  ;;  %40 = vst.msk [vmem:[#allocation2 + $0x88] sm:$0x3] %vm24_vm1, %v17607_v1 }
  0x28   :  { %43 = vst.msk [vmem:[#allocation2 + $0xa0] sm:$0x3] %vm24_vm1, %v17607_v1  ;;  %46 = vst.msk [vmem:[#allocation2 + $0xb8] sm:$0x3] %vm24_vm1, %v17607_v1 }
  0x29   :  { %49 = vst.msk [vmem:[#allocation2 + $0xd0] sm:$0x3] %vm24_vm1, %v17607_v1  ;;  %52 = vst.msk [vmem:[#allocation2 + $0xe8] sm:$0x3] %vm24_vm1, %v17607_v1 }
  0x2a   :  { %55 = vst.msk [vmem:[#allocation2 + $0x100] sm:$0x3] %vm24_vm1, %v17607_v1  ;;  %58 = vst.msk [vmem:[#allocation2 + $0x118] sm:$0x3] %vm24_vm1, %v17607_v1 }
  0x2b   :  { %61 = vst.msk [vmem:[#allocation2 + $0x130] sm:$0x3] %vm24_vm1, %v17607_v1  ;;  %64 = vst.msk [vmem:[#allocation2 + $0x148] sm:$0x3] %vm24_vm1, %v17607_v1 }
  0x2c   :  { %67 = vst.msk [vmem:[#allocation2 + $0x160] sm:$0x3] %vm24_vm1, %v17607_v1  ;;  %70 = vst.msk [vmem:[#allocation2 + $0x178] sm:$0x3] %vm24_vm1, %v17607_v1 }
  0x2d   :  { %73 = vst.msk [vmem:[#allocation2 + $0x190] sm:$0x3] %vm24_vm1, %v17607_v1  ;;  %76 = vst.msk [vmem:[#allocation2 + $0x1a8] sm:$0x3] %vm24_vm1, %v17607_v1 }
  0x2e   :  { %79 = vst.msk [vmem:[#allocation2 + $0x1c0] sm:$0x3] %vm24_vm1, %v17607_v1  ;;  %82 = vst.msk [vmem:[#allocation2 + $0x1d8] sm:$0x3] %vm24_vm1, %v17607_v1 }
  0x2f   :  { %85 = vst.msk [vmem:[#allocation2 + $0x1f0] sm:$0x3] %vm24_vm1, %v17607_v1  ;;  %88 = vst.msk [vmem:[#allocation2 + $0x208] sm:$0x3] %vm24_vm1, %v17607_v1 }
  0x30   :  { %91 = vst.msk [vmem:[#allocation2 + $0x220] sm:$0x3] %vm24_vm1, %v17607_v1  ;;  %94 = vst.msk [vmem:[#allocation2 + $0x238] sm:$0x3] %vm24_vm1, %v17607_v1 }
  0x31   :  { %97 = vst.msk [vmem:[#allocation2 + $0x250] sm:$0x3] %vm24_vm1, %v17607_v1  ;;  %100 = vst.msk [vmem:[#allocation2 + $0x268] sm:$0x3] %vm24_vm1, %v17607_v1 }
  0x32   :  { %103 = vst.msk [vmem:[#allocation2 + $0x280] sm:$0x3] %vm24_vm1, %v17607_v1  ;;  %106 = vst.msk [vmem:[#allocation2 + $0x298] sm:$0x3] %vm24_vm1, %v17607_v1 }
  0x33   :  { %109 = vst.msk [vmem:[#allocation2 + $0x2b0] sm:$0x3] %vm24_vm1, %v17607_v1  ;;  %112 = vst.msk [vmem:[#allocation2 + $0x2c8] sm:$0x3] %vm24_vm1, %v17607_v1 }
  0x34   :  { %115 = vst.msk [vmem:[#allocation2 + $0x2e0] sm:$0x3] %vm24_vm1, %v17607_v1  ;;  %118 = vst.msk [vmem:[#allocation2 + $0x2f8] sm:$0x3] %vm24_vm1, %v17607_v1 }
  0x35   :  { %121 = vst.msk [vmem:[#allocation2 + $0x310] sm:$0x3] %vm24_vm1, %v17607_v1  ;;  %124 = vst.msk [vmem:[#allocation2 + $0x328] sm:$0x3] %vm24_vm1, %v17607_v1 }
  0x36   :  { %127 = vst.msk [vmem:[#allocation2 + $0x340] sm:$0x3] %vm24_vm1, %v17607_v1  ;;  %130 = vst.msk [vmem:[#allocation2 + $0x358] sm:$0x3] %vm24_vm1, %v17607_v1 }
  0x37   :  { %196 = vst.msk [vmem:[#allocation2 + $0x19] sm:$0xff] %vm21_vm0, %v131_v2  ;;  %197 = vst.msk [vmem:[#allocation2 + $0x21] sm:$0xff] %vm21_vm0, %v132_v3 }
  0x38   :  { %198 = vst.msk [vmem:[#allocation2 + $0x31] sm:$0xff] %vm21_vm0, %v133_v4  ;;  %199 = vst.msk [vmem:[#allocation2 + $0x39] sm:$0xff] %vm21_vm0, %v134_v5  ;;  %v189_v5 = vld [vmem:[%s17601_s0 + $0x1d0] sm:$0xff] }
  0x39   :  { %200 = vst.msk [vmem:[#allocation2 + $0x49] sm:$0xff] %vm21_vm0, %v135_v6  ;;  %201 = vst.msk [vmem:[#allocation2 + $0x51] sm:$0xff] %vm21_vm0, %v136_v7 }
  0x3a   :  { %202 = vst.msk [vmem:[#allocation2 + $0x61] sm:$0xff] %vm21_vm0, %v137_v8  ;;  %203 = vst.msk [vmem:[#allocation2 + $0x69] sm:$0xff] %vm21_vm0, %v138_v9  ;;  %v190_v9 = vld [vmem:[%s17601_s0 + $0x1d8] sm:$0xff] }
  0x3b   :  { %204 = vst.msk [vmem:[#allocation2 + $0x79] sm:$0xff] %vm21_vm0, %v139_v10  ;;  %205 = vst.msk [vmem:[#allocation2 + $0x81] sm:$0xff] %vm21_vm0, %v140_v11  ;;  %v191_v10 = vld [vmem:[%s17601_s0 + $0x1e0] sm:$0xff]  ;;  %v192_v11 = vld [vmem:[%s17601_s0 + $0x1e8] sm:$0xff] }
  0x3c   :  { %206 = vst.msk [vmem:[#allocation2 + $0x91] sm:$0xff] %vm21_vm0, %v141_v12  ;;  %207 = vst.msk [vmem:[#allocation2 + $0x99] sm:$0xff] %vm21_vm0, %v142_v13  ;;  %v193_v12 = vld [vmem:[%s17601_s0 + $0x1f0] sm:$0xff]  ;;  %v194_v13 = vld [vmem:[%s17601_s0 + $0x1f8] sm:$0xff] }
  0x3d   :  { %208 = vst.msk [vmem:[#allocation2 + $0xa9] sm:$0xff] %vm21_vm0, %v143_v14  ;;  %209 = vst.msk [vmem:[#allocation2 + $0xb1] sm:$0xff] %vm21_vm0, %v144_v15 }
  0x3e   :  { %210 = vst.msk [vmem:[#allocation2 + $0xc1] sm:$0xff] %vm21_vm0, %v145_v16  ;;  %211 = vst.msk [vmem:[#allocation2 + $0xc9] sm:$0xff] %vm21_vm0, %v146_v17  ;;  %v263_v25 = vld [vmem:[#allocation2 + $0x18] sm:$0xff]  ;;  %v264_v27 = vld [vmem:[#allocation2 + $0x20] sm:$0xff] }
  0x3f   :  { %212 = vst.msk [vmem:[#allocation2 + $0xd9] sm:$0xff] %vm21_vm0, %v147_v18  ;;  %213 = vst.msk [vmem:[#allocation2 + $0xe1] sm:$0xff] %vm21_vm0, %v148_v19  ;;  %381 = vperm.xlu1 %10697, %v263_v25   ;;  %v266_v28 = vld [vmem:[#allocation2 + $0x30] sm:$0xff]  ;;  %v267_v29 = vld [vmem:[#allocation2 + $0x38] sm:$0xff] }
  0x40   :  { %214 = vst.msk [vmem:[#allocation2 + $0xf1] sm:$0xff] %vm21_vm0, %v149_v20  ;;  %215 = vst.msk [vmem:[#allocation2 + $0xf9] sm:$0xff] %vm21_vm0, %v150_v21  ;;  %v269_v30 = vld [vmem:[#allocation2 + $0x48] sm:$0xff]  ;;  %391 = vperm.xlu0 %10696, %v266_v28   ;;  %v270_v39 = vld [vmem:[#allocation2 + $0x50] sm:$0xff] }
  0x41   :  { %216 = vst.msk [vmem:[#allocation2 + $0x109] sm:$0xff] %vm21_vm0, %v151_v22  ;;  %217 = vst.msk [vmem:[#allocation2 + $0x111] sm:$0xff] %vm21_vm0, %v152_v24  ;;  %v272_v41 = vld [vmem:[#allocation2 + $0x60] sm:$0xff]  ;;  %v273_v51 = vld [vmem:[#allocation2 + $0x68] sm:$0xff] }
  0x42   :  { %218 = vst.msk [vmem:[#allocation2 + $0x121] sm:$0xff] %vm21_vm0, %v153_v31  ;;  %219 = vst.msk [vmem:[#allocation2 + $0x129] sm:$0xff] %vm21_vm0, %v154_v32  ;;  %v275_v53 = vld [vmem:[#allocation2 + $0x78] sm:$0xff]  ;;  %v276_v54 = vld [vmem:[#allocation2 + $0x80] sm:$0xff] }
  0x43   :  { %386 = vperm.xlu1 %10697, %v264_v27   ;;  %220 = vst.msk [vmem:[#allocation2 + $0x139] sm:$0xff] %vm21_vm0, %v155_v33  ;;  %221 = vst.msk [vmem:[#allocation2 + $0x141] sm:$0xff] %vm21_vm0, %v156_v34  ;;  %v278_v56 = vld [vmem:[#allocation2 + $0x90] sm:$0xff]  ;;  %v279_v57 = vld [vmem:[#allocation2 + $0x98] sm:$0xff] }
  0x44   :  { %222 = vst.msk [vmem:[#allocation2 + $0x151] sm:$0xff] %vm21_vm0, %v157_v35  ;;  %223 = vst.msk [vmem:[#allocation2 + $0x159] sm:$0xff] %vm21_vm0, %v158_v36  ;;  %401 = vperm.xlu0 %10696, %v269_v30   ;;  %v281_v2 = vld [vmem:[#allocation2 + $0xa8] sm:$0xff]  ;;  %v282_v3 = vld [vmem:[#allocation2 + $0xb0] sm:$0xff] }
  0x45   :  { %224 = vst.msk [vmem:[#allocation2 + $0x169] sm:$0xff] %vm21_vm0, %v159_v37  ;;  %225 = vst.msk [vmem:[#allocation2 + $0x171] sm:$0xff] %vm21_vm0, %v160_v38  ;;  %v284_v4 = vld [vmem:[#allocation2 + $0xc0] sm:$0xff]  ;;  %v285_v6 = vld [vmem:[#allocation2 + $0xc8] sm:$0xff] }
  0x46   :  { %228 = vst.msk [vmem:[#allocation2 + $0x1c9] sm:$0xff] %vm21_vm0, %v163_v40  ;;  %229 = vst.msk [vmem:[#allocation2 + $0x1d1] sm:$0xff] %vm21_vm0, %v164_v42  ;;  %v287_v7 = vld [vmem:[#allocation2 + $0xd8] sm:$0xff]  ;;  %v288_v8 = vld [vmem:[#allocation2 + $0xe0] sm:$0xff] }
  0x47   :  { %396 = vperm.xlu1 %10697, %v267_v29   ;;  %230 = vst.msk [vmem:[#allocation2 + $0x1e1] sm:$0xff] %vm21_vm0, %v165_v43  ;;  %242 = vst.msk [vmem:[#allocation2 + $0x271] sm:$0xff] %vm21_vm0, %v177_v44  ;;  %v290_v14 = vld [vmem:[#allocation2 + $0xf0] sm:$0xff]  ;;  %v291_v15 = vld [vmem:[#allocation2 + $0xf8] sm:$0xff] }
  0x48   :  { %243 = vst.msk [vmem:[#allocation2 + $0x279] sm:$0xff] %vm21_vm0, %v178_v45  ;;  %244 = vst.msk [vmem:[#allocation2 + $0x289] sm:$0xff] %vm21_vm0, %v179_v46  ;;  %411 = vperm.xlu0 %10696, %v272_v41   ;;  %v293_v16 = vld [vmem:[#allocation2 + $0x108] sm:$0xff]  ;;  %v294_v17 = vld [vmem:[#allocation2 + $0x110] sm:$0xff] }
  0x49   :  { %245 = vst.msk [vmem:[#allocation2 + $0x291] sm:$0xff] %vm21_vm0, %v180_v47  ;;  %246 = vst.msk [vmem:[#allocation2 + $0x2a1] sm:$0xff] %vm21_vm0, %v181_v48  ;;  %v296_v18 = vld [vmem:[#allocation2 + $0x120] sm:$0xff]  ;;  %v297_v19 = vld [vmem:[#allocation2 + $0x128] sm:$0xff] }
  0x4a   :  { %247 = vst.msk [vmem:[#allocation2 + $0x2a9] sm:$0xff] %vm21_vm0, %v182_v49  ;;  %248 = vst.msk [vmem:[#allocation2 + $0x2b9] sm:$0xff] %vm21_vm0, %v183_v50  ;;  %v161_v20 = vld [vmem:[%s17601_s0 + $0xf0] sm:$0xff]  ;;  %v299_v21 = vld [vmem:[#allocation2 + $0x138] sm:$0xff] }
  0x4b   :  { %406 = vperm.xlu1 %10697, %v270_v39   ;;  %249 = vst.msk [vmem:[#allocation2 + $0x2c1] sm:$0xff] %vm21_vm0, %v184_v52  ;;  %238 = vst.msk [vmem:[#allocation2 + $0x241] sm:$0xff] %vm21_vm0, %v173_v55  ;;  %v162_v22 = vld [vmem:[%s17601_s0 + $0xf8] sm:$0xff]  ;;  %v300_v23 = vld [vmem:[#allocation2 + $0x140] sm:$0xff] }
  0x4c   :  { %421 = vperm.xlu0 %10696, %v275_v53   ;;  %239 = vst.msk [vmem:[#allocation2 + $0x249] sm:$0xff] %vm21_vm0, %v174_v58  ;;  %240 = vst.msk [vmem:[#allocation2 + $0x259] sm:$0xff] %vm21_vm0, %v175_v59  ;;  %v166_v24 = vld [vmem:[%s17601_s0 + $0x118] sm:$0xff]  ;;  %v302_v25 = vld [vmem:[#allocation2 + $0x150] sm:$0xff] }
  0x4d   :  { %241 = vst.msk [vmem:[#allocation2 + $0x261] sm:$0xff] %vm21_vm0, %v176_v60  ;;  %250 = vst.msk [vmem:[#allocation2 + $0x2d1] sm:$0xff] %vm21_vm0, %v185_v61  ;;  %v303_v27 = vld [vmem:[#allocation2 + $0x158] sm:$0xff]  ;;  %v168_v28 = vld [vmem:[%s17601_s0 + $0x128] sm:$0xff] }
  0x4e   :  { %251 = vst.msk [vmem:[#allocation2 + $0x2d9] sm:$0xff] %vm21_vm0, %v186_v62  ;;  %252 = vst.msk [vmem:[#allocation2 + $0x2e9] sm:$0xff] %vm21_vm0, %v187_v63  ;;  %v305_v29 = vld [vmem:[#allocation2 + $0x168] sm:$0xff]  ;;  %v169_v30 = vld [vmem:[%s17601_s0 + $0x130] sm:$0xff] }
  0x4f   :  { %416 = vperm.xlu1 %10697, %v273_v51   ;;  %253 = vst.msk [vmem:[#allocation2 + $0x2f1] sm:$0xff] %vm21_vm0, %v188_v0  ;;  %254 = vst.msk [vmem:[#allocation2 + $0x301] sm:$0xff] %vm21_vm0, %v189_v5  ;;  %v306_v31 = vld [vmem:[#allocation2 + $0x170] sm:$0xff]  ;;  %v170_v32 = vld [vmem:[%s17601_s0 + $0x138] sm:$0xff] }
  0x50   :  { %431 = vperm.xlu0 %10696, %v278_v56   ;;  %255 = vst.msk [vmem:[#allocation2 + $0x309] sm:$0xff] %vm21_vm0, %v190_v9  ;;  %256 = vst.msk [vmem:[#allocation2 + $0x319] sm:$0xff] %vm21_vm0, %v191_v10  ;;  %v314_v33 = vld [vmem:[#allocation2 + $0x1b0] sm:$0xff]  ;;  %v171_v34 = vld [vmem:[%s17601_s0 + $0x140] sm:$0xff] }
  0x51   :  { %257 = vst.msk [vmem:[#allocation2 + $0x321] sm:$0xff] %vm21_vm0, %v192_v11  ;;  %258 = vst.msk [vmem:[#allocation2 + $0x331] sm:$0xff] %vm21_vm0, %v193_v12  ;;  %v315_v35 = vld [vmem:[#allocation2 + $0x1b8] sm:$0xff]  ;;  %v172_v36 = vld [vmem:[%s17601_s0 + $0x148] sm:$0xff]  ;;  %v10781_v12 = vmov 1983009808  }
  0x52   :  { %259 = vst.msk [vmem:[#allocation2 + $0x339] sm:$0xff] %vm21_vm0, %v194_v13  ;;  %226 = vst.msk [vmem:[#allocation2 + $0x181] sm:$0xff] %vm21_vm0, %v161_v20  ;;  %v317_v37 = vld [vmem:[#allocation2 + $0x1c8] sm:$0xff]  ;;  %v318_v38 = vld [vmem:[#allocation2 + $0x1d0] sm:$0xff]  ;;  %v4446_v13 = vunpack.c.l.s4 %v10781_v12  ;;  %s10782_s0 = smov 32  }
  0x53   :  { %426 = vperm.xlu1 %10697, %v276_v54   ;;  %227 = vst.msk [vmem:[#allocation2 + $0x189] sm:$0xff] %vm21_vm0, %v162_v22  ;;  %231 = vst.msk [vmem:[#allocation2 + $0x1e9] sm:$0xff] %vm21_vm0, %v166_v24  ;;  %v320_v39 = vld [vmem:[#allocation2 + $0x1e0] sm:$0xff]  ;;  %v338_v40 = vld [vmem:[#allocation2 + $0x270] sm:$0xff] }
  0x54   :  { %441 = vperm.xlu0 %10696, %v281_v2   ;;  %232 = vst.msk [vmem:[#allocation2 + $0x1f9] sm:$0xff] %vm21_vm0, %v167_v26  ;;  %233 = vst.msk [vmem:[#allocation2 + $0x201] sm:$0xff] %vm21_vm0, %v168_v28  ;;  %v339_v41 = vld [vmem:[#allocation2 + $0x278] sm:$0xff]  ;;  %v341_v42 = vld [vmem:[#allocation2 + $0x288] sm:$0xff] }
  0x55   :  { %234 = vst.msk [vmem:[#allocation2 + $0x211] sm:$0xff] %vm21_vm0, %v169_v30  ;;  %235 = vst.msk [vmem:[#allocation2 + $0x219] sm:$0xff] %vm21_vm0, %v170_v32  ;;  %v342_v43 = vld [vmem:[#allocation2 + $0x290] sm:$0xff]  ;;  %v344_v44 = vld [vmem:[#allocation2 + $0x2a0] sm:$0xff] }
  0x56   :  { %236 = vst.msk [vmem:[#allocation2 + $0x229] sm:$0xff] %vm21_vm0, %v171_v34  ;;  %237 = vst.msk [vmem:[#allocation2 + $0x231] sm:$0xff] %vm21_vm0, %v172_v36  ;;  %v345_v45 = vld [vmem:[#allocation2 + $0x2a8] sm:$0xff]  ;;  %v347_v46 = vld [vmem:[#allocation2 + $0x2b8] sm:$0xff]  ;;  %vm10202_vm0 = vcmask 517120  }
  0x57   :  { %436 = vperm.xlu1 %10697, %v279_v57   ;;  %v348_v47 = vld [vmem:[#allocation2 + $0x2c0] sm:$0xff]  ;;  %v262_v48 = vld [vmem:[#allocation2 + $0x10] sm:$0x3]  ;;  %v265_v49 = vld [vmem:[#allocation2 + $0x28] sm:$0x3] }
  0x58   :  { %451 = vperm.xlu0 %10696, %v284_v4   ;;  %v268_v50 = vld [vmem:[#allocation2 + $0x40] sm:$0x3]  ;;  %v271_v51 = vld [vmem:[#allocation2 + $0x58] sm:$0x3]  ;;  %v333_v53 = vld [vmem:[#allocation2 + $0x248] sm:$0xff] }
  0x59   :  { %v332_v52 = vld [vmem:[#allocation2 + $0x240] sm:$0xff]  ;;  %v335_v54 = vld [vmem:[#allocation2 + $0x258] sm:$0xff]  ;;  %v350_v56 = vld [vmem:[#allocation2 + $0x2d0] sm:$0xff] }
  0x5a   :  { %v336_v55 = vld [vmem:[#allocation2 + $0x260] sm:$0xff]  ;;  %v351_v57 = vld [vmem:[#allocation2 + $0x2d8] sm:$0xff]  ;;  %v353_v58 = vld [vmem:[#allocation2 + $0x2e8] sm:$0xff] }
  0x5b   :  { %446 = vperm.xlu1 %10697, %v282_v3   ;;  %v354_v59 = vld [vmem:[#allocation2 + $0x2f0] sm:$0xff]  ;;  %v277_v61 = vld [vmem:[#allocation2 + $0x88] sm:$0x3]  ;;  %v340_v62 = vld [vmem:[#allocation2 + $0x280] sm:$0x3] }
  0x5c   :  { %461 = vperm.xlu0 %10696, %v287_v7   ;;  %v274_v60 = vld [vmem:[#allocation2 + $0x70] sm:$0x3]  ;;  %v343_v63 = vld [vmem:[#allocation2 + $0x298] sm:$0x3]  ;;  %v349_v2 = vld [vmem:[#allocation2 + $0x2c8] sm:$0x3] }
  0x5d   :  { %v346_v0 = vld [vmem:[#allocation2 + $0x2b0] sm:$0x3]  ;;  %v337_v4 = vld [vmem:[#allocation2 + $0x268] sm:$0x3]  ;;  %v352_v5 = vld [vmem:[#allocation2 + $0x2e0] sm:$0x3] }
  0x5e   :  { %v334_v3 = vld [vmem:[#allocation2 + $0x250] sm:$0x3]  ;;  %v11290_v7 = vld [vmem:[%s17602_s1 + $0x1] ss:$0 sm:$0xff]  ;;  %v11296_v10 = vld [vmem:[%s17602_s1 + $0x2] ss:$0 sm:$0xff] }
  0x5f   :  { %456 = vperm.xlu1 %10697, %v285_v6   ;;  %v355_v11 = vld [vmem:[#allocation2 + $0x2f8] sm:$0x3]  ;;  %v11308_v22 = vld [vmem:[%s17602_s1] ss:$0 sm:$0xff]  ;;  %v357_v26 = vld [vmem:[#allocation2 + $0x308] sm:$0xff] }
  0x60   :  { %471 = vperm.xlu0 %10696, %v290_v14   ;;  %v4448_v14 = vlaneseq  ;;  %v359_v34 = vld [vmem:[#allocation2 + $0x318] sm:$0xff]  ;;  %v11396_v12 = vld [vmem:[%s17602_s1 + $0x8] ss:$0 sm:$0xff]  ;;  %v362_v1 = vld [vmem:[#allocation2 + $0x330] sm:$0xff] }
  0x62   :  { %v4449_v28 = vshrl.u32 %v4448_v14, 7  ;;  %v286_v14 = vld [vmem:[#allocation2 + $0xd0] sm:$0x3] }
  0x63   :  { %466 = vperm.xlu1 %10697, %v288_v8  }
  0x64   :  { %481 = vperm.xlu0 %10696, %v293_v16   ;;  %v356_v16 = vld [vmem:[#allocation2 + $0x300] sm:$0xff] }
  0x67   :  { %476 = vperm.xlu1 %10697, %v291_v15  }
  0x68   :  { %491 = vperm.xlu0 %10696, %v296_v18  }
  0x6b   :  { %486 = vperm.xlu1 %10697, %v294_v17  }
  0x6c   :  { %501 = vperm.xlu0 %10696, %v299_v21  }
  0x6f   :  { %496 = vperm.xlu1 %10697, %v297_v19  }
  0x70   :  { %511 = vperm.xlu0 %10696, %v302_v25  }
  0x73   :  { %506 = vperm.xlu1 %10697, %v300_v23   ;;  %v11313_v23 = vld [vmem:[%s17602_s1 + $0x4] ss:$0 sm:$0xff] }
  0x74   :  { %521 = vperm.xlu0 %10696, %v305_v29  }
  0x77   :  { %516 = vperm.xlu1 %10697, %v303_v27   ;;  %v4447_v27 = vunpack.c.0.s8 %v4446_v13 }
  0x78   :  { %531 = vperm.xlu0 %10696, %v314_v33  }
  0x7b   :  { %526 = vperm.xlu1 %10697, %v306_v31   ;;  %v11326_v31 = vld [vmem:[%s17602_s1 + $0x5] ss:$0 sm:$0xff] }
  0x7c   :  { %541 = vperm.xlu0 %10696, %v317_v37  }
  0x7f   :  { %536 = vperm.xlu1 %10697, %v315_v35  }
  0x80   :  { %551 = vperm.xlu0 %10696, %v320_v39  }
  0x83   :  { %546 = vperm.xlu1 %10697, %v318_v38  }
  0x84   :  { %616 = vperm.xlu0 %10696, %v339_v41  }
  0x87   :  { %611 = vperm.xlu1 %10697, %v338_v40   ;;  %v11342_v40 = vld [vmem:[%s17602_s1 + $0x3] ss:$0 sm:$0xff] }
  0x88   :  { %626 = vperm.xlu0 %10696, %v342_v43  }
  0x8b   :  { %621 = vperm.xlu1 %10697, %v341_v42  }
  0x8c   :  { %636 = vperm.xlu0 %10696, %v345_v45   ;;  %v372_v6 = vpop.permute.xlu0 %371 }
  0x8d   :  { %v991_v8 = vmul.f32 %v11290_v7, %v372_v6  ;;  %v1480_v15 = vmul.f32 %v11296_v10, %v372_v6  ;;  %v695_v29 = vmul.f32 %v11308_v22, %v372_v6 }
  0x8f   :  { %631 = vperm.xlu1 %10697, %v344_v44   ;;  %v1184_v19 = vrot.slane %v991_v8, 1  ;;  %v1673_v30 = vrot.slane %v1480_v15, 2 }
  0x90   :  { %646 = vperm.xlu0 %10696, %v348_v47   ;;  %v377_v18 = vpop.permute.xlu0 %376 }
  0x91   :  { %v11301_v20 = vmul.f32 %v11290_v7, %v377_v18  ;;  %v11316_v24 = vmul.f32 %v11296_v10, %v377_v18  ;;  %v11379_v6 = vmul.f32 %v11308_v22, %v377_v18 }
  0x93   :  { %641 = vperm.xlu1 %10697, %v347_v46   ;;  %v17614_v32 = vrot.slane %v11301_v20, 1  ;;  %v17613_v36 = vrot.slane %v11316_v24, 2 }
  0x94   :  { %832 = vperm.xlu0 %10696, %v265_v49  }
  0x95   :  { %v1186_v43 = vsel %vm1183_vm2, %v1184_v19, %v17614_v32 }
  0x97   :  { %827 = vperm.xlu1 %10697, %v262_v48   ;;  %v1408_v48 = vadd.f32 %v1186_v43, %v695_v29  ;;  %v289_v43 = vld [vmem:[#allocation2 + $0xe8] sm:$0x3] }
  0x98   :  { %842 = vperm.xlu0 %10696, %v271_v51   ;;  %v1675_v51 = vsel %vm1672_vm3, %v1673_v30, %v17613_v36  ;;  %v292_v36 = vld [vmem:[#allocation2 + $0x100] sm:$0x3] }
  0x9b   :  { %837 = vperm.xlu1 %10697, %v268_v50   ;;  %v360_v50 = vld [vmem:[#allocation2 + $0x320] sm:$0xff] }
  0x9c   :  { %596 = vperm.xlu0 %10696, %v333_v53   ;;  %v280_v53 = vld [vmem:[#allocation2 + $0xa0] sm:$0x3] }
  0x9f   :  { %591 = vperm.xlu1 %10697, %v332_v52  }
  0xa0   :  { %606 = vperm.xlu0 %10696, %v336_v55   ;;  %v1897_v55 = vadd.f32 %v1675_v51, %v1408_v48 }
  0xa3   :  { %601 = vperm.xlu1 %10697, %v335_v54  }
  0xa4   :  { %656 = vperm.xlu0 %10696, %v351_v57  }
  0xa7   :  { %651 = vperm.xlu1 %10697, %v350_v56  }
  0xa8   :  { %666 = vperm.xlu0 %10696, %v354_v59  }
  0xab   :  { %661 = vperm.xlu1 %10697, %v353_v58  }
  0xac   :  { %852 = vperm.xlu0 %10696, %v277_v61  }
  0xaf   :  { %847 = vperm.xlu1 %10697, %v274_v60  }
  0xb0   :  { %952 = vperm.xlu0 %10696, %v343_v63   ;;  %v11373_v63 = vsub.s32 0, %v4449_v28 }
  0xb2   :  { %17896 = vst [vmem:[#allocation6_spill] sm:$0xff] %v11373_v63 }
  0xb3   :  { %947 = vperm.xlu1 %10697, %v340_v62   ;;  %v11371_v62 = vsub.s32 %v4447_v27, %v4449_v28 }
  0xb4   :  { %962 = vperm.xlu0 %10696, %v349_v2  }
  0xb5   :  { %17895 = vst [vmem:[#allocation5_spill] sm:$0xff] %v11371_v62 }
  0xb7   :  { %957 = vperm.xlu1 %10697, %v346_v0  }
  0xb8   :  { %942 = vperm.xlu0 %10696, %v337_v4  }
  0xbb   :  { %937 = vperm.xlu1 %10697, %v334_v3  }
  0xbc   :  { %972 = vperm.xlu0 %10696, %v355_v11   ;;  %v11391_v11 = vld [vmem:[%s17602_s1 + $0x7] ss:$0 sm:$0xff] }
  0xbe   :  { %v382_v9 = vpop.permute.xlu1 %381 }
  0xbf   :  { %967 = vperm.xlu1 %10697, %v352_v5   ;;  %v994_v17 = vmul.f32 %v11290_v7, %v382_v9  ;;  %v392_v39 = vpop.permute.xlu0 %391  ;;  %v697_v41 = vmul.f32 %v11308_v22, %v382_v9  ;;  %v1483_v42 = vmul.f32 %v11296_v10, %v382_v9  ;;  %v2135_v46 = vmul.f32 %v11313_v23, %v382_v9  ;;  %v283_v5 = vld [vmem:[#allocation2 + $0xb8] sm:$0x3] }
  0xc0   :  { %676 = vperm.xlu0 %10696, %v357_v26   ;;  %v2623_v47 = vmul.f32 %v11326_v31, %v382_v9  ;;  %v1989_v54 = vmul.f32 %v11342_v40, %v382_v9  ;;  %v11376_v4 = vmul.f32 %v11290_v7, %v392_v39  ;;  %v11399_v13 = vmul.f32 %v11296_v10, %v392_v39 }
  0xc1   :  { %v1189_v35 = vrot.slane %v994_v17, 1  ;;  %v1678_v59 = vrot.slane %v1483_v42, 2  ;;  %v2327_v0 = vrot.slane %v2135_v46, 1  ;;  %v11407_v17 = vld [vmem:[%s17602_s1 + $0x6] ss:$0 sm:$0xff]  ;;  %v11410_v18 = vmul.f32 %v11313_v23, %v392_v39 }
  0xc2   :  { %v11303_v21 = vpop.permute.xlu1 %386  ;;  %v2815_v2 = vrot.slane %v2623_v47, 2  ;;  %v2053_v3 = vadd.f32 %v1989_v54, %v1897_v55  ;;  %v11422_v29 = vmul.f32 %v11308_v22, %v392_v39  ;;  %v11425_v30 = vmul.f32 %v11326_v31, %v392_v39 }
  0xc3   :  { %v11320_v25 = vmul.f32 %v11290_v7, %v11303_v21  ;;  %671 = vperm.xlu1 %10697, %v356_v16   ;;  %v11331_v33 = vmul.f32 %v11296_v10, %v11303_v21  ;;  %v11337_v38 = vmul.f32 %v11313_v23, %v11303_v21  ;;  %v11351_v44 = vmul.f32 %v11326_v31, %v11303_v21  ;;  %v11366_v58 = vpop.permute.xlu0 %401 }
  0xc4   :  { %686 = vperm.xlu0 %10696, %v360_v50   ;;  %v11383_v8 = vmul.f32 %v11308_v22, %v11303_v21  ;;  %v11416_v26 = vmul.f32 %v11342_v40, %v11303_v21  ;;  %v11432_v21 = vmul.f32 %v11391_v11, %v392_v39  ;;  %v11435_v42 = vmul.f32 %v11396_v12, %v392_v39  ;;  %v358_v50 = vld [vmem:[#allocation2 + $0x310] sm:$0x3] }
  0xc5   :  { %v17612_v37 = vrot.slane %v11320_v25, 1  ;;  %v17609_v52 = vrot.slane %v11331_v33, 2  ;;  %v17611_v57 = vrot.slane %v11337_v38, 1  ;;  %v17610_v60 = vrot.slane %v11351_v44, 2 }
  0xc6   :  { %v11353_v45 = vpop.permute.xlu1 %396  ;;  %v3131_v47 = vmul.f32 %v11407_v17, %v392_v39  ;;  %v11441_v48 = vmul.f32 %v11290_v7, %v11366_v58  ;;  %v11452_v54 = vmul.f32 %v11313_v23, %v11366_v58 }
  0xc7   :  { %v1191_v49 = vsel %vm1183_vm2, %v1189_v35, %v17612_v37  ;;  %681 = vperm.xlu1 %10697, %v359_v34   ;;  %v1680_v9 = vsel %vm1672_vm3, %v1678_v59, %v17609_v52  ;;  %v2329_v16 = vsel %vm1183_vm2, %v2327_v0, %v17611_v57  ;;  %v11412_v19 = vpop.permute.xlu0 %411  ;;  %v2817_v28 = vsel %vm1672_vm3, %v2815_v2, %v17610_v60  ;;  %v363_v60 = vld [vmem:[#allocation2 + $0x338] sm:$0xff] }
  0xc8   :  { %v1410_v56 = vadd.f32 %v1191_v49, %v697_v41  ;;  %v2551_v27 = vadd.f32 %v2329_v16, %v2053_v3  ;;  %862 = vperm.xlu0 %10696, %v283_v5   ;;  %v1991_v41 = vmul.f32 %v11342_v40, %v392_v39  ;;  %v11445_v49 = vmul.f32 %v11296_v10, %v11366_v58  ;;  %v361_v16 = vld [vmem:[#allocation2 + $0x328] sm:$0x3] }
  0xc9   :  { %17899 = vst [vmem:[#allocation9_spill] sm:$0xff] %v11452_v54  ;;  %v11456_v39 = vmul.f32 %v11326_v31, %v11366_v58  ;;  %v11463_v0 = vmul.f32 %v11308_v22, %v11366_v58  ;;  %v11467_v2 = vmul.f32 %v11391_v11, %v11366_v58  ;;  %v11517_v57 = vmul.f32 %v11391_v11, %v11412_v19 }
  0xca   :  { %v11369_v61 = vpop.permute.xlu1 %406  ;;  %v1899_v15 = vadd.f32 %v1680_v9, %v1410_v56  ;;  %17898 = vst [vmem:[#allocation8_spill] sm:$0xff] %v11445_v49  ;;  %v3039_v56 = vadd.f32 %v2817_v28, %v2551_v27  ;;  %v11499_v28 = vmul.f32 %v11313_v23, %v11412_v19  ;;  %v11506_v9 = vmul.f32 %v11308_v22, %v11412_v19 }
  0xcb   :  { %857 = vperm.xlu1 %10697, %v280_v53   ;;  %17900 = vst [vmem:[#allocation10_spill] sm:$0xff] %v11456_v39  ;;  %v11458_v55 = vpop.permute.xlu0 %421  ;;  %17901 = vst [vmem:[#allocation11_spill] sm:$0xff] %v11467_v2  ;;  %v11510_v53 = vmul.f32 %v11326_v31, %v11412_v19  ;;  %v11531_v59 = vmul.f32 %v11342_v40, %v11412_v19  ;;  %v11540_v46 = vmul.f32 %v11407_v17, %v11412_v19 }
  0xcc   :  { %v11447_v51 = vadd.f32 %v1991_v41, %v1899_v15  ;;  %872 = vperm.xlu0 %10696, %v289_v43   ;;  %v11479_v15 = vmul.f32 %v11396_v12, %v11366_v58  ;;  %v11485_v41 = vmul.f32 %v11290_v7, %v11412_v19  ;;  %v11489_v43 = vmul.f32 %v11296_v10, %v11412_v19 }
  0xcd   :  { %17908 = vst [vmem:[#allocation18_spill] sm:$0xff] %v11499_v28  ;;  %v11501_v52 = vadd.f32 %v3131_v47, %v3039_v56  ;;  %17909 = vst [vmem:[#allocation19_spill] sm:$0xff] %v11506_v9  ;;  %v11521_v47 = vmul.f32 %v11396_v12, %v11412_v19  ;;  %v11525_v56 = vmul.f32 %v11290_v7, %v11458_v55  ;;  %v298_v28 = vld [vmem:[#allocation2 + $0x130] sm:$0x3] }
  0xce   :  { %v11427_v34 = vpop.permute.xlu1 %416  ;;  %17904 = vst [vmem:[#allocation14_spill] sm:$0xff] %v11479_v15  ;;  %17905 = vst [vmem:[#allocation15_spill] sm:$0xff] %v11485_v41  ;;  %v11535_v37 = vmul.f32 %v11296_v10, %v11458_v55  ;;  %v11548_v5 = vmul.f32 %v11326_v31, %v11458_v55  ;;  %v11557_v32 = vmul.f32 %v11342_v40, %v11458_v55 }
  0xcf   :  { %17897 = vst [vmem:[#allocation7_spill] sm:$0xff] %v11427_v34  ;;  %867 = vperm.xlu1 %10697, %v286_v14   ;;  %v11475_v14 = vmul.f32 %v11342_v40, %v11366_v58  ;;  %17906 = vst [vmem:[#allocation16_spill] sm:$0xff] %v11489_v43  ;;  %v432_v27 = vpop.permute.xlu0 %431  ;;  %v11561_v19 = vmul.f32 %v11391_v11, %v11458_v55  ;;  %v322_v34 = vld [vmem:[#allocation2 + $0x1f0] sm:$0x3]  ;;  %v11954_v63 = vmul.f32 %v11308_v22, %v11353_v45 }
  0xd0   :  { %17910 = vst [vmem:[#allocation20_spill] sm:$0xff] %v11510_v53  ;;  %982 = vperm.xlu0 %10696, %v361_v16   ;;  %17912 = vst [vmem:[#allocation22_spill] sm:$0xff] %v11517_v57  ;;  %v295_v53 = vld [vmem:[#allocation2 + $0x118] sm:$0x3]  ;;  %v11574_v9 = vmul.f32 %v11290_v7, %v432_v27  ;;  %v11596_v41 = vmul.f32 %v11391_v11, %v432_v27  ;;  %v11599_v35 = vmul.f32 %v11396_v12, %v432_v27 }
  0xd1   :  { %17903 = vst [vmem:[#allocation13_spill] sm:$0xff] %v11475_v14  ;;  %17913 = vst [vmem:[#allocation23_spill] sm:$0xff] %v11521_v47  ;;  %v11593_v47 = vmul.f32 %v11308_v22, %v432_v27 }
  0xd2   :  { %v11469_v3 = vpop.permute.xlu1 %426  ;;  %17914 = vst [vmem:[#allocation24_spill] sm:$0xff] %v11525_v56  ;;  %17915 = vst [vmem:[#allocation25_spill] sm:$0xff] %v11531_v59  ;;  %v330_v59 = vld [vmem:[#allocation2 + $0x230] sm:$0xff] }
  0xd3   :  { %17902 = vst [vmem:[#allocation12_spill] sm:$0xff] %v11469_v3  ;;  %977 = vperm.xlu1 %10697, %v358_v50   ;;  %v11495_v50 = vmul.f32 %v11407_v17, %v11366_v58  ;;  %17916 = vst [vmem:[#allocation26_spill] sm:$0xff] %v11535_v37  ;;  %v442_v16 = vpop.permute.xlu0 %441  ;;  %v11580_v3 = vmul.f32 %v11313_v23, %v432_v27 }
  0xd4   :  { %17917 = vst [vmem:[#allocation27_spill] sm:$0xff] %v11540_v46  ;;  %17919 = vst [vmem:[#allocation29_spill] sm:$0xff] %v11548_v5  ;;  %1980 = vperm.xlu0 %10696, %v363_v60   ;;  %v11577_v60 = vmul.f32 %v11296_v10, %v432_v27  ;;  %v11605_v5 = vmul.f32 %v11342_v40, %v432_v27  ;;  %v11611_v56 = vmul.f32 %v11290_v7, %v442_v16 }
  0xd5   :  { %17907 = vst [vmem:[#allocation17_spill] sm:$0xff] %v11495_v50  ;;  %17921 = vst [vmem:[#allocation31_spill] sm:$0xff] %v11557_v32  ;;  %v11589_v32 = vmul.f32 %v11326_v31, %v432_v27  ;;  %v311_v50 = vld [vmem:[#allocation2 + $0x198] sm:$0xff] }
  0xd6   :  { %v11512_v58 = vpop.permute.xlu1 %436  ;;  %17922 = vst [vmem:[#allocation32_spill] sm:$0xff] %v11561_v19  ;;  %17925 = vst [vmem:[#allocation35_spill] sm:$0xff] %v11574_v9  ;;  %v11641_v9 = vmul.f32 %v11342_v40, %v442_v16 }
  0xd7   :  { %17911 = vst [vmem:[#allocation21_spill] sm:$0xff] %v11512_v58  ;;  %1975 = vperm.xlu1 %10697, %v362_v1   ;;  %v11544_v1 = vmul.f32 %v11313_v23, %v11458_v55  ;;  %v11553_v58 = vmul.f32 %v11308_v22, %v11458_v55  ;;  %17926 = vst [vmem:[#allocation36_spill] sm:$0xff] %v11577_v60  ;;  %v452_v37 = vpop.permute.xlu0 %451  ;;  %v11635_v60 = vmul.f32 %v11396_v12, %v442_v16 }
  0xd8   :  { %17927 = vst [vmem:[#allocation37_spill] sm:$0xff] %v11580_v3  ;;  %17929 = vst [vmem:[#allocation39_spill] sm:$0xff] %v11589_v32  ;;  %882 = vperm.xlu0 %10696, %v295_v53   ;;  %v11632_v3 = vmul.f32 %v11308_v22, %v442_v16  ;;  %v365_v53 = vld [vmem:[#allocation2 + $0x348] sm:$0xff]  ;;  %v11657_v32 = vmul.f32 %v11313_v23, %v452_v37 }
  0xd9   :  { %17918 = vst [vmem:[#allocation28_spill] sm:$0xff] %v11544_v1  ;;  %17920 = vst [vmem:[#allocation30_spill] sm:$0xff] %v11553_v58  ;;  %v11570_v58 = vmul.f32 %v11396_v12, %v11458_v55  ;;  %v11647_v1 = vmul.f32 %v11296_v10, %v452_v37 }
  0xda   :  { %v11563_v43 = vpop.permute.xlu1 %446  ;;  %17930 = vst [vmem:[#allocation40_spill] sm:$0xff] %v11593_v47  ;;  %17931 = vst [vmem:[#allocation41_spill] sm:$0xff] %v11596_v41  ;;  %v301_v47 = vld [vmem:[#allocation2 + $0x148] sm:$0x3]  ;;  %v307_v41 = vld [vmem:[#allocation2 + $0x178] sm:$0x3] }
  0xdb   :  { %17923 = vst [vmem:[#allocation33_spill] sm:$0xff] %v11563_v43  ;;  %17924 = vst [vmem:[#allocation34_spill] sm:$0xff] %v11570_v58  ;;  %877 = vperm.xlu1 %10697, %v292_v36   ;;  %v11586_v36 = vmul.f32 %v11407_v17, %v11458_v55  ;;  %v364_v55 = vld [vmem:[#allocation2 + $0x340] sm:$0x3]  ;;  %v462_v19 = vpop.permute.xlu0 %461  ;;  %v11644_v58 = vmul.f32 %v11290_v7, %v452_v37 }
  0xdc   :  { %17932 = vst [vmem:[#allocation42_spill] sm:$0xff] %v11599_v35  ;;  %17934 = vst [vmem:[#allocation44_spill] sm:$0xff] %v11605_v5  ;;  %892 = vperm.xlu0 %10696, %v301_v47   ;;  %v11651_v35 = vmul.f32 %v11407_v17, %v442_v16  ;;  %v11654_v47 = vmul.f32 %v11308_v22, %v452_v37 }
  0xdd   :  { %17928 = vst [vmem:[#allocation38_spill] sm:$0xff] %v11586_v36  ;;  %v11608_v36 = vmul.f32 %v11407_v17, %v432_v27  ;;  %17936 = vst [vmem:[#allocation46_spill] sm:$0xff] %v11611_v56  ;;  %v11621_v27 = vmul.f32 %v11313_v23, %v442_v16  ;;  %v11693_v56 = vmul.f32 %v11326_v31, %v462_v19 }
  0xde   :  { %v11601_v43 = vpop.permute.xlu1 %456  ;;  %17941 = vst [vmem:[#allocation51_spill] sm:$0xff] %v11632_v3  ;;  %17942 = vst [vmem:[#allocation52_spill] sm:$0xff] %v11635_v60  ;;  %v304_v60 = vld [vmem:[#allocation2 + $0x160] sm:$0x3] }
  0xdf   :  { %17933 = vst [vmem:[#allocation43_spill] sm:$0xff] %v11601_v43  ;;  %17935 = vst [vmem:[#allocation45_spill] sm:$0xff] %v11608_v36  ;;  %887 = vperm.xlu1 %10697, %v298_v28   ;;  %v11617_v43 = vmul.f32 %v11296_v10, %v442_v16  ;;  %v11624_v36 = vmul.f32 %v11326_v31, %v442_v16  ;;  %v11627_v28 = vmul.f32 %v11391_v11, %v442_v16  ;;  %v472_v3 = vpop.permute.xlu0 %471 }
  0xe0   :  { %17938 = vst [vmem:[#allocation48_spill] sm:$0xff] %v11621_v27  ;;  %17944 = vst [vmem:[#allocation54_spill] sm:$0xff] %v11641_v9  ;;  %3117 = vperm.xlu0 %10696, %v365_v53   ;;  %v11683_v16 = vmul.f32 %v11296_v10, %v462_v19  ;;  %v11687_v27 = vmul.f32 %v11407_v17, %v452_v37  ;;  %v11690_v53 = vmul.f32 %v11313_v23, %v462_v19 }
  0xe1   :  { %17937 = vst [vmem:[#allocation47_spill] sm:$0xff] %v11617_v43  ;;  %17939 = vst [vmem:[#allocation49_spill] sm:$0xff] %v11624_v36  ;;  %v11673_v43 = vmul.f32 %v11290_v7, %v462_v19  ;;  %v11680_v36 = vmul.f32 %v11342_v40, %v452_v37 }
  0xe2   :  { %17940 = vst [vmem:[#allocation50_spill] sm:$0xff] %v11627_v28  ;;  %v11637_v5 = vpop.permute.xlu1 %466  ;;  %17945 = vst [vmem:[#allocation55_spill] sm:$0xff] %v11644_v58  ;;  %v11703_v28 = vmul.f32 %v11391_v11, %v462_v19  ;;  %v11709_v58 = vmul.f32 %v11396_v12, %v462_v19 }
  0xe3   :  { %17943 = vst [vmem:[#allocation53_spill] sm:$0xff] %v11637_v5  ;;  %17946 = vst [vmem:[#allocation56_spill] sm:$0xff] %v11647_v1  ;;  %2126 = vperm.xlu1 %10697, %v364_v55   ;;  %v366_v5 = vld [vmem:[#allocation2 + $0x350] sm:$0xff]  ;;  %v11663_v55 = vmul.f32 %v11326_v31, %v452_v37  ;;  %v11697_v1 = vmul.f32 %v11308_v22, %v462_v19 }
  0xe4   :  { %17947 = vst [vmem:[#allocation57_spill] sm:$0xff] %v11651_v35  ;;  %17948 = vst [vmem:[#allocation58_spill] sm:$0xff] %v11654_v47  ;;  %v11667_v35 = vmul.f32 %v11391_v11, %v452_v37  ;;  %v11670_v47 = vmul.f32 %v11396_v12, %v452_v37  ;;  %v482_v37 = vpop.permute.xlu0 %481  ;;  %897 = vperm.xlu0 %10696, %v304_v60   ;;  %v11726_v60 = vmul.f32 %v11407_v17, %v462_v19 }
  0xe5   :  { %17949 = vst [vmem:[#allocation59_spill] sm:$0xff] %v11657_v32  ;;  %17950 = vst [vmem:[#allocation60_spill] sm:$0xff] %v11663_v55  ;;  %v11718_v55 = vmul.f32 %v11296_v10, %v472_v3  ;;  %v11721_v32 = vmul.f32 %v11313_v23, %v472_v3 }
  0xe6   :  { %17951 = vst [vmem:[#allocation61_spill] sm:$0xff] %v11667_v35  ;;  %17952 = vst [vmem:[#allocation62_spill] sm:$0xff] %v11670_v47  ;;  %v11675_v9 = vpop.permute.xlu1 %476  ;;  %v11733_v47 = vmul.f32 %v11308_v22, %v472_v3  ;;  %v11736_v35 = vmul.f32 %v11342_v40, %v472_v3 }
  0xe7   :  { %17953 = vst [vmem:[#allocation63_spill] sm:$0xff] %v11673_v43  ;;  %17954 = vst [vmem:[#allocation64_spill] sm:$0xff] %v11675_v9  ;;  %3122 = vperm.xlu1 %10697, %v366_v5   ;;  %v11700_v5 = vmul.f32 %v11342_v40, %v462_v19  ;;  %v11743_v19 = vmul.f32 %v11407_v17, %v472_v3  ;;  %v11757_v43 = vmul.f32 %v11296_v10, %v482_v37 }
  0xe8   :  { %17955 = vst [vmem:[#allocation65_spill] sm:$0xff] %v11680_v36  ;;  %17956 = vst [vmem:[#allocation66_spill] sm:$0xff] %v11683_v16  ;;  %v492_v36 = vpop.permute.xlu0 %491  ;;  %v11749_v16 = vmul.f32 %v11290_v7, %v482_v37 }
  0xe9   :  { %17957 = vst [vmem:[#allocation67_spill] sm:$0xff] %v11687_v27  ;;  %17958 = vst [vmem:[#allocation68_spill] sm:$0xff] %v11690_v53  ;;  %v367_v27 = vld [vmem:[#allocation2 + $0x358] sm:$0x3]  ;;  %v11785_v53 = vmul.f32 %v11296_v10, %v492_v36  ;;  %v11794_v57 = vmul.f32 %v11308_v22, %v492_v36 }
  0xea   :  { %17959 = vst [vmem:[#allocation69_spill] sm:$0xff] %v11693_v56  ;;  %17960 = vst [vmem:[#allocation70_spill] sm:$0xff] %v11697_v1  ;;  %v11711_v9 = vpop.permute.xlu1 %486  ;;  %v11729_v1 = vmul.f32 %v11326_v31, %v472_v3  ;;  %v11746_v56 = vmul.f32 %v11396_v12, %v472_v3  ;;  %3268 = vperm.xlu0 %10696, %v367_v27   ;;  %v11764_v27 = vmul.f32 %v11326_v31, %v482_v37 }
  0xeb   :  { %17961 = vst [vmem:[#allocation71_spill] sm:$0xff] %v11700_v5  ;;  %17962 = vst [vmem:[#allocation72_spill] sm:$0xff] %v11703_v28  ;;  %v11715_v5 = vmul.f32 %v11290_v7, %v472_v3  ;;  %902 = vperm.xlu1 %10697, %v307_v41   ;;  %v11739_v41 = vmul.f32 %v11391_v11, %v472_v3  ;;  %v11777_v3 = vmul.f32 %v11290_v7, %v492_v36 }
  0xec   :  { %17963 = vst [vmem:[#allocation73_spill] sm:$0xff] %v11709_v58  ;;  %17964 = vst [vmem:[#allocation74_spill] sm:$0xff] %v11711_v9  ;;  %v308_v9 = vld [vmem:[#allocation2 + $0x180] sm:$0xff]  ;;  %v11761_v58 = vmul.f32 %v11313_v23, %v482_v37 }
  0xed   :  { %17965 = vst [vmem:[#allocation75_spill] sm:$0xff] %v11715_v5  ;;  %17966 = vst [vmem:[#allocation76_spill] sm:$0xff] %v11718_v55  ;;  %v11782_v5 = vmul.f32 %v11342_v40, %v482_v37  ;;  %v323_v55 = vld [vmem:[#allocation2 + $0x1f8] sm:$0xff] }
  0xee   :  { %17967 = vst [vmem:[#allocation77_spill] sm:$0xff] %v11721_v32  ;;  %17968 = vst [vmem:[#allocation78_spill] sm:$0xff] %v11726_v60  ;;  %v11771_v60 = vmul.f32 %v11308_v22, %v482_v37  ;;  %v11797_v32 = vmul.f32 %v11313_v23, %v492_v36 }
  0xef   :  { %17969 = vst [vmem:[#allocation79_spill] sm:$0xff] %v11729_v1  ;;  %17970 = vst [vmem:[#allocation80_spill] sm:$0xff] %v11733_v47  ;;  %v11751_v47 = vpop.permute.xlu1 %496  ;;  %1965 = vperm.xlu1 %10697, %v308_v9   ;;  %v11774_v9 = vmul.f32 %v11396_v12, %v482_v37  ;;  %v502_v1 = vpop.permute.xlu0 %501 }
  0xf0   :  { %17971 = vst [vmem:[#allocation81_spill] sm:$0xff] %v11736_v35  ;;  %17972 = vst [vmem:[#allocation82_spill] sm:$0xff] %v11739_v41  ;;  %v321_v35 = vld [vmem:[#allocation2 + $0x1e8] sm:$0xff]  ;;  %v11791_v41 = vmul.f32 %v11407_v17, %v482_v37 }
  0xf1   :  { %17973 = vst [vmem:[#allocation83_spill] sm:$0xff] %v11743_v19  ;;  %17974 = vst [vmem:[#allocation84_spill] sm:$0xff] %v11746_v56  ;;  %v309_v19 = vld [vmem:[#allocation2 + $0x188] sm:$0xff] }
  0xf2   :  { %17975 = vst [vmem:[#allocation85_spill] sm:$0xff] %v11749_v16  ;;  %17976 = vst [vmem:[#allocation86_spill] sm:$0xff] %v11751_v47  ;;  %v11767_v47 = vmul.f32 %v11391_v11, %v482_v37  ;;  %1970 = vperm.xlu0 %10696, %v309_v19   ;;  %v11817_v19 = vmul.f32 %v11407_v17, %v492_v36  ;;  %v11823_v37 = vmul.f32 %v11290_v7, %v502_v1 }
  0xf3   :  { %17977 = vst [vmem:[#allocation87_spill] sm:$0xff] %v11757_v43  ;;  %17978 = vst [vmem:[#allocation88_spill] sm:$0xff] %v11761_v58  ;;  %v11787_v28 = vpop.permute.xlu1 %506  ;;  %556 = vperm.xlu1 %10697, %v321_v35   ;;  %v11811_v35 = vmul.f32 %v11391_v11, %v492_v36  ;;  %v11813_v43 = vpop.permute.xlu0 %511  ;;  %v11835_v16 = vmul.f32 %v11326_v31, %v502_v1 }
  0xf4   :  { %17979 = vst [vmem:[#allocation89_spill] sm:$0xff] %v11764_v27  ;;  %17980 = vst [vmem:[#allocation90_spill] sm:$0xff] %v11767_v47  ;;  %v11832_v27 = vmul.f32 %v11313_v23, %v502_v1  ;;  %v11890_v56 = vmul.f32 %v11396_v12, %v11813_v43 }
  0xf5   :  { %17981 = vst [vmem:[#allocation91_spill] sm:$0xff] %v11771_v60  ;;  %17982 = vst [vmem:[#allocation92_spill] sm:$0xff] %v11774_v9  ;;  %v324_v60 = vld [vmem:[#allocation2 + $0x200] sm:$0xff]  ;;  %v11849_v9 = vmul.f32 %v11396_v12, %v502_v1 }
  0xf6   :  { %17983 = vst [vmem:[#allocation93_spill] sm:$0xff] %v11777_v3  ;;  %17984 = vst [vmem:[#allocation94_spill] sm:$0xff] %v11782_v5  ;;  %v11820_v5 = vmul.f32 %v11396_v12, %v492_v36  ;;  %561 = vperm.xlu0 %10696, %v323_v55   ;;  %v11842_v55 = vmul.f32 %v11342_v40, %v502_v1  ;;  %v11845_v3 = vmul.f32 %v11391_v11, %v502_v1 }
  0xf7   :  { %17985 = vst [vmem:[#allocation95_spill] sm:$0xff] %v11785_v53  ;;  %17986 = vst [vmem:[#allocation96_spill] sm:$0xff] %v11787_v28  ;;  %v11803_v28 = vmul.f32 %v11326_v31, %v492_v36  ;;  %566 = vperm.xlu1 %10697, %v324_v60   ;;  %v11853_v60 = vmul.f32 %v11290_v7, %v11813_v43  ;;  %v11857_v53 = vmul.f32 %v11296_v10, %v11813_v43 }
  0xf8   :  { %17987 = vst [vmem:[#allocation97_spill] sm:$0xff] %v11791_v41  ;;  %17988 = vst [vmem:[#allocation98_spill] sm:$0xff] %v11794_v57  ;;  %v11808_v57 = vmul.f32 %v11342_v40, %v492_v36  ;;  %v11825_v41 = vpop.permute.xlu1 %516  ;;  %v326_v36 = vld [vmem:[#allocation2 + $0x210] sm:$0xff] }
  0xf9   :  { %17989 = vst [vmem:[#allocation99_spill] sm:$0xff] %v11797_v32  ;;  %17990 = vst [vmem:[#allocation100_spill] sm:$0xff] %v11803_v28  ;;  %v11865_v32 = vmul.f32 %v11313_v23, %v11813_v43  ;;  %v329_v28 = vld [vmem:[#allocation2 + $0x228] sm:$0xff] }
  0xfa   :  { %17991 = vst [vmem:[#allocation101_spill] sm:$0xff] %v11808_v57  ;;  %17992 = vst [vmem:[#allocation102_spill] sm:$0xff] %v11811_v35  ;;  %v11829_v57 = vmul.f32 %v11296_v10, %v502_v1  ;;  %v11869_v35 = vmul.f32 %v11326_v31, %v11813_v43  ;;  %571 = vperm.xlu0 %10696, %v326_v36   ;;  %v11886_v36 = vmul.f32 %v11391_v11, %v11813_v43 }
  0xfb   :  { %17993 = vst [vmem:[#allocation103_spill] sm:$0xff] %v11813_v43  ;;  %17994 = vst [vmem:[#allocation104_spill] sm:$0xff] %v11817_v19  ;;  %v11839_v19 = vmul.f32 %v11308_v22, %v502_v1 }
  0xfc   :  { %17995 = vst [vmem:[#allocation105_spill] sm:$0xff] %v11820_v5  ;;  %17996 = vst [vmem:[#allocation106_spill] sm:$0xff] %v11823_v37  ;;  %v11871_v47 = vpop.permute.xlu1 %526  ;;  %v11882_v5 = vmul.f32 %v11342_v40, %v11813_v43  ;;  %v11897_v37 = vmul.f32 %v11407_v17, %v11813_v43 }
  0xfd   :  { %17997 = vst [vmem:[#allocation107_spill] sm:$0xff] %v11825_v41  ;;  %17998 = vst [vmem:[#allocation108_spill] sm:$0xff] %v11829_v57  ;;  %v327_v41 = vld [vmem:[#allocation2 + $0x218] sm:$0xff] }
  0xfe   :  { %17999 = vst [vmem:[#allocation109_spill] sm:$0xff] %v11832_v27  ;;  %18000 = vst [vmem:[#allocation110_spill] sm:$0xff] %v11835_v16  ;;  %576 = vperm.xlu1 %10697, %v327_v41   ;;  %581 = vperm.xlu0 %10696, %v329_v28   ;;  %v310_v28 = vld [vmem:[#allocation2 + $0x190] sm:$0x3] }
  0xff   :  { %18001 = vst [vmem:[#allocation111_spill] sm:$0xff] %v11839_v19  ;;  %18002 = vst [vmem:[#allocation112_spill] sm:$0xff] %v11842_v55  ;;  %v11859_v19 = vpop.permute.xlu0 %521  ;;  %v11877_v55 = vmul.f32 %v11407_v17, %v502_v1 }
 0x100   :  { %18003 = vst [vmem:[#allocation113_spill] sm:$0xff] %v11845_v3  ;;  %18004 = vst [vmem:[#allocation114_spill] sm:$0xff] %v11849_v9  ;;  %v11903_v27 = vpop.permute.xlu1 %536  ;;  %v11907_v41 = vmul.f32 %v11391_v11, %v11859_v19  ;;  %v11911_v58 = vmul.f32 %v11396_v12, %v11859_v19  ;;  %v11958_v9 = vmul.f32 %v11296_v10, %v11353_v45 }
 0x101   :  { %18005 = vst [vmem:[#allocation115_spill] sm:$0xff] %v11853_v60  ;;  %18006 = vst [vmem:[#allocation116_spill] sm:$0xff] %v11857_v53  ;;  %v11919_v3 = vmul.f32 %v11296_v10, %v11903_v27  ;;  %v11925_v60 = vmul.f32 %v11407_v17, %v11859_v19 }
 0x102   :  { %18007 = vst [vmem:[#allocation117_spill] sm:$0xff] %v11859_v19  ;;  %18008 = vst [vmem:[#allocation118_spill] sm:$0xff] %v11865_v32  ;;  %586 = vperm.xlu1 %10697, %v330_v59   ;;  %v11931_v59 = vmul.f32 %v11342_v40, %v11353_v45  ;;  %2121 = vperm.xlu0 %10696, %v310_v28  }
 0x103   :  { %18009 = vst [vmem:[#allocation119_spill] sm:$0xff] %v11869_v35  ;;  %18010 = vst [vmem:[#allocation120_spill] sm:$0xff] %v11871_v47  ;;  %v532_v47 = vpop.permute.xlu0 %531  ;;  %v316_v35 = vld [vmem:[#allocation2 + $0x1c0] sm:$0x3]  ;;  %v18023_v32 = vrot.slane %v11919_v3, 2 }
 0x104   :  { %18011 = vst [vmem:[#allocation121_spill] sm:$0xff] %v11877_v55  ;;  %18012 = vst [vmem:[#allocation122_spill] sm:$0xff] %v11882_v5  ;;  %v1039_v55 = vmul.f32 %v11290_v7, %v532_v47  ;;  %v1528_v16 = vmul.f32 %v11296_v10, %v532_v47  ;;  %v11915_v5 = vmul.f32 %v11290_v7, %v11903_v27 }
 0x105   :  { %18013 = vst [vmem:[#allocation123_spill] sm:$0xff] %v11886_v36  ;;  %18014 = vst [vmem:[#allocation124_spill] sm:$0xff] %v11890_v56  ;;  %v727_v1 = vmul.f32 %v11308_v22, %v532_v47  ;;  %v11935_v56 = vpop.permute.xlu1 %546 }
 0x106   :  { %18015 = vst [vmem:[#allocation125_spill] sm:$0xff] %v11897_v37  ;;  %18016 = vst [vmem:[#allocation126_spill] sm:$0xff] %v11907_v41  ;;  %v1264_v43 = vrot.slane %v1039_v55, 1  ;;  %v1753_v37 = vrot.slane %v1528_v16, 2  ;;  %v11939_v55 = vmul.f32 %v11407_v17, %v11353_v45  ;;  %v11943_v16 = vmul.f32 %v11290_v7, %v11353_v45  ;;  %907 = vperm.xlu1 %10697, %v316_v35  }
 0x107   :  { %18017 = vst [vmem:[#allocation127_spill] sm:$0xff] %v11911_v58  ;;  %18018 = vst [vmem:[#allocation128_spill] sm:$0xff] %v11915_v5  ;;  %v542_v57 = vpop.permute.xlu0 %541  ;;  %v18022_v19 = vrot.slane %v11915_v5, 1  ;;  %v11965_v35 = vmul.f32 %v11290_v7, %v11935_v56  ;;  %v11976_v41 = vmul.f32 %v11313_v23, %v11935_v56  ;;  %v11985_v2 = vmul.f32 %v11326_v31, %v11935_v56 }
 0x108   :  { %18019 = vst [vmem:[#allocation129_spill] sm:$0xff] %v11919_v3  ;;  %18020 = vst [vmem:[#allocation130_spill] sm:$0xff] %v11925_v60  ;;  %v1042_v53 = vmul.f32 %v11290_v7, %v542_v57  ;;  %v2183_v28 = vmul.f32 %v11313_v23, %v542_v57  ;;  %v319_v60 = vld [vmem:[#allocation2 + $0x1d8] sm:$0x3]  ;;  %v1531_v46 = vmul.f32 %v11296_v10, %v542_v57 }
 0x109   :  { %18021 = vst [vmem:[#allocation131_spill] sm:$0xff] %v11935_v56  ;;  %v1266_v47 = vsel %vm1183_vm2, %v1264_v43, %v18022_v19  ;;  %v1755_v43 = vsel %vm1672_vm3, %v1753_v37, %v18023_v32  ;;  %18024 = vst [vmem:[#allocation132_spill] sm:$0xff] %v11965_v35  ;;  %v2021_v58 = vmul.f32 %v11342_v40, %v542_v57  ;;  %912 = vperm.xlu0 %10696, %v319_v60   ;;  %v11978_v32 = vpop.permute.xlu1 %611 }
 0x10a   :  { %v1440_v36 = vadd.f32 %v1266_v47, %v727_v1  ;;  %v1269_v19 = vrot.slane %v1042_v53, 1  ;;  %v11969_v1 = vmul.f32 %v11296_v10, %v11935_v56  ;;  %18026 = vst [vmem:[#allocation134_spill] sm:$0xff] %v11976_v41  ;;  %v2407_v37 = vrot.slane %v2183_v28, 1  ;;  %18027 = vst [vmem:[#allocation135_spill] sm:$0xff] %v11985_v2  ;;  %917 = vperm.xlu1 %10697, %v322_v34  }
 0x10b   :  { %v11971_v47 = vpop.permute.xlu0 %551  ;;  %v2671_v3 = vmul.f32 %v11326_v31, %v542_v57  ;;  %v17707_v15 = vrot.slane %v11965_v35, 1  ;;  %v11991_v53 = vmul.f32 %v11313_v23, %v11353_v45  ;;  %v1758_v28 = vrot.slane %v1531_v46, 2 }
 0x10c   :  { %18025 = vst [vmem:[#allocation133_spill] sm:$0xff] %v11969_v1  ;;  %v1929_v5 = vadd.f32 %v1755_v43, %v1440_v36  ;;  %v325_v36 = vld [vmem:[#allocation2 + $0x208] sm:$0x3]  ;;  %v729_v43 = vmul.f32 %v11308_v22, %v542_v57  ;;  %v18030_v60 = vrot.slane %v11376_v4, 1  ;;  %v12009_v35 = vmul.f32 %v11326_v31, %v11353_v45 }
 0x10d   :  { %v1271_v54 = vsel %vm1183_vm2, %v1269_v19, %v17707_v15  ;;  %922 = vperm.xlu0 %10696, %v325_v36   ;;  %v12013_v19 = vmul.f32 %v11391_v11, %v11353_v45  ;;  %v2895_v36 = vrot.slane %v2671_v3, 2  ;;  %v12025_v34 = vmul.f32 %v11290_v7, %v11971_v47 }
 0x10e   :  { %v2085_v39 = vadd.f32 %v2021_v58, %v1929_v5  ;;  %v1442_v57 = vadd.f32 %v1271_v54, %v729_v43  ;;  %v12000_v58 = vpop.permute.xlu1 %621  ;;  %v18029_v5 = vrot.slane %v11943_v16, 1  ;;  %v12017_v54 = vmul.f32 %v11308_v22, %v11903_v27  ;;  %3107 = vperm.xlu1 %10697, %v311_v50   ;;  %v328_v27 = vld [vmem:[#allocation2 + $0x220] sm:$0x3] }
 0x10f   :  { %v11997_v49 = vpop.permute.xlu0 %616  ;;  %v18032_v43 = vrot.slane %v11976_v41, 1  ;;  %18033 = vst [vmem:[#allocation138_spill] sm:$0xff] %v12025_v34  ;;  %v12029_v14 = vmul.f32 %v11296_v10, %v11971_v47  ;;  %v18035_v41 = vrot.slane %v11969_v1, 2  ;;  %v12037_v50 = vmul.f32 %v11313_v23, %v11971_v47  ;;  %v331_v1 = vld [vmem:[#allocation2 + $0x238] sm:$0x3] }
 0x110   :  { %18028 = vst [vmem:[#allocation136_spill] sm:$0xff] %v11997_v49  ;;  %v1196_v46 = vsel %vm1183_vm2, %v18030_v60, %v18029_v5  ;;  %18031 = vst [vmem:[#allocation137_spill] sm:$0xff] %v12017_v54  ;;  %v312_v60 = vld [vmem:[#allocation2 + $0x1a0] sm:$0xff]  ;;  %v18039_v4 = vrot.slane %v11399_v13, 2  ;;  %v12053_v3 = vmul.f32 %v11308_v22, %v11935_v56  ;;  %v18043_v13 = vrot.slane %v11985_v2, 2 }
 0x111   :  { %v2409_v15 = vsel %vm1183_vm2, %v2407_v37, %v18032_v43  ;;  %18034 = vst [vmem:[#allocation139_spill] sm:$0xff] %v12029_v14  ;;  %v1760_v37 = vsel %vm1672_vm3, %v1758_v28, %v18035_v41  ;;  %18036 = vst [vmem:[#allocation140_spill] sm:$0xff] %v12037_v50  ;;  %v18038_v43 = vrot.slane %v11958_v9, 2  ;;  %v12057_v28 = vmul.f32 %v11326_v31, %v11971_v47 }
 0x112   :  { %v2583_v5 = vadd.f32 %v2409_v15, %v2085_v39  ;;  %v12042_v15 = vadd.f32 %v1196_v46, %v11422_v29  ;;  %18040 = vst [vmem:[#allocation142_spill] sm:$0xff] %v12053_v3  ;;  %v1931_v41 = vadd.f32 %v1760_v37, %v1442_v57  ;;  %v12061_v29 = vmul.f32 %v11391_v11, %v11971_v47  ;;  %v12063_v46 = vpop.permute.xlu1 %631 }
 0x113   :  { %v12039_v39 = vpop.permute.xlu0 %626  ;;  %v12049_v54 = vsel %vm1672_vm3, %v18039_v4, %v18038_v43  ;;  %18041 = vst [vmem:[#allocation143_spill] sm:$0xff] %v12057_v28  ;;  %3112 = vperm.xlu0 %10696, %v312_v60   ;;  %v2897_v4 = vsel %vm1672_vm3, %v2895_v36, %v18043_v13  ;;  %v12070_v43 = vmul.f32 %v11308_v22, %v11971_v47  ;;  %v313_v13 = vld [vmem:[#allocation2 + $0x1a8] sm:$0x3] }
 0x114   :  { %18037 = vst [vmem:[#allocation141_spill] sm:$0xff] %v12039_v39  ;;  %18042 = vst [vmem:[#allocation144_spill] sm:$0xff] %v12061_v29  ;;  %v2023_v57 = vmul.f32 %v11342_v40, %v11971_v47  ;;  %v12076_v37 = vmul.f32 %v11396_v12, %v11971_v47  ;;  %927 = vperm.xlu1 %10697, %v328_v27   ;;  %v3071_v60 = vadd.f32 %v2897_v4, %v2583_v5 }
 0x115   :  { %18044 = vst [vmem:[#allocation145_spill] sm:$0xff] %v12070_v43  ;;  %v12082_v36 = vmul.f32 %v11290_v7, %v11978_v32  ;;  %v3163_v56 = vmul.f32 %v11407_v17, %v11971_v47  ;;  %v12089_v49 = vmul.f32 %v11308_v22, %v11978_v32  ;;  %v12093_v5 = vmul.f32 %v11296_v10, %v11978_v32 }
 0x116   :  { %18045 = vst [vmem:[#allocation146_spill] sm:$0xff] %v12076_v37  ;;  %v12097_v4 = vadd.f32 %v2023_v57, %v1931_v41  ;;  %v12103_v43 = vmul.f32 %v11313_v23, %v11978_v32  ;;  %v12108_v50 = vmul.f32 %v11326_v31, %v11978_v32  ;;  %v12112_v14 = vmul.f32 %v11391_v11, %v11978_v32  ;;  %v12118_v57 = vpop.permute.xlu1 %641 }
 0x117   :  { %v12095_v27 = vpop.permute.xlu0 %636  ;;  %932 = vperm.xlu0 %10696, %v331_v1   ;;  %v12116_v41 = vmul.f32 %v11396_v12, %v11978_v32  ;;  %v12120_v2 = vadd.f32 %v3163_v56, %v3071_v60  ;;  %v12125_v47 = vmul.f32 %v11342_v40, %v11978_v32  ;;  %v12129_v3 = vmul.f32 %v11290_v7, %v12000_v58 }
 0x118   :  { %18046 = vst [vmem:[#allocation147_spill] sm:$0xff] %v12095_v27  ;;  %18047 = vst [vmem:[#allocation148_spill] sm:$0xff] %v12097_v4  ;;  %3263 = vperm.xlu1 %10697, %v313_v13   ;;  %v12134_v28 = vmul.f32 %v11407_v17, %v11978_v32  ;;  %v12138_v56 = vmul.f32 %v11296_v10, %v12000_v58  ;;  %v12142_v60 = vmul.f32 %v11313_v23, %v12000_v58 }
 0x119   :  { %18048 = vst [vmem:[#allocation149_spill] sm:$0xff] %v12112_v14  ;;  %18049 = vst [vmem:[#allocation150_spill] sm:$0xff] %v12116_v41  ;;  %v12149_v37 = vmul.f32 %v11326_v31, %v12000_v58  ;;  %v12153_v32 = vmul.f32 %v11391_v11, %v12000_v58  ;;  %v12157_v4 = vmul.f32 %v11396_v12, %v12000_v58  ;;  %v18073_v41 = vrot.slane %v11301_v20, 1 }
 0x11a   :  { %18050 = vst [vmem:[#allocation151_spill] sm:$0xff] %v12120_v2  ;;  %18051 = vst [vmem:[#allocation152_spill] sm:$0xff] %v12125_v47  ;;  %v12164_v1 = vmul.f32 %v11308_v22, %v12000_v58  ;;  %v12169_v47 = vmul.f32 %v11342_v40, %v12000_v58  ;;  %v12177_v2 = vmul.f32 %v11290_v7, %v12063_v46 }
 0x11b   :  { %18052 = vst [vmem:[#allocation153_spill] sm:$0xff] %v12129_v3  ;;  %18053 = vst [vmem:[#allocation154_spill] sm:$0xff] %v12134_v28  ;;  %v12144_v13 = vpop.permute.xlu0 %646  ;;  %v12183_v27 = vmul.f32 %v11407_v17, %v12039_v39  ;;  %v12187_v28 = vmul.f32 %v11296_v10, %v12063_v46  ;;  %v12194_v29 = vmul.f32 %v11308_v22, %v12063_v46  ;;  %v12310_v39 = vld [vmem:[%s17603_s2] ss:$0 sm:$0xff] }
 0x11c   :  { %18054 = vst [vmem:[#allocation155_spill] sm:$0xff] %v12138_v56  ;;  %18055 = vst [vmem:[#allocation156_spill] sm:$0xff] %v12142_v60  ;;  %v12198_v56 = vmul.f32 %v11342_v40, %v12063_v46  ;;  %v12249_v14 = vmul.f32 %v11342_v40, %v12118_v57  ;;  %v12259_v20 = vmul.f32 %v11326_v31, %v12118_v57 }
 0x11d   :  { %18056 = vst [vmem:[#allocation157_spill] sm:$0xff] %v12144_v13  ;;  %18057 = vst [vmem:[#allocation158_spill] sm:$0xff] %v12149_v37  ;;  %v12173_v13 = vmul.f32 %v11407_v17, %v12000_v58  ;;  %v12206_v58 = vmul.f32 %v11326_v31, %v12063_v46  ;;  %v12225_v37 = vmul.f32 %v11290_v7, %v12118_v57 }
 0x11e   :  { %18058 = vst [vmem:[#allocation159_spill] sm:$0xff] %v12153_v32  ;;  %18059 = vst [vmem:[#allocation160_spill] sm:$0xff] %v12157_v4  ;;  %v12291_v32 = vld [vmem:[%s17602_s1 + $0x1] ss:$0 sm:$0xff] }
 0x11f   :  { %18060 = vst [vmem:[#allocation161_spill] sm:$0xff] %v12164_v1  ;;  %18061 = vst [vmem:[#allocation162_spill] sm:$0xff] %v12169_v47  ;;  %v828_v1 = vpop.permute.xlu1 %827  ;;  %v833_v34 = vpop.permute.xlu0 %832  ;;  %v12210_v47 = vmul.f32 %v11391_v11, %v12063_v46 }
 0x120   :  { %18062 = vst [vmem:[#allocation163_spill] sm:$0xff] %v12173_v13  ;;  %18063 = vst [vmem:[#allocation164_spill] sm:$0xff] %v12177_v2  ;;  %v993_v4 = vmul.f32 %v11290_v7, %v828_v1  ;;  %v1482_v60 = vmul.f32 %v11296_v10, %v828_v1  ;;  %v996_v13 = vmul.f32 %v11290_v7, %v833_v34 }
 0x121   :  { %18064 = vst [vmem:[#allocation165_spill] sm:$0xff] %v12183_v27  ;;  %18065 = vst [vmem:[#allocation166_spill] sm:$0xff] %v12187_v28  ;;  %v12202_v27 = vmul.f32 %v11313_v23, %v12063_v46  ;;  %v12231_v2 = vmul.f32 %v11308_v22, %v12118_v57  ;;  %v2137_v3 = vmul.f32 %v11313_v23, %v833_v34 }
 0x122   :  { %18066 = vst [vmem:[#allocation167_spill] sm:$0xff] %v12194_v29  ;;  %18067 = vst [vmem:[#allocation168_spill] sm:$0xff] %v12198_v56  ;;  %v12215_v29 = vmul.f32 %v11407_v17, %v12063_v46  ;;  %v12219_v56 = vmul.f32 %v11396_v12, %v12063_v46  ;;  %v12235_v46 = vmul.f32 %v11296_v10, %v12118_v57  ;;  %v1676_v1 = vrot.slane %v1482_v60, 2 }
 0x123   :  { %18068 = vst [vmem:[#allocation169_spill] sm:$0xff] %v12206_v58  ;;  %18070 = vst [vmem:[#allocation171_spill] sm:$0xff] %v12225_v37  ;;  %v2625_v10 = vmul.f32 %v11326_v31, %v833_v34  ;;  %v12253_v28 = vmul.f32 %v11313_v23, %v12118_v57  ;;  %v12267_v23 = vld [vmem:[%s17602_s1 + $0x2] ss:$0 sm:$0xff]  ;;  %v3766_v31 = vmul.f32 %v11396_v12, %v11353_v45 }
 0x124   :  { %18069 = vst [vmem:[#allocation170_spill] sm:$0xff] %v12215_v29  ;;  %18071 = vst [vmem:[#allocation172_spill] sm:$0xff] %v12231_v2  ;;  %v1187_v29 = vrot.slane %v993_v4, 1  ;;  %v1192_v2 = vrot.slane %v996_v13, 1  ;;  %v2330_v13 = vrot.slane %v2137_v3, 1  ;;  %v838_v4 = vpop.permute.xlu1 %837  ;;  %v12279_v3 = vmul.f32 %v11396_v12, %v12118_v57 }
 0x125   :  { %18072 = vst [vmem:[#allocation173_spill] sm:$0xff] %v12235_v46  ;;  %18074 = vst [vmem:[#allocation174_spill] sm:$0xff] %v12249_v14  ;;  %v3958_v45 = vrot.slane %v3766_v31, 2  ;;  %v999_v7 = vmul.f32 %v12291_v32, %v838_v4 }
 0x126   :  { %v1188_v22 = vsel %vm1183_vm2, %v18073_v41, %v1187_v29  ;;  %18075 = vst [vmem:[#allocation175_spill] sm:$0xff] %v12253_v28  ;;  %18076 = vst [vmem:[#allocation176_spill] sm:$0xff] %v12259_v20  ;;  %v18077_v29 = vrot.slane %v11316_v24, 2  ;;  %v12275_v24 = vmul.f32 %v11391_v11, %v12118_v57  ;;  %v18102_v28 = vld [vmem:[#allocation11_spill] sm:$0xff] }
 0x127   :  { %v1409_v60 = vadd.f32 %v1188_v22, %v11379_v6  ;;  %v1485_v6 = vmul.f32 %v12267_v23, %v833_v34  ;;  %v3470_v22 = vrot.slane %v12013_v19, 1  ;;  %18079 = vst [vmem:[#allocation178_spill] sm:$0xff] %v12279_v3  ;;  %v18081_v19 = vrot.slane %v11432_v21, 1 }
 0x128   :  { %v1677_v41 = vsel %vm1672_vm3, %v18077_v29, %v1676_v1  ;;  %18078 = vst [vmem:[#allocation177_spill] sm:$0xff] %v12275_v24  ;;  %v18080_v1 = vrot.slane %v11320_v25, 1  ;;  %v2818_v29 = vrot.slane %v2625_v10, 2  ;;  %v12297_v25 = vmul.f32 %v11407_v17, %v12118_v57 }
 0x129   :  { %v1898_v40 = vadd.f32 %v1677_v41, %v1409_v60  ;;  %v3471_v41 = vsel %vm1183_vm2, %v18081_v19, %v3470_v22 }
 0x12a   :  { %v1193_v60 = vsel %vm1183_vm2, %v18080_v1, %v1192_v2  ;;  %18082 = vst [vmem:[#allocation179_spill] sm:$0xff] %v12297_v25  ;;  %v3693_v2 = vadd.f32 %v3471_v41, %v11501_v52  ;;  %v18084_v1 = vrot.slane %v11435_v42, 2  ;;  %v1197_v41 = vrot.slane %v999_v7, 1  ;;  %v12334_v7 = vld [vmem:[%s17602_s1 + $0x4] ss:$0 sm:$0xff] }
 0x12b   :  { %v2054_v34 = vadd.f32 %v11416_v26, %v1898_v40  ;;  %v18083_v26 = vrot.slane %v11337_v38, 1  ;;  %v1681_v40 = vrot.slane %v1485_v6, 2  ;;  %v1411_v17 = vadd.f32 %v1193_v60, %v11383_v8 }
 0x12c   :  { %v3959_v19 = vsel %vm1672_vm3, %v18084_v1, %v3958_v45  ;;  %v18085_v38 = vrot.slane %v11351_v44, 2  ;;  %v3767_v8 = vmul.f32 %v11396_v12, %v838_v4  ;;  %v18086_v44 = vrot.slane %v11331_v33, 2 }
 0x12d   :  { %v2331_v21 = vsel %vm1183_vm2, %v18083_v26, %v2330_v13  ;;  %v4181_v52 = vadd.f32 %v3959_v19, %v3693_v2  ;;  %v3279_v13 = vmul.f32 %v11391_v11, %v838_v4  ;;  %v18087_v11 = vrot.slane %v11991_v53, 1 }
 0x12e   :  { %v2552_v31 = vadd.f32 %v2331_v21, %v2054_v34  ;;  %v2819_v57 = vsel %vm1672_vm3, %v18085_v38, %v2818_v29  ;;  %v1488_v21 = vmul.f32 %v12267_v23, %v838_v4  ;;  %v1682_v60 = vsel %vm1672_vm3, %v18086_v44, %v1681_v40 }
 0x12f   :  { %v4252_v26 = vadd.f32 %v12310_v39, %v4181_v52  ;;  %v3472_v1 = vrot.slane %v3279_v13, 1  ;;  %v18088_v2 = vrot.slane %v11410_v18, 1  ;;  %v2140_v19 = vmul.f32 %v12334_v7, %v838_v4 }
 0x130   :  { %v3040_v34 = vadd.f32 %v2819_v57, %v2552_v31  ;;  %v1900_v12 = vadd.f32 %v1682_v60, %v1411_v17  ;;  %v2821_v57 = vrot.slane %v12009_v35, 2  ;;  %v18089_v18 = vrot.slane %v11943_v16, 1 }
 0x131   :  { %v2334_v31 = vsel %vm1183_vm2, %v18088_v2, %v18087_v11  ;;  %v4316_v38 = vmax.f32 %v4252_v26, 0.0  ;;  %v3473_v40 = vsel %vm1183_vm2, %v3470_v22, %v3472_v1  ;;  %v1686_v2 = vrot.slane %v1488_v21, 2 }
 0x132   :  { %v3196_v29 = vadd.f32 %v11939_v55, %v3040_v34  ;;  %v2553_v33 = vadd.f32 %v2334_v31, %v11447_v51  ;;  %v12339_v55 = vpop.permute.xlu0 %842  ;;  %v1198_v52 = vsel %vm1183_vm2, %v18089_v18, %v1197_v41  ;;  %v3960_v34 = vrot.slane %v3767_v8, 2  ;;  %v12349_v51 = vld [vmem:[%s17602_s1 + $0x5] ss:$0 sm:$0xff] }
 0x133   :  { %v4444_v44 = vcombine.high %v4316_v38, %v4316_v38  ;;  %v4451_v11 = vrot.slane %v4316_v38, %v11371_v62  ;;  %v2628_v22 = vmul.f32 %v12349_v51, %v838_v4  ;;  %v2335_v17 = vrot.slane %v2140_v19, 1 }
 0x134   :  { %v3694_v13 = vadd.f32 %v3473_v40, %v3196_v29  ;;  %v3961_v35 = vsel %vm1672_vm3, %v3958_v45, %v3960_v34  ;;  %v1001_v16 = vmul.f32 %v12291_v32, %v11369_v61  ;;  %v1002_v41 = vmul.f32 %v12291_v32, %v12339_v55 }
 0x135   :  { %v2056_v26 = vadd.f32 %v11931_v59, %v1900_v12  ;;  %v4458_v21 = vrot.slane %v4444_v44, %v11371_v62  ;;  %v1413_v1 = vadd.f32 %v1198_v52, %v11954_v63  ;;  %v18090_v60 = vrot.slane %v11425_v30, 2 }
 0x136   :  { %v4182_v8 = vadd.f32 %v3961_v35, %v3694_v13  ;;  %v4459_v29 = vcombine.high %v4451_v11, %v4451_v11  ;;  %v1200_v31 = vrot.slane %v1001_v16, 1  ;;  %v1202_v45 = vrot.slane %v1002_v41, 1  ;;  %v12384_v16 = vld [vmem:[%s17602_s1] ss:$0 sm:$0xff] }
 0x137   :  { %v2822_v4 = vsel %vm1672_vm3, %v18090_v60, %v2821_v57  ;;  %v1901_v19 = vadd.f32 %v12049_v54, %v12042_v15  ;;  %v2823_v40 = vrot.slane %v2628_v22, 2  ;;  %v1490_v59 = vmul.f32 %v12267_v23, %v11369_v61 }
 0x138   :  { %v3041_v38 = vadd.f32 %v2822_v4, %v2553_v33  ;;  %v18091_v12 = vrot.slane %v11958_v9, 2  ;;  %v18092_v18 = vrot.slane %v11991_v53, 1  ;;  %v4253_v52 = vadd.f32 %v12310_v39, %v4182_v8 }
 0x139   :  { %v1491_v13 = vmul.f32 %v12267_v23, %v12339_v55  ;;  %v4460_v34 = vcombine.high %v4458_v21, %v4458_v21  ;;  %v10233_v54 = vrot.slane %v4451_v11, 9  ;;  %v10234_v44 = vrot.slane %v4459_v29, 9 }
 0x13a   :  { %v1687_v63 = vsel %vm1672_vm3, %v18091_v12, %v1686_v2  ;;  %v2336_v30 = vsel %vm1183_vm2, %v18092_v18, %v2335_v17  ;;  %v4317_v22 = vmax.f32 %v4253_v52, 0.0  ;;  %v18093_v35 = vrot.slane %v11441_v48, 1 }
 0x13b   :  { %v1902_v15 = vadd.f32 %v1687_v63, %v1413_v1  ;;  %v2554_v33 = vadd.f32 %v2336_v30, %v2056_v26  ;;  %v1203_v2 = vsel %vm1183_vm2, %v1200_v31, %v1202_v45  ;;  %v10235_v53 = vrot.slane %v4458_v21, 9 }
 0x13c   :  { %v1201_v9 = vsel %vm1183_vm2, %v18093_v35, %v1200_v31  ;;  %v2824_v17 = vsel %vm1672_vm3, %v2821_v57, %v2823_v40  ;;  %v702_v41 = vmul.f32 %v12384_v16, %v11369_v61  ;;  %v1689_v26 = vrot.slane %v1490_v59, 2 }
 0x13d   :  { %v4461_v1 = vcombine.high %v4317_v22, %v4317_v22  ;;  %v4468_v8 = vrot.slane %v4317_v22, %v11371_v62  ;;  %v1691_v48 = vrot.slane %v1491_v13, 2  ;;  %v2142_v60 = vmul.f32 %v12334_v7, %v11369_v61  ;;  %v18094_v13 = vld [vmem:[#allocation8_spill] sm:$0xff] }
 0x13e   :  { %v10236_v4 = vrot.slane %v4460_v34, 9  ;;  %v3042_v31 = vadd.f32 %v2824_v17, %v2554_v33  ;;  %v1414_v57 = vadd.f32 %v1201_v9, %v11463_v0  ;;  %v1415_v45 = vadd.f32 %v1203_v2, %v702_v41  ;;  %v18096_v2 = vld [vmem:[#allocation13_spill] sm:$0xff] }
 0x13f   :  { %v12392_v40 = vmax.f32 %v4451_v11, %v10233_v54  ;;  %v12394_v12 = vmax.f32 %v4459_v29, %v10234_v44  ;;  %v2143_v63 = vmul.f32 %v12334_v7, %v12339_v55  ;;  %v2630_v59 = vmul.f32 %v12349_v51, %v11369_v61  ;;  %v12410_v29 = vld [vmem:[%s17602_s1 + $0x3] ss:$0 sm:$0xff] }
 0x140   :  { %v12400_v18 = vmax.f32 %v4458_v21, %v10235_v53  ;;  %v4475_v30 = vrot.slane %v4461_v1, %v11371_v62  ;;  %v4476_v52 = vcombine.high %v4468_v8, %v4468_v8  ;;  %v18095_v33 = vrot.slane %v18094_v13, 2 }
 0x141   :  { %v10237_v22 = vrot.slane %v4468_v8, 9  ;;  %v1692_v11 = vsel %vm1672_vm3, %v1689_v26, %v1691_v48  ;;  %v1994_v54 = vmul.f32 %v12410_v29, %v11369_v61  ;;  %v2338_v21 = vrot.slane %v2142_v60, 1 }
 0x142   :  { %v1690_v0 = vsel %vm1672_vm3, %v18095_v33, %v1689_v26  ;;  %v12414_v44 = vmax.f32 %v4460_v34, %v10236_v4  ;;  %v12418_v9 = vadd.f32 %v1692_v11, %v1415_v45  ;;  %v2057_v53 = vadd.f32 %v18096_v2, %v1901_v19  ;;  %v12426_v34 = vld [vmem:[%s17602_s1 + $0x6] ss:$0 sm:$0xff]  ;;  %v12438_v45 = vld [vmem:[%s17602_s1 + $0x7] ss:$0 sm:$0xff] }
 0x143   :  { %v12416_v35 = vadd.f32 %v1690_v0, %v1414_v57  ;;  %v2058_v17 = vadd.f32 %v1994_v54, %v1902_v15  ;;  %v2340_v41 = vrot.slane %v2143_v63, 1  ;;  %v2631_v26 = vmul.f32 %v12349_v51, %v12339_v55  ;;  %v18097_v19 = vld [vmem:[#allocation9_spill] sm:$0xff] }
 0x144   :  { %v2826_v1 = vrot.slane %v2630_v59, 2  ;;  %v4477_v48 = vcombine.high %v4475_v30, %v4475_v30  ;;  %v10238_v13 = vrot.slane %v4476_v52, 9  ;;  %v10239_v33 = vrot.slane %v4475_v30, 9  ;;  %v18099_v0 = vld [vmem:[#allocation17_spill] sm:$0xff] }
 0x145   :  { %v3134_v60 = vmul.f32 %v12426_v34, %v11369_v61  ;;  %v12430_v4 = vmax.f32 %v4468_v8, %v10237_v22  ;;  %v18098_v15 = vrot.slane %v18097_v19, 1  ;;  %v3281_v63 = vmul.f32 %v12438_v45, %v11369_v61  ;;  %v12448_v8 = vld [vmem:[%s17602_s1 + $0x8] ss:$0 sm:$0xff]  ;;  %v592_v19 = vpop.permute.xlu1 %591 }
 0x146   :  { %v3282_v59 = vmul.f32 %v12438_v45, %v12339_v55  ;;  %v3197_v11 = vadd.f32 %v18099_v0, %v3041_v38  ;;  %v3769_v22 = vmul.f32 %v12448_v8, %v11369_v61  ;;  %v3770_v2 = vmul.f32 %v12448_v8, %v12339_v55  ;;  %v18100_v38 = vld [vmem:[#allocation10_spill] sm:$0xff] }
 0x147   :  { %v2339_v57 = vsel %vm1183_vm2, %v18098_v15, %v2338_v21  ;;  %v3198_v54 = vadd.f32 %v3134_v60, %v3042_v31  ;;  %v2341_v15 = vsel %vm1183_vm2, %v2338_v21, %v2340_v41  ;;  %v2828_v10 = vrot.slane %v2631_v26, 2 }
 0x148   :  { %v3475_v42 = vrot.slane %v3281_v63, 1  ;;  %v3477_v6 = vrot.slane %v3282_v59, 1  ;;  %v10240_v20 = vrot.slane %v4477_v48, 9  ;;  %v18101_v31 = vrot.slane %v18100_v38, 2  ;;  %v18104_v59 = vld [vmem:[#allocation14_spill] sm:$0xff] }
 0x149   :  { %v3963_v0 = vrot.slane %v3769_v22, 2  ;;  %v3965_v3 = vrot.slane %v3770_v2, 2  ;;  %v2555_v24 = vadd.f32 %v2339_v57, %v2057_v53  ;;  %v2556_v25 = vadd.f32 %v2341_v15, %v2058_v17 }
 0x14a   :  { %v2827_v60 = vsel %vm1672_vm3, %v18101_v31, %v2826_v1  ;;  %v18103_v61 = vrot.slane %v18102_v28, 1  ;;  %v3478_v55 = vsel %vm1183_vm2, %v3475_v42, %v3477_v6  ;;  %v12462_v46 = vmax.f32 %v4476_v52, %v10238_v13 }
 0x14b   :  { %v12464_v21 = vmax.f32 %v4475_v30, %v10239_v33  ;;  %v3696_v26 = vadd.f32 %v3478_v55, %v3198_v54  ;;  %v2829_v63 = vsel %vm1672_vm3, %v2826_v1, %v2828_v10  ;;  %v18105_v38 = vrot.slane %v18104_v59, 2 }
 0x14c   :  { %v3476_v14 = vsel %vm1183_vm2, %v18103_v61, %v3475_v42  ;;  %v3966_v53 = vsel %vm1672_vm3, %v3963_v0, %v3965_v3  ;;  %v12472_v28 = vmul.f32 %v12291_v32, %v592_v19  ;;  %v12475_v6 = vmul.f32 %v12267_v23, %v592_v19 }
 0x14d   :  { %v3695_v41 = vadd.f32 %v3476_v14, %v3197_v11  ;;  %v3964_v22 = vsel %vm1672_vm3, %v18105_v38, %v3963_v0  ;;  %v4184_v57 = vadd.f32 %v3966_v53, %v3696_v26  ;;  %v12478_v42 = vmul.f32 %v12334_v7, %v592_v19  ;;  %v12480_v14 = vpop.permute.xlu1 %601 }
 0x14e   :  { %18106 = vst [vmem:[#allocation8_spill] sm:$0xff] %v12472_v28  ;;  %18107 = vst [vmem:[#allocation13_spill] sm:$0xff] %v12475_v6  ;;  %v12482_v10 = vmax.f32 %v4477_v48, %v10240_v20  ;;  %v12484_v30 = vadd.f32 %v2827_v60, %v2555_v24  ;;  %v12486_v52 = vadd.f32 %v2829_v63, %v2556_v25 }
 0x14f   :  { %v4183_v17 = vadd.f32 %v3964_v22, %v3695_v41  ;;  %18108 = vst [vmem:[#allocation9_spill] sm:$0xff] %v12478_v42  ;;  %v12489_v3 = vmul.f32 %v12349_v51, %v592_v19  ;;  %v4255_v13 = vadd.f32 %v12310_v39, %v4184_v57  ;;  %v12494_v33 = vmul.f32 %v12384_v16, %v592_v19 }
 0x150   :  { %v12497_v11 = vmul.f32 %v12410_v29, %v592_v19  ;;  %v12501_v24 = vmul.f32 %v12438_v45, %v592_v19  ;;  %v12504_v25 = vmul.f32 %v12448_v8, %v592_v19  ;;  %v12508_v48 = vmul.f32 %v12291_v32, %v12480_v14 }
 0x151   :  { %18109 = vst [vmem:[#allocation17_spill] sm:$0xff] %v12489_v3  ;;  %v4254_v1 = vadd.f32 %v12310_v39, %v4183_v17  ;;  %18110 = vst [vmem:[#allocation10_spill] sm:$0xff] %v12494_v33  ;;  %v4319_v2 = vmax.f32 %v4255_v13, 0.0  ;;  %v12514_v0 = vmul.f32 %v12426_v34, %v592_v19  ;;  %v12518_v61 = vmul.f32 %v12384_v16, %v12480_v14 }
 0x152   :  { %18111 = vst [vmem:[#allocation11_spill] sm:$0xff] %v12497_v11  ;;  %18112 = vst [vmem:[#allocation14_spill] sm:$0xff] %v12501_v24  ;;  %v12522_v55 = vmul.f32 %v12267_v23, %v12480_v14  ;;  %v12531_v53 = vmul.f32 %v12410_v29, %v12480_v14  ;;  %v12538_v19 = vmul.f32 %v12334_v7, %v12480_v14 }
 0x153   :  { %18113 = vst [vmem:[#allocation180_spill] sm:$0xff] %v12504_v25  ;;  %18114 = vst [vmem:[#allocation181_spill] sm:$0xff] %v12508_v48  ;;  %v4318_v54 = vmax.f32 %v4254_v1, 0.0  ;;  %v4495_v63 = vcombine.high %v4319_v2, %v4319_v2  ;;  %v4502_v59 = vrot.slane %v4319_v2, %v11371_v62  ;;  %v12540_v25 = vpop.permute.xlu0 %596 }
 0x154   :  { %18115 = vst [vmem:[#allocation182_spill] sm:$0xff] %v12514_v0  ;;  %18116 = vst [vmem:[#allocation183_spill] sm:$0xff] %v12518_v61 }
 0x155   :  { %18117 = vst [vmem:[#allocation184_spill] sm:$0xff] %v12522_v55  ;;  %v4478_v41 = vcombine.high %v4318_v54, %v4318_v54  ;;  %v4485_v26 = vrot.slane %v4318_v54, %v11371_v62  ;;  %18118 = vst [vmem:[#allocation185_spill] sm:$0xff] %v12531_v53  ;;  %v4509_v1 = vrot.slane %v4495_v63, %v11371_v62  ;;  %v10245_v2 = vrot.slane %v4502_v59, 9 }
 0x156   :  { %v4510_v13 = vcombine.high %v4502_v59, %v4502_v59  ;;  %18119 = vst [vmem:[#allocation186_spill] sm:$0xff] %v12538_v19  ;;  %18120 = vst [vmem:[#allocation187_spill] sm:$0xff] %v12540_v25 }
 0x157   :  { %v4492_v17 = vrot.slane %v4478_v41, %v11371_v62  ;;  %v4493_v57 = vcombine.high %v4485_v26, %v4485_v26  ;;  %v10241_v54 = vrot.slane %v4485_v26, 9  ;;  %v4511_v60 = vcombine.high %v4509_v1, %v4509_v1 }
 0x158   :  { %v10246_v41 = vrot.slane %v4510_v13, 9  ;;  %v10247_v20 = vrot.slane %v4509_v1, 9  ;;  %v6568_v63 = vmax.f32 %v4502_v59, %v10245_v2 }
 0x159   :  { %v4494_v22 = vcombine.high %v4492_v17, %v4492_v17  ;;  %v10242_v31 = vrot.slane %v4493_v57, 9  ;;  %v10243_v15 = vrot.slane %v4492_v17, 9  ;;  %v6564_v0 = vmax.f32 %v4485_v26, %v10241_v54 }
 0x15a   :  { %v10248_v53 = vrot.slane %v4511_v60, 9  ;;  %v6569_v38 = vmax.f32 %v4510_v13, %v10246_v41  ;;  %v6570_v55 = vmax.f32 %v4509_v1, %v10247_v20  ;;  %v6816_v3 = vmax.f32 %v12430_v4, %v6568_v63 }
 0x15b   :  { %v10244_v11 = vrot.slane %v4494_v22, 9  ;;  %v6565_v61 = vmax.f32 %v4493_v57, %v10242_v31  ;;  %v6566_v48 = vmax.f32 %v4492_v17, %v10243_v15  ;;  %v6812_v24 = vmax.f32 %v12392_v40, %v6564_v0  ;;  %v652_v31 = vpop.permute.xlu1 %651 }
 0x15c   :  { %v12548_v26 = vmul.f32 %v12349_v51, %v12480_v14  ;;  %v6571_v15 = vmax.f32 %v4511_v60, %v10248_v53  ;;  %v6817_v59 = vmax.f32 %v12462_v46, %v6569_v38  ;;  %v6818_v17 = vmax.f32 %v12464_v21, %v6570_v55 }
 0x15d   :  { %v6567_v42 = vmax.f32 %v4494_v22, %v10244_v11  ;;  %v6813_v6 = vmax.f32 %v12394_v12, %v6565_v61  ;;  %v6814_v33 = vmax.f32 %v12400_v18, %v6566_v48  ;;  %v12554_v40 = vmul.f32 %v12426_v34, %v12480_v14  ;;  %v18123_v12 = vld [vmem:[#allocation6_spill] sm:$0xff] }
 0x15e   :  { %18121 = vst [vmem:[#allocation188_spill] sm:$0xff] %v12548_v26  ;;  %v7113_v11 = vrot.slane %v6812_v24, %v18123_v12  ;;  %v7129_v48 = vrot.slane %v6816_v3, %v18123_v12  ;;  %v12564_v46 = vmul.f32 %v12438_v45, %v12480_v14  ;;  %v12568_v21 = vmul.f32 %v12448_v8, %v12480_v14  ;;  %v12573_v24 = vpop.permute.xlu0 %606  ;;  %v18179_v26 = vld [vmem:[#allocation34_spill] sm:$0xff] }
 0x15f   :  { %18122 = vst [vmem:[#allocation189_spill] sm:$0xff] %v12554_v40  ;;  %v6815_v4 = vmax.f32 %v12414_v44, %v6567_v42  ;;  %v7117_v18 = vrot.slane %v6813_v6, %v18123_v12  ;;  %v7121_v20 = vrot.slane %v6814_v33, %v18123_v12  ;;  %v7133_v42 = vrot.slane %v6817_v59, %v18123_v12  ;;  %v662_v57 = vpop.permute.xlu1 %661 }
 0x160   :  { %18124 = vst [vmem:[#allocation6_spill] sm:$0xff] %v12564_v46  ;;  %18125 = vst [vmem:[#allocation190_spill] sm:$0xff] %v12568_v21  ;;  %v12576_v3 = vmul.f32 %v12291_v32, %v652_v31  ;;  %v6819_v33 = vmax.f32 %v12482_v10, %v6571_v15  ;;  %v12582_v14 = vmul.f32 %v12267_v23, %v652_v31 }
 0x161   :  { %v7125_v44 = vrot.slane %v6815_v4, %v18123_v12  ;;  %v7623_v6 = vsel %vm7622_vm4, %v7117_v18, %v7113_v11  ;;  %18126 = vst [vmem:[#allocation191_spill] sm:$0xff] %v12573_v24  ;;  %v7137_v55 = vrot.slane %v6818_v17, %v18123_v12  ;;  %v12587_v22 = vmul.f32 %v12384_v16, %v652_v31  ;;  %v18181_v24 = vld [vmem:[#allocation29_spill] sm:$0xff] }
 0x162   :  { %18127 = vst [vmem:[#allocation192_spill] sm:$0xff] %v12576_v3  ;;  %v7625_v0 = vsel %vm7624_vm5, %v7121_v20, %v7623_v6  ;;  %18128 = vst [vmem:[#allocation193_spill] sm:$0xff] %v12582_v14  ;;  %v12590_v53 = vmul.f32 %v12334_v7, %v652_v31  ;;  %v12596_v54 = vmul.f32 %v12349_v51, %v652_v31  ;;  %v18160_v3 = vld [vmem:[#allocation12_spill] sm:$0xff]  ;;  %v18182_v28 = vrot.slane %v18181_v24, 2 }
 0x163   :  { %v7627_v38 = vsel %vm7626_vm6, %v7125_v44, %v7625_v0  ;;  %18129 = vst [vmem:[#allocation194_spill] sm:$0xff] %v12587_v22  ;;  %v12601_v63 = vmul.f32 %v12438_v45, %v652_v31  ;;  %v12604_v15 = vmul.f32 %v12448_v8, %v652_v31  ;;  %v7141_v59 = vrot.slane %v6819_v33, %v18123_v12  ;;  %v12619_v44 = vpop.permute.xlu0 %656 }
 0x164   :  { %18130 = vst [vmem:[#allocation195_spill] sm:$0xff] %v12590_v53  ;;  %v7629_v10 = vsel %vm7628_vm7, %v7129_v48, %v7627_v38  ;;  %18131 = vst [vmem:[#allocation196_spill] sm:$0xff] %v12596_v54  ;;  %v12609_v4 = vmul.f32 %v12291_v32, %v662_v57  ;;  %v12612_v11 = vmul.f32 %v12267_v23, %v662_v57  ;;  %v18143_v48 = vld [vmem:[#allocation7_spill] sm:$0xff]  ;;  %v18151_v54 = vld [vmem:[#allocation22_spill] sm:$0xff] }
 0x165   :  { %v7631_v2 = vsel %vm7630_vm8, %v7133_v42, %v7629_v10  ;;  %18132 = vst [vmem:[#allocation197_spill] sm:$0xff] %v12601_v63  ;;  %18133 = vst [vmem:[#allocation198_spill] sm:$0xff] %v12604_v15  ;;  %v12616_v20 = vmul.f32 %v12410_v29, %v652_v31  ;;  %v12622_v42 = vmul.f32 %v12334_v7, %v662_v57 }
 0x166   :  { %18134 = vst [vmem:[#allocation199_spill] sm:$0xff] %v12609_v4  ;;  %18135 = vst [vmem:[#allocation200_spill] sm:$0xff] %v12612_v11  ;;  %v7633_v18 = vsel %vm7632_vm9, %v7137_v55, %v7631_v2  ;;  %v12626_v33 = vmul.f32 %v12426_v34, %v652_v31  ;;  %v12629_v0 = vmul.f32 %v12384_v16, %v662_v57 }
 0x167   :  { %18136 = vst [vmem:[#allocation201_spill] sm:$0xff] %v12616_v20  ;;  %18137 = vst [vmem:[#allocation202_spill] sm:$0xff] %v12619_v44  ;;  %v12632_v55 = vmul.f32 %v12349_v51, %v662_v57  ;;  %v12637_v2 = vmul.f32 %v12438_v45, %v662_v57  ;;  %v1004_v17 = vmul.f32 %v12291_v32, %v18143_v48 }
 0x168   :  { %18138 = vst [vmem:[#allocation203_spill] sm:$0xff] %v12622_v42  ;;  %18139 = vst [vmem:[#allocation204_spill] sm:$0xff] %v12626_v33  ;;  %v12642_v6 = vsel %vm7634_vm10, %v7141_v59, %v7633_v18  ;;  %v12647_v13 = vmul.f32 %v12410_v29, %v662_v57  ;;  %v12651_v10 = vmul.f32 %v12426_v34, %v662_v57  ;;  %v848_v59 = vpop.permute.xlu1 %847 }
 0x169   :  { %18140 = vst [vmem:[#allocation205_spill] sm:$0xff] %v12629_v0  ;;  %18141 = vst [vmem:[#allocation206_spill] sm:$0xff] %v12632_v55  ;;  %v12654_v1 = vmul.f32 %v12448_v8, %v662_v57  ;;  %v12658_v61 = vmul.f32 %v12267_v23, %v18143_v48  ;;  %v704_v41 = vmul.f32 %v12384_v16, %v18143_v48  ;;  %v12668_v57 = vpop.permute.xlu0 %666  ;;  %v1205_v40 = vrot.slane %v1004_v17, 1  ;;  %v18150_v17 = vld [vmem:[#allocation25_spill] sm:$0xff] }
 0x16a   :  { %18142 = vst [vmem:[#allocation207_spill] sm:$0xff] %v12637_v2  ;;  %18144 = vst [vmem:[#allocation7_spill] sm:$0xff] %v12642_v6  ;;  %v2145_v31 = vmul.f32 %v12334_v7, %v18143_v48  ;;  %v3284_v38 = vmul.f32 %v12438_v45, %v18143_v48  ;;  %v18149_v6 = vld [vmem:[#allocation27_spill] sm:$0xff]  ;;  %v3772_v18 = vmul.f32 %v12448_v8, %v18143_v48 }
 0x16b   :  { %18145 = vst [vmem:[#allocation208_spill] sm:$0xff] %v12647_v13  ;;  %18146 = vst [vmem:[#allocation209_spill] sm:$0xff] %v12651_v10  ;;  %v3199_v42 = vadd.f32 %v18149_v6, %v12484_v30  ;;  %v1996_v55 = vmul.f32 %v12410_v29, %v18143_v48  ;;  %v2633_v10 = vmul.f32 %v12349_v51, %v18143_v48  ;;  %v1694_v2 = vrot.slane %v12658_v61, 2 }
 0x16c   :  { %18147 = vst [vmem:[#allocation210_spill] sm:$0xff] %v12654_v1  ;;  %18148 = vst [vmem:[#allocation211_spill] sm:$0xff] %v12668_v57  ;;  %v3480_v13 = vrot.slane %v3284_v38, 1  ;;  %v1005_v11 = vmul.f32 %v12291_v32, %v848_v59  ;;  %v2059_v0 = vadd.f32 %v18150_v17, %v12416_v35  ;;  %v3968_v30 = vrot.slane %v3772_v18, 2  ;;  %v18153_v38 = vld [vmem:[#allocation15_spill] sm:$0xff] }
 0x16d   :  { %v2060_v6 = vadd.f32 %v1996_v55, %v12418_v9  ;;  %v2343_v4 = vrot.slane %v2145_v31, 1  ;;  %v18152_v57 = vrot.slane %v18151_v54, 1  ;;  %v2146_v63 = vmul.f32 %v12334_v7, %v848_v59  ;;  %v18155_v17 = vld [vmem:[#allocation23_spill] sm:$0xff]  ;;  %v12700_v22 = vpop.permute.xlu0 %852 }
 0x16e   :  { %v18154_v33 = vrot.slane %v18153_v38, 1  ;;  %v3136_v61 = vmul.f32 %v12426_v34, %v18143_v48  ;;  %v1494_v35 = vmul.f32 %v12267_v23, %v848_v59  ;;  %v2831_v18 = vrot.slane %v2633_v10, 2  ;;  %v18157_v48 = vld [vmem:[#allocation19_spill] sm:$0xff] }
 0x16f   :  { %v3481_v15 = vsel %vm1183_vm2, %v18152_v57, %v3480_v13  ;;  %v18156_v9 = vrot.slane %v18155_v17, 2  ;;  %v1207_v54 = vrot.slane %v1005_v11, 1  ;;  %v3285_v31 = vmul.f32 %v12438_v45, %v848_v59 }
 0x170   :  { %v1206_v53 = vsel %vm1183_vm2, %v18154_v33, %v1205_v40  ;;  %v3697_v60 = vadd.f32 %v3481_v15, %v3199_v42  ;;  %v2345_v1 = vrot.slane %v2146_v63, 1  ;;  %v2634_v38 = vmul.f32 %v12349_v51, %v848_v59  ;;  %v18158_v42 = vld [vmem:[#allocation18_spill] sm:$0xff] }
 0x171   :  { %v3969_v55 = vsel %vm1672_vm3, %v18156_v9, %v3968_v30  ;;  %v3773_v33 = vmul.f32 %v12448_v8, %v848_v59  ;;  %v1416_v15 = vadd.f32 %v1206_v53, %v18157_v48  ;;  %v18159_v14 = vrot.slane %v18158_v42, 1  ;;  %v18161_v42 = vld [vmem:[#allocation16_spill] sm:$0xff] }
 0x172   :  { %v4185_v57 = vadd.f32 %v3969_v55, %v3697_v60  ;;  %v3200_v17 = vadd.f32 %v3136_v61, %v12486_v52  ;;  %v3482_v9 = vrot.slane %v3285_v31, 1  ;;  %v1696_v60 = vrot.slane %v1494_v35, 2 }
 0x173   :  { %v2344_v10 = vsel %vm1183_vm2, %v18159_v14, %v2343_v4  ;;  %v3970_v63 = vrot.slane %v3773_v33, 2  ;;  %v1208_v55 = vsel %vm1183_vm2, %v1205_v40, %v1207_v54  ;;  %v1007_v21 = vmul.f32 %v12291_v32, %v18160_v3 }
 0x174   :  { %v2557_v11 = vadd.f32 %v2344_v10, %v2059_v0  ;;  %v4256_v20 = vadd.f32 %v12310_v39, %v4185_v57  ;;  %v3483_v59 = vsel %vm1183_vm2, %v3480_v13, %v3482_v9  ;;  %v1008_v53 = vmul.f32 %v12291_v32, %v12700_v22 }
 0x175   :  { %v2346_v14 = vsel %vm1183_vm2, %v2343_v4, %v2345_v1  ;;  %v2833_v52 = vrot.slane %v2634_v38, 2  ;;  %v3698_v61 = vadd.f32 %v3483_v59, %v3200_v17  ;;  %v3971_v0 = vsel %vm1672_vm3, %v3968_v30, %v3970_v63  ;;  %v18163_v4 = vld [vmem:[#allocation20_spill] sm:$0xff] }
 0x176   :  { %v4320_v48 = vmax.f32 %v4256_v20, 0.0  ;;  %v1210_v31 = vrot.slane %v1007_v21, 1  ;;  %v1212_v35 = vrot.slane %v1008_v53, 1  ;;  %v1496_v40 = vmul.f32 %v12267_v23, %v18160_v3 }
 0x177   :  { %v4186_v57 = vadd.f32 %v3971_v0, %v3698_v61  ;;  %v1497_v33 = vmul.f32 %v12267_v23, %v12700_v22  ;;  %v18162_v20 = vrot.slane %v18161_v42, 2  ;;  %v18164_v38 = vrot.slane %v18163_v4, 2  ;;  %v18165_v0 = vld [vmem:[#allocation24_spill] sm:$0xff] }
 0x178   :  { %v4512_v54 = vcombine.high %v4320_v48, %v4320_v48  ;;  %v4519_v13 = vrot.slane %v4320_v48, %v11371_v62  ;;  %v1417_v21 = vadd.f32 %v1208_v55, %v704_v41  ;;  %v2558_v10 = vadd.f32 %v2346_v14, %v2060_v6 }
 0x179   :  { %v1695_v1 = vsel %vm1672_vm3, %v18162_v20, %v1694_v2  ;;  %v2832_v30 = vsel %vm1672_vm3, %v18164_v38, %v2831_v18  ;;  %v4257_v59 = vadd.f32 %v12310_v39, %v4186_v57  ;;  %v1697_v48 = vsel %vm1672_vm3, %v1694_v2, %v1696_v60  ;;  %v18167_v57 = vld [vmem:[#allocation30_spill] sm:$0xff] }
 0x17a   :  { %v1905_v17 = vadd.f32 %v1695_v1, %v1416_v15  ;;  %v3045_v9 = vadd.f32 %v2832_v30, %v2557_v11  ;;  %v4526_v63 = vrot.slane %v4512_v54, %v11371_v62  ;;  %v4527_v53 = vcombine.high %v4519_v13, %v4519_v13  ;;  %v18168_v30 = vld [vmem:[#allocation26_spill] sm:$0xff] }
 0x17b   :  { %v2834_v61 = vsel %vm1672_vm3, %v2831_v18, %v2833_v52  ;;  %v18166_v42 = vrot.slane %v18165_v0, 1  ;;  %v1213_v38 = vsel %vm1183_vm2, %v1210_v31, %v1212_v35  ;;  %v1699_v41 = vrot.slane %v1496_v40, 2 }
 0x17c   :  { %v4528_v4 = vcombine.high %v4526_v63, %v4526_v63  ;;  %v1701_v6 = vrot.slane %v1497_v33, 2  ;;  %v1906_v15 = vadd.f32 %v1697_v48, %v1417_v21  ;;  %v3046_v11 = vadd.f32 %v2834_v61, %v2558_v10 }
 0x17d   :  { %v1211_v20 = vsel %vm1183_vm2, %v18166_v42, %v1210_v31  ;;  %v4321_v55 = vmax.f32 %v4257_v59, 0.0  ;;  %v706_v14 = vmul.f32 %v12384_v16, %v18160_v3  ;;  %v10249_v54 = vrot.slane %v4519_v13, 9 }
 0x17e   :  { %v1418_v2 = vadd.f32 %v1211_v20, %v18167_v57  ;;  %v1998_v18 = vmul.f32 %v12410_v29, %v18160_v3  ;;  %v2148_v60 = vmul.f32 %v12334_v7, %v18160_v3  ;;  %v10250_v52 = vrot.slane %v4527_v53, 9 }
 0x17f   :  { %v4529_v1 = vcombine.high %v4321_v55, %v4321_v55  ;;  %v4536_v31 = vrot.slane %v4321_v55, %v11371_v62  ;;  %v1419_v35 = vadd.f32 %v1213_v38, %v706_v14  ;;  %v10251_v40 = vrot.slane %v4526_v63, 9  ;;  %v18171_v14 = vld [vmem:[#allocation31_spill] sm:$0xff] }
 0x180   :  { %v10252_v33 = vrot.slane %v4528_v4, 9  ;;  %v18169_v21 = vrot.slane %v18168_v30, 2  ;;  %v1702_v59 = vsel %vm1672_vm3, %v1699_v41, %v1701_v6  ;;  %v2149_v48 = vmul.f32 %v12334_v7, %v12700_v22 }
 0x181   :  { %v2348_v61 = vrot.slane %v2148_v60, 1  ;;  %v2636_v0 = vmul.f32 %v12349_v51, %v18160_v3  ;;  %v2637_v42 = vmul.f32 %v12349_v51, %v12700_v22  ;;  %v12753_v20 = vmax.f32 %v4519_v13, %v10249_v54  ;;  %v18173_v54 = vld [vmem:[#allocation28_spill] sm:$0xff] }
 0x182   :  { %v1700_v10 = vsel %vm1672_vm3, %v18169_v21, %v1699_v41  ;;  %v4543_v38 = vrot.slane %v4529_v1, %v11371_v62  ;;  %v2061_v57 = vadd.f32 %v18171_v14, %v1905_v17  ;;  %v12759_v30 = vmax.f32 %v4527_v53, %v10250_v52  ;;  %v18175_v14 = vld [vmem:[#allocation38_spill] sm:$0xff] }
 0x183   :  { %v12756_v55 = vadd.f32 %v1700_v10, %v1418_v2  ;;  %v4544_v41 = vcombine.high %v4536_v31, %v4536_v31  ;;  %v12761_v6 = vadd.f32 %v1702_v59, %v1419_v35  ;;  %v2062_v60 = vadd.f32 %v1998_v18, %v1906_v15 }
 0x184   :  { %v12763_v21 = vmax.f32 %v4526_v63, %v10251_v40  ;;  %v12765_v46 = vmax.f32 %v4528_v4, %v10252_v33  ;;  %v10253_v44 = vrot.slane %v4536_v31, 9  ;;  %v3138_v13 = vmul.f32 %v12426_v34, %v18160_v3 }
 0x185   :  { %18170 = vst [vmem:[#allocation27_spill] sm:$0xff] %v12756_v55  ;;  %18172 = vst [vmem:[#allocation25_spill] sm:$0xff] %v12761_v6  ;;  %v18174_v1 = vrot.slane %v18173_v54, 1  ;;  %v2350_v10 = vrot.slane %v2149_v48, 1  ;;  %v2836_v17 = vrot.slane %v2636_v0, 2  ;;  %v2838_v53 = vrot.slane %v2637_v42, 2 }
 0x186   :  { %v4545_v52 = vcombine.high %v4543_v38, %v4543_v38  ;;  %v3201_v35 = vadd.f32 %v18175_v14, %v3045_v9  ;;  %v3287_v63 = vmul.f32 %v12438_v45, %v18160_v3  ;;  %v3288_v4 = vmul.f32 %v12438_v45, %v12700_v22  ;;  %v18176_v42 = vld [vmem:[#allocation136_spill] sm:$0xff] }
 0x187   :  { %v2349_v2 = vsel %vm1183_vm2, %v18174_v1, %v2348_v61  ;;  %v10254_v15 = vrot.slane %v4544_v41, 9  ;;  %v3202_v18 = vadd.f32 %v3138_v13, %v3046_v11  ;;  %v3775_v40 = vmul.f32 %v12448_v8, %v18160_v3  ;;  %v18177_v13 = vld [vmem:[#allocation32_spill] sm:$0xff] }
 0x188   :  { %v3776_v33 = vmul.f32 %v12448_v8, %v12700_v22  ;;  %v10255_v59 = vrot.slane %v4543_v38, 9  ;;  %v3485_v48 = vrot.slane %v3287_v63, 1  ;;  %v3487_v0 = vrot.slane %v3288_v4, 1 }
 0x189   :  { %v12783_v9 = vmul.f32 %v12291_v32, %v18176_v42  ;;  %v12785_v54 = vmax.f32 %v4536_v31, %v10253_v44  ;;  %v3973_v1 = vrot.slane %v3775_v40, 2  ;;  %v12789_v11 = vmul.f32 %v12267_v23, %v18176_v42 }
 0x18a   :  { %v3975_v14 = vrot.slane %v3776_v33, 2  ;;  %v18178_v3 = vrot.slane %v18177_v13, 1  ;;  %v3488_v22 = vsel %vm1183_vm2, %v3485_v48, %v3487_v0  ;;  %v12797_v63 = vmul.f32 %v12334_v7, %v18176_v42 }
 0x18b   :  { %v12801_v44 = vmul.f32 %v12349_v51, %v18176_v42  ;;  %v2351_v31 = vsel %vm1183_vm2, %v2348_v61, %v2350_v10  ;;  %v3700_v40 = vadd.f32 %v3488_v22, %v3202_v18  ;;  %v17771_v33 = vrot.slane %v12783_v9, 1 }
 0x18c   :  { %v3486_v6 = vsel %vm1183_vm2, %v18178_v3, %v3485_v48  ;;  %v10256_v55 = vrot.slane %v4545_v52, 9  ;;  %v2559_v13 = vadd.f32 %v2349_v2, %v2061_v57  ;;  %v18180_v3 = vrot.slane %v18179_v26, 2 }
 0x18d   :  { %v3699_v4 = vadd.f32 %v3486_v6, %v3201_v35  ;;  %v3976_v0 = vsel %vm1672_vm3, %v3973_v1, %v3975_v14  ;;  %v2560_v19 = vadd.f32 %v2351_v31, %v2062_v60  ;;  %v2837_v25 = vsel %vm1672_vm3, %v18182_v28, %v2836_v17 }
 0x18e   :  { %v3974_v48 = vsel %vm1672_vm3, %v18180_v3, %v3973_v1  ;;  %v4188_v58 = vadd.f32 %v3976_v0, %v3700_v40  ;;  %v2839_v61 = vsel %vm1672_vm3, %v2836_v17, %v2838_v53  ;;  %v17770_v6 = vrot.slane %v12789_v11, 2 }
 0x18f   :  { %v4187_v37 = vadd.f32 %v3974_v48, %v3699_v4  ;;  %v17769_v10 = vrot.slane %v12797_v63, 1  ;;  %v17768_v57 = vrot.slane %v12801_v44, 2  ;;  %v12816_v26 = vmax.f32 %v4544_v41, %v10254_v15 }
 0x190   :  { %v4259_v60 = vadd.f32 %v12310_v39, %v4188_v58  ;;  %v18183_v28 = vrot.slane %v12082_v36, 1  ;;  %v12825_v35 = vmax.f32 %v4543_v38, %v10255_v59  ;;  %v12827_v17 = vmax.f32 %v4545_v52, %v10256_v55  ;;  %v12839_v36 = vpop.permute.xlu1 %947 }
 0x191   :  { %v4258_v2 = vadd.f32 %v12310_v39, %v4187_v37  ;;  %v12829_v53 = vadd.f32 %v2837_v25, %v2559_v13  ;;  %v12833_v41 = vmul.f32 %v12438_v45, %v18176_v42  ;;  %v12835_v15 = vadd.f32 %v2839_v61, %v2560_v19 }
 0x192   :  { %v1306_v24 = vsel %vm1183_vm2, %v18183_v28, %v17771_v33  ;;  %v4323_v39 = vmax.f32 %v4259_v60, 0.0  ;;  %v744_v58 = vmul.f32 %v12384_v16, %v18176_v42  ;;  %v18186_v25 = vrot.slane %v12093_v5, 2 }
 0x193   :  { %18184 = vst [vmem:[#allocation22_spill] sm:$0xff] %v12829_v53  ;;  %18185 = vst [vmem:[#allocation15_spill] sm:$0xff] %v12835_v15  ;;  %v4322_v37 = vmax.f32 %v4258_v2, 0.0  ;;  %v1456_v38 = vadd.f32 %v1306_v24, %v12089_v49  ;;  %v18187_v19 = vrot.slane %v12103_v43, 1  ;;  %v18189_v18 = vrot.slane %v12108_v50, 2 }
 0x194   :  { %v1795_v55 = vsel %vm1672_vm3, %v18186_v25, %v17770_v6  ;;  %v4563_v5 = vcombine.high %v4323_v39, %v4323_v39  ;;  %v4570_v14 = vrot.slane %v4323_v39, %v11371_v62  ;;  %v12866_v43 = vmul.f32 %v12448_v8, %v18176_v42 }
 0x195   :  { %v12852_v52 = vsel %vm1183_vm2, %v18187_v19, %v17769_v10  ;;  %v12859_v59 = vsel %vm1672_vm3, %v18189_v18, %v17768_v57  ;;  %v4546_v49 = vcombine.high %v4322_v37, %v4322_v37  ;;  %v4553_v1 = vrot.slane %v4322_v37, %v11371_v62 }
 0x196   :  { %18188 = vst [vmem:[#allocation23_spill] sm:$0xff] %v12852_v52  ;;  %18190 = vst [vmem:[#allocation19_spill] sm:$0xff] %v12859_v59  ;;  %v1065_v31 = vmul.f32 %v12291_v32, %v12839_v36  ;;  %v1554_v50 = vmul.f32 %v12267_v23, %v12839_v36  ;;  %v4577_v13 = vrot.slane %v4563_v5, %v11371_v62  ;;  %v10261_v0 = vrot.slane %v4570_v14, 9 }
 0x197   :  { %v4560_v4 = vrot.slane %v4546_v49, %v11371_v62  ;;  %v4561_v40 = vcombine.high %v4553_v1, %v4553_v1  ;;  %v4578_v3 = vcombine.high %v4570_v14, %v4570_v14  ;;  %v10257_v48 = vrot.slane %v4553_v1, 9 }
 0x198   :  { %v2206_v61 = vmul.f32 %v12334_v7, %v12839_v36  ;;  %v2694_v2 = vmul.f32 %v12349_v51, %v12839_v36  ;;  %v4579_v28 = vcombine.high %v4577_v13, %v4577_v13  ;;  %v10263_v25 = vrot.slane %v4577_v13, 9 }
 0x199   :  { %v4562_v60 = vcombine.high %v4560_v4, %v4560_v4  ;;  %v10258_v24 = vrot.slane %v4561_v40, 9  ;;  %v10259_v37 = vrot.slane %v4560_v4, 9  ;;  %v10262_v39 = vrot.slane %v4578_v3, 9 }
 0x19a   :  { %v6580_v19 = vmax.f32 %v4553_v1, %v10257_v48  ;;  %v1307_v18 = vrot.slane %v1065_v31, 1  ;;  %v10264_v57 = vrot.slane %v4579_v28, 9  ;;  %v6584_v6 = vmax.f32 %v4570_v14, %v10261_v0 }
 0x19b   :  { %v10260_v49 = vrot.slane %v4562_v60, 9  ;;  %v6581_v5 = vmax.f32 %v4561_v40, %v10258_v24  ;;  %v6582_v10 = vmax.f32 %v4560_v4, %v10259_v37  ;;  %v6585_v22 = vmax.f32 %v4578_v3, %v10262_v39  ;;  %v953_v24 = vpop.permute.xlu0 %952 }
 0x19c   :  { %v6820_v33 = vmax.f32 %v12753_v20, %v6580_v19  ;;  %v4068_v15 = vrot.slane %v12866_v43, 2  ;;  %v6586_v59 = vmax.f32 %v4577_v13, %v10263_v25  ;;  %v6587_v62 = vmax.f32 %v4579_v28, %v10264_v57 }
 0x19d   :  { %v6583_v53 = vmax.f32 %v4562_v60, %v10260_v49  ;;  %v6821_v52 = vmax.f32 %v12759_v30, %v6581_v5  ;;  %v6822_v42 = vmax.f32 %v12763_v21, %v6582_v10  ;;  %v18191_v1 = vrot.slane %v12783_v9, 1  ;;  %v18193_v10 = vld [vmem:[#allocation149_spill] sm:$0xff] }
 0x19e   :  { %v1796_v48 = vrot.slane %v1554_v50, 2  ;;  %v2445_v40 = vrot.slane %v2206_v61, 1  ;;  %v7145_v4 = vrot.slane %v6820_v33, %v18123_v12  ;;  %v2933_v3 = vrot.slane %v2694_v2, 2 }
 0x19f   :  { %v1308_v31 = vsel %vm1183_vm2, %v18191_v1, %v1307_v18  ;;  %v6823_v14 = vmax.f32 %v12765_v46, %v6583_v53  ;;  %v7149_v20 = vrot.slane %v6821_v52, %v18123_v12  ;;  %v6824_v13 = vmax.f32 %v12785_v54, %v6584_v6 }
 0x1a0   :  { %v7153_v30 = vrot.slane %v6822_v42, %v18123_v12  ;;  %v1945_v0 = vadd.f32 %v1795_v55, %v1456_v38  ;;  %v18192_v21 = vrot.slane %v12833_v41, 1  ;;  %v18194_v9 = vrot.slane %v18193_v10, 1  ;;  %v18195_v42 = vld [vmem:[#allocation150_spill] sm:$0xff]  ;;  %v18197_v55 = vld [vmem:[#allocation141_spill] sm:$0xff] }
 0x1a1   :  { %v6825_v50 = vmax.f32 %v12816_v26, %v6585_v22  ;;  %v6826_v46 = vmax.f32 %v12825_v35, %v6586_v59  ;;  %v7636_v33 = vsel %vm7622_vm4, %v7149_v20, %v7145_v4  ;;  %v1457_v53 = vadd.f32 %v1308_v31, %v744_v58  ;;  %v12952_v4 = vld [vmem:[%s17602_s1 + $0x2] ss:$0 sm:$0xff] }
 0x1a2   :  { %v12895_v57 = vsel %vm1183_vm2, %v18194_v9, %v18192_v21  ;;  %v6827_v52 = vmax.f32 %v12827_v17, %v6587_v62  ;;  %v18196_v54 = vrot.slane %v18195_v42, 2  ;;  %v3345_v38 = vmul.f32 %v12438_v45, %v12839_v36  ;;  %v18204_v21 = vld [vmem:[#allocation162_spill] sm:$0xff] }
 0x1a3   :  { %v1067_v26 = vmul.f32 %v12291_v32, %v18197_v55  ;;  %v7157_v35 = vrot.slane %v6823_v14, %v18123_v12  ;;  %v18198_v59 = vrot.slane %v12789_v11, 2  ;;  %v18199_v62 = vrot.slane %v12797_v63, 1 }
 0x1a4   :  { %v12906_v6 = vsel %vm1672_vm3, %v18196_v54, %v4068_v15  ;;  %v18200_v22 = vrot.slane %v12801_v44, 2  ;;  %v7161_v2 = vrot.slane %v6824_v13, %v18123_v12  ;;  %v7637_v60 = vsel %vm7624_vm5, %v7153_v30, %v7636_v33  ;;  %v18206_v54 = vld [vmem:[#allocation156_spill] sm:$0xff] }
 0x1a5   :  { %v1797_v58 = vsel %vm1672_vm3, %v18198_v59, %v1796_v48  ;;  %v12919_v17 = vsel %vm1183_vm2, %v18199_v62, %v2445_v40  ;;  %v3833_v28 = vmul.f32 %v12448_v8, %v12839_v36  ;;  %v2208_v11 = vmul.f32 %v12334_v7, %v18197_v55 }
 0x1a6   :  { %v12924_v61 = vsel %vm1672_vm3, %v18200_v22, %v2933_v3  ;;  %v7165_v63 = vrot.slane %v6825_v50, %v18123_v12  ;;  %v7169_v37 = vrot.slane %v6826_v46, %v18123_v12  ;;  %v1946_v39 = vadd.f32 %v1797_v58, %v1457_v53  ;;  %v18202_v3 = vld [vmem:[#allocation153_spill] sm:$0xff] }
 0x1a7   :  { %v1310_v44 = vrot.slane %v1067_v26, 1  ;;  %v12935_v25 = vrot.slane %v6827_v52, %v18123_v12  ;;  %v3582_v19 = vrot.slane %v3345_v38, 1  ;;  %v746_v18 = vmul.f32 %v12384_v16, %v18197_v55 }
 0x1a8   :  { %v1556_v36 = vmul.f32 %v12267_v23, %v18197_v55  ;;  %v7638_v49 = vsel %vm7626_vm6, %v7157_v35, %v7637_v60  ;;  %v2448_v5 = vrot.slane %v2208_v11, 1  ;;  %v2696_v1 = vmul.f32 %v12349_v51, %v18197_v55 }
 0x1a9   :  { %18201 = vst [vmem:[#allocation18_spill] sm:$0xff] %v12935_v25  ;;  %v1068_v31 = vmul.f32 %v12291_v32, %v953_v24  ;;  %v4070_v48 = vrot.slane %v3833_v28, 2  ;;  %v2038_v40 = vmul.f32 %v12410_v29, %v18197_v55  ;;  %v3347_v14 = vmul.f32 %v12438_v45, %v18197_v55 }
 0x1aa   :  { %v1557_v23 = vmul.f32 %v12952_v4, %v953_v24  ;;  %v3835_v20 = vmul.f32 %v12448_v8, %v18197_v55  ;;  %v18203_v13 = vrot.slane %v18202_v3, 1  ;;  %v2101_v10 = vadd.f32 %v18204_v21, %v1945_v0  ;;  %v18208_v0 = vld [vmem:[#allocation161_spill] sm:$0xff] }
 0x1ab   :  { %v1312_v30 = vrot.slane %v1068_v31, 1  ;;  %v7639_v9 = vsel %vm7628_vm7, %v7161_v2, %v7638_v49  ;;  %v18205_v50 = vrot.slane %v12833_v41, 1  ;;  %v1799_v33 = vrot.slane %v1556_v36, 2  ;;  %v18212_v49 = vld [vmem:[#allocation158_spill] sm:$0xff] }
 0x1ac   :  { %v1311_v32 = vsel %vm1183_vm2, %v18203_v13, %v1310_v44  ;;  %v2209_v53 = vmul.f32 %v12334_v7, %v953_v24  ;;  %v2936_v52 = vrot.slane %v2696_v1, 2  ;;  %v18207_v38 = vrot.slane %v18206_v54, 1 }
 0x1ad   :  { %v12965_v46 = vsel %vm1183_vm2, %v18205_v50, %v3582_v19  ;;  %v1313_v42 = vsel %vm1183_vm2, %v1310_v44, %v1312_v30  ;;  %v2697_v26 = vmul.f32 %v12349_v51, %v953_v24  ;;  %v1458_v35 = vadd.f32 %v1311_v32, %v18208_v0  ;;  %v18210_v44 = vld [vmem:[#allocation155_spill] sm:$0xff]  ;;  %v958_v50 = vpop.permute.xlu1 %957  ;;  %v13028_v0 = vld [vmem:[%s17602_s1 + $0x4] ss:$0 sm:$0xff] }
 0x1ae   :  { %v2449_v55 = vsel %vm1183_vm2, %v18207_v38, %v2448_v5  ;;  %v1801_v59 = vrot.slane %v1557_v23, 2  ;;  %v3348_v41 = vmul.f32 %v12438_v45, %v953_v24  ;;  %v7640_v62 = vsel %vm7630_vm8, %v7165_v63, %v7639_v9  ;;  %v18219_v32 = vld [vmem:[#allocation147_spill] sm:$0xff] }
 0x1af   :  { %v2599_v58 = vadd.f32 %v2449_v55, %v2101_v10  ;;  %v3585_v22 = vrot.slane %v3347_v14, 1  ;;  %v4073_v2 = vrot.slane %v3835_v20, 2  ;;  %v2450_v7 = vrot.slane %v2209_v53, 1  ;;  %v18217_v20 = vld [vmem:[#allocation160_spill] sm:$0xff] }
 0x1b0   :  { %v12979_v60 = vsel %vm1672_vm3, %v4068_v15, %v4070_v48  ;;  %v1459_v28 = vadd.f32 %v1313_v42, %v746_v18  ;;  %v2102_v11 = vadd.f32 %v2038_v40, %v1946_v39  ;;  %v3836_v51 = vmul.f32 %v12448_v8, %v953_v24  ;;  %v18215_v24 = vld [vmem:[#allocation159_spill] sm:$0xff]  ;;  %v18220_v55 = vld [vmem:[#allocation168_spill] sm:$0xff] }
 0x1b1   :  { %18209 = vst [vmem:[#allocation12_spill] sm:$0xff] %v12979_v60  ;;  %v18211_v19 = vrot.slane %v18210_v44, 2  ;;  %v18213_v1 = vrot.slane %v18212_v49, 2  ;;  %v2938_v31 = vrot.slane %v2697_v26, 2  ;;  %v3587_v14 = vrot.slane %v3348_v41, 1 }
 0x1b2   :  { %v12989_v23 = vsel %vm7632_vm9, %v7169_v37, %v7640_v62  ;;  %v1802_v15 = vsel %vm1672_vm3, %v1799_v33, %v1801_v59  ;;  %v2451_v39 = vsel %vm1183_vm2, %v2448_v5, %v2450_v7  ;;  %v18216_v48 = vrot.slane %v18215_v24, 1  ;;  %v13006_v37 = vld [vmem:[%s17602_s1 + $0x1] ss:$0 sm:$0xff] }
 0x1b3   :  { %v1800_v36 = vsel %vm1672_vm3, %v18211_v19, %v1799_v33  ;;  %v2937_v63 = vsel %vm1672_vm3, %v18213_v1, %v2936_v52  ;;  %18214 = vst [vmem:[#allocation16_spill] sm:$0xff] %v12989_v23  ;;  %v18218_v3 = vrot.slane %v18217_v20, 2  ;;  %v1070_v30 = vmul.f32 %v13006_v37, %v18219_v32 }
 0x1b4   :  { %v1947_v43 = vadd.f32 %v1800_v36, %v1458_v35  ;;  %v3087_v18 = vadd.f32 %v2937_v63, %v2599_v58  ;;  %v12996_v40 = vsel %vm1183_vm2, %v18216_v48, %v3585_v22  ;;  %v1948_v21 = vadd.f32 %v1802_v15, %v1459_v28  ;;  %v18221_v35 = vld [vmem:[#allocation170_spill] sm:$0xff]  ;;  %v13043_v28 = vld [vmem:[%s17602_s1 + $0x5] ss:$0 sm:$0xff] }
 0x1b5   :  { %v13001_v13 = vsel %vm1672_vm3, %v18218_v3, %v4073_v2  ;;  %v2600_v5 = vadd.f32 %v2451_v39, %v2102_v11  ;;  %v4075_v10 = vrot.slane %v3836_v51, 2  ;;  %v13012_v9 = vmul.f32 %v12952_v4, %v18219_v32 }
 0x1b6   :  { %v2939_v33 = vsel %vm1672_vm3, %v2936_v52, %v2938_v31  ;;  %v13016_v53 = vsel %vm1183_vm2, %v3585_v22, %v3587_v14  ;;  %v748_v42 = vmul.f32 %v12384_v16, %v18219_v32  ;;  %v3350_v54 = vmul.f32 %v12438_v45, %v18219_v32  ;;  %v18224_v14 = vld [vmem:[#allocation164_spill] sm:$0xff] }
 0x1b7   :  { %v2040_v38 = vmul.f32 %v12410_v29, %v18219_v32  ;;  %v2103_v26 = vadd.f32 %v18220_v55, %v1947_v43  ;;  %v2211_v52 = vmul.f32 %v13028_v0, %v18219_v32  ;;  %v3243_v59 = vadd.f32 %v18221_v35, %v3087_v18  ;;  %v13074_v55 = vld [vmem:[%s17603_s2] ss:$0 sm:$0xff] }
 0x1b8   :  { %v1315_v58 = vrot.slane %v1070_v30, 1  ;;  %v3590_v16 = vrot.slane %v3350_v54, 1  ;;  %v3838_v41 = vmul.f32 %v12448_v8, %v18219_v32  ;;  %v1071_v62 = vmul.f32 %v13006_v37, %v958_v50 }
 0x1b9   :  { %v3088_v29 = vadd.f32 %v2939_v33, %v2600_v5  ;;  %v13037_v22 = vsel %vm1672_vm3, %v4073_v2, %v4075_v10  ;;  %v1804_v7 = vrot.slane %v13012_v9, 2  ;;  %v2699_v11 = vmul.f32 %v13043_v28, %v18219_v32  ;;  %v18227_v10 = vld [vmem:[#allocation167_spill] sm:$0xff] }
 0x1ba   :  { %18222 = vst [vmem:[#allocation20_spill] sm:$0xff] %v13037_v22  ;;  %v18223_v51 = vrot.slane %v12210_v47, 1  ;;  %v4078_v19 = vrot.slane %v3838_v41, 2  ;;  %v1317_v36 = vrot.slane %v1071_v62, 1  ;;  %v2212_v49 = vmul.f32 %v13028_v0, %v958_v50 }
 0x1bb   :  { %v2104_v2 = vadd.f32 %v2040_v38, %v1948_v21  ;;  %v2453_v1 = vrot.slane %v2211_v52, 1  ;;  %v3180_v63 = vmul.f32 %v12426_v34, %v18219_v32  ;;  %v18225_v15 = vrot.slane %v18224_v14, 1 }
 0x1bc   :  { %v3591_v44 = vsel %vm1183_vm2, %v18223_v51, %v3590_v16  ;;  %v18226_v18 = vrot.slane %v12219_v56, 2  ;;  %v1560_v39 = vmul.f32 %v12952_v4, %v958_v50  ;;  %v3351_v24 = vmul.f32 %v12438_v45, %v958_v50  ;;  %v18228_v56 = vld [vmem:[#allocation166_spill] sm:$0xff] }
 0x1bd   :  { %v3741_v31 = vadd.f32 %v3591_v44, %v3243_v59  ;;  %v1316_v43 = vsel %vm1183_vm2, %v18225_v15, %v1315_v58  ;;  %v2941_v48 = vrot.slane %v2699_v11, 2  ;;  %v3244_v20 = vadd.f32 %v3180_v63, %v3088_v29  ;;  %v18231_v29 = vld [vmem:[#allocation157_spill] sm:$0xff] }
 0x1be   :  { %v4079_v47 = vsel %vm1672_vm3, %v18226_v18, %v4078_v19  ;;  %v2700_v30 = vmul.f32 %v13043_v28, %v958_v50  ;;  %v1318_v34 = vsel %vm1183_vm2, %v1315_v58, %v1317_v36  ;;  %v2455_v32 = vrot.slane %v2212_v49, 1  ;;  %v18232_v11 = vld [vmem:[#allocation169_spill] sm:$0xff] }
 0x1bf   :  { %v4229_v3 = vadd.f32 %v4079_v47, %v3741_v31  ;;  %v3592_v21 = vrot.slane %v3351_v24, 1  ;;  %v3839_v5 = vmul.f32 %v12448_v8, %v958_v50  ;;  %v1460_v9 = vadd.f32 %v1316_v43, %v18227_v10  ;;  %v18234_v31 = vld [vmem:[#allocation5_spill] sm:$0xff]  ;;  %v13086_v43 = vpop.permute.xlu0 %962 }
 0x1c0   :  { %v18229_v33 = vrot.slane %v18228_v56, 2  ;;  %v18230_v38 = vrot.slane %v12202_v27, 1  ;;  %v1806_v59 = vrot.slane %v1560_v39, 2  ;;  %v1461_v41 = vadd.f32 %v1318_v34, %v748_v42  ;;  %v13092_v39 = vld [vmem:[%s17602_s1] ss:$0 sm:$0xff] }
 0x1c1   :  { %v4300_v52 = vadd.f32 %v13074_v55, %v4229_v3  ;;  %v3593_v8 = vsel %vm1183_vm2, %v3590_v16, %v3592_v21  ;;  %v4080_v50 = vrot.slane %v3839_v5, 2  ;;  %v1073_v27 = vmul.f32 %v13006_v37, %v18231_v29  ;;  %18235 = vst [vmem:[#allocation24_spill] sm:$0xff] %v13092_v39  ;;  %v13106_v5 = vld [vmem:[%s17602_s1 + $0x3] ss:$0 sm:$0xff] }
 0x1c2   :  { %v1805_v54 = vsel %vm1672_vm3, %v18229_v33, %v1804_v7  ;;  %v2454_v45 = vsel %vm1183_vm2, %v18230_v38, %v2453_v1  ;;  %v3742_v62 = vadd.f32 %v3593_v8, %v3244_v20  ;;  %v18233_v51 = vrot.slane %v18232_v11, 2  ;;  %18236 = vst [vmem:[#allocation30_spill] sm:$0xff] %v13106_v5  ;;  %v18237_v8 = vld [vmem:[#allocation171_spill] sm:$0xff] }
 0x1c3   :  { %v2601_v35 = vadd.f32 %v2454_v45, %v2103_v26  ;;  %v4364_v58 = vmax.f32 %v4300_v52, 0.0  ;;  %v2456_v36 = vsel %vm1183_vm2, %v2453_v1, %v2455_v32  ;;  %v2943_v49 = vrot.slane %v2700_v30, 2  ;;  %v13121_v45 = vld [vmem:[%s17602_s1 + $0x7] ss:$0 sm:$0xff] }
 0x1c4   :  { %v2942_v44 = vsel %vm1672_vm3, %v18233_v51, %v2941_v48  ;;  %v4081_v63 = vsel %vm1672_vm3, %v4078_v19, %v4080_v50  ;;  %v2602_v16 = vadd.f32 %v2456_v36, %v2104_v2  ;;  %v1949_v42 = vadd.f32 %v1805_v54, %v1460_v9 }
 0x1c5   :  { %v5260_v26 = vcombine.high %v4364_v58, %v4364_v58  ;;  %v5267_v14 = vrot.slane %v4364_v58, %v18234_v31  ;;  %v4230_v15 = vadd.f32 %v4081_v63, %v3742_v62  ;;  %v3089_v18 = vadd.f32 %v2942_v44, %v2601_v35  ;;  %v13128_v35 = vld [vmem:[%s17602_s1 + $0x8] ss:$0 sm:$0xff] }
 0x1c6   :  { %v1807_v47 = vsel %vm1672_vm3, %v1804_v7, %v1806_v59  ;;  %v750_v1 = vmul.f32 %v13092_v39, %v18231_v29  ;;  %v1320_v20 = vrot.slane %v1073_v27, 1  ;;  %v2944_v30 = vsel %vm1672_vm3, %v2941_v48, %v2943_v49  ;;  %v13139_v49 = vld [vmem:[%s17602_s1 + $0x6] ss:$0 sm:$0xff] }
 0x1c7   :  { %v5274_v19 = vrot.slane %v5260_v26, %v18234_v31  ;;  %v1950_v24 = vadd.f32 %v1807_v47, %v1461_v41  ;;  %v4301_v2 = vadd.f32 %v13074_v55, %v4230_v15  ;;  %v5275_v3 = vcombine.high %v5267_v14, %v5267_v14  ;;  %v18239_v15 = vld [vmem:[#allocation172_spill] sm:$0xff] }
 0x1c8   :  { %v1562_v7 = vmul.f32 %v12952_v4, %v18231_v29  ;;  %v1074_v34 = vmul.f32 %v13006_v37, %v13086_v43  ;;  %v3090_v21 = vadd.f32 %v2944_v30, %v2602_v16  ;;  %v2042_v10 = vmul.f32 %v13106_v5, %v18231_v29 }
 0x1c9   :  { %v5276_v32 = vcombine.high %v5274_v19, %v5274_v19  ;;  %v2214_v9 = vmul.f32 %v13028_v0, %v18231_v29  ;;  %v4365_v48 = vmax.f32 %v4301_v2, 0.0  ;;  %v13114_v56 = vmul.f32 %v13043_v28, %v18231_v29 }
 0x1ca   :  { %v1322_v33 = vrot.slane %v1074_v34, 1  ;;  %v1563_v54 = vmul.f32 %v12952_v4, %v13086_v43  ;;  %v10425_v38 = vrot.slane %v5267_v14, 9  ;;  %v3353_v52 = vmul.f32 %v13121_v45, %v18231_v29 }
 0x1cb   :  { %v3841_v59 = vmul.f32 %v13128_v35, %v18231_v29  ;;  %v18238_v50 = vrot.slane %v18237_v8, 1  ;;  %v10426_v41 = vrot.slane %v5275_v3, 9  ;;  %v10427_v62 = vrot.slane %v5274_v19, 9 }
 0x1cc   :  { %v5277_v27 = vcombine.high %v4365_v48, %v4365_v48  ;;  %v5284_v11 = vrot.slane %v4365_v48, %v18234_v31  ;;  %v10428_v51 = vrot.slane %v5276_v32, 9  ;;  %v1809_v44 = vrot.slane %v1562_v7, 2 }
 0x1cd   :  { %v1321_v58 = vsel %vm1183_vm2, %v18238_v50, %v1320_v20  ;;  %v2458_v36 = vrot.slane %v2214_v9, 1  ;;  %v3182_v63 = vmul.f32 %v13139_v49, %v18231_v29  ;;  %v2946_v26 = vrot.slane %v13114_v56, 2 }
 0x1ce   :  { %v1323_v16 = vsel %vm1183_vm2, %v1320_v20, %v1322_v33  ;;  %v1462_v47 = vadd.f32 %v1321_v58, %v18239_v15  ;;  %v1811_v2 = vrot.slane %v1563_v54, 2  ;;  %v5291_v30 = vrot.slane %v5277_v27, %v18234_v31  ;;  %v18240_v58 = vld [vmem:[#allocation173_spill] sm:$0xff]  ;;  %v18243_v15 = vld [vmem:[#allocation174_spill] sm:$0xff] }
 0x1cf   :  { %v3595_v34 = vrot.slane %v3353_v52, 1  ;;  %v4083_v7 = vrot.slane %v3841_v59, 2  ;;  %v2215_v9 = vmul.f32 %v13028_v0, %v13086_v43  ;;  %v13149_v48 = vmax.f32 %v5267_v14, %v10425_v38 }
 0x1d0   :  { %v13151_v8 = vmax.f32 %v5275_v3, %v10426_v41  ;;  %v13153_v50 = vmax.f32 %v5274_v19, %v10427_v62  ;;  %v5292_v29 = vcombine.high %v5284_v11, %v5284_v11  ;;  %v13155_v56 = vmax.f32 %v5276_v32, %v10428_v51  ;;  %v18244_v41 = vld [vmem:[#allocation175_spill] sm:$0xff] }
 0x1d1   :  { %v10429_v20 = vrot.slane %v5284_v11, 9  ;;  %v1463_v33 = vadd.f32 %v1323_v16, %v750_v1  ;;  %v18241_v54 = vrot.slane %v18240_v58, 2  ;;  %v1812_v52 = vsel %vm1672_vm3, %v1809_v44, %v1811_v2  ;;  %v18246_v51 = vld [vmem:[#allocation179_spill] sm:$0xff] }
 0x1d2   :  { %v2105_v14 = vadd.f32 %v18243_v15, %v1949_v42  ;;  %v2106_v38 = vadd.f32 %v2042_v10, %v1950_v24  ;;  %v5293_v3 = vcombine.high %v5291_v30, %v5291_v30  ;;  %v18245_v19 = vrot.slane %v18244_v41, 1  ;;  %v18247_v24 = vld [vmem:[#allocation177_spill] sm:$0xff] }
 0x1d3   :  { %v1810_v27 = vsel %vm1672_vm3, %v18241_v54, %v1809_v44  ;;  %v2460_v32 = vrot.slane %v2215_v9, 1  ;;  %v3245_v25 = vadd.f32 %v18246_v51, %v3089_v18  ;;  %v10430_v1 = vrot.slane %v5292_v29, 9  ;;  %v18250_v51 = vld [vmem:[#allocation178_spill] sm:$0xff] }
 0x1d4   :  { %v13161_v59 = vadd.f32 %v1810_v27, %v1462_v47  ;;  %v2459_v62 = vsel %vm1183_vm2, %v18245_v19, %v2458_v36  ;;  %v10431_v16 = vrot.slane %v5291_v30, 9  ;;  %v2703_v58 = vmul.f32 %v13043_v28, %v13086_v43 }
 0x1d5   :  { %v3354_v44 = vmul.f32 %v13121_v45, %v13086_v43  ;;  %v13172_v47 = vmax.f32 %v5284_v11, %v10429_v20  ;;  %v3246_v42 = vadd.f32 %v3182_v63, %v3090_v21  ;;  %v18248_v10 = vrot.slane %v18247_v24, 1 }
 0x1d6   :  { %18242 = vst [vmem:[#allocation26_spill] sm:$0xff] %v13161_v59  ;;  %v3842_v9 = vmul.f32 %v13128_v35, %v13086_v43  ;;  %v13179_v54 = vadd.f32 %v1812_v52, %v1463_v33  ;;  %v2603_v18 = vadd.f32 %v2459_v62, %v2105_v14  ;;  %v10432_v41 = vrot.slane %v5293_v3, 9 }
 0x1d7   :  { %v3596_v2 = vsel %vm1183_vm2, %v18248_v10, %v3595_v34  ;;  %v3597_v27 = vrot.slane %v3354_v44, 1  ;;  %v2461_v19 = vsel %vm1183_vm2, %v2458_v36, %v2460_v32  ;;  %v18251_v23 = vrot.slane %v18250_v51, 2  ;;  %v18252_v10 = vld [vmem:[#allocation187_spill] sm:$0xff]  ;;  %v18253_v32 = vld [vmem:[#allocation176_spill] sm:$0xff] }
 0x1d8   :  { %18249 = vst [vmem:[#allocation31_spill] sm:$0xff] %v13179_v54  ;;  %v3743_v15 = vadd.f32 %v3596_v2, %v3245_v25  ;;  %v4085_v21 = vrot.slane %v3842_v9, 2  ;;  %v2948_v63 = vrot.slane %v2703_v58, 2  ;;  %v13188_v43 = vmul.f32 %v13006_v37, %v18252_v10  ;;  %v13219_v2 = vpop.permute.xlu1 %937 }
 0x1d9   :  { %v4084_v11 = vsel %vm1672_vm3, %v18251_v23, %v4083_v7  ;;  %v3598_v20 = vsel %vm1183_vm2, %v3595_v34, %v3597_v27  ;;  %v13190_v33 = vmax.f32 %v5292_v29, %v10430_v1  ;;  %v13192_v52 = vmax.f32 %v5291_v30, %v10431_v16 }
 0x1da   :  { %v4231_v24 = vadd.f32 %v4084_v11, %v3743_v15  ;;  %v2604_v25 = vadd.f32 %v2461_v19, %v2106_v38  ;;  %v3744_v14 = vadd.f32 %v3598_v20, %v3246_v42  ;;  %v4086_v36 = vsel %vm1672_vm3, %v4083_v7, %v4085_v21 }
 0x1db   :  { %v13198_v23 = vmul.f32 %v12952_v4, %v18252_v10  ;;  %v13202_v34 = vmul.f32 %v13028_v0, %v18252_v10  ;;  %v18254_v58 = vrot.slane %v18253_v32, 2  ;;  %v13209_v38 = vmul.f32 %v13043_v28, %v18252_v10 }
 0x1dc   :  { %v4302_v62 = vadd.f32 %v13074_v55, %v4231_v24  ;;  %v4232_v30 = vadd.f32 %v4086_v36, %v3744_v14  ;;  %v13213_v7 = vmul.f32 %v13121_v45, %v18252_v10  ;;  %v2949_v1 = vsel %vm1672_vm3, %v2946_v26, %v2948_v63 }
 0x1dd   :  { %v2947_v29 = vsel %vm1672_vm3, %v18254_v58, %v2946_v26  ;;  %v1295_v42 = vrot.slane %v13188_v43, 1  ;;  %v13221_v9 = vmax.f32 %v5293_v3, %v10432_v41  ;;  %v13223_v27 = vadd.f32 %v2949_v1, %v2604_v25  ;;  %v18257_v25 = vld [vmem:[#allocation8_spill] sm:$0xff] }
 0x1de   :  { %v13216_v16 = vadd.f32 %v2947_v29, %v2603_v18  ;;  %v4366_v44 = vmax.f32 %v4302_v62, 0.0  ;;  %v4303_v15 = vadd.f32 %v13074_v55, %v4232_v30  ;;  %v740_v19 = vmul.f32 %v13092_v39, %v18252_v10 }
 0x1df   :  { %18256 = vst [vmem:[#allocation38_spill] sm:$0xff] %v13223_v27  ;;  %v1059_v41 = vmul.f32 %v13006_v37, %v13219_v2  ;;  %v18258_v14 = vrot.slane %v18257_v25, 1  ;;  %v13242_v58 = vmul.f32 %v13128_v35, %v18252_v10  ;;  %v1548_v29 = vmul.f32 %v12952_v4, %v13219_v2 }
 0x1e0   :  { %18255 = vst [vmem:[#allocation28_spill] sm:$0xff] %v13216_v16  ;;  %v5294_v51 = vcombine.high %v4366_v44, %v4366_v44  ;;  %v5301_v11 = vrot.slane %v4366_v44, %v18234_v31  ;;  %v4367_v21 = vmax.f32 %v4303_v15, 0.0 }
 0x1e1   :  { %v1296_v36 = vsel %vm1183_vm2, %v18258_v14, %v1295_v42  ;;  %v1297_v63 = vrot.slane %v1059_v41, 1 }
 0x1e2   :  { %v5308_v20 = vrot.slane %v5294_v51, %v18234_v31  ;;  %v5309_v24 = vcombine.high %v5301_v11, %v5301_v11  ;;  %v10433_v43 = vrot.slane %v5301_v11, 9  ;;  %v5311_v62 = vcombine.high %v4367_v21, %v4367_v21 }
 0x1e3   :  { %v5318_v32 = vrot.slane %v4367_v21, %v18234_v31 }
 0x1e4   :  { %v5310_v30 = vcombine.high %v5308_v20, %v5308_v20  ;;  %v10434_v1 = vrot.slane %v5309_v24, 9  ;;  %v10435_v44 = vrot.slane %v5308_v20, 9  ;;  %v6756_v15 = vmax.f32 %v5301_v11, %v10433_v43 }
 0x1e5   :  { %v5325_v51 = vrot.slane %v5311_v62, %v18234_v31  ;;  %v5326_v3 = vcombine.high %v5318_v32, %v5318_v32  ;;  %v10437_v25 = vrot.slane %v5318_v32, 9  ;;  %v2200_v11 = vmul.f32 %v13028_v0, %v13219_v2 }
 0x1e6   :  { %v10436_v14 = vrot.slane %v5310_v30, 9  ;;  %v6757_v18 = vmax.f32 %v5309_v24, %v10434_v1  ;;  %v6758_v26 = vmax.f32 %v5308_v20, %v10435_v44  ;;  %v6908_v21 = vmax.f32 %v13149_v48, %v6756_v15  ;;  %v18268_v15 = vld [vmem:[#allocation17_spill] sm:$0xff] }
 0x1e7   :  { %v5327_v27 = vcombine.high %v5325_v51, %v5325_v51  ;;  %v10438_v10 = vrot.slane %v5326_v3, 9  ;;  %v10439_v16 = vrot.slane %v5325_v51, 9  ;;  %v6760_v54 = vmax.f32 %v5318_v32, %v10437_v25 }
 0x1e8   :  { %v6759_v59 = vmax.f32 %v5310_v30, %v10436_v14  ;;  %v6909_v22 = vmax.f32 %v13151_v8, %v6757_v18  ;;  %v6910_v60 = vmax.f32 %v13153_v50, %v6758_v26  ;;  %v7497_v20 = vrot.slane %v6908_v21, %v18123_v12  ;;  %v18259_v30 = vld [vmem:[#allocation10_spill] sm:$0xff] }
 0x1e9   :  { %v10440_v43 = vrot.slane %v5327_v27, 9  ;;  %v6761_v62 = vmax.f32 %v5326_v3, %v10438_v10  ;;  %v6912_v41 = vmax.f32 %v13172_v47, %v6760_v54  ;;  %v6762_v24 = vmax.f32 %v5325_v51, %v10439_v16 }
 0x1ea   :  { %v6911_v48 = vmax.f32 %v13155_v56, %v6759_v59  ;;  %v7501_v1 = vrot.slane %v6909_v22, %v18123_v12  ;;  %v7505_v32 = vrot.slane %v6910_v60, %v18123_v12  ;;  %v1452_v8 = vadd.f32 %v1296_v36, %v18259_v30  ;;  %v18261_v59 = vld [vmem:[#allocation13_spill] sm:$0xff] }
 0x1eb   :  { %v17776_v50 = vrot.slane %v13242_v58, 2  ;;  %v1298_v26 = vsel %vm1183_vm2, %v1295_v42, %v1297_v63  ;;  %v1786_v18 = vrot.slane %v1548_v29, 2  ;;  %v6763_v44 = vmax.f32 %v5327_v27, %v10440_v43  ;;  %v18264_v63 = vld [vmem:[#allocation9_spill] sm:$0xff] }
 0x1ec   :  { %v6913_v10 = vmax.f32 %v13190_v33, %v6761_v62  ;;  %v7509_v47 = vrot.slane %v6911_v48, %v18123_v12  ;;  %v7713_v54 = vsel %vm7622_vm4, %v7501_v1, %v7497_v20  ;;  %v7513_v56 = vrot.slane %v6912_v41, %v18123_v12  ;;  %v18272_v41 = vld [vmem:[#allocation14_spill] sm:$0xff] }
 0x1ed   :  { %v7714_v22 = vsel %vm7624_vm5, %v7505_v32, %v7713_v54  ;;  %v18260_v60 = vrot.slane %v13198_v23, 2  ;;  %v18262_v16 = vrot.slane %v18261_v59, 2  ;;  %v18263_v42 = vrot.slane %v13202_v34, 1  ;;  %v18278_v32 = vld [vmem:[#allocation191_spill] sm:$0xff] }
 0x1ee   :  { %v18265_v27 = vrot.slane %v18264_v63, 1  ;;  %v6914_v36 = vmax.f32 %v13192_v52, %v6762_v24  ;;  %v18267_v29 = vrot.slane %v13209_v38, 2  ;;  %v18269_v51 = vrot.slane %v18268_v15, 2  ;;  %v18275_v52 = vld [vmem:[#allocation180_spill] sm:$0xff] }
 0x1ef   :  { %v1785_v3 = vsel %vm1672_vm3, %v18262_v16, %v18260_v60  ;;  %v1453_v14 = vadd.f32 %v1298_v26, %v740_v19  ;;  %v2435_v21 = vrot.slane %v2200_v11, 1  ;;  %v18271_v62 = vrot.slane %v13213_v7, 1 }
 0x1f0   :  { %v13275_v33 = vsel %vm1183_vm2, %v18265_v27, %v18263_v42  ;;  %v13283_v25 = vsel %vm1672_vm3, %v18269_v51, %v18267_v29  ;;  %v1941_v43 = vadd.f32 %v1785_v3, %v1452_v8  ;;  %v18273_v20 = vrot.slane %v18272_v41, 1  ;;  %v943_v42 = vpop.permute.xlu0 %942  ;;  %v18282_v51 = vld [vmem:[#allocation181_spill] sm:$0xff] }
 0x1f1   :  { %18266 = vst [vmem:[#allocation32_spill] sm:$0xff] %v13275_v33  ;;  %18270 = vst [vmem:[#allocation34_spill] sm:$0xff] %v13283_v25  ;;  %v18276_v24 = vrot.slane %v18275_v52, 2  ;;  %v1061_v30 = vmul.f32 %v13006_v37, %v18278_v32  ;;  %v6915_v19 = vmax.f32 %v13221_v9, %v6763_v44  ;;  %v7517_v11 = vrot.slane %v6913_v10, %v18123_v12 }
 0x1f2   :  { %v13290_v48 = vsel %vm1183_vm2, %v18273_v20, %v18271_v62  ;;  %v7715_v8 = vsel %vm7626_vm6, %v7509_v47, %v7714_v22  ;;  %v18279_v26 = vmov %v18260_v60  ;;  %v13310_v59 = vmul.f32 %v13043_v28, %v13219_v2 }
 0x1f3   :  { %18274 = vst [vmem:[#allocation29_spill] sm:$0xff] %v13290_v48  ;;  %v13297_v1 = vsel %vm1672_vm3, %v18276_v24, %v17776_v50  ;;  %v1787_v54 = vsel %vm1672_vm3, %v18279_v26, %v1786_v18  ;;  %v7716_v60 = vsel %vm7628_vm7, %v7513_v56, %v7715_v8  ;;  %v1300_v16 = vrot.slane %v1061_v30, 1  ;;  %v18284_v24 = vld [vmem:[#allocation183_spill] sm:$0xff] }
 0x1f4   :  { %18277 = vst [vmem:[#allocation149_spill] sm:$0xff] %v13297_v1  ;;  %v1550_v3 = vmul.f32 %v12952_v4, %v18278_v32  ;;  %v7521_v9 = vrot.slane %v6914_v36, %v18123_v12  ;;  %v1942_v44 = vadd.f32 %v1787_v54, %v1453_v14  ;;  %v18280_v10 = vrot.slane %v13202_v34, 1 }
 0x1f5   :  { %v13322_v18 = vmul.f32 %v13121_v45, %v13219_v2  ;;  %v13326_v47 = vmul.f32 %v13128_v35, %v13219_v2  ;;  %v2202_v22 = vmul.f32 %v13028_v0, %v18278_v32  ;;  %v2690_v63 = vmul.f32 %v13043_v28, %v18278_v32 }
 0x1f6   :  { %v13318_v23 = vsel %vm1183_vm2, %v18280_v10, %v2435_v21  ;;  %v1789_v56 = vrot.slane %v1550_v3, 2  ;;  %v7525_v34 = vrot.slane %v6915_v19, %v18123_v12  ;;  %v7717_v27 = vsel %vm7630_vm8, %v7517_v11, %v7716_v60  ;;  %v18285_v11 = vld [vmem:[#allocation184_spill] sm:$0xff]  ;;  %v18287_v60 = vld [vmem:[#allocation185_spill] sm:$0xff] }
 0x1f7   :  { %18281 = vst [vmem:[#allocation150_spill] sm:$0xff] %v13318_v23  ;;  %v742_v36 = vmul.f32 %v13092_v39, %v18278_v32  ;;  %v1062_v29 = vmul.f32 %v13006_v37, %v943_v42  ;;  %v2923_v15 = vrot.slane %v13310_v59, 2  ;;  %v2438_v2 = vrot.slane %v2202_v22, 1 }
 0x1f8   :  { %v18283_v14 = vrot.slane %v18282_v51, 1  ;;  %v1551_v62 = vmul.f32 %v12952_v4, %v943_v42  ;;  %v3572_v41 = vrot.slane %v13322_v18, 1  ;;  %v2926_v20 = vrot.slane %v2690_v63, 2  ;;  %v18288_v18 = vld [vmem:[#allocation186_spill] sm:$0xff] }
 0x1f9   :  { %v1302_v52 = vrot.slane %v1062_v29, 1  ;;  %v2034_v19 = vmul.f32 %v13106_v5, %v18278_v32  ;;  %v18286_v8 = vrot.slane %v18285_v11, 2  ;;  %v2097_v59 = vadd.f32 %v18287_v60, %v1941_v43  ;;  %v18291_v43 = vld [vmem:[#allocation188_spill] sm:$0xff] }
 0x1fa   :  { %v1301_v21 = vsel %vm1183_vm2, %v18283_v14, %v1300_v16  ;;  %v1791_v54 = vrot.slane %v1551_v62, 2  ;;  %v2203_v22 = vmul.f32 %v13028_v0, %v943_v42  ;;  %v18289_v63 = vrot.slane %v18288_v18, 1 }
 0x1fb   :  { %v1454_v30 = vadd.f32 %v1301_v21, %v18284_v24  ;;  %v1790_v26 = vsel %vm1672_vm3, %v18286_v8, %v1789_v56  ;;  %v1303_v3 = vsel %vm1183_vm2, %v1300_v16, %v1302_v52  ;;  %v2098_v14 = vadd.f32 %v2034_v19, %v1942_v44  ;;  %v18290_v8 = vld [vmem:[#allocation152_spill] sm:$0xff]  ;;  %v18294_v19 = vld [vmem:[#allocation23_spill] sm:$0xff] }
 0x1fc   :  { %v2439_v29 = vsel %vm1183_vm2, %v18289_v63, %v2438_v2  ;;  %v1455_v51 = vadd.f32 %v1303_v3, %v742_v36  ;;  %v2691_v24 = vmul.f32 %v13043_v28, %v943_v42  ;;  %v1792_v11 = vsel %vm1672_vm3, %v1789_v56, %v1791_v54  ;;  %v18293_v52 = vld [vmem:[#allocation136_spill] sm:$0xff] }
 0x1fd   :  { %v1943_v10 = vadd.f32 %v1790_v26, %v1454_v30  ;;  %v2595_v21 = vadd.f32 %v2439_v29, %v2097_v59  ;;  %v2440_v50 = vrot.slane %v2203_v22, 1  ;;  %v18292_v60 = vrot.slane %v18291_v43, 2  ;;  %v18295_v22 = vld [vmem:[#allocation154_spill] sm:$0xff] }
 0x1fe   :  { %v2036_v30 = vmul.f32 %v13106_v5, %v18293_v52  ;;  %v1944_v26 = vadd.f32 %v1792_v11, %v1455_v51  ;;  %v2928_v18 = vrot.slane %v2691_v24, 2  ;;  %v4060_v44 = vrot.slane %v13326_v47, 2  ;;  %v18296_v24 = vld [vmem:[#allocation19_spill] sm:$0xff] }
 0x1ff   :  { %v2099_v62 = vadd.f32 %v18290_v8, %v1943_v10  ;;  %v2927_v16 = vsel %vm1672_vm3, %v18292_v60, %v2926_v20  ;;  %v3341_v36 = vmul.f32 %v13121_v45, %v18278_v32  ;;  %v2441_v56 = vsel %vm1183_vm2, %v2438_v2, %v2440_v50 }
 0x200   :  { %v3083_v63 = vadd.f32 %v2927_v16, %v2595_v21  ;;  %v7718_v59 = vsel %vm7632_vm9, %v7521_v9, %v7717_v27  ;;  %v2100_v3 = vadd.f32 %v2036_v30, %v1944_v26  ;;  %v2596_v10 = vadd.f32 %v2441_v56, %v2098_v14 }
 0x201   :  { %v2597_v54 = vadd.f32 %v18294_v19, %v2099_v62  ;;  %v3829_v51 = vmul.f32 %v13128_v35, %v18278_v32  ;;  %v2929_v21 = vsel %vm1672_vm3, %v2926_v20, %v2928_v18  ;;  %v3342_v11 = vmul.f32 %v13121_v45, %v943_v42  ;;  %v18298_v62 = vld [vmem:[#allocation163_spill] sm:$0xff]  ;;  %v18301_v18 = vld [vmem:[#allocation202_spill] sm:$0xff] }
 0x202   :  { %v3239_v29 = vadd.f32 %v18295_v22, %v3083_v63  ;;  %v3176_v50 = vmul.f32 %v13139_v49, %v18293_v52  ;;  %v2598_v2 = vadd.f32 %v12919_v17, %v2100_v3  ;;  %v3084_v8 = vadd.f32 %v2929_v21, %v2596_v10  ;;  %v18310_v10 = vld [vmem:[#allocation12_spill] sm:$0xff] }
 0x203   :  { %v3085_v47 = vadd.f32 %v18296_v24, %v2597_v54  ;;  %v13380_v27 = vsel %vm7634_vm10, %v7525_v34, %v7718_v59  ;;  %v3575_v14 = vrot.slane %v3341_v36, 1  ;;  %v3830_v20 = vmul.f32 %v13128_v35, %v943_v42 }
 0x204   :  { %v3737_v9 = vadd.f32 %v12895_v57, %v3239_v29  ;;  %18297 = vst [vmem:[#allocation141_spill] sm:$0xff] %v13380_v27  ;;  %v18299_v60 = vrot.slane %v13209_v38, 2  ;;  %v3086_v52 = vadd.f32 %v12924_v61, %v2598_v2  ;;  %v3240_v30 = vadd.f32 %v3176_v50, %v3084_v8 }
 0x205   :  { %v3241_v43 = vadd.f32 %v18298_v62, %v3085_v47  ;;  %v4063_v26 = vrot.slane %v3829_v51, 2  ;;  %v3577_v57 = vrot.slane %v3342_v11, 1  ;;  %v13394_v63 = vmul.f32 %v13006_v37, %v18301_v18 }
 0x206   :  { %v13387_v16 = vsel %vm1672_vm3, %v18299_v60, %v2923_v15  ;;  %v4225_v17 = vadd.f32 %v12906_v6, %v3737_v9  ;;  %v18302_v42 = vrot.slane %v13213_v7, 1  ;;  %v18304_v15 = vld [vmem:[#allocation165_spill] sm:$0xff]  ;;  %v3738_v61 = vadd.f32 %v12965_v46, %v3240_v30 }
 0x207   :  { %18300 = vst [vmem:[#allocation153_spill] sm:$0xff] %v13387_v16  ;;  %v3739_v34 = vadd.f32 %v12996_v40, %v3241_v43  ;;  %v3242_v36 = vadd.f32 %v18304_v15, %v3086_v52  ;;  %v18305_v6 = vrot.slane %v13242_v58, 2  ;;  %v18307_v40 = vld [vmem:[#allocation6_spill] sm:$0xff]  ;;  %v4065_v7 = vrot.slane %v3830_v20, 2  ;;  %v18320_v15 = vld [vmem:[#allocation201_spill] sm:$0xff] }
 0x208   :  { %v13399_v38 = vsel %vm1183_vm2, %v18302_v42, %v3572_v41  ;;  %v4296_v56 = vadd.f32 %v13074_v55, %v4225_v17  ;;  %v18308_v54 = vrot.slane %v18307_v40, 1  ;;  %v4226_v22 = vadd.f32 %v18310_v10, %v3738_v61  ;;  %v18319_v42 = vld [vmem:[#allocation26_spill] sm:$0xff] }
 0x209   :  { %18303 = vst [vmem:[#allocation162_spill] sm:$0xff] %v13399_v38  ;;  %v13407_v19 = vsel %vm1672_vm3, %v18305_v6, %v4060_v44  ;;  %v4227_v41 = vadd.f32 %v13001_v13, %v3739_v34  ;;  %v3740_v3 = vadd.f32 %v13016_v53, %v3242_v36  ;;  %v13419_v29 = vmul.f32 %v12952_v4, %v18301_v18  ;;  %v18312_v44 = vld [vmem:[#allocation190_spill] sm:$0xff]  ;;  %v18315_v53 = vld [vmem:[#allocation20_spill] sm:$0xff] }
 0x20a   :  { %18306 = vst [vmem:[#allocation156_spill] sm:$0xff] %v13407_v19  ;;  %v13412_v59 = vsel %vm1183_vm2, %v18308_v54, %v3575_v14  ;;  %v4360_v46 = vmax.f32 %v4296_v56, 0.0  ;;  %v13422_v58 = vsel %vm1183_vm2, %v3575_v14, %v3577_v57  ;;  %v18313_v51 = vrot.slane %v18312_v44, 2  ;;  %v18322_v44 = vld [vmem:[#allocation193_spill] sm:$0xff] }
 0x20b   :  { %18309 = vst [vmem:[#allocation161_spill] sm:$0xff] %v13412_v59  ;;  %18311 = vst [vmem:[#allocation155_spill] sm:$0xff] %v13422_v58  ;;  %v4298_v24 = vadd.f32 %v13074_v55, %v4227_v41  ;;  %v17778_v13 = vrot.slane %v13394_v63, 1  ;;  %v4228_v47 = vadd.f32 %v18315_v53, %v3740_v3  ;;  %v4297_v11 = vadd.f32 %v13074_v55, %v4226_v22  ;;  %v18321_v3 = vld [vmem:[#allocation31_spill] sm:$0xff] }
 0x20c   :  { %v13427_v21 = vsel %vm1672_vm3, %v18313_v51, %v4063_v26  ;;  %v5192_v50 = vcombine.high %v4360_v46, %v4360_v46  ;;  %v5199_v2 = vrot.slane %v4360_v46, %v18234_v31  ;;  %v13435_v8 = vsel %vm1672_vm3, %v4063_v26, %v4065_v7  ;;  %v18317_v26 = vld [vmem:[#allocation192_spill] sm:$0xff] }
 0x20d   :  { %18314 = vst [vmem:[#allocation158_spill] sm:$0xff] %v13427_v21  ;;  %18316 = vst [vmem:[#allocation159_spill] sm:$0xff] %v13435_v8  ;;  %v4362_v9 = vmax.f32 %v4298_v24, 0.0  ;;  %v13439_v14 = vmul.f32 %v13092_v39, %v18301_v18  ;;  %v2044_v62 = vmul.f32 %v13106_v5, %v18301_v18  ;;  %v4299_v43 = vadd.f32 %v13074_v55, %v4228_v47 }
 0x20e   :  { %v4361_v20 = vmax.f32 %v4297_v11, 0.0  ;;  %v5206_v60 = vrot.slane %v5192_v50, %v18234_v31  ;;  %v17777_v52 = vrot.slane %v13419_v29, 2  ;;  %v18318_v57 = vrot.slane %v18317_v26, 1 }
 0x20f   :  { %v5226_v30 = vcombine.high %v4362_v9, %v4362_v9  ;;  %v5233_v17 = vrot.slane %v4362_v9, %v18234_v31  ;;  %v13454_v36 = vadd.f32 %v18320_v15, %v18319_v42  ;;  %v4363_v61 = vmax.f32 %v4299_v43, 0.0  ;;  %v18324_v9 = vld [vmem:[#allocation194_spill] sm:$0xff] }
 0x210   :  { %v1326_v34 = vsel %vm1183_vm2, %v18318_v57, %v17778_v13  ;;  %v5207_v56 = vcombine.high %v5199_v2, %v5199_v2  ;;  %v5209_v6 = vcombine.high %v4361_v20, %v4361_v20  ;;  %v5216_v40 = vrot.slane %v4361_v20, %v18234_v31 }
 0x211   :  { %v5208_v54 = vcombine.high %v5206_v60, %v5206_v60  ;;  %v5240_v7 = vrot.slane %v5226_v30, %v18234_v31  ;;  %v5241_v41 = vcombine.high %v5233_v17, %v5233_v17  ;;  %v13459_v10 = vadd.f32 %v2044_v62, %v18321_v3 }
 0x212   :  { %v5243_v22 = vcombine.high %v4363_v61, %v4363_v61  ;;  %v5250_v46 = vrot.slane %v4363_v61, %v18234_v31  ;;  %v18323_v51 = vrot.slane %v18322_v44, 2  ;;  %v13469_v53 = vmul.f32 %v13028_v0, %v18301_v18 }
 0x213   :  { %v5223_v47 = vrot.slane %v5209_v6, %v18234_v31  ;;  %v5224_v11 = vcombine.high %v5216_v40, %v5216_v40  ;;  %v5242_v50 = vcombine.high %v5240_v7, %v5240_v7  ;;  %v1464_v62 = vadd.f32 %v1326_v34, %v18324_v9 }
 0x214   :  { %v1815_v24 = vsel %vm1672_vm3, %v18323_v51, %v17777_v52  ;;  %v5257_v43 = vrot.slane %v5243_v22, %v18234_v31  ;;  %v5258_v20 = vcombine.high %v5250_v46, %v5250_v46  ;;  %v10409_v30 = vrot.slane %v5199_v2, 9 }
 0x215   :  { %v10410_v26 = vrot.slane %v5207_v56, 9  ;;  %v10411_v57 = vrot.slane %v5206_v60, 9  ;;  %v10412_v42 = vrot.slane %v5208_v54, 9  ;;  %v10417_v15 = vrot.slane %v5233_v17, 9 }
 0x216   :  { %v10418_v61 = vrot.slane %v5241_v41, 9  ;;  %v10413_v3 = vrot.slane %v5216_v40, 9  ;;  %v10419_v44 = vrot.slane %v5240_v7, 9  ;;  %v10420_v51 = vrot.slane %v5242_v50, 9 }
 0x217   :  { %v10421_v52 = vrot.slane %v5250_v46, 9  ;;  %v5225_v13 = vcombine.high %v5223_v47, %v5223_v47  ;;  %v10414_v19 = vrot.slane %v5224_v11, 9  ;;  %v10422_v6 = vrot.slane %v5258_v20, 9 }
 0x218   :  { %v5259_v8 = vcombine.high %v5257_v43, %v5257_v43  ;;  %v10423_v34 = vrot.slane %v5257_v43, 9  ;;  %v6732_v9 = vmax.f32 %v5199_v2, %v10409_v30  ;;  %v6733_v22 = vmax.f32 %v5207_v56, %v10410_v26  ;;  %v18328_v26 = vld [vmem:[#allocation28_spill] sm:$0xff] }
 0x219   :  { %v6734_v38 = vmax.f32 %v5206_v60, %v10411_v57  ;;  %v6735_v48 = vmax.f32 %v5208_v54, %v10412_v42  ;;  %v6740_v21 = vmax.f32 %v5233_v17, %v10417_v15  ;;  %v6741_v58 = vmax.f32 %v5241_v41, %v10418_v61  ;;  %v18329_v57 = vld [vmem:[#allocation204_spill] sm:$0xff]  ;;  %v18330_v61 = vld [vmem:[#allocation197_spill] sm:$0xff] }
 0x21a   :  { %v6736_v59 = vmax.f32 %v5216_v40, %v10413_v3  ;;  %v6742_v16 = vmax.f32 %v5240_v7, %v10419_v44  ;;  %v6743_v25 = vmax.f32 %v5242_v50, %v10420_v51  ;;  %v6744_v23 = vmax.f32 %v5250_v46, %v10421_v52  ;;  %v968_v7 = vpop.permute.xlu1 %967 }
 0x21b   :  { %v6745_v33 = vmax.f32 %v5258_v20, %v10422_v6  ;;  %v6900_v32 = vmax.f32 %v6732_v9, %v6740_v21  ;;  %v6901_v27 = vmax.f32 %v6733_v22, %v6741_v58  ;;  %v13477_v5 = vmul.f32 %v13043_v28, %v18301_v18  ;;  %v18332_v9 = vld [vmem:[#allocation38_spill] sm:$0xff] }
 0x21c   :  { %v10415_v1 = vrot.slane %v5223_v47, 9  ;;  %v6902_v39 = vmax.f32 %v6734_v38, %v6742_v16  ;;  %v6903_v31 = vmax.f32 %v6735_v48, %v6743_v25  ;;  %v6904_v2 = vmax.f32 %v6736_v59, %v6744_v23  ;;  %v18326_v38 = vld [vmem:[#allocation195_spill] sm:$0xff] }
 0x21d   :  { %v6737_v56 = vmax.f32 %v5224_v11, %v10414_v19  ;;  %v7465_v60 = vrot.slane %v6900_v32, %v18123_v12  ;;  %v7469_v17 = vrot.slane %v6901_v27, %v18123_v12  ;;  %v3184_v40 = vmul.f32 %v13139_v49, %v18301_v18 }
 0x21e   :  { %v10416_v52 = vrot.slane %v5225_v13, 9  ;;  %v10424_v54 = vrot.slane %v5259_v8, 9  ;;  %v6746_v21 = vmax.f32 %v5257_v43, %v10423_v34  ;;  %v7473_v58 = vrot.slane %v6902_v39, %v18123_v12 }
 0x21f   :  { %v6905_v41 = vmax.f32 %v6737_v56, %v6745_v33  ;;  %v7477_v46 = vrot.slane %v6903_v31, %v18123_v12  ;;  %v7706_v25 = vsel %vm7622_vm4, %v7469_v17, %v7465_v60  ;;  %v13486_v48 = vadd.f32 %v1815_v24, %v1464_v62  ;;  %v18333_v60 = vld [vmem:[#allocation198_spill] sm:$0xff] }
 0x220   :  { %v6738_v23 = vmax.f32 %v5223_v47, %v10415_v1  ;;  %v7481_v32 = vrot.slane %v6904_v2, %v18123_v12  ;;  %v7707_v27 = vsel %vm7624_vm5, %v7473_v58, %v7706_v25  ;;  %v18325_v16 = vrot.slane %v13469_v53, 1 }
 0x221   :  { %v18327_v19 = vrot.slane %v18326_v38, 1  ;;  %v2951_v39 = vrot.slane %v13477_v5, 2  ;;  %v3356_v31 = vmul.f32 %v13121_v45, %v18301_v18  ;;  %v3844_v33 = vmul.f32 %v13128_v35, %v18301_v18 }
 0x222   :  { %v1077_v1 = vmul.f32 %v13006_v37, %v968_v7  ;;  %v6739_v24 = vmax.f32 %v5225_v13, %v10416_v52  ;;  %v6747_v47 = vmax.f32 %v5259_v8, %v10424_v54  ;;  %v6906_v11 = vmax.f32 %v6738_v23, %v6746_v21 }
 0x223   :  { %v2464_v59 = vsel %vm1183_vm2, %v18327_v19, %v18325_v16  ;;  %v2218_v50 = vmul.f32 %v13028_v0, %v968_v7  ;;  %v7485_v62 = vrot.slane %v6905_v41, %v18123_v12  ;;  %v7708_v43 = vsel %vm7626_vm6, %v7477_v46, %v7707_v27 }
 0x224   :  { %v3600_v20 = vrot.slane %v3356_v31, 1  ;;  %v4088_v30 = vrot.slane %v3844_v33, 2  ;;  %v7709_v5 = vsel %vm7628_vm7, %v7481_v32, %v7708_v43  ;;  %v3247_v42 = vadd.f32 %v18329_v57, %v18328_v26  ;;  %v13534_v31 = vpop.permute.xlu0 %972  ;;  %v18339_v33 = vld [vmem:[#allocation196_spill] sm:$0xff] }
 0x225   :  { %v1327_v15 = vrot.slane %v1077_v1, 1  ;;  %v2465_v18 = vrot.slane %v2218_v50, 1  ;;  %v18331_v3 = vrot.slane %v18330_v61, 1  ;;  %v1566_v8 = vmul.f32 %v12952_v4, %v968_v7 }
 0x226   :  { %v2706_v44 = vmul.f32 %v13043_v28, %v968_v7  ;;  %v3357_v51 = vmul.f32 %v13121_v45, %v968_v7  ;;  %v6907_v6 = vmax.f32 %v6739_v24, %v6747_v47  ;;  %v2605_v34 = vadd.f32 %v2464_v59, %v13454_v36  ;;  %v18338_v59 = vld [vmem:[#allocation211_spill] sm:$0xff] }
 0x227   :  { %v3601_v13 = vsel %vm1183_vm2, %v18331_v3, %v3600_v20  ;;  %v3248_v22 = vadd.f32 %v3184_v40, %v18332_v9  ;;  %v7489_v56 = vrot.slane %v6906_v11, %v18123_v12  ;;  %v18334_v17 = vrot.slane %v18333_v60, 2  ;;  %v18345_v9 = vld [vmem:[#allocation30_spill] sm:$0xff] }
 0x228   :  { %v3745_v2 = vadd.f32 %v3601_v13, %v3247_v42  ;;  %v3602_v54 = vrot.slane %v3357_v51, 1  ;;  %v3845_v21 = vmul.f32 %v13128_v35, %v968_v7  ;;  %v7710_v58 = vsel %vm7630_vm8, %v7485_v62, %v7709_v5 }
 0x229   :  { %v4089_v52 = vsel %vm1672_vm3, %v18334_v17, %v4088_v30  ;;  %v18335_v46 = vrot.slane %v13394_v63, 1  ;;  %v18336_v36 = vmov %v18325_v16  ;;  %v1816_v23 = vrot.slane %v1566_v8, 2 }
 0x22a   :  { %v4233_v41 = vadd.f32 %v4089_v52, %v3745_v2  ;;  %v2466_v40 = vsel %vm1183_vm2, %v18336_v36, %v2465_v18  ;;  %v2953_v32 = vrot.slane %v2706_v44, 2  ;;  %v3603_v27 = vsel %vm1183_vm2, %v3600_v20, %v3602_v54  ;;  %v18346_v52 = vld [vmem:[#allocation199_spill] sm:$0xff] }
 0x22b   :  { %v1328_v25 = vsel %vm1183_vm2, %v18335_v46, %v1327_v15  ;;  %v4090_v16 = vrot.slane %v3845_v21, 2  ;;  %v13529_v38 = vrot.slane %v6907_v6, %v18123_v12  ;;  %v3746_v19 = vadd.f32 %v3603_v27, %v3248_v22 }
 0x22c   :  { %v4304_v7 = vadd.f32 %v13074_v55, %v4233_v41  ;;  %v1079_v63 = vmul.f32 %v13006_v37, %v18338_v59  ;;  %v18340_v53 = vrot.slane %v18339_v33, 2  ;;  %v1465_v24 = vadd.f32 %v1328_v25, %v13439_v14 }
 0x22d   :  { %18337 = vst [vmem:[#allocation160_spill] sm:$0xff] %v13529_v38  ;;  %v2606_v47 = vadd.f32 %v2466_v40, %v13459_v10  ;;  %v4091_v11 = vsel %vm1672_vm3, %v4088_v30, %v4090_v16  ;;  %v13543_v50 = vsel %vm7632_vm9, %v7489_v56, %v7710_v58  ;;  %v18342_v5 = vrot.slane %v13419_v29, 2  ;;  %v18343_v30 = vld [vmem:[#allocation5_spill] sm:$0xff]  ;;  %v18344_v29 = vld [vmem:[#allocation24_spill] sm:$0xff] }
 0x22e   :  { %v2952_v1 = vsel %vm1672_vm3, %v18340_v53, %v2951_v39  ;;  %18341 = vst [vmem:[#allocation147_spill] sm:$0xff] %v13543_v50  ;;  %v4368_v43 = vmax.f32 %v4304_v7, 0.0  ;;  %v4234_v20 = vadd.f32 %v4091_v11, %v3746_v19  ;;  %v2954_v57 = vsel %vm1672_vm3, %v2951_v39, %v2953_v32  ;;  %v18348_v7 = vld [vmem:[#allocation205_spill] sm:$0xff] }
 0x22f   :  { %v3093_v62 = vadd.f32 %v2952_v1, %v2605_v34  ;;  %v1817_v26 = vsel %vm1672_vm3, %v18342_v5, %v1816_v23  ;;  %v1568_v42 = vmul.f32 %v12952_v4, %v18338_v59  ;;  %v1080_v14 = vmul.f32 %v13006_v37, %v13534_v31 }
 0x230   :  { %v5328_v10 = vcombine.high %v4368_v43, %v4368_v43  ;;  %v5335_v15 = vrot.slane %v4368_v43, %v18343_v30  ;;  %v4305_v18 = vadd.f32 %v13074_v55, %v4234_v20  ;;  %v1330_v61 = vrot.slane %v1079_v63, 1  ;;  %v18349_v43 = vld [vmem:[#allocation200_spill] sm:$0xff] }
 0x231   :  { %v1954_v3 = vadd.f32 %v1817_v26, %v1465_v24  ;;  %v3094_v13 = vadd.f32 %v2954_v57, %v2606_v47  ;;  %v754_v8 = vmul.f32 %v18344_v29, %v18338_v59  ;;  %v1332_v44 = vrot.slane %v1080_v14, 1 }
 0x232   :  { %v5342_v39 = vrot.slane %v5328_v10, %v18343_v30  ;;  %v5343_v51 = vcombine.high %v5335_v15, %v5335_v15  ;;  %v4369_v6 = vmax.f32 %v4305_v18, 0.0  ;;  %v1569_v34 = vmul.f32 %v12952_v4, %v13534_v31 }
 0x233   :  { %v1819_v37 = vrot.slane %v1568_v42, 2  ;;  %v2046_v22 = vmul.f32 %v18345_v9, %v18338_v59  ;;  %v2220_v2 = vmul.f32 %v13028_v0, %v18338_v59  ;;  %v13566_v56 = vmul.f32 %v13043_v28, %v18338_v59 }
 0x234   :  { %v5344_v60 = vcombine.high %v5342_v39, %v5342_v39  ;;  %v3359_v17 = vmul.f32 %v13121_v45, %v18338_v59  ;;  %v18347_v54 = vrot.slane %v18346_v52, 1  ;;  %v1333_v4 = vsel %vm1183_vm2, %v1330_v61, %v1332_v44 }
 0x235   :  { %v10441_v58 = vrot.slane %v5335_v15, 9  ;;  %v5345_v41 = vcombine.high %v4369_v6, %v4369_v6  ;;  %v5352_v46 = vrot.slane %v4369_v6, %v18343_v30  ;;  %v3847_v25 = vmul.f32 %v13128_v35, %v18338_v59 }
 0x236   :  { %v1331_v21 = vsel %vm1183_vm2, %v18347_v54, %v1330_v61  ;;  %v10442_v36 = vrot.slane %v5343_v51, 9  ;;  %v10443_v40 = vrot.slane %v5342_v39, 9  ;;  %v3186_v23 = vmul.f32 %v13139_v49, %v18338_v59  ;;  %v18352_v61 = vld [vmem:[#allocation208_spill] sm:$0xff] }
 0x237   :  { %v1821_v32 = vrot.slane %v1569_v34, 2  ;;  %v10444_v27 = vrot.slane %v5344_v60, 9  ;;  %v2468_v16 = vrot.slane %v2220_v2, 1  ;;  %v1466_v19 = vadd.f32 %v1331_v21, %v18348_v7  ;;  %v18353_v34 = vld [vmem:[#allocation209_spill] sm:$0xff]  ;;  %v18358_v21 = vld [vmem:[#allocation206_spill] sm:$0xff] }
 0x238   :  { %v1467_v63 = vadd.f32 %v1333_v4, %v754_v8  ;;  %v5359_v33 = vrot.slane %v5345_v41, %v18343_v30  ;;  %v5360_v53 = vcombine.high %v5352_v46, %v5352_v46  ;;  %v2956_v1 = vrot.slane %v13566_v56, 2 }
 0x239   :  { %v3605_v24 = vrot.slane %v3359_v17, 1  ;;  %v13582_v47 = vmax.f32 %v5335_v15, %v10441_v58  ;;  %v4093_v11 = vrot.slane %v3847_v25, 2  ;;  %v18350_v20 = vrot.slane %v18349_v43, 2  ;;  %v18354_v17 = vld [vmem:[#allocation207_spill] sm:$0xff] }
 0x23a   :  { %v2221_v59 = vmul.f32 %v13028_v0, %v13534_v31  ;;  %v13589_v26 = vmax.f32 %v5343_v51, %v10442_v36  ;;  %v13591_v57 = vmax.f32 %v5342_v39, %v10443_v40  ;;  %v10445_v42 = vrot.slane %v5352_v46, 9  ;;  %v18361_v36 = vld [vmem:[#allocation210_spill] sm:$0xff] }
 0x23b   :  { %v1820_v5 = vsel %vm1672_vm3, %v18350_v20, %v1819_v37  ;;  %v1822_v14 = vsel %vm1672_vm3, %v1819_v37, %v1821_v32  ;;  %v13594_v10 = vmax.f32 %v5344_v60, %v10444_v27  ;;  %v2109_v29 = vadd.f32 %v18352_v61, %v13486_v48  ;;  %v13628_v20 = vld [vmem:[%s17602_s1 + $0x1] ss:$0 sm:$0xff]  ;;  %v13650_v61 = vld [vmem:[%s17602_s1 + $0x4] ss:$0 sm:$0xff] }
 0x23c   :  { %v1955_v18 = vadd.f32 %v1820_v5, %v1466_v19  ;;  %v13596_v15 = vadd.f32 %v1822_v14, %v1467_v63  ;;  %v5361_v8 = vcombine.high %v5359_v33, %v5359_v33  ;;  %v10446_v44 = vrot.slane %v5360_v53, 9 }
 0x23d   :  { %v2110_v6 = vadd.f32 %v2046_v22, %v1954_v3  ;;  %v3249_v0 = vadd.f32 %v18353_v34, %v3093_v62  ;;  %v10447_v51 = vrot.slane %v5359_v33, 9  ;;  %v2470_v2 = vrot.slane %v2221_v59, 1  ;;  %v18356_v22 = vld [vmem:[#allocation203_spill] sm:$0xff]  ;;  %v13637_v59 = vld [vmem:[%s17602_s1 + $0x2] ss:$0 sm:$0xff] }
 0x23e   :  { %18351 = vst [vmem:[#allocation168_spill] sm:$0xff] %v13596_v15  ;;  %v2709_v39 = vmul.f32 %v13043_v28, %v13534_v31  ;;  %v3360_v37 = vmul.f32 %v13121_v45, %v13534_v31  ;;  %v13605_v56 = vmax.f32 %v5352_v46, %v10445_v42  ;;  %v3250_v60 = vadd.f32 %v3186_v23, %v3094_v13  ;;  %v13618_v46 = vpop.permute.xlu1 %671 }
 0x23f   :  { %v18355_v52 = vrot.slane %v18354_v17, 1  ;;  %v3848_v3 = vmul.f32 %v13128_v35, %v13534_v31  ;;  %v18357_v62 = vrot.slane %v18356_v22, 1  ;;  %v18359_v4 = vrot.slane %v18358_v21, 2  ;;  %18360 = vst [vmem:[#allocation170_spill] sm:$0xff] %v13618_v46 }
 0x240   :  { %v3607_v58 = vrot.slane %v3360_v37, 1  ;;  %v10448_v13 = vrot.slane %v5361_v8, 9  ;;  %v18362_v40 = vrot.slane %v18361_v36, 2  ;;  %v2471_v31 = vsel %vm1183_vm2, %v2468_v16, %v2470_v2 }
 0x241   :  { %v3606_v48 = vsel %vm1183_vm2, %v18355_v52, %v3605_v24  ;;  %v2469_v54 = vsel %vm1183_vm2, %v18357_v62, %v2468_v16  ;;  %v2957_v28 = vsel %vm1672_vm3, %v18359_v4, %v2956_v1  ;;  %v4095_v32 = vrot.slane %v3848_v3, 2 }
 0x242   :  { %v3747_v41 = vadd.f32 %v3606_v48, %v3249_v0  ;;  %v2607_v25 = vadd.f32 %v2469_v54, %v2109_v29  ;;  %v4094_v23 = vsel %vm1672_vm3, %v18362_v40, %v4093_v11  ;;  %v2958_v27 = vrot.slane %v2709_v39, 2  ;;  %v13681_v3 = vpop.permute.xlu1 %681 }
 0x243   :  { %v3608_v7 = vsel %vm1183_vm2, %v3605_v24, %v3607_v58  ;;  %v2608_v63 = vadd.f32 %v2471_v31, %v2110_v6  ;;  %v13632_v5 = vmul.f32 %v13628_v20, %v13618_v46  ;;  %v13641_v16 = vmul.f32 %v13637_v59, %v13618_v46  ;;  %18369 = vst [vmem:[#allocation172_spill] sm:$0xff] %v13681_v3 }
 0x244   :  { %v4235_v19 = vadd.f32 %v4094_v23, %v3747_v41  ;;  %v3748_v43 = vadd.f32 %v3608_v7, %v3250_v60  ;;  %v4096_v24 = vsel %vm1672_vm3, %v4093_v11, %v4095_v32  ;;  %v2047_v14 = vmul.f32 %v18345_v9, %v13618_v46  ;;  %v13663_v11 = vld [vmem:[%s17602_s1 + $0x5] ss:$0 sm:$0xff] }
 0x245   :  { %18363 = vst [vmem:[#allocation164_spill] sm:$0xff] %v13632_v5  ;;  %18364 = vst [vmem:[#allocation167_spill] sm:$0xff] %v13641_v16  ;;  %v13654_v29 = vmul.f32 %v13650_v61, %v13618_v46  ;;  %v13656_v6 = vmax.f32 %v5360_v53, %v10446_v44  ;;  %v13658_v34 = vmax.f32 %v5359_v33, %v10447_v51 }
 0x246   :  { %v4306_v42 = vadd.f32 %v13074_v55, %v4235_v19  ;;  %v4236_v0 = vadd.f32 %v4096_v24, %v3748_v43  ;;  %v13667_v9 = vmul.f32 %v13663_v11, %v13618_v46  ;;  %v13669_v2 = vmax.f32 %v5361_v8, %v10448_v13  ;;  %v18372_v13 = vld [vmem:[#allocation21_spill] sm:$0xff] }
 0x247   :  { %18365 = vst [vmem:[#allocation166_spill] sm:$0xff] %v13654_v29  ;;  %v2959_v39 = vsel %vm1672_vm3, %v2956_v1, %v2958_v27  ;;  %v3095_v37 = vadd.f32 %v2957_v28, %v2607_v25  ;;  %v13678_v48 = vadd.f32 %v2047_v14, %v1955_v18  ;;  %v3187_v62 = vmul.f32 %v13139_v49, %v13618_v46 }
 0x248   :  { %18366 = vst [vmem:[#allocation157_spill] sm:$0xff] %v13667_v9  ;;  %v4370_v60 = vmax.f32 %v4306_v42, 0.0  ;;  %v13672_v53 = vadd.f32 %v2959_v39, %v2608_v63  ;;  %v4307_v33 = vadd.f32 %v13074_v55, %v4236_v0  ;;  %v13688_v55 = vmul.f32 %v13121_v45, %v13618_v46 }
 0x249   :  { %18368 = vst [vmem:[#allocation171_spill] sm:$0xff] %v13678_v48  ;;  %v13693_v18 = vmul.f32 %v13128_v35, %v13618_v46  ;;  %v13698_v41 = vmul.f32 %v13139_v49, %v13681_v3  ;;  %v13702_v25 = vmul.f32 %v13628_v20, %v18372_v13  ;;  %v13707_v19 = vmul.f32 %v13637_v59, %v18372_v13 }
 0x24a   :  { %18367 = vst [vmem:[#allocation169_spill] sm:$0xff] %v13672_v53  ;;  %v5362_v17 = vcombine.high %v4370_v60, %v4370_v60  ;;  %v5369_v52 = vrot.slane %v4370_v60, %v18343_v30  ;;  %v4371_v1 = vmax.f32 %v4307_v33, 0.0  ;;  %v18433_v53 = vld [vmem:[#allocation61_spill] sm:$0xff] }
 0x24b   :  { %18370 = vst [vmem:[#allocation173_spill] sm:$0xff] %v13693_v18  ;;  %18371 = vst [vmem:[#allocation174_spill] sm:$0xff] %v13698_v41  ;;  %v17785_v39 = vrot.slane %v13702_v25, 1  ;;  %v18434_v9 = vrot.slane %v18433_v53, 1 }
 0x24c   :  { %v5376_v54 = vrot.slane %v5362_v17, %v18343_v30  ;;  %v5377_v21 = vcombine.high %v5369_v52, %v5369_v52  ;;  %v10449_v4 = vrot.slane %v5369_v52, 9  ;;  %v5379_v28 = vcombine.high %v4371_v1, %v4371_v1 }
 0x24d   :  { %v5386_v58 = vrot.slane %v4371_v1, %v18343_v30 }
 0x24e   :  { %v5378_v36 = vcombine.high %v5376_v54, %v5376_v54  ;;  %v10450_v40 = vrot.slane %v5377_v21, 9  ;;  %v10451_v23 = vrot.slane %v5376_v54, 9  ;;  %v6772_v32 = vmax.f32 %v5369_v52, %v10449_v4 }
 0x24f   :  { %v5393_v31 = vrot.slane %v5379_v28, %v18343_v30  ;;  %v5394_v27 = vcombine.high %v5386_v58, %v5386_v58  ;;  %v10453_v7 = vrot.slane %v5386_v58, 9  ;;  %v13713_v4 = vadd.f32 %v3187_v62, %v3095_v37  ;;  %v18391_v62 = vld [vmem:[#allocation42_spill] sm:$0xff] }
 0x250   :  { %v10452_v63 = vrot.slane %v5378_v36, 9  ;;  %v6773_v43 = vmax.f32 %v5377_v21, %v10450_v40  ;;  %v6774_v49 = vmax.f32 %v5376_v54, %v10451_v23  ;;  %v6916_v24 = vmax.f32 %v13582_v47, %v6772_v32 }
 0x251   :  { %v5395_v42 = vcombine.high %v5393_v31, %v5393_v31  ;;  %v10454_v14 = vrot.slane %v5394_v27, 9  ;;  %v6776_v0 = vmax.f32 %v5386_v58, %v10453_v7  ;;  %v10455_v60 = vrot.slane %v5393_v31, 9  ;;  %18373 = vst [vmem:[#allocation175_spill] sm:$0xff] %v13713_v4 }
 0x252   :  { %v6775_v33 = vmax.f32 %v5378_v36, %v10452_v63  ;;  %v6917_v17 = vmax.f32 %v13589_v26, %v6773_v43  ;;  %v6918_v52 = vmax.f32 %v13591_v57, %v6774_v49  ;;  %v13717_v21 = vmul.f32 %v13121_v45, %v13681_v3  ;;  %v13730_v36 = vpop.permute.xlu0 %676  ;;  %v13744_v43 = vld [vmem:[%s17602_s1] ss:$0 sm:$0xff] }
 0x253   :  { %v10456_v1 = vrot.slane %v5395_v42, 9  ;;  %v13721_v47 = vmul.f32 %v13128_v35, %v13681_v3  ;;  %v6777_v54 = vmax.f32 %v5394_v27, %v10454_v14  ;;  %v7529_v58 = vrot.slane %v6916_v24, %v18123_v12 }
 0x254   :  { %18374 = vst [vmem:[#allocation179_spill] sm:$0xff] %v13717_v21  ;;  %v6919_v28 = vmax.f32 %v13594_v10, %v6775_v33  ;;  %v7533_v26 = vrot.slane %v6917_v17, %v18123_v12  ;;  %v6920_v57 = vmax.f32 %v13605_v56, %v6776_v0  ;;  %v7537_v37 = vrot.slane %v6918_v52, %v18123_v12  ;;  %v18376_v10 = vld [vmem:[#allocation35_spill] sm:$0xff] }
 0x255   :  { %18375 = vst [vmem:[#allocation177_spill] sm:$0xff] %v13721_v47  ;;  %v6778_v40 = vmax.f32 %v5393_v31, %v10455_v60  ;;  %v18377_v23 = vrot.slane %v18376_v10, 1  ;;  %v17784_v27 = vrot.slane %v13707_v19, 2  ;;  %v6779_v56 = vmax.f32 %v5395_v42, %v10456_v1  ;;  %v13755_v42 = vld [vmem:[%s17602_s1 + $0x3] ss:$0 sm:$0xff]  ;;  %v18378_v0 = vld [vmem:[#allocation27_spill] sm:$0xff] }
 0x256   :  { %v7720_v35 = vsel %vm7622_vm4, %v7533_v26, %v7529_v58  ;;  %v13748_v31 = vmul.f32 %v13744_v43, %v18372_v13  ;;  %v6921_v49 = vmax.f32 %v13656_v6, %v6777_v54  ;;  %v7541_v24 = vrot.slane %v6919_v28, %v18123_v12  ;;  %v18379_v60 = vld [vmem:[#allocation44_spill] sm:$0xff]  ;;  %v858_v54 = vpop.permute.xlu1 %857 }
 0x257   :  { %v1216_v32 = vsel %vm1183_vm2, %v18377_v23, %v17785_v39  ;;  %v2000_v14 = vmul.f32 %v13755_v42, %v18372_v13  ;;  %v2063_v33 = vadd.f32 %v18379_v60, %v18378_v0  ;;  %v7545_v17 = vrot.slane %v6920_v57, %v18123_v12  ;;  %v18380_v1 = vld [vmem:[#allocation40_spill] sm:$0xff]  ;;  %v13779_v57 = vld [vmem:[%s17602_s1 + $0x7] ss:$0 sm:$0xff]  ;;  %v18385_v60 = vld [vmem:[#allocation22_spill] sm:$0xff] }
 0x258   :  { %v7721_v52 = vsel %vm7624_vm5, %v7537_v37, %v7720_v35  ;;  %v1420_v58 = vadd.f32 %v1216_v32, %v18380_v1  ;;  %v2151_v6 = vmul.f32 %v13650_v61, %v18372_v13  ;;  %v6922_v28 = vmax.f32 %v13658_v34, %v6778_v40  ;;  %v18381_v26 = vld [vmem:[#allocation36_spill] sm:$0xff]  ;;  %v13784_v40 = vpop.permute.xlu0 %686  ;;  %v18384_v35 = vld [vmem:[#allocation25_spill] sm:$0xff] }
 0x259   :  { %v18382_v10 = vrot.slane %v18381_v26, 2  ;;  %v13774_v0 = vmul.f32 %v13663_v11, %v18372_v13  ;;  %v3290_v37 = vmul.f32 %v13779_v57, %v18372_v13  ;;  %v6923_v34 = vmax.f32 %v13669_v2, %v6779_v56  ;;  %18383 = vst [vmem:[#allocation178_spill] sm:$0xff] %v13784_v40  ;;  %v18386_v1 = vld [vmem:[#allocation45_spill] sm:$0xff] }
 0x25a   :  { %v2064_v32 = vadd.f32 %v2000_v14, %v18384_v35  ;;  %v3203_v26 = vadd.f32 %v18386_v1, %v18385_v60  ;;  %v7549_v44 = vrot.slane %v6921_v49, %v18123_v12  ;;  %v7722_v63 = vsel %vm7626_vm6, %v7541_v24, %v7721_v52  ;;  %v13803_v60 = vld [vmem:[%s17602_s1 + $0x6] ss:$0 sm:$0xff]  ;;  %v868_v15 = vpop.permute.xlu1 %867 }
 0x25b   :  { %v1705_v23 = vsel %vm1672_vm3, %v18382_v10, %v17784_v27  ;;  %v13792_v10 = vld [vmem:[%s17602_s1 + $0x8] ss:$0 sm:$0xff]  ;;  %v3490_v2 = vrot.slane %v3290_v37, 1  ;;  %v1011_v56 = vmul.f32 %v13628_v20, %v858_v54  ;;  %v7723_v14 = vsel %vm7628_vm7, %v7545_v17, %v7722_v63  ;;  %v18387_v49 = vld [vmem:[#allocation41_spill] sm:$0xff] }
 0x25c   :  { %v3778_v51 = vmul.f32 %v13792_v10, %v18372_v13  ;;  %v2353_v35 = vrot.slane %v2151_v6, 1  ;;  %v3140_v1 = vmul.f32 %v13803_v60, %v18372_v13  ;;  %v2841_v22 = vrot.slane %v13774_v0, 2  ;;  %v18390_v13 = vld [vmem:[#allocation15_spill] sm:$0xff] }
 0x25d   :  { %v18388_v8 = vrot.slane %v18387_v49, 1  ;;  %v2152_v52 = vmul.f32 %v13650_v61, %v858_v54  ;;  %v3291_v63 = vmul.f32 %v13779_v57, %v858_v54  ;;  %v7553_v17 = vrot.slane %v6922_v28, %v18123_v12 }
 0x25e   :  { %v3978_v7 = vrot.slane %v3778_v51, 2  ;;  %v13815_v6 = vrot.slane %v6923_v34, %v18123_v12  ;;  %v13817_v37 = vadd.f32 %v1705_v23, %v1420_v58  ;;  %v7724_v51 = vsel %vm7630_vm8, %v7549_v44, %v7723_v14  ;;  %v13826_v34 = vpop.permute.xlu0 %862  ;;  %v18393_v58 = vld [vmem:[#allocation37_spill] sm:$0xff]  ;;  %v18395_v44 = vld [vmem:[#allocation39_spill] sm:$0xff] }
 0x25f   :  { %v3491_v24 = vsel %vm1183_vm2, %v18388_v8, %v3490_v2  ;;  %v3204_v0 = vadd.f32 %v3140_v1, %v18390_v13  ;;  %v18392_v49 = vrot.slane %v18391_v62, 2  ;;  %v1217_v27 = vrot.slane %v1011_v56, 1 }
 0x260   :  { %18389 = vst [vmem:[#allocation176_spill] sm:$0xff] %v13815_v6  ;;  %v3701_v45 = vadd.f32 %v3491_v24, %v3203_v26  ;;  %v1500_v38 = vmul.f32 %v13637_v59, %v858_v54  ;;  %v3492_v50 = vrot.slane %v3291_v63, 1  ;;  %v3779_v28 = vmul.f32 %v13792_v10, %v858_v54  ;;  %v18397_v24 = vld [vmem:[#allocation33_spill] sm:$0xff] }
 0x261   :  { %v3979_v8 = vsel %vm1672_vm3, %v18392_v49, %v3978_v7  ;;  %v18394_v23 = vrot.slane %v18393_v58, 1  ;;  %v18396_v14 = vrot.slane %v18395_v44, 2  ;;  %v2355_v62 = vrot.slane %v2152_v52, 1  ;;  %v13839_v63 = vld [vmem:[%s17603_s2] ss:$0 sm:$0xff] }
 0x262   :  { %v4189_v39 = vadd.f32 %v3979_v8, %v3701_v45  ;;  %v1013_v56 = vmul.f32 %v13628_v20, %v18397_v24  ;;  %v3493_v49 = vsel %vm1183_vm2, %v3490_v2, %v3492_v50  ;;  %v3980_v8 = vrot.slane %v3779_v28, 2 }
 0x263   :  { %v2354_v26 = vsel %vm1183_vm2, %v18394_v23, %v2353_v35  ;;  %v2842_v1 = vsel %vm1672_vm3, %v18396_v14, %v2841_v22  ;;  %v18398_v58 = vrot.slane %v13702_v25, 1  ;;  %v2640_v52 = vmul.f32 %v13663_v11, %v858_v54 }
 0x264   :  { %v2561_v45 = vadd.f32 %v2354_v26, %v2063_v33  ;;  %v4260_v13 = vadd.f32 %v13839_v63, %v4189_v39  ;;  %v3702_v44 = vadd.f32 %v3493_v49, %v3204_v0  ;;  %v1014_v33 = vmul.f32 %v13628_v20, %v13826_v34  ;;  %v18401_v49 = vld [vmem:[#allocation46_spill] sm:$0xff] }
 0x265   :  { %v1218_v23 = vsel %vm1183_vm2, %v18398_v58, %v1217_v27  ;;  %v1706_v14 = vrot.slane %v1500_v38, 2  ;;  %v3981_v6 = vsel %vm1672_vm3, %v3978_v7, %v3980_v8  ;;  %v1220_v3 = vrot.slane %v1013_v56, 1 }
 0x266   :  { %v4324_v26 = vmax.f32 %v4260_v13, 0.0  ;;  %v2356_v39 = vsel %vm1183_vm2, %v2353_v35, %v2355_v62  ;;  %v4190_v16 = vadd.f32 %v3981_v6, %v3702_v44  ;;  %v1222_v50 = vrot.slane %v1014_v33, 1  ;;  %v18403_v33 = vld [vmem:[#allocation51_spill] sm:$0xff] }
 0x267   :  { %v1502_v25 = vmul.f32 %v13637_v59, %v18397_v24  ;;  %v1421_v54 = vadd.f32 %v1218_v23, %v13748_v31  ;;  %v1503_v0 = vmul.f32 %v13637_v59, %v13826_v34  ;;  %v13858_v38 = vsel %vm7632_vm9, %v7553_v17, %v7724_v51 }
 0x268   :  { %v4580_v2 = vcombine.high %v4324_v26, %v4324_v26  ;;  %v4587_v27 = vrot.slane %v4324_v26, %v18343_v30  ;;  %18399 = vst [vmem:[#allocation8_spill] sm:$0xff] %v13858_v38  ;;  %v3049_v7 = vadd.f32 %v2842_v1, %v2561_v45  ;;  %v2843_v28 = vrot.slane %v2640_v52, 2 }
 0x269   :  { %v4261_v35 = vadd.f32 %v13839_v63, %v4190_v16  ;;  %v18400_v62 = vrot.slane %v13707_v19, 2  ;;  %v2562_v13 = vadd.f32 %v2356_v39, %v2064_v32  ;;  %v18402_v8 = vrot.slane %v18401_v49, 1 }
 0x26a   :  { %v4594_v6 = vrot.slane %v4580_v2, %v18343_v30  ;;  %v4595_v58 = vcombine.high %v4587_v27, %v4587_v27  ;;  %v1223_v17 = vsel %vm1183_vm2, %v1220_v3, %v1222_v50  ;;  %v1709_v51 = vrot.slane %v1502_v25, 2 }
 0x26b   :  { %v1707_v56 = vsel %vm1672_vm3, %v18400_v62, %v1706_v14  ;;  %v1221_v31 = vsel %vm1183_vm2, %v18402_v8, %v1220_v3  ;;  %v4325_v23 = vmax.f32 %v4261_v35, 0.0  ;;  %v710_v16 = vmul.f32 %v13744_v43, %v18397_v24  ;;  %v18404_v35 = vld [vmem:[#allocation47_spill] sm:$0xff] }
 0x26c   :  { %v4596_v1 = vcombine.high %v4594_v6, %v4594_v6  ;;  %v1910_v45 = vadd.f32 %v1707_v56, %v1421_v54  ;;  %v1711_v52 = vrot.slane %v1503_v0, 2  ;;  %v2844_v19 = vsel %vm1672_vm3, %v2841_v22, %v2843_v28 }
 0x26d   :  { %v4597_v44 = vcombine.high %v4325_v23, %v4325_v23  ;;  %v13873_v32 = vrot.slane %v4325_v23, %v18343_v30  ;;  %v1422_v26 = vadd.f32 %v1221_v31, %v18403_v33  ;;  %v10265_v14 = vrot.slane %v4587_v27, 9 }
 0x26e   :  { %v3050_v39 = vadd.f32 %v2844_v19, %v2562_v13  ;;  %v1423_v2 = vadd.f32 %v1223_v17, %v710_v16  ;;  %v13878_v3 = vmul.f32 %v13650_v61, %v18397_v24  ;;  %v10266_v50 = vrot.slane %v4595_v58, 9 }
 0x26f   :  { %v10267_v25 = vrot.slane %v4594_v6, 9  ;;  %v10268_v54 = vrot.slane %v4596_v1, 9  ;;  %v18405_v0 = vrot.slane %v18404_v35, 2  ;;  %v13884_v28 = vrot.slane %v4597_v44, %v18343_v30 }
 0x270   :  { %v13888_v62 = vcombine.high %v13873_v32, %v13873_v32  ;;  %v1712_v56 = vsel %vm1672_vm3, %v1709_v51, %v1711_v52  ;;  %v2002_v13 = vmul.f32 %v13755_v42, %v18397_v24  ;;  %v13897_v8 = vmul.f32 %v13650_v61, %v13826_v34 }
 0x271   :  { %v1710_v22 = vsel %vm1672_vm3, %v18405_v0, %v1709_v51  ;;  %v2358_v31 = vrot.slane %v13878_v3, 1  ;;  %v13902_v23 = vmul.f32 %v13663_v11, %v18397_v24  ;;  %v13904_v17 = vmax.f32 %v4587_v27, %v10265_v14  ;;  %v18406_v51 = vld [vmem:[#allocation54_spill] sm:$0xff] }
 0x272   :  { %v13893_v49 = vadd.f32 %v1710_v22, %v1422_v26  ;;  %v13906_v16 = vadd.f32 %v1712_v56, %v1423_v2  ;;  %v13910_v52 = vadd.f32 %v18406_v51, %v13817_v37  ;;  %v13912_v19 = vadd.f32 %v2002_v13, %v1910_v45 }
 0x273   :  { %v13914_v44 = vmax.f32 %v4595_v58, %v10266_v50  ;;  %v13916_v33 = vmax.f32 %v4594_v6, %v10267_v25  ;;  %v13918_v26 = vmax.f32 %v4596_v1, %v10268_v54  ;;  %v10269_v35 = vrot.slane %v13873_v32, 9  ;;  %v18407_v6 = vld [vmem:[#allocation48_spill] sm:$0xff]  ;;  %v18409_v54 = vld [vmem:[#allocation57_spill] sm:$0xff]  ;;  %v18414_v50 = vld [vmem:[#allocation50_spill] sm:$0xff] }
 0x274   :  { %v13923_v27 = vcombine.high %v13884_v28, %v13884_v28  ;;  %v10270_v14 = vrot.slane %v13888_v62, 9  ;;  %v13929_v37 = vmul.f32 %v13663_v11, %v13826_v34  ;;  %v18408_v58 = vrot.slane %v18407_v6, 1 }
 0x275   :  { %v2360_v45 = vrot.slane %v13897_v8, 1  ;;  %v3142_v25 = vmul.f32 %v13803_v60, %v18397_v24  ;;  %v13941_v0 = vadd.f32 %v18409_v54, %v3049_v7  ;;  %v3293_v22 = vmul.f32 %v13779_v57, %v18397_v24 }
 0x276   :  { %v2359_v1 = vsel %vm1183_vm2, %v18408_v58, %v2358_v31  ;;  %v3294_v56 = vmul.f32 %v13779_v57, %v13826_v34  ;;  %v13949_v13 = vmul.f32 %v13792_v10, %v18397_v24  ;;  %v13953_v8 = vmul.f32 %v13792_v10, %v13826_v34 }
 0x277   :  { %v3206_v51 = vadd.f32 %v3142_v25, %v3050_v39  ;;  %v3495_v6 = vrot.slane %v3293_v22, 1  ;;  %v18410_v2 = vmov 0.0   ;;  %v10272_v34 = vrot.slane %v13923_v27, 9  ;;  %v18411_v25 = vld [vmem:[#allocation7_spill] sm:$0xff] }
 0x278   :  { %v3497_v58 = vrot.slane %v3294_v56, 1  ;;  %v3983_v54 = vrot.slane %v13949_v13, 2  ;;  %6944 = vst.msk [vmem:[#allocation3 + $0x10] sm:$0xff] %vm6940_vm11, %v18410_v2  ;;  %6941 = vst.msk [vmem:[#allocation3] sm:$0xff] %vm6940_vm11, %v18410_v2  ;;  %v2361_v24 = vsel %vm1183_vm2, %v2358_v31, %v2360_v45  ;;  %v3985_v39 = vrot.slane %v13953_v8, 2  ;;  %v18412_v22 = vld [vmem:[#allocation43_spill] sm:$0xff] }
 0x279   :  { %6945 = vst.msk [vmem:[#allocation3 + $0x18] sm:$0x3] %vm6942_vm12, %v18410_v2  ;;  %6943 = vst.msk [vmem:[#allocation3 + $0x8] sm:$0x3] %vm6942_vm12, %v18410_v2  ;;  %v14046_v56 = vmul.f32 %v13628_v20, %v18412_v22  ;;  %v18413_v13 = vld [vmem:[#allocation141_spill] sm:$0xff]  ;;  %v2564_v7 = vadd.f32 %v2361_v24, %v13912_v19  ;;  %v18415_v3 = vrot.slane %v18414_v50, 1  ;;  %v14059_v8 = vmax.f32 %v13873_v32, %v10269_v35 }
 0x27a   :  { %6946 = vst.msk [vmem:[#allocation3 + $0x20] sm:$0xff] %vm6940_vm11, %v18410_v2  ;;  %6948 = vst.msk [vmem:[#allocation3 + $0x30] sm:$0xff] %vm6940_vm11, %v18410_v2  ;;  %v3498_v45 = vsel %vm1183_vm2, %v3495_v6, %v3497_v58  ;;  %v18416_v19 = vld [vmem:[#allocation52_spill] sm:$0xff]  ;;  %v14074_v32 = vmul.f32 %v13637_v59, %v18412_v22  ;;  %v18418_v35 = vrot.slane %v13902_v23, 2  ;;  %v18419_v58 = vld [vmem:[#allocation49_spill] sm:$0xff]  ;;  %v14100_v23 = vmul.f32 %v13744_v43, %v18412_v22 }
 0x27b   :  { %6947 = vst.msk [vmem:[#allocation3 + $0x28] sm:$0x3] %vm6942_vm12, %v18410_v2  ;;  %6949 = vst.msk [vmem:[#allocation3 + $0x38] sm:$0x3] %vm6942_vm12, %v18410_v2  ;;  %v3496_v31 = vsel %vm1183_vm2, %v18415_v3, %v3495_v6  ;;  %v18417_v24 = vrot.slane %v18416_v19, 2  ;;  %v17789_v6 = vrot.slane %v14046_v56, 1  ;;  %v14092_v19 = vmax.f32 %v13923_v27, %v10272_v34 }
 0x27c   :  { %6950 = vst.msk [vmem:[#allocation3 + $0x40] sm:$0xff] %vm6940_vm11, %v18410_v2  ;;  %6952 = vst.msk [vmem:[#allocation3 + $0x50] sm:$0xff] %vm6940_vm11, %v18410_v2 }
 0x27d   :  { %6951 = vst.msk [vmem:[#allocation3 + $0x48] sm:$0x3] %vm6942_vm12, %v18410_v2  ;;  %6953 = vst.msk [vmem:[#allocation3 + $0x58] sm:$0x3] %vm6942_vm12, %v18410_v2  ;;  %v3984_v50 = vsel %vm1672_vm3, %v18417_v24, %v3983_v54 }
 0x27e   :  { %6954 = vst.msk [vmem:[#allocation3 + $0x60] sm:$0xff] %vm6940_vm11, %v18410_v2  ;;  %6956 = vst.msk [vmem:[#allocation3 + $0x70] sm:$0xff] %vm6940_vm11, %v18410_v2 }
 0x27f   :  { %6955 = vst.msk [vmem:[#allocation3 + $0x68] sm:$0x3] %vm6942_vm12, %v18410_v2  ;;  %6957 = vst.msk [vmem:[#allocation3 + $0x78] sm:$0x3] %vm6942_vm12, %v18410_v2 }
 0x280   :  { %6958 = vst.msk [vmem:[#allocation3 + $0x80] sm:$0xff] %vm6940_vm11, %v18410_v2  ;;  %6960 = vst.msk [vmem:[#allocation3 + $0x90] sm:$0xff] %vm6940_vm11, %v18410_v2 }
 0x281   :  { %6959 = vst.msk [vmem:[#allocation3 + $0x88] sm:$0x3] %vm6942_vm12, %v18410_v2  ;;  %6961 = vst.msk [vmem:[#allocation3 + $0x98] sm:$0x3] %vm6942_vm12, %v18410_v2 }
 0x282   :  { %6962 = vst.msk [vmem:[#allocation3 + $0xa0] sm:$0xff] %vm6940_vm11, %v18410_v2  ;;  %6964 = vst.msk [vmem:[#allocation3 + $0xb0] sm:$0xff] %vm6940_vm11, %v18410_v2 }
 0x283   :  { %6963 = vst.msk [vmem:[#allocation3 + $0xa8] sm:$0x3] %vm6942_vm12, %v18410_v2  ;;  %6965 = vst.msk [vmem:[#allocation3 + $0xb8] sm:$0x3] %vm6942_vm12, %v18410_v2 }
 0x284   :  { %6966 = vst.msk [vmem:[#allocation3 + $0xc0] sm:$0xff] %vm6940_vm11, %v18410_v2  ;;  %6968 = vst.msk [vmem:[#allocation3 + $0xd0] sm:$0xff] %vm6940_vm11, %v18410_v2 }
 0x285   :  { %6967 = vst.msk [vmem:[#allocation3 + $0xc8] sm:$0x3] %vm6942_vm12, %v18410_v2  ;;  %6969 = vst.msk [vmem:[#allocation3 + $0xd8] sm:$0x3] %vm6942_vm12, %v18410_v2 }
 0x286   :  { %6970 = vst.msk [vmem:[#allocation3 + $0xe0] sm:$0xff] %vm6940_vm11, %v18410_v2  ;;  %6972 = vst.msk [vmem:[#allocation3 + $0xf0] sm:$0xff] %vm6940_vm11, %v18410_v2 }
 0x287   :  { %6971 = vst.msk [vmem:[#allocation3 + $0xe8] sm:$0x3] %vm6942_vm12, %v18410_v2  ;;  %6973 = vst.msk [vmem:[#allocation3 + $0xf8] sm:$0x3] %vm6942_vm12, %v18410_v2 }
 0x288   :  { %6974 = vst.msk [vmem:[#allocation3 + $0x100] sm:$0xff] %vm6940_vm11, %v18410_v2  ;;  %6976 = vst.msk [vmem:[#allocation3 + $0x110] sm:$0xff] %vm6940_vm11, %v18410_v2 }
 0x289   :  { %6975 = vst.msk [vmem:[#allocation3 + $0x108] sm:$0x3] %vm6942_vm12, %v18410_v2  ;;  %6977 = vst.msk [vmem:[#allocation3 + $0x118] sm:$0x3] %vm6942_vm12, %v18410_v2 }
 0x28a   :  { %6978 = vst.msk [vmem:[#allocation3 + $0x120] sm:$0xff] %vm6940_vm11, %v18410_v2  ;;  %6980 = vst.msk [vmem:[#allocation3 + $0x130] sm:$0xff] %vm6940_vm11, %v18410_v2 }
 0x28b   :  { %6979 = vst.msk [vmem:[#allocation3 + $0x128] sm:$0x3] %vm6942_vm12, %v18410_v2  ;;  %6981 = vst.msk [vmem:[#allocation3 + $0x138] sm:$0x3] %vm6942_vm12, %v18410_v2  ;;  %v2563_v2 = vadd.f32 %v2359_v1, %v13910_v52  ;;  %v3703_v52 = vadd.f32 %v3496_v31, %v13941_v0  ;;  %v3704_v1 = vadd.f32 %v3498_v45, %v3206_v51  ;;  %v18421_v0 = vrot.slane %v13929_v37, 2 }
 0x28c   :  { %7758 = vst.msk [vmem:[#allocation3 + $0x11] sm:$0xff] %vm6940_vm11, %v18411_v25  ;;  %7770 = vst.msk [vmem:[#allocation3 + $0xf1] sm:$0xff] %vm6940_vm11, %v18413_v13  ;;  %v14064_v25 = vmax.f32 %v13888_v62, %v10270_v14  ;;  %v3986_v13 = vsel %vm1672_vm3, %v3983_v54, %v3985_v39  ;;  %v18420_v62 = vrot.slane %v18419_v58, 2  ;;  %v18422_v51 = vmov %v18418_v35 }
 0x28d   :  { %v2849_v3 = vsel %vm1672_vm3, %v18422_v51, %v18421_v0  ;;  %v4191_v31 = vadd.f32 %v3984_v50, %v3703_v52  ;;  %v4192_v54 = vadd.f32 %v3986_v13, %v3704_v1  ;;  %v18423_v39 = vrot.slane %v13884_v28, 9  ;;  %v14104_v1 = vld [vmem:[#allocation3] sm:$0xff] }
 0x28e   :  { %v2847_v14 = vsel %vm1672_vm3, %v18420_v62, %v18418_v35  ;;  %v14094_v58 = vadd.f32 %v2849_v3, %v2564_v7  ;;  %v2004_v52 = vmul.f32 %v13755_v42, %v18412_v22  ;;  %18424 = vst [vmem:[#allocation10_spill] sm:$0xff] %v14104_v1  ;;  %v18426_v7 = vld [vmem:[#allocation55_spill] sm:$0xff]  ;;  %v18428_v13 = vld [vmem:[#allocation65_spill] sm:$0xff]  ;;  %7814 = vst.msk [vmem:[#allocation4] sm:$0xff] %vm6940_vm11, %v14104_v1 }
 0x28f   :  { %v14089_v45 = vmax.f32 %v13884_v28, %v18423_v39  ;;  %v3051_v24 = vadd.f32 %v2847_v14, %v2563_v2  ;;  %v4262_v35 = vadd.f32 %v13839_v63, %v4191_v31  ;;  %v4263_v37 = vadd.f32 %v13839_v63, %v4192_v54 }
 0x290   :  { %v18427_v34 = vrot.slane %v18426_v7, 1  ;;  %v14116_v62 = vadd.f32 %v18428_v13, %v13893_v49  ;;  %v14120_v14 = vmul.f32 %v13779_v57, %v18412_v22  ;;  %v14128_v54 = vadd.f32 %v2004_v52, %v13906_v16  ;;  %v18430_v52 = vld [vmem:[#allocation58_spill] sm:$0xff] }
 0x291   :  { %v4326_v0 = vmax.f32 %v4262_v35, 0.0  ;;  %v4327_v51 = vmax.f32 %v4263_v37, 0.0  ;;  %v14132_v49 = vmul.f32 %v13650_v61, %v18412_v22  ;;  %v14136_v39 = vmul.f32 %v13663_v11, %v18412_v22 }
 0x292   :  { %v1226_v2 = vsel %vm1183_vm2, %v18427_v34, %v17789_v6  ;;  %v3144_v35 = vmul.f32 %v13803_v60, %v18412_v22  ;;  %v14149_v50 = vmul.f32 %v13792_v10, %v18412_v22 }
 0x293   :  { %v14106_v28 = vld [vmem:[#allocation3 + $0x10] sm:$0xff]  ;;  %v7777_v27 = vld [vmem:[#allocation3 + $0x18] sm:$0x3]  ;;  %v4614_v37 = vcombine.high %v4326_v0, %v4326_v0  ;;  %v4631_v7 = vcombine.high %v4327_v51, %v4327_v51  ;;  %v4638_v34 = vrot.slane %v4327_v51, %v18343_v30  ;;  %v1424_v13 = vadd.f32 %v1226_v2, %v18430_v52 }
 0x294   :  { %18425 = vst [vmem:[#allocation13_spill] sm:$0xff] %v14106_v28  ;;  %v7978_v3 = vrot.slane %v14106_v28, 2  ;;  %v7979_v31 = vrot.slane %v7777_v27, 2  ;;  %7815 = vst.msk [vmem:[#allocation4 + $0x18] sm:$0xff] %vm6940_vm11, %v14106_v28  ;;  %v4621_v27 = vrot.slane %v4326_v0, %v18343_v30 }
 0x295   :  { %v4628_v38 = vrot.slane %v4614_v37, %v18343_v30  ;;  %v4645_v5 = vrot.slane %v4631_v7, %v18343_v30  ;;  %v4646_v0 = vcombine.high %v4638_v34, %v4638_v34  ;;  %v3988_v7 = vrot.slane %v14149_v50, 2 }
 0x296   :  { %v14143_v16 = vsel %vm1672_vm3, %v7978_v3, %v7979_v31  ;;  %v4629_v28 = vcombine.high %v4621_v27, %v4621_v27  ;;  %v10273_v51 = vrot.slane %v4621_v27, 9  ;;  %v10277_v3 = vrot.slane %v4638_v34, 9  ;;  %v18431_v31 = vld [vmem:[#allocation67_spill] sm:$0xff] }
 0x297   :  { %18429 = vst [vmem:[#allocation9_spill] sm:$0xff] %v14143_v16  ;;  %8201 = vrot.lane.b32.xlu0 %v14143_v16, %s10782_s0  ;;  %v3207_v52 = vadd.f32 %v18431_v31, %v3051_v24  ;;  %v4630_v6 = vcombine.high %v4628_v38, %v4628_v38  ;;  %v4647_v46 = vcombine.high %v4645_v5, %v4645_v5  ;;  %v10275_v1 = vrot.slane %v4628_v38, 9 }
 0x298   :  { %v10274_v22 = vrot.slane %v4629_v28, 9  ;;  %v10278_v47 = vrot.slane %v4646_v0, 9  ;;  %v6596_v37 = vmax.f32 %v4621_v27, %v10273_v51  ;;  %v6600_v21 = vmax.f32 %v4638_v34, %v10277_v3 }
 0x299   :  { %v10276_v41 = vrot.slane %v4630_v6, 9  ;;  %v6598_v48 = vmax.f32 %v4628_v38, %v10275_v1  ;;  %v18432_v16 = vrot.slane %v14120_v14, 1  ;;  %v10279_v24 = vrot.slane %v4645_v5, 9 }
 0x29a   :  { %v6597_v40 = vmax.f32 %v4629_v28, %v10274_v22  ;;  %v10280_v31 = vrot.slane %v4647_v46, 9  ;;  %v6828_v29 = vmax.f32 %v13904_v17, %v6596_v37  ;;  %v6601_v27 = vmax.f32 %v4646_v0, %v10278_v47  ;;  %v18436_v28 = vld [vmem:[#allocation56_spill] sm:$0xff] }
 0x29b   :  { %v3501_v2 = vsel %vm1183_vm2, %v18434_v9, %v18432_v16  ;;  %v6599_v4 = vmax.f32 %v4630_v6, %v10276_v41  ;;  %v6830_v51 = vmax.f32 %v13916_v33, %v6598_v48  ;;  %v6832_v38 = vmax.f32 %v14059_v8, %v6600_v21  ;;  %v18438_v16 = vld [vmem:[#allocation62_spill] sm:$0xff]  ;;  %v18441_v8 = vld [vmem:[#allocation59_spill] sm:$0xff] }
 0x29c   :  { %v3705_v18 = vadd.f32 %v3501_v2, %v3207_v52  ;;  %v6829_v34 = vmax.f32 %v13914_v44, %v6597_v40  ;;  %v18435_v1 = vrot.slane %v14074_v32, 2  ;;  %v18437_v53 = vrot.slane %v18436_v28, 2 }
 0x29d   :  { %v18439_v3 = vrot.slane %v18438_v16, 2  ;;  %v1017_v41 = vmul.f32 %v13628_v20, %v868_v15  ;;  %v6831_v47 = vmax.f32 %v13918_v26, %v6599_v4  ;;  %v7177_v48 = vrot.slane %v6828_v29, %v18123_v12 }
 0x29e   :  { %v1715_v9 = vsel %vm1672_vm3, %v18437_v53, %v18435_v1  ;;  %v7181_v21 = vrot.slane %v6829_v34, %v18123_v12  ;;  %v7185_v40 = vrot.slane %v6830_v51, %v18123_v12  ;;  %v6602_v44 = vmax.f32 %v4645_v5, %v10279_v24 }
 0x29f   :  { %v3989_v17 = vsel %vm1672_vm3, %v18439_v3, %v3988_v7  ;;  %v18440_v33 = vrot.slane %v14132_v49, 1  ;;  %v18442_v6 = vrot.slane %v18441_v8, 1  ;;  %v2851_v2 = vrot.slane %v14136_v39, 2 }
 0x2a0   :  { %v4193_v52 = vadd.f32 %v3989_v17, %v3705_v18  ;;  %v6603_v22 = vmax.f32 %v4647_v46, %v10280_v31  ;;  %v6833_v37 = vmax.f32 %v14064_v25, %v6601_v27  ;;  %v7189_v4 = vrot.slane %v6831_v47, %v18123_v12 }
 0x2a1   :  { %v2364_v0 = vsel %vm1183_vm2, %v18442_v6, %v18440_v33  ;;  %v7643_v29 = vsel %vm7622_vm4, %v7181_v21, %v7177_v48  ;;  %v7193_v26 = vrot.slane %v6832_v38, %v18123_v12  ;;  %v1506_v34 = vmul.f32 %v13637_v59, %v868_v15  ;;  %v14218_v33 = vpop.permute.xlu0 %872 }
 0x2a2   :  { %v7644_v5 = vsel %vm7624_vm5, %v7185_v40, %v7643_v29  ;;  %v4264_v24 = vadd.f32 %v13839_v63, %v4193_v52  ;;  %v14195_v51 = vadd.f32 %v1715_v9, %v1424_v13  ;;  %v2565_v39 = vadd.f32 %v2364_v0, %v14116_v62  ;;  %v18447_v0 = vld [vmem:[#allocation53_spill] sm:$0xff] }
 0x2a3   :  { %v3208_v46 = vadd.f32 %v3144_v35, %v14094_v58  ;;  %v1227_v18 = vrot.slane %v1017_v41, 1  ;;  %v6834_v25 = vmax.f32 %v14089_v45, %v6602_v44  ;;  %v2158_v27 = vmul.f32 %v13650_v61, %v868_v15  ;;  %v18443_v45 = vld [vmem:[#allocation60_spill] sm:$0xff] }
 0x2a4   :  { %v4328_v31 = vmax.f32 %v4264_v24, 0.0  ;;  %v3297_v38 = vmul.f32 %v13779_v57, %v868_v15  ;;  %v6835_v1 = vmax.f32 %v14092_v19, %v6603_v22  ;;  %v7197_v28 = vrot.slane %v6833_v37, %v18123_v12 }
 0x2a5   :  { %v7645_v53 = vsel %vm7626_vm6, %v7189_v4, %v7644_v5  ;;  %v3785_v13 = vmul.f32 %v13792_v10, %v868_v15  ;;  %v1716_v35 = vrot.slane %v1506_v34, 2  ;;  %v18444_v16 = vrot.slane %v18443_v45, 2 }
 0x2a6   :  { %v7646_v62 = vsel %vm7628_vm7, %v7193_v26, %v7645_v53  ;;  %v4648_v9 = vcombine.high %v4328_v31, %v4328_v31  ;;  %v4655_v58 = vrot.slane %v4328_v31, %v18343_v30  ;;  %v18445_v17 = vrot.slane %v14046_v56, 1 }
 0x2a7   :  { %v2852_v3 = vsel %vm1672_vm3, %v18444_v16, %v2851_v2  ;;  %v2646_v41 = vmul.f32 %v13663_v11, %v868_v15  ;;  %v3502_v47 = vrot.slane %v3297_v38, 1  ;;  %v7201_v48 = vrot.slane %v6834_v25, %v18123_v12 }
 0x2a8   :  { %v1228_v19 = vsel %vm1183_vm2, %v18445_v17, %v1227_v18  ;;  %v14216_v21 = vadd.f32 %v2852_v3, %v2565_v39  ;;  %v2365_v40 = vrot.slane %v2158_v27, 1  ;;  %v3990_v44 = vrot.slane %v3785_v13, 2 }
 0x2a9   :  { %v14221_v8 = vrot.slane %v6835_v1, %v18123_v12  ;;  %v7647_v6 = vsel %vm7630_vm8, %v7197_v28, %v7646_v62  ;;  %v4662_v56 = vrot.slane %v4648_v9, %v18343_v30  ;;  %v1019_v52 = vmul.f32 %v13628_v20, %v18447_v0 }
 0x2aa   :  { %v4663_v15 = vcombine.high %v4655_v58, %v4655_v58  ;;  %v1425_v22 = vadd.f32 %v1228_v19, %v14100_v23  ;;  %v18448_v37 = vrot.slane %v14074_v32, 2  ;;  %v18449_v29 = vrot.slane %v14120_v14, 1 }
 0x2ab   :  { %18446 = vst [vmem:[#allocation17_spill] sm:$0xff] %v14221_v8  ;;  %v2853_v5 = vrot.slane %v2646_v41, 2  ;;  %v1020_v34 = vmul.f32 %v13628_v20, %v14218_v33  ;;  %v1230_v39 = vrot.slane %v1019_v52, 1  ;;  %v14237_v18 = vsel %vm7632_vm9, %v7201_v48, %v7647_v6 }
 0x2ac   :  { %v1717_v4 = vsel %vm1672_vm3, %v18448_v37, %v1716_v35  ;;  %v3503_v26 = vsel %vm1183_vm2, %v18449_v29, %v3502_v47  ;;  %18450 = vst [vmem:[#allocation14_spill] sm:$0xff] %v14237_v18  ;;  %v10281_v25 = vrot.slane %v4655_v58, 9  ;;  %v18451_v23 = vrot.slane %v14132_v49, 1 }
 0x2ad   :  { %v3706_v24 = vadd.f32 %v3503_v26, %v3208_v46  ;;  %v3991_v14 = vsel %vm1672_vm3, %v3988_v7, %v3990_v44  ;;  %v4664_v31 = vcombine.high %v4662_v56, %v4662_v56  ;;  %v1232_v38 = vrot.slane %v1020_v34, 1  ;;  %v18452_v7 = vld [vmem:[#allocation63_spill] sm:$0xff]  ;;  %v18455_v34 = vld [vmem:[#allocation66_spill] sm:$0xff] }
 0x2ae   :  { %v2366_v32 = vsel %vm1183_vm2, %v18451_v23, %v2365_v40  ;;  %v1508_v46 = vmul.f32 %v13637_v59, %v18447_v0  ;;  %v10282_v1 = vrot.slane %v4663_v15, 9  ;;  %v1914_v28 = vadd.f32 %v1717_v4, %v1425_v22  ;;  %v18454_v40 = vld [vmem:[#allocation70_spill] sm:$0xff] }
 0x2af   :  { %v4194_v27 = vadd.f32 %v3991_v14, %v3706_v24  ;;  %v2566_v53 = vadd.f32 %v2366_v32, %v14128_v54  ;;  %v1509_v13 = vmul.f32 %v13637_v59, %v14218_v33  ;;  %v2854_v49 = vsel %vm1672_vm3, %v2851_v2, %v2853_v5  ;;  %v18457_v14 = vld [vmem:[#allocation71_spill] sm:$0xff] }
 0x2b0   :  { %v714_v50 = vmul.f32 %v13744_v43, %v18447_v0  ;;  %v18453_v9 = vrot.slane %v18452_v7, 1  ;;  %v10283_v45 = vrot.slane %v4662_v56, 9  ;;  %v14257_v16 = vmax.f32 %v4655_v58, %v10281_v25  ;;  %v18460_v7 = vld [vmem:[#allocation78_spill] sm:$0xff] }
 0x2b1   :  { %v4265_v62 = vadd.f32 %v13839_v63, %v4194_v27  ;;  %v1233_v3 = vsel %vm1183_vm2, %v1230_v39, %v1232_v38  ;;  %v2160_v54 = vmul.f32 %v13650_v61, %v18447_v0  ;;  %v10284_v17 = vrot.slane %v4664_v31, 9 }
 0x2b2   :  { %v1231_v35 = vsel %vm1183_vm2, %v18453_v9, %v1230_v39  ;;  %v1719_v2 = vrot.slane %v1508_v46, 2  ;;  %v2161_v41 = vmul.f32 %v13650_v61, %v14218_v33  ;;  %v14264_v47 = vmax.f32 %v4663_v15, %v10282_v1  ;;  %v18458_v1 = vld [vmem:[#allocation68_spill] sm:$0xff] }
 0x2b3   :  { %v4329_v19 = vmax.f32 %v4265_v62, 0.0  ;;  %v3054_v48 = vadd.f32 %v2854_v49, %v2566_v53  ;;  %v1426_v44 = vadd.f32 %v1231_v35, %v18454_v40  ;;  %v1721_v6 = vrot.slane %v1509_v13, 2  ;;  %v18461_v40 = vld [vmem:[#allocation69_spill] sm:$0xff] }
 0x2b4   :  { %v1427_v58 = vadd.f32 %v1233_v3, %v714_v50  ;;  %v2368_v22 = vrot.slane %v2160_v54, 1  ;;  %v2648_v37 = vmul.f32 %v13663_v11, %v18447_v0  ;;  %v14269_v4 = vmax.f32 %v4662_v56, %v10283_v45 }
 0x2b5   :  { %v4665_v52 = vcombine.high %v4329_v19, %v4329_v19  ;;  %v4672_v29 = vrot.slane %v4329_v19, %v18343_v30  ;;  %v2006_v26 = vmul.f32 %v13755_v42, %v18447_v0  ;;  %v2649_v15 = vmul.f32 %v13663_v11, %v14218_v33 }
 0x2b6   :  { %v14276_v5 = vmax.f32 %v4664_v31, %v10284_v17  ;;  %v18456_v39 = vrot.slane %v18455_v34, 2  ;;  %v2370_v23 = vrot.slane %v2161_v41, 1  ;;  %v1722_v56 = vsel %vm1672_vm3, %v1719_v2, %v1721_v6 }
 0x2b7   :  { %v4679_v24 = vrot.slane %v4665_v52, %v18343_v30  ;;  %v2069_v27 = vadd.f32 %v18457_v14, %v14195_v51  ;;  %v2070_v38 = vadd.f32 %v2006_v26, %v1914_v28  ;;  %v14287_v46 = vadd.f32 %v1722_v56, %v1427_v58  ;;  %v18465_v14 = vld [vmem:[#allocation73_spill] sm:$0xff] }
 0x2b8   :  { %v1720_v25 = vsel %vm1672_vm3, %v18456_v39, %v1719_v2  ;;  %v18459_v31 = vrot.slane %v18458_v1, 1  ;;  %v2856_v13 = vrot.slane %v2648_v37, 2  ;;  %v3146_v49 = vmul.f32 %v13803_v60, %v18447_v0 }
 0x2b9   :  { %v14283_v32 = vadd.f32 %v1720_v25, %v1426_v44  ;;  %v4680_v62 = vcombine.high %v4672_v29, %v4672_v29  ;;  %v2858_v50 = vrot.slane %v2649_v15, 2  ;;  %v3209_v9 = vadd.f32 %v18460_v7, %v14216_v21 }
 0x2ba   :  { %v2369_v53 = vsel %vm1183_vm2, %v18459_v31, %v2368_v22  ;;  %v3299_v35 = vmul.f32 %v13779_v57, %v18447_v0  ;;  %v4681_v51 = vcombine.high %v4679_v24, %v4679_v24  ;;  %v10285_v28 = vrot.slane %v4672_v29, 9 }
 0x2bb   :  { %v2371_v45 = vsel %vm1183_vm2, %v2368_v22, %v2370_v23  ;;  %v3300_v3 = vmul.f32 %v13779_v57, %v14218_v33  ;;  %v3210_v54 = vadd.f32 %v3146_v49, %v3054_v48  ;;  %v3787_v19 = vmul.f32 %v13792_v10, %v18447_v0  ;;  %v18463_v22 = vld [vmem:[#allocation72_spill] sm:$0xff] }
 0x2bc   :  { %v3505_v17 = vrot.slane %v3299_v35, 1  ;;  %v3788_v2 = vmul.f32 %v13792_v10, %v14218_v33  ;;  %v2567_v41 = vadd.f32 %v2369_v53, %v2069_v27  ;;  %v2568_v21 = vadd.f32 %v2371_v45, %v2070_v38 }
 0x2bd   :  { %v18462_v44 = vrot.slane %v18461_v40, 2  ;;  %v3507_v52 = vrot.slane %v3300_v3, 1  ;;  %v2859_v58 = vsel %vm1672_vm3, %v2856_v13, %v2858_v50  ;;  %v18464_v37 = vrot.slane %v18463_v22, 1 }
 0x2be   :  { %v3993_v26 = vrot.slane %v3787_v19, 2  ;;  %v3995_v15 = vrot.slane %v3788_v2, 2  ;;  %v10286_v34 = vrot.slane %v4680_v62, 9  ;;  %v10287_v0 = vrot.slane %v4679_v24, 9 }
 0x2bf   :  { %v2857_v6 = vsel %vm1672_vm3, %v18462_v44, %v2856_v13  ;;  %v3506_v48 = vsel %vm1183_vm2, %v18464_v37, %v3505_v17  ;;  %v3508_v39 = vsel %vm1183_vm2, %v3505_v17, %v3507_v52  ;;  %v10288_v25 = vrot.slane %v4681_v51, 9  ;;  %v18468_v37 = vld [vmem:[#allocation175_spill] sm:$0xff] }
 0x2c0   :  { %v3707_v33 = vadd.f32 %v3506_v48, %v3209_v9  ;;  %v14313_v23 = vmax.f32 %v4672_v29, %v10285_v28  ;;  %v3708_v56 = vadd.f32 %v3508_v39, %v3210_v54  ;;  %v18466_v27 = vrot.slane %v18465_v14, 2 }
 0x2c1   :  { %v14318_v1 = vadd.f32 %v2857_v6, %v2567_v41  ;;  %v3996_v31 = vsel %vm1672_vm3, %v3993_v26, %v3995_v15  ;;  %v14323_v13 = vmul.f32 %v13628_v20, %v13730_v36  ;;  %v14327_v50 = vmul.f32 %v13637_v59, %v13730_v36 }
 0x2c2   :  { %v3994_v38 = vsel %vm1672_vm3, %v18466_v27, %v3993_v26  ;;  %v4196_v49 = vadd.f32 %v3996_v31, %v3708_v56  ;;  %v14331_v29 = vmul.f32 %v13779_v57, %v13730_v36  ;;  %v14335_v7 = vmul.f32 %v13792_v10, %v13730_v36 }
 0x2c3   :  { %v4195_v53 = vadd.f32 %v3994_v38, %v3707_v33  ;;  %v14337_v9 = vmax.f32 %v4680_v62, %v10286_v34  ;;  %v14339_v35 = vmax.f32 %v4679_v24, %v10287_v0  ;;  %v14341_v28 = vadd.f32 %v2859_v58, %v2568_v21 }
 0x2c4   :  { %v14344_v3 = vmax.f32 %v4681_v51, %v10288_v25  ;;  %v4267_v59 = vadd.f32 %v13839_v63, %v4196_v49  ;;  %v14349_v54 = vmul.f32 %v13744_v43, %v13730_v36  ;;  %v3610_v17 = vrot.slane %v14331_v29, 1  ;;  %v14359_v51 = vpop.permute.xlu1 %977 }
 0x2c5   :  { %v4266_v45 = vadd.f32 %v13839_v63, %v4195_v53  ;;  %v1335_v62 = vrot.slane %v14323_v13, 1  ;;  %v2048_v24 = vmul.f32 %v13755_v42, %v13730_v36  ;;  %v14357_v2 = vmul.f32 %v13650_v61, %v13730_v36 }
 0x2c6   :  { %v4331_v41 = vmax.f32 %v4267_v59, 0.0  ;;  %v1824_v21 = vrot.slane %v14327_v50, 2  ;;  %v18467_v43 = vrot.slane %v13688_v55, 1  ;;  %v17803_v44 = vrot.slane %v14335_v7, 2 }
 0x2c7   :  { %v4330_v19 = vmax.f32 %v4266_v45, 0.0  ;;  %v14371_v61 = vmul.f32 %v13663_v11, %v13730_v36  ;;  %v3188_v52 = vmul.f32 %v13803_v60, %v13730_v36  ;;  %v1083_v55 = vmul.f32 %v13628_v20, %v14359_v51  ;;  %v18469_v36 = vld [vmem:[#allocation173_spill] sm:$0xff] }
 0x2c8   :  { %v3611_v40 = vsel %vm1183_vm2, %v18467_v43, %v3610_v17  ;;  %v4699_v58 = vcombine.high %v4331_v41, %v4331_v41  ;;  %v4706_v22 = vrot.slane %v4331_v41, %v18343_v30  ;;  %v2473_v0 = vrot.slane %v14357_v2, 1 }
 0x2c9   :  { %v4682_v6 = vcombine.high %v4330_v19, %v4330_v19  ;;  %v4689_v42 = vrot.slane %v4330_v19, %v18343_v30  ;;  %v3749_v48 = vadd.f32 %v3611_v40, %v18468_v37  ;;  %v18470_v25 = vrot.slane %v18469_v36, 2 }
 0x2ca   :  { %v4713_v11 = vrot.slane %v4699_v58, %v18343_v30  ;;  %v4714_v39 = vcombine.high %v4706_v22, %v4706_v22  ;;  %v10293_v33 = vrot.slane %v4706_v22, 9  ;;  %v2961_v53 = vrot.slane %v14371_v61, 2 }
 0x2cb   :  { %v4696_v26 = vrot.slane %v4682_v6, %v18343_v30  ;;  %v4697_v15 = vcombine.high %v4689_v42, %v4689_v42  ;;  %v10289_v34 = vrot.slane %v4689_v42, 9  ;;  %v4099_v56 = vsel %vm1672_vm3, %v18470_v25, %v17803_v44  ;;  %v18471_v6 = vld [vmem:[#allocation166_spill] sm:$0xff] }
 0x2cc   :  { %v4715_v31 = vcombine.high %v4713_v11, %v4713_v11  ;;  %v4237_v49 = vadd.f32 %v4099_v56, %v3749_v48  ;;  %v1337_v45 = vrot.slane %v1083_v55, 1  ;;  %v10294_v19 = vrot.slane %v4714_v39, 9  ;;  %v18474_v56 = vld [vmem:[#allocation157_spill] sm:$0xff] }
 0x2cd   :  { %v4698_v14 = vcombine.high %v4696_v26, %v4696_v26  ;;  %v10290_v27 = vrot.slane %v4697_v15, 9  ;;  %v10291_v38 = vrot.slane %v4696_v26, 9  ;;  %v6612_v20 = vmax.f32 %v4689_v42, %v10289_v34  ;;  %v14395_v42 = vld [vmem:[%s17602_s1 + $0x2] ss:$0 sm:$0xff] }
 0x2ce   :  { %v10295_v43 = vrot.slane %v4713_v11, 9  ;;  %v18472_v58 = vrot.slane %v18471_v6, 1  ;;  %v1572_v48 = vmul.f32 %v14395_v42, %v14359_v51  ;;  %v6616_v34 = vmax.f32 %v4706_v22, %v10293_v33 }
 0x2cf   :  { %v10292_v59 = vrot.slane %v4698_v14, 9  ;;  %v6613_v2 = vmax.f32 %v4697_v15, %v10290_v27  ;;  %v6614_v41 = vmax.f32 %v4696_v26, %v10291_v38  ;;  %v6836_v40 = vmax.f32 %v14257_v16, %v6612_v20  ;;  %v18473_v16 = vld [vmem:[#allocation168_spill] sm:$0xff]  ;;  %v18476_v20 = vld [vmem:[#allocation169_spill] sm:$0xff] }
 0x2d0   :  { %v2474_v37 = vsel %vm1183_vm2, %v18472_v58, %v2473_v0  ;;  %v10296_v36 = vrot.slane %v4715_v31, 9  ;;  %v2112_v25 = vadd.f32 %v2048_v24, %v18473_v16  ;;  %v18475_v27 = vrot.slane %v18474_v56, 2 }
 0x2d1   :  { %v6615_v55 = vmax.f32 %v4698_v14, %v10292_v59  ;;  %v6837_v15 = vmax.f32 %v14264_v47, %v6613_v2  ;;  %v6838_v26 = vmax.f32 %v14269_v4, %v6614_v41  ;;  %v3252_v6 = vadd.f32 %v3188_v52, %v18476_v20  ;;  %v18477_v14 = vld [vmem:[#allocation171_spill] sm:$0xff] }
 0x2d2   :  { %v2962_v38 = vsel %vm1672_vm3, %v18475_v27, %v2961_v53  ;;  %v6617_v58 = vmax.f32 %v4714_v39, %v10294_v19  ;;  %v2609_v22 = vadd.f32 %v2474_v37, %v18477_v14  ;;  %v4308_v47 = vadd.f32 %v13839_v63, %v4237_v49 }
 0x2d3   :  { %v7213_v44 = vrot.slane %v6837_v15, %v18123_v12  ;;  %v6839_v4 = vmax.f32 %v14276_v5, %v6615_v55  ;;  %v7209_v33 = vrot.slane %v6836_v40, %v18123_v12  ;;  %v1338_v24 = vsel %vm1183_vm2, %v1335_v62, %v1337_v45  ;;  %v14422_v5 = vld [vmem:[%s17602_s1 + $0x4] ss:$0 sm:$0xff] }
 0x2d4   :  { %v1826_v59 = vrot.slane %v1572_v48, 2  ;;  %v6618_v2 = vmax.f32 %v4713_v11, %v10295_v43  ;;  %v6840_v41 = vmax.f32 %v14313_v23, %v6616_v34  ;;  %v7217_v52 = vrot.slane %v6838_v26, %v18123_v12  ;;  %v14429_v11 = vld [vmem:[%s17602_s1 + $0x5] ss:$0 sm:$0xff] }
 0x2d5   :  { %v4372_v39 = vmax.f32 %v4308_v47, 0.0  ;;  %v6619_v19 = vmax.f32 %v4715_v31, %v10296_v36  ;;  %v7650_v37 = vsel %vm7622_vm4, %v7213_v44, %v7209_v33  ;;  %v2224_v49 = vmul.f32 %v14422_v5, %v14359_v51 }
 0x2d6   :  { %v2712_v23 = vmul.f32 %v14429_v11, %v14359_v51  ;;  %v6841_v31 = vmax.f32 %v14337_v9, %v6617_v58  ;;  %v3363_v43 = vmul.f32 %v13779_v57, %v14359_v51  ;;  %v7221_v40 = vrot.slane %v6839_v4, %v18123_v12 }
 0x2d7   :  { %v5396_v45 = vcombine.high %v4372_v39, %v4372_v39  ;;  %v5403_v44 = vrot.slane %v4372_v39, %v18343_v30  ;;  %v3097_v48 = vadd.f32 %v2962_v38, %v2609_v22  ;;  %v2475_v55 = vrot.slane %v2224_v49, 1  ;;  %v983_v49 = vpop.permute.xlu0 %982 }
 0x2d8   :  { %v3851_v34 = vmul.f32 %v13792_v10, %v14359_v51  ;;  %v6842_v15 = vmax.f32 %v14339_v35, %v6618_v2  ;;  %v7225_v26 = vrot.slane %v6840_v41, %v18123_v12  ;;  %v7651_v36 = vsel %vm7624_vm5, %v7217_v52, %v7650_v37  ;;  %v18479_v52 = vld [vmem:[#allocation178_spill] sm:$0xff] }
 0x2d9   :  { %v1469_v9 = vadd.f32 %v1338_v24, %v14349_v54  ;;  %v5410_v16 = vrot.slane %v5396_v45, %v18343_v30  ;;  %v2476_v56 = vsel %vm1183_vm2, %v2473_v0, %v2475_v55  ;;  %v2963_v27 = vrot.slane %v2712_v23, 2  ;;  %v18481_v45 = vld [vmem:[#allocation174_spill] sm:$0xff] }
 0x2da   :  { %v3612_v20 = vrot.slane %v3363_v43, 1  ;;  %v6843_v38 = vmax.f32 %v14344_v3, %v6619_v19  ;;  %v7229_v58 = vrot.slane %v6841_v31, %v18123_v12  ;;  %v5411_v14 = vcombine.high %v5403_v44, %v5403_v44 }
 0x2db   :  { %v1827_v35 = vsel %vm1672_vm3, %v1824_v21, %v1826_v59  ;;  %v7652_v51 = vsel %vm7626_vm6, %v7221_v40, %v7651_v36  ;;  %v2610_v22 = vadd.f32 %v2476_v56, %v2112_v25  ;;  %v4100_v47 = vrot.slane %v3851_v34, 2  ;;  %v18482_v56 = vld [vmem:[#allocation179_spill] sm:$0xff] }
 0x2dc   :  { %v3613_v54 = vsel %vm1183_vm2, %v3610_v17, %v3612_v20  ;;  %v14456_v0 = vrot.slane %v6842_v15, %v18123_v12  ;;  %v7653_v3 = vsel %vm7628_vm7, %v7225_v26, %v7652_v51  ;;  %v14459_v4 = vadd.f32 %v1827_v35, %v1469_v9  ;;  %v18484_v35 = vld [vmem:[#allocation177_spill] sm:$0xff] }
 0x2dd   :  { %v3750_v33 = vadd.f32 %v3613_v54, %v3252_v6  ;;  %v5412_v24 = vcombine.high %v5410_v16, %v5410_v16  ;;  %v10457_v2 = vrot.slane %v5403_v44, 9  ;;  %v2964_v59 = vsel %vm1672_vm3, %v2961_v53, %v2963_v27 }
 0x2de   :  { %v18478_v25 = vrot.slane %v14335_v7, 2  ;;  %v10458_v17 = vrot.slane %v5411_v14, 9  ;;  %v3365_v39 = vmul.f32 %v13779_v57, %v18479_v52  ;;  %v3853_v19 = vmul.f32 %v13792_v10, %v18479_v52 }
 0x2df   :  { %v14472_v6 = vrot.slane %v6843_v38, %v18123_v12  ;;  %v14475_v37 = vsel %vm7630_vm8, %v7229_v58, %v7653_v3  ;;  %v10459_v61 = vrot.slane %v5410_v16, 9  ;;  %v3098_v53 = vadd.f32 %v2964_v59, %v2610_v22 }
 0x2e0   :  { %v4101_v29 = vsel %vm1672_vm3, %v18478_v25, %v4100_v47  ;;  %v3615_v23 = vrot.slane %v3365_v39, 1  ;;  %v4103_v31 = vrot.slane %v3853_v19, 2  ;;  %v3253_v43 = vadd.f32 %v18481_v45, %v3097_v48  ;;  %v14493_v48 = vld [vmem:[#allocation3 + $0x8] sm:$0x3]  ;;  %v14521_v45 = vld [vmem:[%s17602_s1] ss:$0 sm:$0xff] }
 0x2e1   :  { %v4238_v41 = vadd.f32 %v4101_v29, %v3750_v33  ;;  %18480 = vst [vmem:[#allocation180_spill] sm:$0xff] %v14472_v6  ;;  %v10460_v40 = vrot.slane %v5412_v24, 9  ;;  %v14479_v55 = vmax.f32 %v5403_v44, %v10457_v2  ;;  %v14483_v34 = vmul.f32 %v14422_v5, %v18479_v52  ;;  %v18486_v47 = vld [vmem:[#allocation10_spill] sm:$0xff] }
 0x2e2   :  { %v3190_v15 = vmul.f32 %v13803_v60, %v18479_v52  ;;  %v14487_v26 = vmax.f32 %v5411_v14, %v10458_v17  ;;  %v3366_v9 = vmul.f32 %v13779_v57, %v983_v49  ;;  %v18483_v27 = vrot.slane %v18482_v56, 1 }
 0x2e3   :  { %v4309_v7 = vadd.f32 %v13839_v63, %v4238_v41  ;;  %v3854_v58 = vmul.f32 %v13792_v10, %v983_v49  ;;  %v18485_v51 = vrot.slane %v18484_v35, 2  ;;  %v7862_v57 = vrot.slane %v18486_v47, 1 }
 0x2e4   :  { %v3616_v20 = vsel %vm1183_vm2, %v18483_v27, %v3615_v23  ;;  %v3254_v44 = vadd.f32 %v3190_v15, %v3098_v53  ;;  %v3617_v54 = vrot.slane %v3366_v9, 1  ;;  %v14501_v3 = vmax.f32 %v5410_v16, %v10459_v61 }
 0x2e5   :  { %v4373_v36 = vmax.f32 %v4309_v7, 0.0  ;;  %v3751_v38 = vadd.f32 %v3616_v20, %v3253_v43  ;;  %v4104_v22 = vsel %vm1672_vm3, %v18485_v51, %v4103_v31  ;;  %v4105_v33 = vrot.slane %v3854_v58, 2  ;;  %v14528_v43 = vld [vmem:[%s17602_s1 + $0x1] ss:$0 sm:$0xff] }
 0x2e6   :  { %v7863_v59 = vrot.slane %v14493_v48, 1  ;;  %v3618_v17 = vsel %vm1183_vm2, %v3615_v23, %v3617_v54  ;;  %v14509_v41 = vmax.f32 %v5412_v24, %v10460_v40  ;;  %v14514_v53 = vmul.f32 %v14422_v5, %v983_v49  ;;  %v18487_v24 = vld [vmem:[#allocation170_spill] sm:$0xff]  ;;  %v18493_v54 = vld [vmem:[#allocation167_spill] sm:$0xff] }
 0x2e7   :  { %v5413_v60 = vcombine.high %v4373_v36, %v4373_v36  ;;  %v5420_v14 = vrot.slane %v4373_v36, %v18343_v30  ;;  %v4239_v2 = vadd.f32 %v4104_v22, %v3751_v38  ;;  %v3752_v39 = vadd.f32 %v3618_v17, %v3254_v44  ;;  %v18489_v36 = vld [vmem:[#allocation164_spill] sm:$0xff] }
 0x2e8   :  { %v7864_v16 = vsel %vm1183_vm2, %v7862_v57, %v7863_v59  ;;  %v4106_v7 = vsel %vm1672_vm3, %v4103_v31, %v4105_v33  ;;  %v755_v23 = vmul.f32 %v14521_v45, %v18487_v24  ;;  %v14531_v40 = vmul.f32 %v14528_v43, %v983_v49 }
 0x2e9   :  { %v14505_v25 = vrot.slane %v5413_v60, %v18343_v30  ;;  %v5428_v10 = vcombine.high %v5420_v14, %v5420_v14  ;;  %v4310_v19 = vadd.f32 %v13839_v63, %v4239_v2  ;;  %v10461_v61 = vrot.slane %v5420_v14, 9  ;;  %7910 = vrot.lane.b32.xlu0 %v7864_v16, %s10782_s0  ;;  %v18495_v16 = vld [vmem:[#allocation172_spill] sm:$0xff] }
 0x2ea   :  { %18488 = vst [vmem:[#allocation181_spill] sm:$0xff] %v14531_v40  ;;  %v4240_v15 = vadd.f32 %v4106_v7, %v3752_v39  ;;  %v18490_v9 = vrot.slane %v18489_v36, 1  ;;  %v14543_v44 = vmul.f32 %v14395_v42, %v983_v49  ;;  %v14546_v58 = vmul.f32 %v14429_v11, %v983_v49 }
 0x2eb   :  { %v4374_v31 = vmax.f32 %v4310_v19, 0.0  ;;  %v14540_v27 = vcombine.high %v14505_v25, %v14505_v25  ;;  %v10462_v20 = vrot.slane %v5428_v10, 9  ;;  %v10463_v22 = vrot.slane %v14505_v25, 9 }
 0x2ec   :  { %v1336_v56 = vsel %vm1183_vm2, %v18490_v9, %v1335_v62  ;;  %18491 = vst [vmem:[#allocation183_spill] sm:$0xff] %v14543_v44  ;;  %18492 = vst [vmem:[#allocation184_spill] sm:$0xff] %v14546_v58  ;;  %v4311_v35 = vadd.f32 %v13839_v63, %v4240_v15  ;;  %v6784_v62 = vmax.f32 %v5420_v14, %v10461_v61  ;;  %v2480_v60 = vrot.slane %v14514_v53, 1  ;;  %v14562_v14 = vld [vmem:[%s17602_s1 + $0x3] ss:$0 sm:$0xff] }
 0x2ed   :  { %v1468_v38 = vadd.f32 %v1336_v56, %v755_v23  ;;  %v5430_v51 = vcombine.high %v4374_v31, %v4374_v31  ;;  %v5437_v13 = vrot.slane %v4374_v31, %v18343_v30  ;;  %v18494_v57 = vrot.slane %v18493_v54, 2 }
 0x2ee   :  { %v4375_v2 = vmax.f32 %v4311_v35, 0.0  ;;  %v10464_v63 = vrot.slane %v14540_v27, 9  ;;  %v6785_v39 = vmax.f32 %v5428_v10, %v10462_v20  ;;  %v2049_v50 = vmul.f32 %v14562_v14, %v18495_v16 }
 0x2ef   :  { %v1825_v33 = vsel %vm1672_vm3, %v18494_v57, %v1824_v21  ;;  %v5444_v49 = vrot.slane %v5430_v51, %v18343_v30  ;;  %v5445_v59 = vcombine.high %v5437_v13, %v5437_v13  ;;  %v10465_v17 = vrot.slane %v5437_v13, 9 }
 0x2f0   :  { %v1957_v19 = vadd.f32 %v1825_v33, %v1468_v38  ;;  %v5447_v53 = vcombine.high %v4375_v2, %v4375_v2  ;;  %v5454_v21 = vrot.slane %v4375_v2, %v18343_v30  ;;  %v2225_v15 = vmul.f32 %v14422_v5, %v18495_v16 }
 0x2f1   :  { %v5446_v61 = vcombine.high %v5444_v49, %v5444_v49  ;;  %v10466_v7 = vrot.slane %v5445_v59, 9  ;;  %v10467_v24 = vrot.slane %v5444_v49, 9  ;;  %v6788_v23 = vmax.f32 %v5437_v13, %v10465_v17 }
 0x2f2   :  { %v2713_v10 = vmul.f32 %v14429_v11, %v18495_v16  ;;  %v5461_v31 = vrot.slane %v5447_v53, %v18343_v30  ;;  %v5462_v36 = vcombine.high %v5454_v21, %v5454_v21  ;;  %v10469_v56 = vrot.slane %v5454_v21, 9 }
 0x2f3   :  { %v10468_v9 = vrot.slane %v5446_v61, 9  ;;  %v6789_v20 = vmax.f32 %v5445_v59, %v10466_v7  ;;  %v6790_v38 = vmax.f32 %v5444_v49, %v10467_v24  ;;  %v6924_v35 = vmax.f32 %v14479_v55, %v6788_v23 }
 0x2f4   :  { %v14575_v51 = vmul.f32 %v14429_v11, %v18479_v52  ;;  %v5463_v13 = vcombine.high %v5461_v31, %v5461_v31  ;;  %v10470_v54 = vrot.slane %v5462_v36, 9  ;;  %v10471_v57 = vrot.slane %v5461_v31, 9 }
 0x2f5   :  { %v6791_v33 = vmax.f32 %v5446_v61, %v10468_v9  ;;  %v6792_v2 = vmax.f32 %v5454_v21, %v10469_v56  ;;  %v6925_v17 = vmax.f32 %v14487_v26, %v6789_v20  ;;  %v6926_v53 = vmax.f32 %v14501_v3, %v6790_v38 }
 0x2f6   :  { %18496 = vst [vmem:[#allocation185_spill] sm:$0xff] %v14575_v51  ;;  %v2113_v29 = vadd.f32 %v2049_v50, %v1957_v19  ;;  %v10472_v6 = vrot.slane %v5463_v13, 9  ;;  %v6793_v8 = vmax.f32 %v5462_v36, %v10470_v54  ;;  %v2477_v59 = vrot.slane %v2225_v15, 1 }
 0x2f7   :  { %v6927_v49 = vmax.f32 %v14509_v41, %v6791_v33  ;;  %v6928_v55 = vmax.f32 %v6784_v62, %v6792_v2  ;;  %v7561_v7 = vrot.slane %v6924_v35, %v18123_v12  ;;  %v7565_v24 = vrot.slane %v6925_v17, %v18123_v12  ;;  %v14624_v33 = vld [vmem:[%s17602_s1 + $0x6] ss:$0 sm:$0xff] }
 0x2f8   :  { %v7569_v23 = vrot.slane %v6926_v53, %v18123_v12  ;;  %v6786_v61 = vmax.f32 %v14505_v25, %v10463_v22  ;;  %v6794_v21 = vmax.f32 %v5461_v31, %v10471_v57  ;;  %v18497_v26 = vrot.slane %v14483_v34, 1  ;;  %v1976_v25 = vpop.permute.xlu1 %1975  ;;  %v14633_v53 = vld [vmem:[%s17602_s1 + $0x8] ss:$0 sm:$0xff] }
 0x2f9   :  { %v17806_v19 = vrot.slane %v14575_v51, 2  ;;  %v6929_v50 = vmax.f32 %v6785_v39, %v6793_v8  ;;  %v7573_v41 = vrot.slane %v6927_v49, %v18123_v12  ;;  %v7727_v62 = vsel %vm7622_vm4, %v7565_v24, %v7561_v7  ;;  %v18520_v39 = vld [vmem:[#allocation82_spill] sm:$0xff] }
 0x2fa   :  { %v2479_v3 = vsel %vm1183_vm2, %v2477_v59, %v18497_v26  ;;  %v6795_v36 = vmax.f32 %v5463_v13, %v10472_v6  ;;  %v7577_v9 = vrot.slane %v6928_v55, %v18123_v12  ;;  %v7728_v56 = vsel %vm7624_vm5, %v7569_v23, %v7727_v62  ;;  %v18505_v23 = vld [vmem:[#allocation16_spill] sm:$0xff] }
 0x2fb   :  { %v2611_v15 = vadd.f32 %v2479_v3, %v2113_v29  ;;  %v2965_v20 = vrot.slane %v2713_v10, 2  ;;  %v14595_v22 = vsel %vm7632_vm9, %v14456_v0, %v14475_v37  ;;  %v6787_v29 = vmax.f32 %v14540_v27, %v10464_v63  ;;  %v1981_v0 = vpop.permute.xlu0 %1980  ;;  %v14614_v27 = vld [vmem:[%s17602_s1 + $0x7] ss:$0 sm:$0xff] }
 0x2fc   :  { %18498 = vst [vmem:[#allocation186_spill] sm:$0xff] %v14595_v22  ;;  %v18499_v6 = vmov %v18497_v26  ;;  %v6930_v10 = vmax.f32 %v6786_v61, %v6794_v21  ;;  %v7581_v37 = vrot.slane %v6929_v50, %v18123_v12  ;;  %v7729_v13 = vsel %vm7626_vm6, %v7573_v41, %v7728_v56  ;;  %v18506_v61 = vld [vmem:[#allocation18_spill] sm:$0xff]  ;;  %v18507_v26 = vld [vmem:[#allocation64_spill] sm:$0xff] }
 0x2fd   :  { %v14604_v38 = vsel %vm1183_vm2, %v18499_v6, %v2480_v60  ;;  %v2967_v35 = vsel %vm1672_vm3, %v2965_v20, %v17806_v19  ;;  %v3367_v34 = vmul.f32 %v14614_v27, %v1976_v25  ;;  %v6931_v60 = vmax.f32 %v6787_v29, %v6795_v36 }
 0x2fe   :  { %v3099_v54 = vadd.f32 %v2967_v35, %v2611_v15  ;;  %v7730_v63 = vsel %vm7628_vm7, %v7577_v9, %v7729_v13  ;;  %v14619_v57 = vmul.f32 %v14422_v5, %v1976_v25  ;;  %v3191_v2 = vmul.f32 %v14624_v33, %v1976_v25 }
 0x2ff   :  { %v14628_v17 = vmul.f32 %v14562_v14, %v1976_v25  ;;  %v3855_v49 = vmul.f32 %v14633_v53, %v1976_v25  ;;  %v14637_v59 = vmul.f32 %v14614_v27, %v1981_v0  ;;  %v14640_v55 = vmul.f32 %v14633_v53, %v1981_v0 }
 0x300   :  { %18500 = vst [vmem:[#allocation152_spill] sm:$0xff] %v14619_v57  ;;  %v7585_v7 = vrot.slane %v6930_v10, %v18123_v12  ;;  %v14644_v24 = vmul.f32 %v14429_v11, %v1976_v25  ;;  %v7642_v21 = vsel %vm7634_vm10, %v18506_v61, %v18505_v23  ;;  %v14651_v3 = vmul.f32 %v14528_v43, %v18507_v26 }
 0x301   :  { %18501 = vst [vmem:[#allocation188_spill] sm:$0xff] %v14628_v17  ;;  %18502 = vst [vmem:[#allocation136_spill] sm:$0xff] %v14637_v59  ;;  %v7731_v50 = vsel %vm7630_vm8, %v7581_v37, %v7730_v63  ;;  %v3619_v41 = vrot.slane %v3367_v34, 1  ;;  %v17805_v62 = vrot.slane %v14637_v59, 1  ;;  %v17804_v15 = vrot.slane %v14640_v55, 2 }
 0x302   :  { %18503 = vst [vmem:[#allocation23_spill] sm:$0xff] %v14640_v55  ;;  %18504 = vst [vmem:[#allocation154_spill] sm:$0xff] %v14644_v24  ;;  %v14658_v36 = vrot.slane %v6931_v60, %v18123_v12  ;;  %v3255_v56 = vadd.f32 %v3191_v2, %v3099_v54  ;;  %v14662_v20 = vmul.f32 %v14422_v5, %v1981_v0  ;;  %v4107_v25 = vrot.slane %v3855_v49, 2  ;;  %v878_v49 = vpop.permute.xlu1 %877 }
 0x303   :  { %7759 = vst.msk [vmem:[#allocation3 + $0x21] sm:$0xff] %vm6940_vm11, %v7642_v21  ;;  %v3621_v29 = vsel %vm1183_vm2, %v3619_v41, %v17805_v62  ;;  %v1235_v6 = vrot.slane %v14651_v3, 1  ;;  %v14670_v10 = vmul.f32 %v14395_v42, %v18507_v26  ;;  %v14673_v35 = vsel %vm7632_vm9, %v7585_v7, %v7731_v50 }
 0x304   :  { %18508 = vst [vmem:[#allocation19_spill] sm:$0xff] %v14658_v36  ;;  %18509 = vst [vmem:[#allocation163_spill] sm:$0xff] %v14662_v20  ;;  %v14676_v37 = vmul.f32 %v14562_v14, %v1981_v0  ;;  %v3753_v13 = vadd.f32 %v3621_v29, %v3255_v56  ;;  %v2163_v54 = vmul.f32 %v14422_v5, %v18507_v26  ;;  %v18516_v56 = vld [vmem:[#allocation83_spill] sm:$0xff]  ;;  %v18521_v41 = vrot.slane %v18520_v39, 1 }
 0x305   :  { %18510 = vst [vmem:[#allocation202_spill] sm:$0xff] %v14673_v35  ;;  %v14681_v34 = vmul.f32 %v14429_v11, %v1981_v0  ;;  %v14684_v60 = vmul.f32 %v14624_v33, %v1981_v0  ;;  %v4109_v63 = vsel %vm1672_vm3, %v4107_v25, %v17804_v15  ;;  %v14691_v2 = vmul.f32 %v14429_v11, %v18507_v26  ;;  %v18514_v0 = vld [vmem:[#allocation75_spill] sm:$0xff]  ;;  %v18519_v15 = vld [vmem:[#allocation80_spill] sm:$0xff] }
 0x306   :  { %18511 = vst [vmem:[#allocation165_spill] sm:$0xff] %v14676_v37  ;;  %v4241_v23 = vadd.f32 %v4109_v63, %v3753_v13  ;;  %v716_v61 = vmul.f32 %v14521_v45, %v18507_v26  ;;  %v3302_v21 = vmul.f32 %v14614_v27, %v18507_v26  ;;  %v18515_v3 = vrot.slane %v18514_v0, 1 }
 0x307   :  { %18512 = vst [vmem:[#allocation6_spill] sm:$0xff] %v14681_v34  ;;  %18513 = vst [vmem:[#allocation12_spill] sm:$0xff] %v14684_v60  ;;  %v3211_v25 = vadd.f32 %v18516_v56, %v14318_v1  ;;  %v3790_v29 = vmul.f32 %v14633_v53, %v18507_v26  ;;  %v2008_v13 = vmul.f32 %v14562_v14, %v18507_v26  ;;  %v2373_v63 = vrot.slane %v2163_v54, 1  ;;  %v18518_v1 = vld [vmem:[#allocation81_spill] sm:$0xff] }
 0x308   :  { %v1236_v50 = vsel %vm1183_vm2, %v18515_v3, %v1235_v6  ;;  %v3510_v31 = vrot.slane %v3302_v21, 1  ;;  %v1023_v9 = vmul.f32 %v14528_v43, %v878_v49  ;;  %v2071_v0 = vadd.f32 %v18518_v1, %v14283_v32  ;;  %v14722_v54 = vld [vmem:[%s17603_s2] ss:$0 sm:$0xff] }
 0x309   :  { %v2861_v3 = vrot.slane %v14691_v2, 2  ;;  %v3998_v56 = vrot.slane %v3790_v29, 2  ;;  %v2164_v7 = vmul.f32 %v14422_v5, %v878_v49  ;;  %v4312_v21 = vadd.f32 %v14722_v54, %v4241_v23  ;;  %v18523_v29 = vld [vmem:[#allocation76_spill] sm:$0xff]  ;;  %v18525_v23 = vld [vmem:[#allocation77_spill] sm:$0xff] }
 0x30a   :  { %v14706_v8 = vld [vmem:[#allocation3 + $0x20] sm:$0xff]  ;;  %v1428_v62 = vadd.f32 %v1236_v50, %v18519_v15  ;;  %v2072_v19 = vadd.f32 %v2008_v13, %v14287_v46  ;;  %v3511_v32 = vsel %vm1183_vm2, %v18521_v41, %v3510_v31  ;;  %v18522_v2 = vrot.slane %v14670_v10, 2  ;;  %v18527_v46 = vld [vmem:[#allocation84_spill] sm:$0xff]  ;;  %v14744_v44 = vld [vmem:[#allocation3 + $0x28] sm:$0x3] }
 0x30b   :  { %18517 = vst [vmem:[#allocation190_spill] sm:$0xff] %v14706_v8  ;;  %8267 = vrot.lane.b32.xlu0 %v14706_v8, %s10783_s14  ;;  %7816 = vst.msk [vmem:[#allocation4 + $0x30] sm:$0xff] %vm6940_vm11, %v14706_v8  ;;  %v18524_v1 = vrot.slane %v18523_v29, 2  ;;  %v3148_v35 = vmul.f32 %v14624_v33, %v18507_v26  ;;  %v3709_v22 = vadd.f32 %v3511_v32, %v3211_v25  ;;  %v1237_v18 = vrot.slane %v1023_v9, 1 }
 0x30c   :  { %v18526_v37 = vrot.slane %v18525_v23, 1  ;;  %v18528_v50 = vrot.slane %v18527_v46, 2  ;;  %v1512_v41 = vmul.f32 %v14395_v42, %v878_v49  ;;  %v2375_v13 = vrot.slane %v2164_v7, 1 }
 0x30d   :  { %v1725_v36 = vsel %vm1672_vm3, %v18524_v1, %v18522_v2  ;;  %v18529_v2 = vld [vmem:[#allocation79_spill] sm:$0xff]  ;;  %v3212_v9 = vadd.f32 %v3148_v35, %v14341_v28  ;;  %v4376_v32 = vmax.f32 %v4312_v21, 0.0  ;;  %v3303_v23 = vmul.f32 %v14614_v27, %v878_v49 }
 0x30e   :  { %v2374_v15 = vsel %vm1183_vm2, %v18526_v37, %v2373_v63  ;;  %v3999_v39 = vsel %vm1672_vm3, %v18528_v50, %v3998_v56  ;;  %v18530_v1 = vrot.slane %v18529_v2, 2  ;;  %v2652_v37 = vmul.f32 %v14429_v11, %v878_v49  ;;  %v14753_v50 = vpop.permute.xlu0 %882 }
 0x30f   :  { %v2569_v29 = vadd.f32 %v2374_v15, %v2071_v0  ;;  %v4197_v25 = vadd.f32 %v3999_v39, %v3709_v22  ;;  %v3791_v46 = vmul.f32 %v14633_v53, %v878_v49  ;;  %v1238_v0 = vsel %vm1183_vm2, %v1235_v6, %v1237_v18  ;;  %v18532_v49 = vld [vmem:[#allocation74_spill] sm:$0xff] }
 0x310   :  { %v2862_v26 = vsel %vm1672_vm3, %v18530_v1, %v2861_v3  ;;  %v7981_v15 = vrot.slane %v14706_v8, 2  ;;  %v7982_v2 = vrot.slane %v14744_v44, 2  ;;  %v1726_v1 = vrot.slane %v1512_v41, 2 }
 0x311   :  { %v4268_v7 = vadd.f32 %v14722_v54, %v4197_v25  ;;  %v2376_v28 = vsel %vm1183_vm2, %v2373_v63, %v2375_v13  ;;  %v3512_v22 = vrot.slane %v3303_v23, 1  ;;  %v4000_v35 = vrot.slane %v3791_v46, 2 }
 0x312   :  { %v14761_v39 = vsel %vm1672_vm3, %v7981_v15, %v7982_v2  ;;  %v1025_v40 = vmul.f32 %v14528_v43, %v18532_v49  ;;  %v1026_v25 = vmul.f32 %v14528_v43, %v14753_v50  ;;  %v5464_v18 = vcombine.high %v4376_v32, %v4376_v32 }
 0x313   :  { %v4332_v21 = vmax.f32 %v4268_v7, 0.0  ;;  %18531 = vst [vmem:[#allocation20_spill] sm:$0xff] %v14761_v39  ;;  %v1429_v6 = vadd.f32 %v1238_v0, %v716_v61  ;;  %v2863_v17 = vrot.slane %v2652_v37, 2  ;;  %v3513_v57 = vsel %vm1183_vm2, %v3510_v31, %v3512_v22  ;;  %8203 = vrot.lane.b32.xlu1 %v14761_v39, %s10782_s0  ;;  %8425 = vst.msk [vmem:[#allocation4 + $0x10] sm:$0xff] %vm6940_vm11, %v14761_v39 }
 0x314   :  { %v2570_v13 = vadd.f32 %v2376_v28, %v2072_v19  ;;  %v3710_v23 = vadd.f32 %v3513_v57, %v3212_v9  ;;  %v4001_v46 = vsel %vm1672_vm3, %v3998_v56, %v4000_v35  ;;  %v1240_v7 = vrot.slane %v1025_v40, 1 }
 0x315   :  { %v4716_v63 = vcombine.high %v4332_v21, %v4332_v21  ;;  %v4723_v41 = vrot.slane %v4332_v21, %v18343_v30  ;;  %v1242_v15 = vrot.slane %v1026_v25, 1  ;;  %v1514_v61 = vmul.f32 %v14395_v42, %v18532_v49 }
 0x316   :  { %v1917_v37 = vadd.f32 %v1725_v36, %v1428_v62  ;;  %v3057_v31 = vadd.f32 %v2862_v26, %v2569_v29  ;;  %v4198_v0 = vadd.f32 %v4001_v46, %v3710_v23  ;;  %v1515_v2 = vmul.f32 %v14395_v42, %v14753_v50  ;;  %v18536_v26 = vld [vmem:[#allocation85_spill] sm:$0xff]  ;;  %v18538_v23 = vld [vmem:[#allocation91_spill] sm:$0xff] }
 0x317   :  { %v4730_v22 = vrot.slane %v4716_v63, %v18343_v30  ;;  %v4731_v39 = vcombine.high %v4723_v41, %v4723_v41  ;;  %v18533_v21 = vrot.slane %v14670_v10, 2  ;;  %v2864_v57 = vsel %vm1672_vm3, %v2861_v3, %v2863_v17 }
 0x318   :  { %v14784_v40 = vrot.slane %v4376_v32, %v18343_v30  ;;  %v14787_v56 = vrot.slane %v5464_v18, %v18343_v30  ;;  %v3058_v36 = vadd.f32 %v2864_v57, %v2570_v13  ;;  %v4269_v29 = vadd.f32 %v14722_v54, %v4198_v0 }
 0x319   :  { %v1727_v19 = vsel %vm1672_vm3, %v18533_v21, %v1726_v1  ;;  %v18537_v9 = vrot.slane %v18536_v26, 1  ;;  %v1243_v10 = vsel %vm1183_vm2, %v1240_v7, %v1242_v15  ;;  %v1729_v35 = vrot.slane %v1514_v61, 2  ;;  %v18539_v61 = vld [vmem:[#allocation87_spill] sm:$0xff] }
 0x31a   :  { %18534 = vst [vmem:[#allocation192_spill] sm:$0xff] %v14784_v40  ;;  %18535 = vst [vmem:[#allocation26_spill] sm:$0xff] %v14787_v56  ;;  %v1918_v62 = vadd.f32 %v1727_v19, %v1429_v6  ;;  %v10297_v1 = vrot.slane %v4723_v41, 9  ;;  %v718_v17 = vmul.f32 %v14521_v45, %v18532_v49  ;;  %v1731_v3 = vrot.slane %v1515_v2, 2 }
 0x31b   :  { %v1241_v28 = vsel %vm1183_vm2, %v18537_v9, %v1240_v7  ;;  %v2010_v32 = vmul.f32 %v14562_v14, %v18532_v49  ;;  %v4732_v25 = vcombine.high %v4730_v22, %v4730_v22  ;;  %v10298_v18 = vrot.slane %v4731_v39, 9 }
 0x31c   :  { %v4333_v6 = vmax.f32 %v4269_v29, 0.0  ;;  %v2166_v63 = vmul.f32 %v14422_v5, %v18532_v49  ;;  %v10299_v13 = vrot.slane %v4730_v22, 9  ;;  %v1430_v46 = vadd.f32 %v1241_v28, %v18538_v23  ;;  %v14810_v29 = vld [vmem:[#allocation3 + $0xf0] sm:$0xff] }
 0x31d   :  { %v1431_v0 = vadd.f32 %v1243_v10, %v718_v17  ;;  %v2167_v7 = vmul.f32 %v14422_v5, %v14753_v50  ;;  %v18540_v21 = vrot.slane %v18539_v61, 2  ;;  %v2654_v19 = vmul.f32 %v14429_v11, %v18532_v49  ;;  %18541 = vst [vmem:[#allocation201_spill] sm:$0xff] %v14810_v29  ;;  %7827 = vst.msk [vmem:[#allocation4 + $0x138] sm:$0xff] %vm6940_vm11, %v14810_v29  ;;  %v18542_v61 = vld [vmem:[#allocation94_spill] sm:$0xff]  ;;  %v18543_v29 = vld [vmem:[#allocation88_spill] sm:$0xff] }
 0x31e   :  { %v4733_v15 = vcombine.high %v4333_v6, %v4333_v6  ;;  %v2655_v57 = vmul.f32 %v14429_v11, %v14753_v50  ;;  %v14812_v26 = vmax.f32 %v4723_v41, %v10297_v1  ;;  %v4740_v9 = vrot.slane %v4333_v6, %v18343_v30 }
 0x31f   :  { %v1730_v2 = vsel %vm1672_vm3, %v18540_v21, %v1729_v35  ;;  %v1732_v28 = vsel %vm1672_vm3, %v1729_v35, %v1731_v3  ;;  %v2378_v10 = vrot.slane %v2166_v63, 1  ;;  %v10300_v17 = vrot.slane %v4732_v25, 9 }
 0x320   :  { %v14818_v23 = vmax.f32 %v4731_v39, %v10298_v18  ;;  %v2073_v21 = vadd.f32 %v18542_v61, %v1917_v37  ;;  %v2380_v56 = vrot.slane %v2167_v7, 1  ;;  %v14821_v40 = vmax.f32 %v4730_v22, %v10299_v13  ;;  %v18545_v37 = vld [vmem:[#allocation97_spill] sm:$0xff] }
 0x321   :  { %v1919_v20 = vadd.f32 %v1730_v2, %v1430_v46  ;;  %v14823_v24 = vadd.f32 %v1732_v28, %v1431_v0  ;;  %v2074_v41 = vadd.f32 %v2010_v32, %v1918_v62  ;;  %v4747_v1 = vrot.slane %v4733_v15, %v18343_v30 }
 0x322   :  { %v2866_v6 = vrot.slane %v2654_v19, 2  ;;  %v2868_v35 = vrot.slane %v2655_v57, 2  ;;  %v3150_v3 = vmul.f32 %v14624_v33, %v18532_v49  ;;  %v4748_v63 = vcombine.high %v4740_v9, %v4740_v9 }
 0x323   :  { %v18544_v39 = vrot.slane %v18543_v29, 1  ;;  %v3213_v7 = vadd.f32 %v18545_v37, %v3057_v31  ;;  %v3305_v22 = vmul.f32 %v14614_v27, %v18532_v49  ;;  %v10301_v13 = vrot.slane %v4740_v9, 9  ;;  %v18548_v37 = vld [vmem:[#allocation86_spill] sm:$0xff] }
 0x324   :  { %v2381_v62 = vsel %vm1183_vm2, %v2378_v10, %v2380_v56  ;;  %v3306_v46 = vmul.f32 %v14614_v27, %v14753_v50  ;;  %v3214_v0 = vadd.f32 %v3150_v3, %v3058_v36  ;;  %v3793_v2 = vmul.f32 %v14633_v53, %v18532_v49  ;;  %v18546_v56 = vld [vmem:[#allocation90_spill] sm:$0xff] }
 0x325   :  { %v2379_v18 = vsel %vm1183_vm2, %v18544_v39, %v2378_v10  ;;  %v3515_v15 = vrot.slane %v3305_v22, 1  ;;  %v3794_v19 = vmul.f32 %v14633_v53, %v14753_v50  ;;  %v4749_v57 = vcombine.high %v4747_v1, %v4747_v1 }
 0x326   :  { %v2571_v32 = vadd.f32 %v2379_v18, %v2073_v21  ;;  %v3517_v31 = vrot.slane %v3306_v46, 1  ;;  %v7975_v29 = vrot.slane %v18486_v47, 2  ;;  %v7976_v28 = vrot.slane %v14493_v48, 2  ;;  %v18549_v48 = vld [vmem:[#allocation92_spill] sm:$0xff] }
 0x327   :  { %v10302_v61 = vrot.slane %v4748_v63, 9  ;;  %v18547_v10 = vrot.slane %v18546_v56, 1  ;;  %v4003_v39 = vrot.slane %v3793_v2, 2  ;;  %v4005_v36 = vrot.slane %v3794_v19, 2 }
 0x328   :  { %v3518_v3 = vsel %vm1183_vm2, %v3515_v15, %v3517_v31  ;;  %v7977_v49 = vsel %vm1672_vm3, %v7975_v29, %v7976_v28  ;;  %v14850_v50 = vmul.f32 %v14528_v43, %v18548_v37  ;;  %v10303_v22 = vrot.slane %v4747_v1, 9  ;;  %v18551_v31 = vld [vmem:[#allocation89_spill] sm:$0xff] }
 0x329   :  { %v3516_v21 = vsel %vm1183_vm2, %v18547_v10, %v3515_v15  ;;  %v2572_v47 = vadd.f32 %v2381_v62, %v2074_v41  ;;  %v3712_v46 = vadd.f32 %v3518_v3, %v3214_v0  ;;  %v18550_v34 = vrot.slane %v18549_v48, 2  ;;  %8023 = vrot.lane.b32.xlu0 %v7977_v49, %s10783_s14 }
 0x32a   :  { %v3711_v18 = vadd.f32 %v3516_v21, %v3213_v7  ;;  %v14856_v2 = vmax.f32 %v4732_v25, %v10300_v17  ;;  %v10304_v19 = vrot.slane %v4749_v57, 9  ;;  %v4006_v7 = vsel %vm1672_vm3, %v4003_v39, %v4005_v36 }
 0x32b   :  { %v4004_v56 = vsel %vm1672_vm3, %v18550_v34, %v4003_v39  ;;  %v18552_v29 = vrot.slane %v18551_v31, 2  ;;  %v2869_v10 = vsel %vm1672_vm3, %v2866_v6, %v2868_v35  ;;  %v4200_v41 = vadd.f32 %v4006_v7, %v3712_v46 }
 0x32c   :  { %v4199_v15 = vadd.f32 %v4004_v56, %v3711_v18  ;;  %v14865_v62 = vmul.f32 %v14395_v42, %v18548_v37  ;;  %v14867_v34 = vmax.f32 %v4740_v9, %v10301_v13  ;;  %v17817_v17 = vrot.slane %v14850_v50, 1 }
 0x32d   :  { %v2867_v28 = vsel %vm1672_vm3, %v18552_v29, %v2866_v6  ;;  %v14871_v21 = vmax.f32 %v4748_v63, %v10302_v61  ;;  %v14873_v39 = vmax.f32 %v4747_v1, %v10303_v22  ;;  %v3060_v36 = vadd.f32 %v2869_v10, %v2572_v47  ;;  %v18553_v63 = vld [vmem:[#allocation101_spill] sm:$0xff] }
 0x32e   :  { %v3059_v0 = vadd.f32 %v2867_v28, %v2571_v32  ;;  %v4270_v25 = vadd.f32 %v14722_v54, %v4199_v15  ;;  %v4271_v3 = vadd.f32 %v14722_v54, %v4200_v41  ;;  %v14876_v6 = vmax.f32 %v4749_v57, %v10304_v19  ;;  %v18554_v22 = vld [vmem:[#allocation93_spill] sm:$0xff] }
 0x32f   :  { %v14880_v18 = vmul.f32 %v14521_v45, %v18548_v37  ;;  %v2012_v9 = vmul.f32 %v14562_v14, %v18548_v37  ;;  %v14886_v61 = vadd.f32 %v18553_v63, %v1919_v20  ;;  %v14890_v1 = vmul.f32 %v14422_v5, %v18548_v37 }
 0x330   :  { %v4334_v35 = vmax.f32 %v4270_v25, 0.0  ;;  %v4335_v13 = vmax.f32 %v4271_v3, 0.0  ;;  %v18555_v47 = vrot.slane %v18554_v22, 1  ;;  %v14900_v48 = vmul.f32 %v14429_v11, %v18548_v37  ;;  %v18556_v3 = vld [vmem:[#allocation104_spill] sm:$0xff] }
 0x331   :  { %v14904_v19 = vadd.f32 %v2012_v9, %v14823_v24  ;;  %v14908_v7 = vmul.f32 %v14614_v27, %v18548_v37  ;;  %v3152_v28 = vmul.f32 %v14624_v33, %v18548_v37  ;;  %v2383_v58 = vrot.slane %v14890_v1, 1 }
 0x332   :  { %v4750_v57 = vcombine.high %v4334_v35, %v4334_v35  ;;  %v4757_v49 = vrot.slane %v4334_v35, %v18343_v30  ;;  %v1246_v46 = vsel %vm1183_vm2, %v18555_v47, %v17817_v17  ;;  %v4767_v56 = vcombine.high %v4335_v13, %v4335_v13 }
 0x333   :  { %v4774_v20 = vrot.slane %v4335_v13, %v18343_v30  ;;  %v3215_v35 = vadd.f32 %v18556_v3, %v3059_v0  ;;  %v14921_v0 = vmul.f32 %v14633_v53, %v18548_v37 }
 0x334   :  { %v4764_v15 = vrot.slane %v4750_v57, %v18343_v30  ;;  %v4765_v31 = vcombine.high %v4757_v49, %v4757_v49  ;;  %v10305_v29 = vrot.slane %v4757_v49, 9  ;;  %v4781_v10 = vrot.slane %v4767_v56, %v18343_v30  ;;  %v18557_v56 = vld [vmem:[#allocation98_spill] sm:$0xff] }
 0x335   :  { %v4782_v41 = vcombine.high %v4774_v20, %v4774_v20  ;;  %v10309_v25 = vrot.slane %v4774_v20, 9  ;;  %v3520_v57 = vrot.slane %v14908_v7, 1  ;;  %v1432_v51 = vadd.f32 %v1246_v46, %v18557_v56  ;;  %v18558_v46 = vld [vmem:[#allocation102_spill] sm:$0xff]  ;;  %v18572_v7 = vld [vmem:[#allocation96_spill] sm:$0xff] }
 0x336   :  { %v4766_v13 = vcombine.high %v4764_v15, %v4764_v15  ;;  %v10306_v24 = vrot.slane %v4765_v31, 9  ;;  %v10307_v9 = vrot.slane %v4764_v15, 9  ;;  %v6628_v63 = vmax.f32 %v4757_v49, %v10305_v29 }
 0x337   :  { %v4783_v22 = vcombine.high %v4781_v10, %v4781_v10  ;;  %v10310_v47 = vrot.slane %v4782_v41, 9  ;;  %v6632_v17 = vmax.f32 %v4774_v20, %v10309_v25  ;;  %v10311_v60 = vrot.slane %v4781_v10, 9 }
 0x338   :  { %v10308_v32 = vrot.slane %v4766_v13, 9  ;;  %v6629_v16 = vmax.f32 %v4765_v31, %v10306_v24  ;;  %v6630_v55 = vmax.f32 %v4764_v15, %v10307_v9  ;;  %v6844_v59 = vmax.f32 %v14812_v26, %v6628_v63  ;;  %v888_v9 = vpop.permute.xlu1 %887 }
 0x339   :  { %v10312_v49 = vrot.slane %v4783_v22, 9  ;;  %v6633_v3 = vmax.f32 %v4782_v41, %v10310_v47  ;;  %v6848_v15 = vmax.f32 %v14867_v34, %v6632_v17  ;;  %v18559_v31 = vrot.slane %v18558_v46, 1 }
 0x33a   :  { %v6631_v29 = vmax.f32 %v4766_v13, %v10308_v32  ;;  %v6845_v20 = vmax.f32 %v14818_v23, %v6629_v16  ;;  %v6846_v25 = vmax.f32 %v14821_v40, %v6630_v55  ;;  %v7241_v26 = vrot.slane %v6844_v59, %v18123_v12  ;;  %v18561_v40 = vld [vmem:[#allocation95_spill] sm:$0xff] }
 0x33b   :  { %v3521_v24 = vsel %vm1183_vm2, %v18559_v31, %v3520_v57  ;;  %v18560_v55 = vrot.slane %v14865_v62, 2  ;;  %v18562_v34 = vrot.slane %v18561_v40, 2  ;;  %v2871_v17 = vrot.slane %v14900_v48, 2 }
 0x33c   :  { %v6847_v37 = vmax.f32 %v14856_v2, %v6631_v29  ;;  %v7245_v32 = vrot.slane %v6845_v20, %v18123_v12  ;;  %v7249_v16 = vrot.slane %v6846_v25, %v18123_v12  ;;  %v3713_v23 = vadd.f32 %v3521_v24, %v3215_v35  ;;  %v18563_v20 = vld [vmem:[#allocation105_spill] sm:$0xff] }
 0x33d   :  { %v1735_v59 = vsel %vm1672_vm3, %v18562_v34, %v18560_v55  ;;  %v3216_v41 = vadd.f32 %v3152_v28, %v3060_v36  ;;  %v4008_v13 = vrot.slane %v14921_v0, 2  ;;  %v6634_v63 = vmax.f32 %v4781_v10, %v10311_v60  ;;  %v18565_v60 = vld [vmem:[#allocation99_spill] sm:$0xff] }
 0x33e   :  { %v6635_v47 = vmax.f32 %v4783_v22, %v10312_v49  ;;  %v7657_v2 = vsel %vm7622_vm4, %v7245_v32, %v7241_v26  ;;  %v1029_v56 = vmul.f32 %v14528_v43, %v888_v9  ;;  %v6849_v29 = vmax.f32 %v14871_v21, %v6633_v3 }
 0x33f   :  { %v7253_v35 = vrot.slane %v6847_v37, %v18123_v12  ;;  %v18564_v25 = vrot.slane %v18563_v20, 2  ;;  %v1518_v31 = vmul.f32 %v14395_v42, %v888_v9  ;;  %v7257_v36 = vrot.slane %v6848_v15, %v18123_v12  ;;  %v18567_v15 = vld [vmem:[#allocation100_spill] sm:$0xff] }
 0x340   :  { %v7658_v28 = vsel %vm7624_vm5, %v7249_v16, %v7657_v2  ;;  %v18566_v10 = vrot.slane %v18565_v60, 1  ;;  %v14957_v21 = vadd.f32 %v1735_v59, %v1432_v51  ;;  %v2170_v3 = vmul.f32 %v14422_v5, %v888_v9  ;;  %v10755_v60 = vld [vmem:[#allocation3 + $0x18] sm:$0x3] }
 0x341   :  { %v4009_v46 = vsel %vm1672_vm3, %v18564_v25, %v4008_v13  ;;  %v3309_v26 = vmul.f32 %v14614_v27, %v888_v9  ;;  %v6850_v24 = vmax.f32 %v14873_v39, %v6634_v63  ;;  %v18568_v37 = vrot.slane %v18567_v15, 2  ;;  %v18569_v25 = vld [vmem:[#allocation13_spill] sm:$0xff] }
 0x342   :  { %v2384_v22 = vsel %vm1183_vm2, %v18566_v10, %v2383_v58  ;;  %v4201_v0 = vadd.f32 %v4009_v46, %v3713_v23  ;;  %v1247_v55 = vrot.slane %v1029_v56, 1  ;;  %v6851_v51 = vmax.f32 %v14876_v6, %v6635_v47 }
 0x343   :  { %v2573_v49 = vadd.f32 %v2384_v22, %v14886_v61  ;;  %v2872_v32 = vsel %vm1672_vm3, %v18568_v37, %v2871_v17  ;;  %v7261_v23 = vrot.slane %v6849_v29, %v18123_v12  ;;  %v7659_v61 = vsel %vm7626_vm6, %v7253_v35, %v7658_v28 }
 0x344   :  { %v4272_v16 = vadd.f32 %v14722_v54, %v4201_v0  ;;  %v1736_v40 = vrot.slane %v1518_v31, 2  ;;  %v7660_v34 = vsel %vm7628_vm7, %v7257_v36, %v7659_v61  ;;  %v3522_v39 = vrot.slane %v3309_v26, 1  ;;  %v14983_v31 = vpop.permute.xlu0 %892 }
 0x345   :  { %v3797_v63 = vmul.f32 %v14633_v53, %v888_v9  ;;  %v2385_v2 = vrot.slane %v2170_v3, 1  ;;  %v2658_v20 = vmul.f32 %v14429_v11, %v888_v9  ;;  %v7865_v46 = vrot.slane %v18569_v25, 1 }
 0x346   :  { %v4336_v59 = vmax.f32 %v4272_v16, 0.0  ;;  %v7866_v56 = vrot.slane %v10755_v60, 1  ;;  %v18570_v47 = vrot.slane %v14850_v50, 1  ;;  %v3523_v35 = vsel %vm1183_vm2, %v3520_v57, %v3522_v39 }
 0x347   :  { %v14985_v36 = vadd.f32 %v2872_v32, %v2573_v49  ;;  %v3714_v9 = vadd.f32 %v3523_v35, %v3216_v41  ;;  %v4010_v28 = vrot.slane %v3797_v63, 2  ;;  %v7265_v0 = vrot.slane %v6850_v24, %v18123_v12 }
 0x348   :  { %v4784_v10 = vcombine.high %v4336_v59, %v4336_v59  ;;  %v4791_v6 = vrot.slane %v4336_v59, %v18343_v30  ;;  %v1248_v29 = vsel %vm1183_vm2, %v18570_v47, %v1247_v55  ;;  %v7867_v22 = vsel %vm1183_vm2, %v7865_v46, %v7866_v56 }
 0x349   :  { %v14990_v3 = vrot.slane %v6851_v51, %v18123_v12  ;;  %7912 = vrot.lane.b32.xlu1 %v7867_v22, %s10782_s0  ;;  %8179 = vst.msk [vmem:[#allocation4 + $0x8] sm:$0xff] %vm6940_vm11, %v7867_v22  ;;  %v1031_v57 = vmul.f32 %v14528_v43, %v18572_v7  ;;  %v7661_v49 = vsel %vm7630_vm8, %v7261_v23, %v7660_v34  ;;  %v2873_v26 = vrot.slane %v2658_v20, 2  ;;  %v18575_v20 = vld [vmem:[#allocation106_spill] sm:$0xff] }
 0x34a   :  { %v4798_v50 = vrot.slane %v4784_v10, %v18343_v30  ;;  %v1433_v41 = vadd.f32 %v1248_v29, %v14880_v18  ;;  %v1032_v24 = vmul.f32 %v14528_v43, %v14983_v31  ;;  %v4799_v15 = vcombine.high %v4791_v6, %v4791_v6 }
 0x34b   :  { %18571 = vst [vmem:[#allocation31_spill] sm:$0xff] %v14990_v3  ;;  %v18573_v37 = vrot.slane %v14865_v62, 2  ;;  %v2386_v16 = vsel %vm1183_vm2, %v2383_v58, %v2385_v2  ;;  %v4011_v55 = vsel %vm1672_vm3, %v4008_v13, %v4010_v28  ;;  %v1250_v61 = vrot.slane %v1031_v57, 1  ;;  %v18577_v28 = vld [vmem:[#allocation111_spill] sm:$0xff] }
 0x34c   :  { %v4202_v51 = vadd.f32 %v4011_v55, %v3714_v9  ;;  %v1252_v23 = vrot.slane %v1032_v24, 1  ;;  %v1520_v18 = vmul.f32 %v14395_v42, %v18572_v7  ;;  %v15011_v34 = vsel %vm7632_vm9, %v7265_v0, %v7661_v49  ;;  %v18579_v55 = vld [vmem:[#allocation108_spill] sm:$0xff] }
 0x34d   :  { %v1737_v32 = vsel %vm1672_vm3, %v18573_v37, %v1736_v40  ;;  %18574 = vst [vmem:[#allocation193_spill] sm:$0xff] %v15011_v34  ;;  %v4800_v59 = vcombine.high %v4798_v50, %v4798_v50  ;;  %v2574_v62 = vadd.f32 %v2386_v16, %v14904_v19  ;;  %v1521_v40 = vmul.f32 %v14395_v42, %v14983_v31  ;;  %v18624_v34 = vld [vmem:[#allocation123_spill] sm:$0xff] }
 0x34e   :  { %v10313_v1 = vrot.slane %v4791_v6, 9  ;;  %v1922_v39 = vadd.f32 %v1737_v32, %v1433_v41  ;;  %v2874_v58 = vsel %vm1672_vm3, %v2871_v17, %v2873_v26  ;;  %v4273_v13 = vadd.f32 %v14722_v54, %v4202_v51 }
 0x34f   :  { %v10314_v63 = vrot.slane %v4799_v15, 9  ;;  %v722_v2 = vmul.f32 %v14521_v45, %v18572_v7  ;;  %v18576_v46 = vrot.slane %v18575_v20, 1  ;;  %v1253_v19 = vsel %vm1183_vm2, %v1250_v61, %v1252_v23 }
 0x350   :  { %v10315_v56 = vrot.slane %v4798_v50, 9  ;;  %v4337_v42 = vmax.f32 %v4273_v13, 0.0  ;;  %v1739_v10 = vrot.slane %v1520_v18, 2  ;;  %v2172_v48 = vmul.f32 %v14422_v5, %v18572_v7 }
 0x351   :  { %v1251_v60 = vsel %vm1183_vm2, %v18576_v46, %v1250_v61  ;;  %v10316_v47 = vrot.slane %v4800_v59, 9  ;;  %v1741_v17 = vrot.slane %v1521_v40, 2  ;;  %v2173_v29 = vmul.f32 %v14422_v5, %v14983_v31  ;;  %v18578_v5 = vld [vmem:[#allocation112_spill] sm:$0xff]  ;;  %v18583_v46 = vld [vmem:[#allocation110_spill] sm:$0xff] }
 0x352   :  { %v15032_v45 = vmul.f32 %v14429_v11, %v18572_v7  ;;  %v15034_v35 = vmax.f32 %v4791_v6, %v10313_v1  ;;  %v3062_v9 = vadd.f32 %v2874_v58, %v2574_v62  ;;  %v1434_v22 = vadd.f32 %v1251_v60, %v18577_v28  ;;  %v18581_v1 = vld [vmem:[#allocation109_spill] sm:$0xff] }
 0x353   :  { %v1435_v0 = vadd.f32 %v1253_v19, %v722_v2  ;;  %v15037_v57 = vmax.f32 %v4799_v15, %v10314_v63  ;;  %v4801_v49 = vcombine.high %v4337_v42, %v4337_v42  ;;  %v4808_v41 = vrot.slane %v4337_v42, %v18343_v30 }
 0x354   :  { %v2388_v26 = vrot.slane %v2172_v48, 1  ;;  %v2014_v24 = vmul.f32 %v14562_v14, %v18572_v7  ;;  %v2077_v37 = vadd.f32 %v18578_v5, %v14957_v21  ;;  %v2390_v11 = vrot.slane %v2173_v29, 1  ;;  %v15060_v21 = vld [vmem:[%s17602_s1 + $0x5] ss:$0 sm:$0xff] }
 0x355   :  { %v2876_v6 = vrot.slane %v15032_v45, 2  ;;  %v15045_v32 = vmax.f32 %v4798_v50, %v10315_v56  ;;  %v15047_v16 = vmax.f32 %v4800_v59, %v10316_v47  ;;  %v18580_v15 = vrot.slane %v18579_v55, 2  ;;  %v18585_v56 = vld [vmem:[#allocation121_spill] sm:$0xff] }
 0x356   :  { %v1742_v61 = vsel %vm1672_vm3, %v1739_v10, %v1741_v17  ;;  %v2078_v62 = vadd.f32 %v2014_v24, %v1922_v39  ;;  %v2661_v50 = vmul.f32 %v15060_v21, %v14983_v31  ;;  %v4815_v59 = vrot.slane %v4801_v49, %v18343_v30 }
 0x357   :  { %v1740_v51 = vsel %vm1672_vm3, %v18580_v15, %v1739_v10  ;;  %v15055_v18 = vadd.f32 %v1742_v61, %v1435_v0  ;;  %v4816_v40 = vcombine.high %v4808_v41, %v4808_v41  ;;  %v18582_v58 = vrot.slane %v18581_v1, 1 }
 0x358   :  { %v15053_v23 = vadd.f32 %v1740_v51, %v1434_v22  ;;  %v3154_v63 = vmul.f32 %v14624_v33, %v18572_v7  ;;  %v10317_v2 = vrot.slane %v4808_v41, 9  ;;  %v2391_v39 = vsel %vm1183_vm2, %v2388_v26, %v2390_v11  ;;  %v18587_v11 = vld [vmem:[#allocation113_spill] sm:$0xff] }
 0x359   :  { %v2389_v13 = vsel %vm1183_vm2, %v18582_v58, %v2388_v26  ;;  %v18584_v60 = vrot.slane %v18583_v46, 2  ;;  %v3217_v42 = vadd.f32 %v18585_v56, %v14985_v36  ;;  %v3311_v10 = vmul.f32 %v14614_v27, %v18572_v7 }
 0x35a   :  { %v2575_v20 = vadd.f32 %v2389_v13, %v2077_v37  ;;  %v3312_v48 = vmul.f32 %v14614_v27, %v14983_v31  ;;  %v3799_v47 = vmul.f32 %v14633_v53, %v18572_v7  ;;  %v3218_v17 = vadd.f32 %v3154_v63, %v3062_v9  ;;  %v2127_v7 = vpop.permute.xlu1 %2126 }
 0x35b   :  { %v2877_v19 = vsel %vm1672_vm3, %v18584_v60, %v2876_v6  ;;  %v3800_v29 = vmul.f32 %v14633_v53, %v14983_v31  ;;  %v7868_v45 = vrot.slane %v14706_v8, 1  ;;  %v7869_v28 = vrot.slane %v14744_v44, 1 }
 0x35c   :  { %v3525_v22 = vrot.slane %v3311_v10, 1  ;;  %v3527_v0 = vrot.slane %v3312_v48, 1  ;;  %v4013_v36 = vrot.slane %v3799_v47, 2  ;;  %v2050_v49 = vmul.f32 %v14562_v14, %v18479_v52  ;;  %v18591_v47 = vld [vmem:[#allocation184_spill] sm:$0xff] }
 0x35d   :  { %v4817_v26 = vcombine.high %v4815_v59, %v4815_v59  ;;  %v2878_v24 = vrot.slane %v2661_v50, 2  ;;  %v4015_v5 = vrot.slane %v3800_v29, 2  ;;  %v15089_v37 = vsel %vm1183_vm2, %v7868_v45, %v7869_v28  ;;  %v18589_v50 = vld [vmem:[#allocation114_spill] sm:$0xff]  ;;  %v18593_v29 = vld [vmem:[#allocation185_spill] sm:$0xff] }
 0x35e   :  { %18586 = vst [vmem:[#allocation194_spill] sm:$0xff] %v15089_v37  ;;  %v10318_v9 = vrot.slane %v4816_v40, 9  ;;  %v18588_v31 = vrot.slane %v18587_v11, 1  ;;  %v3528_v44 = vsel %vm1183_vm2, %v3525_v22, %v3527_v0  ;;  %8339 = vrot.lane.b32.xlu0 %v15089_v37, %s10784_s19  ;;  %8180 = vst.msk [vmem:[#allocation4 + $0x20] sm:$0xff] %vm6940_vm11, %v15089_v37  ;;  %v2114_v14 = vadd.f32 %v2050_v49, %v14459_v4 }
 0x35f   :  { %v10319_v15 = vrot.slane %v4815_v59, 9  ;;  %v3716_v61 = vadd.f32 %v3528_v44, %v3218_v17  ;;  %v18590_v1 = vrot.slane %v18589_v50, 2  ;;  %v4016_v13 = vsel %vm1672_vm3, %v4013_v36, %v4015_v5  ;;  %v18595_v5 = vld [vmem:[#allocation12_spill] sm:$0xff]  ;;  %v18598_v50 = vld [vmem:[#allocation23_spill] sm:$0xff] }
 0x360   :  { %v3526_v55 = vsel %vm1183_vm2, %v18588_v31, %v3525_v22  ;;  %v2612_v63 = vadd.f32 %v14604_v38, %v2114_v14  ;;  %v3369_v46 = vmul.f32 %v14614_v27, %v2127_v7  ;;  %v3857_v60 = vmul.f32 %v14633_v53, %v2127_v7  ;;  %v18596_v31 = vld [vmem:[#allocation136_spill] sm:$0xff] }
 0x361   :  { %v3715_v51 = vadd.f32 %v3526_v55, %v3217_v42  ;;  %v4014_v58 = vsel %vm1672_vm3, %v18590_v1, %v4013_v36  ;;  %v2576_v56 = vadd.f32 %v2391_v39, %v2078_v62  ;;  %v4204_v48 = vadd.f32 %v4016_v13, %v3716_v61  ;;  %v15156_v13 = vld [vmem:[%s17602_s1 + $0x2] ss:$0 sm:$0xff] }
 0x362   :  { %v18592_v4 = vrot.slane %v18591_v47, 2  ;;  %v18594_v42 = vrot.slane %v18593_v29, 2  ;;  %v10320_v45 = vrot.slane %v4817_v26, 9  ;;  %v15112_v28 = vmax.f32 %v4808_v41, %v10317_v2  ;;  %8090 = vrot.lane.b32.xlu0 %v18569_v25, %s10784_s19  ;;  %18600 = vst [vmem:[#allocation195_spill] sm:$0xff] %v15156_v13 }
 0x363   :  { %v4203_v10 = vadd.f32 %v4014_v58, %v3715_v51  ;;  %v3622_v0 = vrot.slane %v3369_v46, 1  ;;  %v2879_v38 = vsel %vm1672_vm3, %v2876_v6, %v2878_v24  ;;  %v15117_v36 = vadd.f32 %v2877_v19, %v2575_v20  ;;  %v18601_v46 = vld [vmem:[#allocation172_spill] sm:$0xff] }
 0x364   :  { %v2969_v17 = vsel %vm1672_vm3, %v18594_v42, %v18592_v4  ;;  %v4275_v39 = vadd.f32 %v14722_v54, %v4204_v48  ;;  %v15121_v49 = vmax.f32 %v4816_v40, %v10318_v9  ;;  %v18597_v41 = vrot.slane %v18596_v31, 1  ;;  %v15136_v40 = vld [vmem:[%s17602_s1 + $0x4] ss:$0 sm:$0xff] }
 0x365   :  { %v3100_v22 = vadd.f32 %v2969_v17, %v2612_v63  ;;  %v4274_v62 = vadd.f32 %v14722_v54, %v4203_v10  ;;  %v4110_v55 = vrot.slane %v3857_v60, 2  ;;  %v15127_v44 = vmax.f32 %v4815_v59, %v10319_v15 }
 0x366   :  { %v3623_v2 = vsel %vm1183_vm2, %v18597_v41, %v3622_v0  ;;  %v15129_v25 = vadd.f32 %v2879_v38, %v2576_v56  ;;  %v4339_v20 = vmax.f32 %v4275_v39, 0.0  ;;  %v15131_v19 = vmax.f32 %v4817_v26, %v10320_v45 }
 0x367   :  { %v3256_v11 = vadd.f32 %v18595_v5, %v3100_v22  ;;  %v4338_v6 = vmax.f32 %v4274_v62, 0.0  ;;  %v15139_v24 = vmul.f32 %v15136_v40, %v2127_v7  ;;  %v15143_v14 = vmul.f32 %v14528_v43, %v18479_v52 }
 0x368   :  { %v4835_v51 = vcombine.high %v4339_v20, %v4339_v20  ;;  %v4842_v26 = vrot.slane %v4339_v20, %v18343_v30  ;;  %v15148_v61 = vmul.f32 %v15060_v21, %v2127_v7  ;;  %v18599_v1 = vrot.slane %v18598_v50, 2 }
 0x369   :  { %v3754_v9 = vadd.f32 %v3623_v2, %v3256_v11  ;;  %v4818_v59 = vcombine.high %v4338_v6, %v4338_v6  ;;  %v4825_v15 = vrot.slane %v4338_v6, %v18343_v30  ;;  %v15160_v63 = vmul.f32 %v15156_v13, %v18479_v52 }
 0x36a   :  { %v4111_v58 = vsel %vm1672_vm3, %v18599_v1, %v4110_v55  ;;  %v1084_v60 = vmul.f32 %v14528_v43, %v18601_v46  ;;  %v4849_v10 = vrot.slane %v4835_v51, %v18343_v30  ;;  %v4850_v48 = vcombine.high %v4842_v26, %v4842_v26 }
 0x36b   :  { %v4832_v56 = vrot.slane %v4818_v59, %v18343_v30  ;;  %v4833_v7 = vcombine.high %v4825_v15, %v4825_v15  ;;  %v10321_v47 = vrot.slane %v4825_v15, 9  ;;  %v10325_v4 = vrot.slane %v4842_v26, 9 }
 0x36c   :  { %v4242_v29 = vadd.f32 %v4111_v58, %v3754_v9  ;;  %v1340_v42 = vrot.slane %v15143_v14, 1  ;;  %v4851_v45 = vcombine.high %v4849_v10, %v4849_v10  ;;  %v10326_v38 = vrot.slane %v4850_v48, 9  ;;  %v18612_v14 = vld [vmem:[#allocation192_spill] sm:$0xff] }
 0x36d   :  { %v4834_v17 = vcombine.high %v4832_v56, %v4832_v56  ;;  %v10322_v22 = vrot.slane %v4833_v7, 9  ;;  %v10323_v0 = vrot.slane %v4832_v56, 9  ;;  %v6644_v62 = vmax.f32 %v4825_v15, %v10321_v47 }
 0x36e   :  { %v1339_v39 = vrot.slane %v1084_v60, 1  ;;  %v1573_v43 = vmul.f32 %v15156_v13, %v18601_v46  ;;  %v10327_v11 = vrot.slane %v4849_v10, 9  ;;  %v6648_v2 = vmax.f32 %v4842_v26, %v10325_v4  ;;  %v15180_v26 = vld [vmem:[%s17602_s1] ss:$0 sm:$0xff] }
 0x36f   :  { %v10324_v5 = vrot.slane %v4834_v17, 9  ;;  %v6645_v31 = vmax.f32 %v4833_v7, %v10322_v22  ;;  %v6646_v41 = vmax.f32 %v4832_v56, %v10323_v0  ;;  %v6852_v55 = vmax.f32 %v15034_v35, %v6644_v62 }
 0x370   :  { %v4313_v6 = vadd.f32 %v14722_v54, %v4242_v29  ;;  %v1341_v20 = vsel %vm1183_vm2, %v1339_v39, %v1340_v42  ;;  %v10328_v9 = vrot.slane %v4851_v45, 9  ;;  %v6649_v50 = vmax.f32 %v4850_v48, %v10326_v38  ;;  %v3118_v38 = vpop.permute.xlu0 %3117 }
 0x371   :  { %v6647_v59 = vmax.f32 %v4834_v17, %v10324_v5  ;;  %v6853_v15 = vmax.f32 %v15037_v57, %v6645_v31  ;;  %v6854_v51 = vmax.f32 %v15045_v32, %v6646_v41  ;;  %v1829_v1 = vrot.slane %v15160_v63, 2  ;;  %v18602_v17 = vld [vmem:[#allocation6_spill] sm:$0xff]  ;;  %v18604_v31 = vld [vmem:[#allocation163_spill] sm:$0xff] }
 0x372   :  { %v757_v35 = vmul.f32 %v15180_v26, %v18601_v46  ;;  %v1828_v58 = vrot.slane %v1573_v43, 2  ;;  %v6650_v60 = vmax.f32 %v4849_v10, %v10327_v11  ;;  %v7273_v7 = vrot.slane %v6852_v55, %v18123_v12  ;;  %v18603_v43 = vld [vmem:[#allocation154_spill] sm:$0xff] }
 0x373   :  { %v6855_v56 = vmax.f32 %v15047_v16, %v6647_v59  ;;  %v7277_v57 = vrot.slane %v6853_v15, %v18123_v12  ;;  %v6856_v32 = vmax.f32 %v15112_v28, %v6648_v2  ;;  %v7281_v63 = vrot.slane %v6854_v51, %v18123_v12  ;;  %v18606_v2 = vld [vmem:[#allocation152_spill] sm:$0xff] }
 0x374   :  { %v4377_v48 = vmax.f32 %v4313_v6, 0.0  ;;  %v1470_v47 = vadd.f32 %v1341_v20, %v757_v35  ;;  %v15189_v4 = vmax.f32 %v4851_v45, %v10328_v9  ;;  %v2485_v46 = vrot.slane %v15139_v24, 1  ;;  %v18608_v9 = vld [vmem:[#allocation188_spill] sm:$0xff] }
 0x375   :  { %v7664_v29 = vsel %vm7622_vm4, %v7277_v57, %v7273_v7  ;;  %v2971_v10 = vrot.slane %v18602_v17, 2  ;;  %v6857_v16 = vmax.f32 %v15121_v49, %v6649_v50  ;;  %v1830_v28 = vsel %vm1672_vm3, %v1828_v58, %v1829_v1  ;;  %v18609_v7 = vld [vmem:[#allocation181_spill] sm:$0xff] }
 0x376   :  { %v5481_v22 = vcombine.high %v4377_v48, %v4377_v48  ;;  %v15196_v0 = vrot.slane %v4377_v48, %v18343_v30  ;;  %v7285_v62 = vrot.slane %v6855_v56, %v18123_v12  ;;  %v2973_v45 = vrot.slane %v15148_v61, 2 }
 0x377   :  { %v1959_v39 = vadd.f32 %v1830_v28, %v1470_v47  ;;  %v2970_v5 = vrot.slane %v18603_v43, 2  ;;  %v6858_v24 = vmax.f32 %v15127_v44, %v6650_v60  ;;  %v7289_v11 = vrot.slane %v6856_v32, %v18123_v12  ;;  %v18621_v44 = vld [vmem:[#allocation118_spill] sm:$0xff] }
 0x378   :  { %v7665_v49 = vsel %vm7624_vm5, %v7281_v63, %v7664_v29  ;;  %v18605_v41 = vrot.slane %v18604_v31, 1  ;;  %v18607_v55 = vrot.slane %v18606_v2, 1  ;;  %v15211_v20 = vrot.slane %v5481_v22, %v18343_v30  ;;  %v3123_v63 = vpop.permute.xlu1 %3122  ;;  %v15258_v2 = vpop.permute.xlu0 %897 }
 0x379   :  { %v2115_v61 = vadd.f32 %v18608_v9, %v1959_v39  ;;  %v2972_v59 = vsel %vm1672_vm3, %v2970_v5, %v2971_v10  ;;  %v3370_v15 = vmul.f32 %v14614_v27, %v3118_v38  ;;  %v15219_v51 = vrot.slane %v6857_v16, %v18123_v12  ;;  %v18613_v39 = vld [vmem:[#allocation183_spill] sm:$0xff] }
 0x37a   :  { %v2484_v6 = vsel %vm1183_vm2, %v18607_v55, %v18605_v41  ;;  %v15223_v50 = vcombine.high %v15196_v0, %v15196_v0  ;;  %v3858_v35 = vmul.f32 %v14633_v53, %v3118_v38  ;;  %v7666_v58 = vsel %vm7626_vm6, %v7285_v62, %v7665_v49  ;;  %v18615_v49 = vld [vmem:[#allocation26_spill] sm:$0xff] }
 0x37b   :  { %v2613_v60 = vadd.f32 %v2484_v6, %v2115_v61  ;;  %v758_v56 = vmul.f32 %v15180_v26, %v18479_v52  ;;  %v18610_v57 = vrot.slane %v18609_v7, 1  ;;  %v15235_v48 = vrot.slane %v6858_v24, %v18123_v12 }
 0x37c   :  { %v15238_v47 = vsel %vm7628_vm7, %v7289_v11, %v7666_v58  ;;  %v3193_v17 = vmul.f32 %v14624_v33, %v3118_v38  ;;  %v15244_v52 = vcombine.high %v15211_v20, %v15211_v20  ;;  %v3624_v16 = vrot.slane %v3370_v15, 1  ;;  %v18617_v15 = vld [vmem:[#allocation165_spill] sm:$0xff] }
 0x37d   :  { %v1343_v32 = vsel %vm1183_vm2, %v1340_v42, %v18610_v57  ;;  %18611 = vst [vmem:[#allocation28_spill] sm:$0xff] %v15235_v48  ;;  %v5479_v42 = vcombine.high %v18612_v14, %v18612_v14  ;;  %v4112_v62 = vrot.slane %v3858_v35, 2  ;;  %v18614_v43 = vrot.slane %v18613_v39, 2 }
 0x37e   :  { %v1471_v22 = vadd.f32 %v1343_v32, %v758_v56  ;;  %v15253_v24 = vmul.f32 %v14614_v27, %v3123_v63  ;;  %v3101_v38 = vadd.f32 %v2972_v59, %v2613_v60  ;;  %v5480_v41 = vcombine.high %v18615_v49, %v18615_v49  ;;  %v15278_v56 = vld [vmem:[%s17602_s1 + $0x1] ss:$0 sm:$0xff] }
 0x37f   :  { %v1832_v5 = vsel %vm1672_vm3, %v1829_v1, %v18614_v43  ;;  %v18616_v55 = vrot.slane %v18604_v31, 1  ;;  %v10473_v9 = vrot.slane %v18612_v14, 9  ;;  %v15266_v27 = vmul.f32 %v14633_v53, %v3123_v63 }
 0x380   :  { %v1960_v11 = vadd.f32 %v1832_v5, %v1471_v22  ;;  %v17825_v1 = vrot.slane %v15253_v24, 1  ;;  %v3257_v59 = vadd.f32 %v3193_v17, %v3101_v38  ;;  %v10474_v58 = vrot.slane %v5479_v42, 9  ;;  %v18618_v5 = vld [vmem:[#allocation107_spill] sm:$0xff] }
 0x381   :  { %v2486_v6 = vsel %vm1183_vm2, %v18616_v55, %v2485_v46  ;;  %v10475_v60 = vrot.slane %v18615_v49, 9  ;;  %v17824_v46 = vrot.slane %v15266_v27, 2  ;;  %v1035_v53 = vmul.f32 %v15278_v56, %v15258_v2 }
 0x382   :  { %v2116_v35 = vadd.f32 %v18617_v15, %v1960_v11  ;;  %v3626_v31 = vsel %vm1183_vm2, %v3624_v16, %v17825_v1  ;;  %v2974_v57 = vsel %vm1672_vm3, %v2971_v10, %v2973_v45  ;;  %v10476_v32 = vrot.slane %v5480_v41, 9  ;;  %v15289_v16 = vld [vmem:[%s17602_s1 + $0x6] ss:$0 sm:$0xff] }
 0x383   :  { %v3755_v17 = vadd.f32 %v3626_v31, %v3257_v59  ;;  %v15284_v22 = vmax.f32 %v18612_v14, %v10473_v9  ;;  %v3194_v39 = vmul.f32 %v15289_v16, %v3123_v63  ;;  %v4114_v43 = vsel %vm1672_vm3, %v4112_v62, %v17824_v46 }
 0x384   :  { %v2614_v7 = vadd.f32 %v2486_v6, %v2116_v35  ;;  %v15297_v38 = vmul.f32 %v15278_v56, %v18618_v5  ;;  %v15299_v10 = vmax.f32 %v5479_v42, %v10474_v58  ;;  %v15303_v14 = vmul.f32 %v15156_v13, %v18618_v5 }
 0x385   :  { %v4243_v45 = vadd.f32 %v4114_v43, %v3755_v17  ;;  %v15307_v11 = vmul.f32 %v15156_v13, %v15258_v2  ;;  %v15310_v63 = vmax.f32 %v18615_v49, %v10475_v60  ;;  %v1257_v55 = vrot.slane %v1035_v53, 1  ;;  %v15327_v49 = vld [vmem:[%s17602_s1 + $0x3] ss:$0 sm:$0xff] }
 0x386   :  { %v2175_v62 = vmul.f32 %v15136_v40, %v18618_v5  ;;  %v2176_v42 = vmul.f32 %v15136_v40, %v15258_v2  ;;  %v3102_v6 = vadd.f32 %v2974_v57, %v2614_v7  ;;  %v15316_v9 = vmax.f32 %v5480_v41, %v10476_v32  ;;  %v18620_v32 = vld [vmem:[#allocation122_spill] sm:$0xff] }
 0x387   :  { %18619 = vst [vmem:[#allocation204_spill] sm:$0xff] %v15307_v11  ;;  %v4314_v59 = vadd.f32 %v14722_v54, %v4243_v45  ;;  %v15321_v15 = vmul.f32 %v15180_v26, %v18618_v5  ;;  %v17823_v35 = vrot.slane %v15297_v38, 1  ;;  %v2016_v58 = vmul.f32 %v15327_v49, %v18618_v5 }
 0x388   :  { %v2393_v60 = vrot.slane %v2175_v62, 1  ;;  %v2395_v31 = vrot.slane %v2176_v42, 1  ;;  %v2663_v7 = vmul.f32 %v15060_v21, %v18618_v5  ;;  %v2079_v17 = vadd.f32 %v18620_v32, %v15053_v23  ;;  %v18623_v23 = vld [vmem:[#allocation125_spill] sm:$0xff] }
 0x389   :  { %v4378_v41 = vmax.f32 %v4314_v59, 0.0  ;;  %v1258_v57 = vsel %vm1183_vm2, %v17823_v35, %v1257_v55  ;;  %v2080_v43 = vadd.f32 %v2016_v58, %v15055_v18  ;;  %v2664_v45 = vmul.f32 %v15060_v21, %v15258_v2 }
 0x38a   :  { %v15343_v62 = vadd.f32 %v3194_v39, %v3102_v6  ;;  %v3156_v54 = vmul.f32 %v15289_v16, %v18618_v5  ;;  %v18622_v53 = vrot.slane %v18621_v44, 1  ;;  %v2396_v35 = vsel %vm1183_vm2, %v2393_v60, %v2395_v31  ;;  %v15357_v39 = vld [vmem:[%s17602_s1 + $0x7] ss:$0 sm:$0xff] }
 0x38b   :  { %v5498_v42 = vcombine.high %v4378_v41, %v4378_v41  ;;  %v5505_v59 = vrot.slane %v4378_v41, %v18343_v30  ;;  %v3219_v18 = vadd.f32 %v18623_v23, %v15117_v36  ;;  %v3314_v6 = vmul.f32 %v15357_v39, %v18618_v5  ;;  %v15367_v36 = vld [vmem:[%s17602_s1 + $0x8] ss:$0 sm:$0xff] }
 0x38c   :  { %v2394_v55 = vsel %vm1183_vm2, %v18622_v53, %v2393_v60  ;;  %v2881_v44 = vrot.slane %v2663_v7, 2  ;;  %v2883_v61 = vrot.slane %v2664_v45, 2  ;;  %v3315_v60 = vmul.f32 %v15357_v39, %v15258_v2 }
 0x38d   :  { %v5512_v58 = vrot.slane %v5498_v42, %v18343_v30  ;;  %v5513_v41 = vcombine.high %v5505_v59, %v5505_v59  ;;  %v10481_v32 = vrot.slane %v5505_v59, 9  ;;  %v3530_v31 = vrot.slane %v3314_v6, 1 }
 0x38e   :  { %v3802_v53 = vmul.f32 %v15367_v36, %v18618_v5  ;;  %v3220_v1 = vadd.f32 %v3156_v54, %v15129_v25  ;;  %v3532_v7 = vrot.slane %v3315_v60, 1  ;;  %v3803_v45 = vmul.f32 %v15367_v36, %v15258_v2 }
 0x38f   :  { %v5514_v23 = vcombine.high %v5512_v58, %v5512_v58  ;;  %v10482_v33 = vrot.slane %v5513_v41, 9  ;;  %v10483_v46 = vrot.slane %v5512_v58, 9  ;;  %v6804_v42 = vmax.f32 %v5505_v59, %v10481_v32  ;;  %v15378_v59 = vld [vmem:[#allocation3 + $0xf8] sm:$0x3] }
 0x390   :  { %v4018_v28 = vrot.slane %v3802_v53, 2  ;;  %v18625_v37 = vrot.slane %v18624_v34, 1  ;;  %v2577_v48 = vadd.f32 %v2394_v55, %v2079_v17  ;;  %v3533_v5 = vsel %vm1183_vm2, %v3530_v31, %v3532_v7  ;;  %18626 = vst [vmem:[#allocation197_spill] sm:$0xff] %v15378_v59  ;;  %v18627_v32 = vld [vmem:[#allocation124_spill] sm:$0xff] }
 0x391   :  { %v10484_v6 = vrot.slane %v5514_v23, 9  ;;  %v6805_v29 = vmax.f32 %v5513_v41, %v10482_v33  ;;  %v6806_v3 = vmax.f32 %v5512_v58, %v10483_v46  ;;  %v4020_v13 = vrot.slane %v3803_v45, 2 }
 0x392   :  { %v3531_v8 = vsel %vm1183_vm2, %v18625_v37, %v3530_v31  ;;  %v6932_v25 = vmax.f32 %v15284_v22, %v6804_v42  ;;  %v2578_v2 = vadd.f32 %v2396_v35, %v2080_v43  ;;  %v18628_v60 = vrot.slane %v18627_v32, 2  ;;  %v18629_v37 = vld [vmem:[#allocation201_spill] sm:$0xff] }
 0x393   :  { %v3717_v11 = vadd.f32 %v3531_v8, %v3219_v18  ;;  %v6933_v54 = vmax.f32 %v15299_v10, %v6805_v29  ;;  %v6807_v46 = vmax.f32 %v5514_v23, %v10484_v6  ;;  %v3718_v34 = vadd.f32 %v3533_v5, %v3220_v1  ;;  %v18630_v8 = vld [vmem:[#allocation119_spill] sm:$0xff]  ;;  %v15397_v1 = vld [vmem:[%s17603_s2] ss:$0 sm:$0xff] }
 0x394   :  { %v4019_v33 = vsel %vm1672_vm3, %v18628_v60, %v4018_v28  ;;  %v8014_v17 = vrot.slane %v18629_v37, 2  ;;  %v6934_v55 = vmax.f32 %v15310_v63, %v6806_v3  ;;  %v18631_v18 = vrot.slane %v18630_v8, 2  ;;  %v18635_v8 = vld [vmem:[#allocation126_spill] sm:$0xff] }
 0x395   :  { %v4205_v58 = vadd.f32 %v4019_v33, %v3717_v11  ;;  %v4021_v22 = vsel %vm1672_vm3, %v4018_v28, %v4020_v13  ;;  %v8015_v29 = vrot.slane %v15378_v59, 2  ;;  %v7597_v10 = vrot.slane %v6933_v54, %v18123_v12 }
 0x396   :  { %v2882_v41 = vsel %vm1672_vm3, %v18631_v18, %v2881_v44  ;;  %v2884_v35 = vsel %vm1672_vm3, %v2881_v44, %v2883_v61  ;;  %v4206_v43 = vadd.f32 %v4021_v22, %v3718_v34  ;;  %v15401_v11 = vadd.f32 %v1258_v57, %v15321_v15 }
 0x397   :  { %v4276_v3 = vadd.f32 %v15397_v1, %v4205_v58  ;;  %v3065_v63 = vadd.f32 %v2882_v41, %v2577_v48  ;;  %v3066_v31 = vadd.f32 %v2884_v35, %v2578_v2  ;;  %v15404_v13 = vsel %vm1672_vm3, %v8014_v17, %v8015_v29  ;;  %v18633_v48 = vld [vmem:[#allocation120_spill] sm:$0xff] }
 0x398   :  { %18632 = vst [vmem:[#allocation38_spill] sm:$0xff] %v15404_v13  ;;  %v6935_v28 = vmax.f32 %v15316_v9, %v6807_v46  ;;  %v7593_v61 = vrot.slane %v6932_v25, %v18123_v12  ;;  %v4277_v44 = vadd.f32 %v15397_v1, %v4206_v43  ;;  %8225 = vrot.lane.b32.xlu0 %v15404_v13, %s10782_s0  ;;  %8436 = vst.msk [vmem:[#allocation4 + $0x118] sm:$0xff] %vm6940_vm11, %v15404_v13  ;;  %v18634_v25 = vld [vmem:[#allocation130_spill] sm:$0xff]  ;;  %v15435_v43 = vpop.permute.xlu1 %902 }
 0x399   :  { %v4340_v53 = vmax.f32 %v4276_v3, 0.0  ;;  %v7601_v15 = vrot.slane %v6934_v55, %v18123_v12  ;;  %v15416_v57 = vmul.f32 %v15136_v40, %v18633_v48  ;;  %v3317_v9 = vmul.f32 %v15357_v39, %v18633_v48 }
 0x39a   :  { %v3805_v23 = vmul.f32 %v15367_v36, %v18633_v48  ;;  %v7734_v42 = vsel %vm7622_vm4, %v7597_v10, %v7593_v61  ;;  %v4341_v7 = vmax.f32 %v4277_v44, 0.0  ;;  %v3158_v5 = vmul.f32 %v15289_v16, %v18633_v48 }
 0x39b   :  { %v4852_v45 = vcombine.high %v4340_v53, %v4340_v53  ;;  %v4859_v6 = vrot.slane %v4340_v53, %v18343_v30  ;;  %v3221_v54 = vadd.f32 %v18634_v25, %v3065_v63  ;;  %v3535_v2 = vrot.slane %v3317_v9, 1  ;;  %v18637_v9 = vld [vmem:[#allocation127_spill] sm:$0xff] }
 0x39c   :  { %v4023_v32 = vrot.slane %v3805_v23, 2  ;;  %v4869_v46 = vcombine.high %v4341_v7, %v4341_v7  ;;  %v4876_v34 = vrot.slane %v4341_v7, %v18343_v30  ;;  %v7605_v58 = vrot.slane %v6935_v28, %v18123_v12 }
 0x39d   :  { %v4866_v60 = vrot.slane %v4852_v45, %v18343_v30  ;;  %v4867_v33 = vcombine.high %v4859_v6, %v4859_v6  ;;  %v7735_v17 = vsel %vm7624_vm5, %v7601_v15, %v7734_v42  ;;  %v10329_v55 = vrot.slane %v4859_v6, 9 }
 0x39e   :  { %v18636_v18 = vrot.slane %v18635_v8, 1  ;;  %v4883_v29 = vrot.slane %v4869_v46, %v18343_v30  ;;  %v4884_v10 = vcombine.high %v4876_v34, %v4876_v34  ;;  %v10333_v63 = vrot.slane %v4876_v34, 9  ;;  %v3269_v8 = vpop.permute.xlu0 %3268 }
 0x39f   :  { %v4868_v22 = vcombine.high %v4866_v60, %v4866_v60  ;;  %v10330_v35 = vrot.slane %v4867_v33, 9  ;;  %v10331_v3 = vrot.slane %v4866_v60, 9  ;;  %v18638_v23 = vrot.slane %v18637_v9, 2 }
 0x3a0   :  { %v3536_v41 = vsel %vm1183_vm2, %v18636_v18, %v3535_v2  ;;  %v4885_v28 = vcombine.high %v4883_v29, %v4883_v29  ;;  %v10334_v15 = vrot.slane %v4884_v10, 9  ;;  %v10335_v7 = vrot.slane %v4883_v29, 9 }
 0x3a1   :  { %v3719_v44 = vadd.f32 %v3536_v41, %v3221_v54  ;;  %v10332_v53 = vrot.slane %v4868_v22, 9  ;;  %v4024_v42 = vsel %vm1672_vm3, %v18638_v23, %v4023_v32  ;;  %v3222_v45 = vadd.f32 %v3158_v5, %v3066_v31 }
 0x3a2   :  { %v15443_v46 = vmul.f32 %v15136_v40, %v15435_v43  ;;  %v10336_v18 = vrot.slane %v4885_v28, 9  ;;  %v6652_v13 = vmax.f32 %v4859_v6, %v10329_v55  ;;  %v6653_v59 = vmax.f32 %v4867_v33, %v10330_v35 }
 0x3a3   :  { %v4207_v25 = vadd.f32 %v4024_v42, %v3719_v44  ;;  %v6654_v61 = vmax.f32 %v4866_v60, %v10331_v3  ;;  %v15445_v54 = vmax.f32 %v4868_v22, %v10332_v53  ;;  %v15447_v41 = vmax.f32 %v4876_v34, %v10333_v63 }
 0x3a4   :  { %v3318_v23 = vmul.f32 %v15357_v39, %v15435_v43  ;;  %v15452_v31 = vmax.f32 %v4884_v10, %v10334_v15  ;;  %v3806_v5 = vmul.f32 %v15367_v36, %v15435_v43  ;;  %v3372_v44 = vmul.f32 %v15357_v39, %v3269_v8 }
 0x3a5   :  { %v4278_v9 = vadd.f32 %v15397_v1, %v4207_v25  ;;  %v3860_v6 = vmul.f32 %v15367_v36, %v3269_v8  ;;  %v15458_v33 = vmax.f32 %v4883_v29, %v10335_v7  ;;  %v15460_v60 = vmax.f32 %v4885_v28, %v10336_v18 }
 0x3a6   :  { %v3537_v55 = vrot.slane %v3318_v23, 1  ;;  %v4025_v22 = vrot.slane %v3806_v5, 2  ;;  %v3627_v35 = vrot.slane %v3372_v44, 1  ;;  %v18639_v63 = vrot.slane %v15196_v0, 9 }
 0x3a7   :  { %v4342_v34 = vmax.f32 %v4278_v9, 0.0  ;;  %v4115_v3 = vrot.slane %v3860_v6, 2  ;;  %v18640_v29 = vrot.slane %v15223_v50, 9  ;;  %v18641_v8 = vrot.slane %v15253_v24, 1 }
 0x3a8   :  { %v15465_v10 = vmax.f32 %v15196_v0, %v18639_v63  ;;  %v3538_v42 = vsel %vm1183_vm2, %v3535_v2, %v3537_v55  ;;  %v4026_v25 = vsel %vm1672_vm3, %v4023_v32, %v4025_v22  ;;  %v18642_v0 = vrot.slane %v15266_v27, 2  ;;  %v18645_v63 = vld [vmem:[#allocation103_spill] sm:$0xff] }
 0x3a9   :  { %v4886_v53 = vcombine.high %v4342_v34, %v4342_v34  ;;  %v4893_v15 = vrot.slane %v4342_v34, %v18343_v30  ;;  %v15472_v28 = vmax.f32 %v15223_v50, %v18640_v29  ;;  %v3720_v7 = vadd.f32 %v3538_v42, %v3222_v45  ;;  %v18647_v42 = vld [vmem:[#allocation115_spill] sm:$0xff] }
 0x3aa   :  { %v3628_v18 = vsel %vm1183_vm2, %v18641_v8, %v3627_v35  ;;  %v4116_v9 = vsel %vm1672_vm3, %v18642_v0, %v4115_v3  ;;  %v18643_v50 = vrot.slane %v15211_v20, 9  ;;  %v18644_v24 = vrot.slane %v15244_v52, 9 }
 0x3ab   :  { %v4900_v23 = vrot.slane %v4886_v53, %v18343_v30  ;;  %v4901_v5 = vcombine.high %v4893_v15, %v4893_v15  ;;  %v10337_v2 = vrot.slane %v4893_v15, 9  ;;  %v3756_v44 = vadd.f32 %v3628_v18, %v15343_v62 }
 0x3ac   :  { %v4208_v6 = vadd.f32 %v4026_v25, %v3720_v7  ;;  %v15486_v45 = vmax.f32 %v15211_v20, %v18643_v50  ;;  %v15491_v32 = vmax.f32 %v15244_v52, %v18644_v24  ;;  %v15494_v27 = vsel %vm7626_vm6, %v7605_v58, %v7735_v17 }
 0x3ad   :  { %v4902_v34 = vcombine.high %v4900_v23, %v4900_v23  ;;  %v10338_v55 = vrot.slane %v4901_v5, 9  ;;  %v10339_v22 = vrot.slane %v4900_v23, 9  ;;  %v6660_v35 = vmax.f32 %v4893_v15, %v10337_v2 }
 0x3ae   :  { %v4279_v62 = vadd.f32 %v15397_v1, %v4208_v6  ;;  %v4244_v3 = vadd.f32 %v4116_v9, %v3756_v44  ;;  %v723_v53 = vmul.f32 %v15180_v26, %v18645_v63  ;;  %v18646_v20 = vrot.slane %v15297_v38, 1  ;;  %v18650_v9 = vld [vmem:[#allocation116_spill] sm:$0xff] }
 0x3af   :  { %v18648_v29 = vrot.slane %v18647_v42, 1  ;;  %v10340_v7 = vrot.slane %v4902_v34, 9  ;;  %v6661_v25 = vmax.f32 %v4901_v5, %v10338_v55  ;;  %v6662_v58 = vmax.f32 %v4900_v23, %v10339_v22 }
 0x3b0   :  { %v6860_v17 = vmax.f32 %v6652_v13, %v6660_v35  ;;  %v4343_v8 = vmax.f32 %v4279_v62, 0.0  ;;  %v4315_v18 = vadd.f32 %v15397_v1, %v4244_v3  ;;  %v18649_v0 = vrot.slane %v15303_v14, 2  ;;  %v18652_v62 = vld [vmem:[#allocation117_spill] sm:$0xff] }
 0x3b1   :  { %v1256_v52 = vsel %vm1183_vm2, %v18648_v29, %v18646_v20  ;;  %v18651_v2 = vrot.slane %v18650_v9, 2  ;;  %v6663_v6 = vmax.f32 %v4902_v34, %v10340_v7  ;;  %v6861_v38 = vmax.f32 %v6653_v59, %v6661_v25 }
 0x3b2   :  { %v1436_v15 = vadd.f32 %v1256_v52, %v723_v53  ;;  %v6862_v50 = vmax.f32 %v6654_v61, %v6662_v58  ;;  %v7305_v24 = vrot.slane %v6860_v17, %v18123_v12  ;;  %v4903_v63 = vcombine.high %v4343_v8, %v4343_v8 }
 0x3b3   :  { %v1745_v44 = vsel %vm1672_vm3, %v18651_v2, %v18649_v0  ;;  %v4910_v5 = vrot.slane %v4343_v8, %v18343_v30  ;;  %v4379_v23 = vmax.f32 %v4315_v18, 0.0  ;;  %v6863_v55 = vmax.f32 %v15445_v54, %v6663_v6 }
 0x3b4   :  { %v1925_v13 = vadd.f32 %v1745_v44, %v1436_v15  ;;  %v7309_v22 = vrot.slane %v6861_v38, %v18123_v12  ;;  %v7313_v35 = vrot.slane %v6862_v50, %v18123_v12  ;;  %v2017_v3 = vmul.f32 %v15327_v49, %v18652_v62 }
 0x3b5   :  { %v4917_v34 = vrot.slane %v4903_v63, %v18343_v30  ;;  %v4918_v59 = vcombine.high %v4910_v5, %v4910_v5  ;;  %v10341_v61 = vrot.slane %v4910_v5, 9  ;;  %v5515_v53 = vcombine.high %v4379_v23, %v4379_v23  ;;  %v15527_v63 = vpop.permute.xlu1 %1965 }
 0x3b6   :  { %v7317_v20 = vrot.slane %v6863_v55, %v18123_v12  ;;  %v7671_v42 = vsel %vm7622_vm4, %v7309_v22, %v7305_v24  ;;  %v5522_v29 = vrot.slane %v4379_v23, %v18343_v30  ;;  %v15521_v52 = vadd.f32 %v2017_v3, %v1925_v13  ;;  %v15531_v22 = vpop.permute.xlu0 %1970 }
 0x3b7   :  { %v7672_v54 = vsel %vm7624_vm5, %v7313_v35, %v7671_v42  ;;  %v4919_v7 = vcombine.high %v4917_v34, %v4917_v34  ;;  %v10342_v25 = vrot.slane %v4918_v59, 9  ;;  %v10343_v58 = vrot.slane %v4917_v34, 9 }
 0x3b8   :  { %v7673_v17 = vsel %vm7626_vm6, %v7317_v20, %v7672_v54  ;;  %v6664_v8 = vmax.f32 %v4910_v5, %v10341_v61  ;;  %v5529_v18 = vrot.slane %v5515_v53, %v18343_v30  ;;  %v5530_v15 = vcombine.high %v5522_v29, %v5522_v29 }
 0x3b9   :  { %v10344_v0 = vrot.slane %v4919_v7, 9  ;;  %v6665_v9 = vmax.f32 %v4918_v59, %v10342_v25  ;;  %v6666_v2 = vmax.f32 %v4917_v34, %v10343_v58  ;;  %v10485_v44 = vrot.slane %v5522_v29, 9 }
 0x3ba   :  { %v6864_v6 = vmax.f32 %v15447_v41, %v6664_v8  ;;  %v5531_v38 = vcombine.high %v5529_v18, %v5529_v18  ;;  %v10486_v50 = vrot.slane %v5530_v15, 9  ;;  %v10487_v24 = vrot.slane %v5529_v18, 9 }
 0x3bb   :  { %v6667_v23 = vmax.f32 %v4919_v7, %v10344_v0  ;;  %v6865_v13 = vmax.f32 %v15452_v31, %v6665_v9  ;;  %v6866_v55 = vmax.f32 %v15458_v33, %v6666_v2  ;;  %v6808_v5 = vmax.f32 %v5522_v29, %v10485_v44  ;;  %v15557_v9 = vpop.permute.xlu0 %561 }
 0x3bc   :  { %v7321_v35 = vrot.slane %v6864_v6, %v18123_v12  ;;  %v10488_v3 = vrot.slane %v5531_v38, 9  ;;  %v6809_v34 = vmax.f32 %v5530_v15, %v10486_v50  ;;  %v6810_v59 = vmax.f32 %v5529_v18, %v10487_v24  ;;  %v18655_v24 = vld [vmem:[#allocation195_spill] sm:$0xff] }
 0x3bd   :  { %v6867_v41 = vmax.f32 %v15460_v60, %v6667_v23  ;;  %v7325_v61 = vrot.slane %v6865_v13, %v18123_v12  ;;  %v7329_v53 = vrot.slane %v6866_v55, %v18123_v12  ;;  %v6936_v20 = vmax.f32 %v15465_v10, %v6808_v5 }
 0x3be   :  { %v7674_v31 = vsel %vm7628_vm7, %v7321_v35, %v7673_v17  ;;  %v6811_v42 = vmax.f32 %v5531_v38, %v10488_v3  ;;  %v6937_v33 = vmax.f32 %v15472_v28, %v6809_v34  ;;  %v6938_v29 = vmax.f32 %v15486_v45, %v6810_v59  ;;  %v15550_v28 = vpop.permute.xlu1 %556 }
 0x3bf   :  { %v7333_v54 = vrot.slane %v6867_v41, %v18123_v12  ;;  %v7675_v7 = vsel %vm7630_vm8, %v7325_v61, %v7674_v31  ;;  %v7609_v25 = vrot.slane %v6936_v20, %v18123_v12  ;;  %v2177_v60 = vmul.f32 %v15136_v40, %v18652_v62 }
 0x3c0   :  { %v7676_v58 = vsel %vm7632_vm9, %v7329_v53, %v7675_v7  ;;  %v6939_v10 = vmax.f32 %v15491_v32, %v6811_v42  ;;  %v7613_v17 = vrot.slane %v6937_v33, %v18123_v12  ;;  %v7617_v8 = vrot.slane %v6938_v29, %v18123_v12  ;;  %v18660_v53 = vld [vmem:[#allocation28_spill] sm:$0xff]  ;;  %v15622_v29 = vpop.permute.xlu0 %571 }
 0x3c1   :  { %v7677_v45 = vsel %vm7634_vm10, %v7333_v54, %v7676_v58  ;;  %v7737_v18 = vsel %vm7628_vm7, %v7609_v25, %v15494_v27  ;;  %v2397_v15 = vrot.slane %v2177_v60, 1  ;;  %v2665_v0 = vmul.f32 %v15060_v21, %v18652_v62  ;;  %v18662_v60 = vld [vmem:[#allocation147_spill] sm:$0xff]  ;;  %v18663_v58 = vld [vmem:[#allocation160_spill] sm:$0xff] }
 0x3c2   :  { %v15561_v32 = vmul.f32 %v15278_v56, %v15435_v43  ;;  %7764 = vst.msk [vmem:[#allocation3 + $0x71] sm:$0xff] %vm6940_vm11, %v7677_v45  ;;  %v7621_v2 = vrot.slane %v6939_v10, %v18123_v12  ;;  %v7738_v44 = vsel %vm7630_vm8, %v7613_v17, %v7737_v18  ;;  %v15568_v6 = vmul.f32 %v15060_v21, %v18633_v48  ;;  %v15611_v42 = vpop.permute.xlu1 %566 }
 0x3c3   :  { %v18653_v27 = vmax.f32 %v15131_v19, %v15189_v4  ;;  %v7668_v50 = vsel %vm7630_vm8, %v15219_v51, %v15238_v47  ;;  %v15581_v23 = vmul.f32 %v18655_v24, %v15435_v43  ;;  %v7739_v13 = vsel %vm7632_vm9, %v7617_v8, %v7738_v44  ;;  %v18657_v4 = vld [vmem:[#allocation204_spill] sm:$0xff] }
 0x3c4   :  { %v7740_v55 = vsel %vm7634_vm10, %v7621_v2, %v7739_v13  ;;  %v18656_v5 = vrot.slane %v15416_v57, 1  ;;  %v2885_v3 = vrot.slane %v2665_v0, 2  ;;  %v17835_v19 = vrot.slane %v15568_v6, 2 }
 0x3c5   :  { %v15574_v38 = vrot.slane %v18653_v27, %v18123_v12  ;;  %v18658_v34 = vrot.slane %v18657_v4, 2  ;;  %v18659_v59 = vrot.slane %v15303_v14, 2  ;;  %v2400_v47 = vrot.slane %v15443_v46, 1  ;;  %7773 = vst.msk [vmem:[#allocation3 + $0x121] sm:$0xff] %vm6940_vm11, %v7740_v55 }
 0x3c6   :  { %v2399_v35 = vsel %vm1183_vm2, %v2397_v15, %v18656_v5  ;;  %v15597_v41 = vmul.f32 %v15060_v21, %v15435_v43  ;;  %v15603_v20 = vsel %vm7632_vm9, %v18660_v53, %v7668_v50  ;;  %v3319_v46 = vmul.f32 %v15357_v39, %v15527_v63 }
 0x3c7   :  { %18654 = vst [vmem:[#allocation198_spill] sm:$0xff] %v15574_v38  ;;  %v1747_v51 = vsel %vm1672_vm3, %v18659_v59, %v18658_v34  ;;  %v2579_v61 = vadd.f32 %v2399_v35, %v15521_v52  ;;  %18661 = vst [vmem:[#allocation211_spill] sm:$0xff] %v15603_v20  ;;  %v15616_v33 = vmul.f32 %v15136_v40, %v15527_v63  ;;  %v18664_v17 = vmov %v18656_v5 }
 0x3c8   :  { %v15606_v31 = vadd.f32 %v1747_v51, %v15401_v11  ;;  %v3159_v52 = vmul.f32 %v15289_v16, %v15527_v63  ;;  %v3807_v11 = vmul.f32 %v15367_v36, %v15527_v63  ;;  %v2887_v54 = vsel %vm1672_vm3, %v2885_v3, %v17835_v19 }
 0x3c9   :  { %v15629_v7 = vmul.f32 %v15357_v39, %v15531_v22  ;;  %v15633_v25 = vmul.f32 %v15367_v36, %v15531_v22  ;;  %v7712_v10 = vsel %vm7634_vm10, %v18663_v58, %v18662_v60  ;;  %v15641_v8 = vsel %vm1183_vm2, %v18664_v17, %v2400_v47  ;;  %v18667_v47 = vld [vmem:[#allocation8_spill] sm:$0xff]  ;;  %v18670_v60 = vld [vmem:[#allocation14_spill] sm:$0xff]  ;;  %v18671_v58 = vld [vmem:[#allocation17_spill] sm:$0xff] }
 0x3ca   :  { %v3067_v18 = vadd.f32 %v2887_v54, %v2579_v61  ;;  %v15646_v15 = vmul.f32 %v15327_v49, %v15527_v63  ;;  %7769 = vst.msk [vmem:[#allocation3 + $0xe1] sm:$0xff] %vm6940_vm11, %v7712_v10  ;;  %v3539_v0 = vrot.slane %v3319_v46, 1  ;;  %v15651_v2 = vmul.f32 %v15136_v40, %v15531_v22  ;;  %v18668_v61 = vld [vmem:[#allocation176_spill] sm:$0xff]  ;;  %v15688_v46 = vpop.permute.xlu0 %581 }
 0x3cb   :  { %v17834_v44 = vrot.slane %v15629_v7, 1  ;;  %v17833_v57 = vrot.slane %v15633_v25, 2  ;;  %v15658_v50 = vmul.f32 %v15060_v21, %v15527_v63  ;;  %v15662_v55 = vmul.f32 %v15278_v56, %v15557_v9  ;;  %v15675_v63 = vpop.permute.xlu1 %576  ;;  %18669 = vst [vmem:[#allocation30_spill] sm:$0xff] %v15688_v46 }
 0x3cc   :  { %v3223_v13 = vadd.f32 %v3159_v52, %v3067_v18  ;;  %v4027_v5 = vrot.slane %v3807_v11, 2  ;;  %v15666_v35 = vmul.f32 %v15327_v49, %v15531_v22  ;;  %v15673_v4 = vmul.f32 %v18655_v24, %v15557_v9  ;;  %18666 = vst [vmem:[#allocation24_spill] sm:$0xff] %v15675_v63 }
 0x3cd   :  { %v3541_v3 = vsel %vm1183_vm2, %v3539_v0, %v17834_v44  ;;  %v15679_v34 = vmul.f32 %v15060_v21, %v15531_v22  ;;  %v15683_v51 = vmul.f32 %v15136_v40, %v15557_v9  ;;  %v7726_v53 = vsel %vm7634_vm10, %v18668_v61, %v18667_v47 }
 0x3ce   :  { %18665 = vst [vmem:[#allocation196_spill] sm:$0xff] %v15666_v35  ;;  %v3721_v59 = vadd.f32 %v3541_v3, %v3223_v13  ;;  %v15693_v11 = vmul.f32 %v15289_v16, %v15531_v22  ;;  %v4029_v54 = vsel %vm1672_vm3, %v4027_v5, %v17833_v57  ;;  %7771 = vst.msk [vmem:[#allocation3 + $0x101] sm:$0xff] %vm6940_vm11, %v7726_v53  ;;  %v15758_v57 = vpop.permute.xlu0 %2121 }
 0x3cf   :  { %v7649_v10 = vsel %vm7634_vm10, %v18671_v58, %v18670_v60  ;;  %v15704_v18 = vmul.f32 %v15180_v26, %v15557_v9  ;;  %v15709_v22 = vmul.f32 %v15327_v49, %v15557_v9  ;;  %v15721_v47 = vmul.f32 %v15289_v16, %v15557_v9  ;;  %v15751_v52 = vpop.permute.xlu1 %586 }
 0x3d0   :  { %v4209_v17 = vadd.f32 %v4029_v54, %v3721_v59  ;;  %7760 = vst.msk [vmem:[#allocation3 + $0x31] sm:$0xff] %vm6940_vm11, %v7649_v10  ;;  %v15717_v59 = vmul.f32 %v15060_v21, %v15557_v9  ;;  %v15725_v61 = vmul.f32 %v15357_v39, %v15557_v9  ;;  %v15733_v58 = vmul.f32 %v15367_v36, %v15557_v9 }
 0x3d1   :  { %v15712_v13 = vld [vmem:[#allocation3 + $0xe0] sm:$0xff]  ;;  %v7803_v5 = vld [vmem:[#allocation3 + $0xe8] sm:$0x3]  ;;  %v15737_v10 = vmul.f32 %v15278_v56, %v15622_v29  ;;  %v15741_v43 = vmul.f32 %v18655_v24, %v15622_v29  ;;  %v15745_v14 = vmul.f32 %v15136_v40, %v15622_v29  ;;  %v15749_v27 = vmul.f32 %v15060_v21, %v15622_v29  ;;  %18678 = vst [vmem:[#allocation203_spill] sm:$0xff] %v15751_v52 }
 0x3d2   :  { %18672 = vst [vmem:[#allocation199_spill] sm:$0xff] %v15712_v13  ;;  %18673 = vst [vmem:[#allocation205_spill] sm:$0xff] %v15717_v59  ;;  %v7898_v53 = vrot.slane %v15712_v13, 1  ;;  %v7899_v54 = vrot.slane %v7803_v5, 1  ;;  %v4280_v9 = vadd.f32 %v15397_v1, %v4209_v17  ;;  %v8011_v3 = vrot.slane %v15712_v13, 2 }
 0x3d3   :  { %7826 = vst.msk [vmem:[#allocation4 + $0x120] sm:$0xff] %vm6940_vm11, %v15712_v13  ;;  %18674 = vst [vmem:[#allocation200_spill] sm:$0xff] %v15737_v10  ;;  %v8012_v0 = vrot.slane %v7803_v5, 2  ;;  %v15768_v17 = vmul.f32 %v15180_v26, %v15622_v29  ;;  %v15779_v19 = vmul.f32 %v15327_v49, %v15622_v29  ;;  %v15783_v21 = vmul.f32 %v15367_v36, %v15622_v29 }
 0x3d4   :  { %18675 = vst [vmem:[#allocation208_spill] sm:$0xff] %v15741_v43  ;;  %18676 = vst [vmem:[#allocation209_spill] sm:$0xff] %v15745_v14  ;;  %v15755_v60 = vsel %vm1183_vm2, %v7898_v53, %v7899_v54  ;;  %v15772_v53 = vmul.f32 %v15357_v39, %v15622_v29  ;;  %v15799_v38 = vmul.f32 %v15289_v16, %v15622_v29  ;;  %v908_v14 = vpop.permute.xlu1 %907 }
 0x3d5   :  { %18677 = vst [vmem:[#allocation207_spill] sm:$0xff] %v15749_v27  ;;  %18679 = vst [vmem:[#allocation206_spill] sm:$0xff] %v15755_v60  ;;  %7934 = vrot.lane.b32.xlu0 %v15755_v60, %s10782_s0  ;;  %v15775_v54 = vld [vmem:[#allocation3 + $0x100] sm:$0xff]  ;;  %v15786_v44 = vsel %vm1672_vm3, %v8011_v3, %v8012_v0  ;;  %v15788_v26 = vld [vmem:[#allocation3 + $0x108] sm:$0x3]  ;;  %v15805_v3 = vmax.f32 %v4280_v9, 0.0  ;;  %v2018_v52 = vmul.f32 %v15327_v49, %v18633_v48 }
 0x3d6   :  { %8190 = vst.msk [vmem:[#allocation4 + $0x110] sm:$0xff] %vm6940_vm11, %v15755_v60  ;;  %18680 = vst [vmem:[#allocation210_spill] sm:$0xff] %v15768_v17  ;;  %v7904_v13 = vrot.slane %v15775_v54, 1  ;;  %v7905_v29 = vrot.slane %v15788_v26, 1  ;;  %v15824_v60 = vmul.f32 %v15278_v56, %v15688_v46  ;;  %v3321_v5 = vmul.f32 %v15357_v39, %v15758_v57 }
 0x3d7   :  { %18681 = vst [vmem:[#allocation21_spill] sm:$0xff] %v15772_v53  ;;  %18682 = vst [vmem:[#allocation35_spill] sm:$0xff] %v15775_v54  ;;  %v15792_v45 = vld [vmem:[#allocation3 + $0x30] sm:$0xff]  ;;  %v15803_v0 = vld [vmem:[#allocation3 + $0x38] sm:$0x3]  ;;  %v913_v53 = vpop.permute.xlu0 %912  ;;  %v15833_v43 = vmul.f32 %v18655_v24, %v15688_v46 }
 0x3d8   :  { %18683 = vst [vmem:[#allocation27_spill] sm:$0xff] %v15779_v19  ;;  %18684 = vst [vmem:[#allocation44_spill] sm:$0xff] %v15783_v21  ;;  %8269 = vrot.lane.b32.xlu1 %v15792_v45, %s10783_s14  ;;  %v7871_v9 = vrot.slane %v15792_v45, 1  ;;  %v7872_v20 = vrot.slane %v15803_v0, 1  ;;  %v15827_v27 = vsel %vm1183_vm2, %v7904_v13, %v7905_v29  ;;  %v2082_v21 = vadd.f32 %v2018_v52, %v15606_v31 }
 0x3d9   :  { %18685 = vst [vmem:[#allocation40_spill] sm:$0xff] %v15786_v44  ;;  %7828 = vst.msk [vmem:[#allocation4 + $0x150] sm:$0xff] %vm6940_vm11, %v15775_v54  ;;  %8291 = vrot.lane.b32.xlu0 %v15775_v54, %s10783_s14  ;;  %v3809_v13 = vmul.f32 %v15367_v36, %v15758_v57  ;;  %v4920_v29 = vcombine.high %v15805_v3, %v15805_v3  ;;  %v15858_v31 = vmul.f32 %v15327_v49, %v15688_v46 }
 0x3da   :  { %18686 = vst [vmem:[#allocation36_spill] sm:$0xff] %v15792_v45  ;;  %18687 = vst [vmem:[#allocation25_spill] sm:$0xff] %v15799_v38  ;;  %v15838_v17 = vsel %vm1183_vm2, %v7871_v9, %v7872_v20  ;;  %v3542_v20 = vrot.slane %v3321_v5, 1  ;;  %v1041_v9 = vmul.f32 %v15278_v56, %v908_v14  ;;  %v2580_v52 = vadd.f32 %v15641_v8, %v2082_v21  ;;  %v15870_v5 = vld [vmem:[%s17602_s1 + $0x5] ss:$0 sm:$0xff] }
 0x3db   :  { %8435 = vst.msk [vmem:[#allocation4 + $0x100] sm:$0xff] %vm6940_vm11, %v15786_v44  ;;  %7817 = vst.msk [vmem:[#allocation4 + $0x48] sm:$0xff] %vm6940_vm11, %v15792_v45  ;;  %v1044_v10 = vmul.f32 %v15278_v56, %v913_v53  ;;  %v18699_v8 = vrot.slane %v15568_v6, 2  ;;  %v18700_v19 = vrot.slane %v15629_v7, 1  ;;  %v4030_v63 = vrot.slane %v3809_v13, 2 }
 0x3dc   :  { %18688 = vst [vmem:[#allocation22_spill] sm:$0xff] %v15824_v60  ;;  %18689 = vst [vmem:[#allocation45_spill] sm:$0xff] %v15827_v27  ;;  %v15847_v60 = vrot.slane %v15805_v3, %v18343_v30  ;;  %v1530_v3 = vmul.f32 %v18655_v24, %v908_v14  ;;  %v1267_v21 = vrot.slane %v1041_v9, 1  ;;  %v1533_v6 = vmul.f32 %v18655_v24, %v913_v53  ;;  %v15906_v24 = vld [vmem:[%s17602_s1 + $0x4] ss:$0 sm:$0xff] }
 0x3dd   :  { %18690 = vst [vmem:[#allocation41_spill] sm:$0xff] %v15833_v43  ;;  %8192 = vst.msk [vmem:[#allocation4 + $0x140] sm:$0xff] %vm6940_vm11, %v15827_v27  ;;  %v18693_v43 = vld [vmem:[#allocation9_spill] sm:$0xff]  ;;  %8047 = vrot.lane.b32.xlu0 %v15786_v44, %s10783_s14  ;;  %v15874_v44 = vmul.f32 %v15870_v5, %v15688_v46  ;;  %v15893_v9 = vmul.f32 %v15289_v16, %v15688_v46 }
 0x3de   :  { %18691 = vst [vmem:[#allocation15_spill] sm:$0xff] %v15838_v17  ;;  %18692 = vst [vmem:[#allocation42_spill] sm:$0xff] %v15847_v60  ;;  %8025 = vrot.lane.b32.xlu1 %v18693_v43, %s10783_s14  ;;  %v15865_v43 = vmul.f32 %v15136_v40, %v15688_v46  ;;  %v1756_v59 = vrot.slane %v1530_v3, 2  ;;  %v18701_v60 = vld [vmem:[#allocation128_spill] sm:$0xff]  ;;  %v2673_v3 = vmul.f32 %v15870_v5, %v913_v53 }
 0x3df   :  { %8181 = vst.msk [vmem:[#allocation4 + $0x38] sm:$0xff] %vm6940_vm11, %v15838_v17  ;;  %18694 = vst [vmem:[#allocation37_spill] sm:$0xff] %v15858_v31  ;;  %v18698_v31 = vrot.slane %v15597_v41, 2  ;;  %v18702_v35 = vrot.slane %v18701_v60, 1  ;;  %v1272_v41 = vrot.slane %v1044_v10, 1  ;;  %v18705_v60 = vld [vmem:[#allocation137_spill] sm:$0xff] }
 0x3e0   :  { %18695 = vst [vmem:[#allocation39_spill] sm:$0xff] %v15865_v43  ;;  %18696 = vst [vmem:[#allocation33_spill] sm:$0xff] %v15870_v5  ;;  %v3543_v43 = vsel %vm1183_vm2, %v18700_v19, %v3542_v20  ;;  %v15897_v19 = vmul.f32 %v15357_v39, %v15688_v46  ;;  %v18708_v10 = vld [vmem:[#allocation129_spill] sm:$0xff] }
 0x3e1   :  { %18697 = vst [vmem:[#allocation46_spill] sm:$0xff] %v15874_v44  ;;  %v2889_v14 = vsel %vm1672_vm3, %v18699_v8, %v18698_v31  ;;  %v1268_v44 = vsel %vm1183_vm2, %v18702_v35, %v1267_v21  ;;  %v2185_v31 = vmul.f32 %v15136_v40, %v913_v53  ;;  %18703 = vst [vmem:[#allocation51_spill] sm:$0xff] %v15893_v9  ;;  %8363 = vrot.lane.b32.xlu0 %v15827_v27, %s10784_s19 }
 0x3e2   :  { %v3068_v38 = vadd.f32 %v2889_v14, %v2580_v52  ;;  %8341 = vrot.lane.b32.xlu1 %v15838_v17, %s10784_s19  ;;  %18704 = vst [vmem:[#allocation47_spill] sm:$0xff] %v15897_v19  ;;  %v1441_v35 = vadd.f32 %v1268_v44, %v18705_v60  ;;  %18706 = vst [vmem:[#allocation54_spill] sm:$0xff] %v15906_v24  ;;  %v15910_v40 = vmul.f32 %v15906_v24, %v15758_v57  ;;  %v18712_v17 = vld [vmem:[#allocation190_spill] sm:$0xff] }
 0x3e3   :  { %v18709_v13 = vrot.slane %v18708_v10, 2  ;;  %v2410_v52 = vrot.slane %v2185_v31, 1  ;;  %v7984_v14 = vrot.slane %v15792_v45, 2  ;;  %v18711_v21 = vrot.slane %v15633_v25, 2  ;;  %v18713_v10 = vld [vmem:[#allocation132_spill] sm:$0xff] }
 0x3e4   :  { %v3224_v7 = vadd.f32 %v15693_v11, %v3068_v38  ;;  %18707 = vst [vmem:[#allocation48_spill] sm:$0xff] %v15910_v40  ;;  %v18710_v38 = vld [vmem:[#allocation131_spill] sm:$0xff]  ;;  %v18714_v27 = vrot.slane %v18713_v10, 1  ;;  %v1761_v31 = vrot.slane %v1533_v6, 2  ;;  %v7985_v53 = vrot.slane %v15803_v0, 2 }
 0x3e5   :  { %v1757_v20 = vsel %vm1672_vm3, %v18709_v13, %v1756_v59  ;;  %v2022_v44 = vmul.f32 %v15327_v49, %v18710_v38  ;;  %v4031_v60 = vsel %vm1672_vm3, %v18711_v21, %v4030_v63  ;;  %8114 = vrot.lane.b32.xlu0 %v18629_v37, %s10784_s19  ;;  %v8018_v25 = vrot.slane %v15788_v26, 2  ;;  %v18715_v63 = vld [vmem:[#allocation134_spill] sm:$0xff] }
 0x3e6   :  { %v3722_v8 = vadd.f32 %v3543_v43, %v3224_v7  ;;  %v1930_v11 = vadd.f32 %v1757_v20, %v1441_v35  ;;  %8092 = vrot.lane.b32.xlu1 %v18712_v17, %s10784_s19  ;;  %v1273_v59 = vsel %vm1183_vm2, %v18714_v27, %v1272_v41  ;;  %v8017_v35 = vrot.slane %v15775_v54, 2  ;;  %v18718_v41 = vld [vmem:[#allocation142_spill] sm:$0xff] }
 0x3e7   :  { %v18716_v13 = vrot.slane %v18715_v63, 1  ;;  %v2898_v20 = vrot.slane %v2673_v3, 2  ;;  %v15936_v38 = vsel %vm1672_vm3, %v7984_v14, %v7985_v53  ;;  %v15940_v27 = vmul.f32 %v15278_v56, %v15550_v28  ;;  %v18724_v53 = vld [vmem:[#allocation135_spill] sm:$0xff]  ;;  %v18735_v54 = vld [vmem:[#allocation146_spill] sm:$0xff] }
 0x3e8   :  { %v4210_v43 = vadd.f32 %v4031_v60, %v3722_v8  ;;  %v2086_v7 = vadd.f32 %v2022_v44, %v1930_v11  ;;  %18717 = vst [vmem:[#allocation57_spill] sm:$0xff] %v15936_v38  ;;  %v1443_v6 = vadd.f32 %v1273_v59, %v18718_v41  ;;  %8426 = vst.msk [vmem:[#allocation4 + $0x28] sm:$0xff] %vm6940_vm11, %v15936_v38  ;;  %v18722_v44 = vld [vmem:[#allocation133_spill] sm:$0xff]  ;;  %v918_v41 = vpop.permute.xlu1 %917 }
 0x3e9   :  { %v2411_v17 = vsel %vm1183_vm2, %v18716_v13, %v2410_v52  ;;  %v15947_v26 = vsel %vm1672_vm3, %v8017_v35, %v8018_v25  ;;  %v15950_v52 = vrot.slane %v4920_v29, %v18343_v30  ;;  %v15954_v3 = vmul.f32 %v15870_v5, %v15758_v57  ;;  %8205 = vrot.lane.b32.xlu0 %v15936_v38, %s10782_s0  ;;  %v15971_v57 = vld [vmem:[%s17602_s1 + $0x2] ss:$0 sm:$0xff] }
 0x3ea   :  { %v4281_v0 = vadd.f32 %v15397_v1, %v4210_v43  ;;  %v2584_v8 = vadd.f32 %v2411_v17, %v2086_v7  ;;  %18719 = vst [vmem:[#allocation7_spill] sm:$0xff] %v15947_v26  ;;  %v18723_v11 = vrot.slane %v18722_v44, 2  ;;  %8437 = vst.msk [vmem:[#allocation4 + $0x130] sm:$0xff] %vm6940_vm11, %v15947_v26  ;;  %8227 = vrot.lane.b32.xlu1 %v15947_v26, %s10782_s0  ;;  %v1275_v29 = vrot.slane %v15940_v27, 1  ;;  %v18732_v44 = vld [vmem:[#allocation151_spill] sm:$0xff] }
 0x3eb   :  { %18720 = vst [vmem:[#allocation43_spill] sm:$0xff] %v15950_v52  ;;  %18721 = vst [vmem:[#allocation141_spill] sm:$0xff] %v15954_v3  ;;  %v3326_v21 = vmul.f32 %v15357_v39, %v15550_v28  ;;  %v15975_v60 = vmul.f32 %v15971_v57, %v15550_v28  ;;  %v15979_v10 = vmul.f32 %v15906_v24, %v15550_v28  ;;  %v18725_v43 = vrot.slane %v18724_v53, 2 }
 0x3ec   :  { %v1762_v14 = vsel %vm1672_vm3, %v18723_v11, %v1761_v31  ;;  %v15983_v59 = vmul.f32 %v15870_v5, %v15550_v28  ;;  %v4345_v31 = vmax.f32 %v4281_v0, 0.0  ;;  %v3814_v25 = vmul.f32 %v15367_v36, %v15550_v28  ;;  %v18727_v11 = vld [vmem:[#allocation144_spill] sm:$0xff] }
 0x3ed   :  { %v2899_v7 = vsel %vm1672_vm3, %v18725_v43, %v2898_v20  ;;  %v3550_v35 = vrot.slane %v3326_v21, 1  ;;  %v15992_v63 = vmul.f32 %v15367_v36, %v15688_v46  ;;  %v1932_v17 = vadd.f32 %v1762_v14, %v1443_v6  ;;  %v18729_v43 = vld [vmem:[#allocation138_spill] sm:$0xff]  ;;  %v16042_v46 = vpop.permute.xlu0 %922 }
 0x3ee   :  { %v3072_v27 = vadd.f32 %v2899_v7, %v2584_v8  ;;  %v2024_v0 = vmul.f32 %v15327_v49, %v15550_v28  ;;  %v3164_v20 = vmul.f32 %v15289_v16, %v15550_v28  ;;  %v18728_v21 = vrot.slane %v18727_v11, 1  ;;  %v18731_v7 = vld [vmem:[#allocation194_spill] sm:$0xff] }
 0x3ef   :  { %18726 = vst [vmem:[#allocation50_spill] sm:$0xff] %v15992_v63  ;;  %v18730_v38 = vrot.slane %v18729_v43, 1  ;;  %v1764_v6 = vrot.slane %v15975_v60, 2  ;;  %v2413_v8 = vrot.slane %v15979_v10, 1  ;;  %v2901_v14 = vrot.slane %v15983_v59, 2  ;;  %7914 = vrot.lane.b32.xlu0 %v18731_v7, %s10782_s0  ;;  %v18734_v59 = vld [vmem:[#allocation145_spill] sm:$0xff] }
 0x3f0   :  { %v3551_v53 = vsel %vm1183_vm2, %v18728_v21, %v3550_v35  ;;  %v4937_v49 = vcombine.high %v4345_v31, %v4345_v31  ;;  %v4038_v13 = vrot.slane %v3814_v25, 2  ;;  %v1047_v11 = vmul.f32 %v15278_v56, %v918_v41  ;;  %v16019_v60 = vld [vmem:[%s17602_s1] ss:$0 sm:$0xff] }
 0x3f1   :  { %v1276_v26 = vsel %vm1183_vm2, %v18730_v38, %v1275_v29  ;;  %v3725_v16 = vadd.f32 %v3551_v53, %v18732_v44  ;;  %v16014_v21 = vrot.slane %v4345_v31, %v18343_v30  ;;  %v2088_v43 = vadd.f32 %v2024_v0, %v1932_v17  ;;  %v18737_v17 = vld [vmem:[#allocation139_spill] sm:$0xff] }
 0x3f2   :  { %v3228_v38 = vadd.f32 %v3164_v20, %v3072_v27  ;;  %v732_v10 = vmul.f32 %v16019_v60, %v15550_v28  ;;  %v1444_v7 = vadd.f32 %v1276_v26, %v18734_v59  ;;  %v18736_v44 = vrot.slane %v18735_v54, 2  ;;  %v18740_v26 = vld [vmem:[#allocation140_spill] sm:$0xff] }
 0x3f3   :  { %18733 = vst [vmem:[#allocation52_spill] sm:$0xff] %v16014_v21  ;;  %v2188_v53 = vmul.f32 %v15906_v24, %v918_v41  ;;  %v3327_v31 = vmul.f32 %v15357_v39, %v918_v41  ;;  %v18738_v27 = vrot.slane %v18737_v17, 2  ;;  %v1277_v45 = vrot.slane %v1047_v11, 1 }
 0x3f4   :  { %v4039_v25 = vsel %vm1672_vm3, %v18736_v44, %v4038_v13  ;;  %v3815_v9 = vmul.f32 %v15367_v36, %v918_v41  ;;  %v16034_v28 = vrot.slane %v4937_v49, %v18343_v30  ;;  %v18741_v59 = vrot.slane %v18740_v26, 1  ;;  %v18742_v44 = vld [vmem:[#allocation143_spill] sm:$0xff] }
 0x3f5   :  { %v1765_v0 = vsel %vm1672_vm3, %v18738_v27, %v1764_v6  ;;  %v4213_v20 = vadd.f32 %v4039_v25, %v3725_v16  ;;  %v18743_v63 = vrot.slane %v18742_v44, 2  ;;  %v3552_v39 = vrot.slane %v3327_v31, 1 }
 0x3f6   :  { %18739 = vst [vmem:[#allocation49_spill] sm:$0xff] %v16034_v28  ;;  %v2414_v54 = vsel %vm1183_vm2, %v18741_v59, %v2413_v8  ;;  %v16046_v16 = vcombine.high %v16014_v21, %v16014_v21  ;;  %v1536_v49 = vmul.f32 %v15971_v57, %v918_v41  ;;  %v2676_v11 = vmul.f32 %v15870_v5, %v918_v41 }
 0x3f7   :  { %v2902_v19 = vsel %vm1672_vm3, %v18743_v63, %v2901_v14  ;;  %v4284_v36 = vadd.f32 %v15397_v1, %v4213_v20  ;;  %v2415_v25 = vrot.slane %v2188_v53, 1  ;;  %v3553_v17 = vsel %vm1183_vm2, %v3550_v35, %v3552_v39  ;;  %v18745_v20 = vld [vmem:[#allocation148_spill] sm:$0xff] }
 0x3f8   :  { %18744 = vst [vmem:[#allocation55_spill] sm:$0xff] %v16046_v16  ;;  %v4040_v27 = vrot.slane %v3815_v9, 2  ;;  %v1049_v63 = vmul.f32 %v15278_v56, %v15611_v42  ;;  %v1278_v26 = vsel %vm1183_vm2, %v1275_v29, %v1277_v45  ;;  %v3726_v59 = vadd.f32 %v3553_v17, %v3228_v38 }
 0x3f9   :  { %v4348_v31 = vmax.f32 %v4284_v36, 0.0  ;;  %v1050_v44 = vmul.f32 %v15278_v56, %v16042_v46  ;;  %v1933_v16 = vadd.f32 %v1765_v0, %v1444_v7  ;;  %v2585_v21 = vadd.f32 %v2414_v54, %v18745_v20 }
 0x3fa   :  { %v4041_v3 = vsel %vm1672_vm3, %v4038_v13, %v4040_v27  ;;  %v1280_v41 = vrot.slane %v1049_v63, 1  ;;  %v1766_v9 = vrot.slane %v1536_v49, 2  ;;  %v1445_v52 = vadd.f32 %v1278_v26, %v732_v10 }
 0x3fb   :  { %v4988_v53 = vcombine.high %v4348_v31, %v4348_v31  ;;  %v4995_v35 = vrot.slane %v4348_v31, %v18343_v30  ;;  %v4214_v39 = vadd.f32 %v4041_v3, %v3726_v59  ;;  %v2416_v36 = vsel %vm1183_vm2, %v2413_v8, %v2415_v25 }
 0x3fc   :  { %v2903_v40 = vrot.slane %v2676_v11, 2  ;;  %v1538_v45 = vmul.f32 %v15971_v57, %v15611_v42  ;;  %v2586_v29 = vadd.f32 %v2416_v36, %v2088_v43  ;;  %v1282_v7 = vrot.slane %v1050_v44, 1 }
 0x3fd   :  { %v5002_v56 = vrot.slane %v4988_v53, %v18343_v30  ;;  %v4285_v38 = vadd.f32 %v15397_v1, %v4214_v39  ;;  %v16067_v13 = vcombine.high %v16034_v28, %v16034_v28  ;;  %v5003_v0 = vcombine.high %v4995_v35, %v4995_v35  ;;  %v16084_v53 = vld [vmem:[%s17602_s1 + $0x3] ss:$0 sm:$0xff] }
 0x3fe   :  { %v18747_v3 = vrot.slane %v15662_v55, 1  ;;  %v1539_v8 = vmul.f32 %v15971_v57, %v16042_v46  ;;  %v3073_v54 = vadd.f32 %v2902_v19, %v2585_v21  ;;  %v1767_v11 = vsel %vm1672_vm3, %v1764_v6, %v1766_v9 }
 0x3ff   :  { %18746 = vst [vmem:[#allocation65_spill] sm:$0xff] %v16067_v13  ;;  %v5004_v49 = vcombine.high %v5002_v56, %v5002_v56  ;;  %v734_v1 = vmul.f32 %v16019_v60, %v15611_v42  ;;  %v10361_v43 = vrot.slane %v4995_v35, 9  ;;  %v2904_v25 = vsel %vm1672_vm3, %v2901_v14, %v2903_v40 }
 0x400   :  { %v1281_v10 = vsel %vm1183_vm2, %v18747_v3, %v1280_v41  ;;  %v4349_v17 = vmax.f32 %v4285_v38, 0.0  ;;  %v1769_v27 = vrot.slane %v1538_v45, 2  ;;  %v1934_v63 = vadd.f32 %v1767_v11, %v1445_v52 }
 0x401   :  { %v3074_v31 = vadd.f32 %v2904_v25, %v2586_v29  ;;  %v1283_v55 = vsel %vm1183_vm2, %v1280_v41, %v1282_v7  ;;  %v1446_v26 = vadd.f32 %v1281_v10, %v15704_v18  ;;  %v10362_v59 = vrot.slane %v5003_v0, 9 }
 0x402   :  { %v5005_v44 = vcombine.high %v4349_v17, %v4349_v17  ;;  %v5012_v19 = vrot.slane %v4349_v17, %v18343_v30  ;;  %v1771_v21 = vrot.slane %v1539_v8, 2  ;;  %v10363_v6 = vrot.slane %v5002_v56, 9  ;;  %v16126_v17 = vld [vmem:[%s17602_s1 + $0x6] ss:$0 sm:$0xff] }
 0x403   :  { %v10364_v20 = vrot.slane %v5004_v49, 9  ;;  %v2026_v40 = vmul.f32 %v16084_v53, %v15611_v42  ;;  %v2190_v52 = vmul.f32 %v15906_v24, %v15611_v42  ;;  %v16090_v14 = vmax.f32 %v4995_v35, %v10361_v43 }
 0x404   :  { %v18748_v18 = vrot.slane %v15673_v4, 2  ;;  %v2191_v9 = vmul.f32 %v15906_v24, %v16042_v46  ;;  %v16099_v39 = vmul.f32 %v15870_v5, %v15611_v42  ;;  %v5019_v36 = vrot.slane %v5005_v44, %v18343_v30 }
 0x405   :  { %v5020_v45 = vcombine.high %v5012_v19, %v5012_v19  ;;  %v10365_v29 = vrot.slane %v5012_v19, 9  ;;  %v16102_v38 = vadd.f32 %v1283_v55, %v734_v1  ;;  %v16104_v7 = vmax.f32 %v5003_v0, %v10362_v59  ;;  %v16139_v59 = vld [vmem:[%s17602_s1 + $0x7] ss:$0 sm:$0xff] }
 0x406   :  { %v1770_v41 = vsel %vm1672_vm3, %v18748_v18, %v1769_v27  ;;  %v16107_v35 = vsel %vm1672_vm3, %v1769_v27, %v1771_v21  ;;  %v2418_v3 = vrot.slane %v2190_v52, 1  ;;  %v16111_v10 = vmax.f32 %v5002_v56, %v10363_v6  ;;  %v18750_v18 = vld [vmem:[#allocation197_spill] sm:$0xff] }
 0x407   :  { %v16109_v4 = vadd.f32 %v1770_v41, %v1446_v26  ;;  %v16113_v8 = vmax.f32 %v5004_v49, %v10364_v20  ;;  %v2089_v11 = vadd.f32 %v15709_v22, %v1933_v16  ;;  %v16116_v43 = vadd.f32 %v2026_v40, %v1934_v63 }
 0x408   :  { %v2420_v25 = vrot.slane %v2191_v9, 1  ;;  %v16120_v1 = vmul.f32 %v15870_v5, %v16042_v46  ;;  %v3166_v56 = vmul.f32 %v16126_v17, %v15611_v42  ;;  %v5021_v49 = vcombine.high %v5019_v36, %v5019_v36 }
 0x409   :  { %v10366_v27 = vrot.slane %v5020_v45, 9  ;;  %v10367_v22 = vrot.slane %v5019_v36, 9  ;;  %v16130_v16 = vmax.f32 %v5012_v19, %v10365_v29  ;;  %v18749_v63 = vrot.slane %v15683_v51, 1  ;;  %v16148_v51 = vld [vmem:[%s17602_s1 + $0x8] ss:$0 sm:$0xff] }
 0x40a   :  { %v3229_v26 = vadd.f32 %v15721_v47, %v3073_v54  ;;  %v3329_v44 = vmul.f32 %v16139_v59, %v15611_v42  ;;  %v3330_v21 = vmul.f32 %v16139_v59, %v16042_v46  ;;  %v3230_v6 = vadd.f32 %v3166_v56, %v3074_v31  ;;  %v16162_v29 = vld [vmem:[%s17602_s1 + $0x1] ss:$0 sm:$0xff] }
 0x40b   :  { %v2419_v55 = vsel %vm1183_vm2, %v18749_v63, %v2418_v3  ;;  %v3817_v47 = vmul.f32 %v16148_v51, %v15611_v42  ;;  %v3818_v54 = vmul.f32 %v16148_v51, %v16042_v46  ;;  %v7901_v19 = vrot.slane %v18629_v37, 1 }
 0x40c   :  { %v16156_v20 = vsel %vm1183_vm2, %v2418_v3, %v2420_v25  ;;  %v3555_v40 = vrot.slane %v3329_v44, 1  ;;  %v3557_v52 = vrot.slane %v3330_v21, 1  ;;  %v7902_v31 = vrot.slane %v18750_v18, 1 }
 0x40d   :  { %v4043_v41 = vrot.slane %v3817_v47, 2  ;;  %v4045_v9 = vrot.slane %v3818_v54, 2  ;;  %v1036_v42 = vmul.f32 %v16162_v29, %v18652_v62  ;;  %v1037_v46 = vmul.f32 %v16162_v29, %v18633_v48 }
 0x40e   :  { %v18751_v3 = vrot.slane %v15725_v61, 1  ;;  %v3558_v56 = vsel %vm1183_vm2, %v3555_v40, %v3557_v52  ;;  %v16173_v63 = vsel %vm1183_vm2, %v7901_v19, %v7902_v31  ;;  %v1525_v44 = vmul.f32 %v15971_v57, %v18652_v62 }
 0x40f   :  { %18752 = vst [vmem:[#allocation58_spill] sm:$0xff] %v16173_v63  ;;  %v10368_v21 = vrot.slane %v5021_v49, 9  ;;  %v3728_v54 = vadd.f32 %v3558_v56, %v3230_v6  ;;  %v18753_v18 = vrot.slane %v15733_v58, 2  ;;  %7936 = vrot.lane.b32.xlu1 %v16173_v63, %s10782_s0  ;;  %8191 = vst.msk [vmem:[#allocation4 + $0x128] sm:$0xff] %vm6940_vm11, %v16173_v63  ;;  %v4046_v61 = vsel %vm1672_vm3, %v4043_v41, %v4045_v9 }
 0x410   :  { %v3556_v25 = vsel %vm1183_vm2, %v18751_v3, %v3555_v40  ;;  %v1259_v19 = vrot.slane %v1036_v42, 1  ;;  %v1260_v40 = vrot.slane %v1037_v46, 1  ;;  %v1526_v52 = vmul.f32 %v15971_v57, %v18633_v48  ;;  %v3108_v42 = vpop.permute.xlu1 %3107 }
 0x411   :  { %v3727_v47 = vadd.f32 %v3556_v25, %v3229_v26  ;;  %v4044_v0 = vsel %vm1672_vm3, %v18753_v18, %v4043_v41  ;;  %v4216_v26 = vadd.f32 %v4046_v61, %v3728_v54  ;;  %v725_v58 = vmul.f32 %v16019_v60, %v18652_v62  ;;  %v16198_v41 = vld [vmem:[%s17603_s2] ss:$0 sm:$0xff] }
 0x412   :  { %v1748_v6 = vrot.slane %v1525_v44, 2  ;;  %v16189_v3 = vmax.f32 %v5020_v45, %v10366_v27  ;;  %v1261_v56 = vsel %vm1183_vm2, %v1259_v19, %v1260_v40  ;;  %v1749_v18 = vrot.slane %v1526_v52, 2 }
 0x413   :  { %v4215_v31 = vadd.f32 %v4044_v0, %v3727_v47  ;;  %v16193_v63 = vmax.f32 %v5019_v36, %v10367_v22  ;;  %v4287_v9 = vadd.f32 %v16198_v41, %v4216_v26  ;;  %v1438_v62 = vadd.f32 %v1261_v56, %v725_v58 }
 0x414   :  { %v16202_v45 = vmax.f32 %v5021_v49, %v10368_v21  ;;  %v16204_v27 = vadd.f32 %v2419_v55, %v2089_v11  ;;  %v18754_v46 = vrot.slane %v15651_v2, 1  ;;  %v18755_v36 = vrot.slane %v15616_v33, 1 }
 0x415   :  { %v4286_v0 = vadd.f32 %v16198_v41, %v4215_v31  ;;  %v17867_v44 = vrot.slane %v15679_v34, 2  ;;  %v4351_v54 = vmax.f32 %v4287_v9, 0.0  ;;  %v1750_v61 = vsel %vm1672_vm3, %v1748_v6, %v1749_v18 }
 0x416   :  { %v2404_v22 = vsel %vm1183_vm2, %v18755_v36, %v18754_v46  ;;  %v2890_v19 = vrot.slane %v15658_v50, 2  ;;  %v1927_v52 = vadd.f32 %v1750_v61, %v1438_v62  ;;  %v16215_v49 = vmul.f32 %v16126_v17, %v3108_v42 }
 0x417   :  { %v4350_v47 = vmax.f32 %v4286_v0, 0.0  ;;  %v726_v11 = vmul.f32 %v16019_v60, %v18633_v48  ;;  %v18756_v55 = vrot.slane %v15561_v32, 1  ;;  %v5039_v26 = vcombine.high %v4351_v54, %v4351_v54 }
 0x418   :  { %v5046_v58 = vrot.slane %v4351_v54, %v18343_v30  ;;  %v2083_v6 = vadd.f32 %v15646_v15, %v1927_v52  ;;  %v2892_v50 = vsel %vm1672_vm3, %v2890_v19, %v17867_v44  ;;  %v16229_v56 = vmul.f32 %v16139_v59, %v3108_v42 }
 0x419   :  { %v1263_v33 = vsel %vm1183_vm2, %v1260_v40, %v18756_v55  ;;  %v5022_v21 = vcombine.high %v4350_v47, %v4350_v47  ;;  %v5029_v31 = vrot.slane %v4350_v47, %v18343_v30  ;;  %v5053_v40 = vrot.slane %v5039_v26, %v18343_v30 }
 0x41a   :  { %v1439_v48 = vadd.f32 %v1263_v33, %v726_v11  ;;  %v5054_v9 = vcombine.high %v5046_v58, %v5046_v58  ;;  %v10373_v46 = vrot.slane %v5046_v58, 9  ;;  %v2581_v36 = vadd.f32 %v2404_v22, %v2083_v6 }
 0x41b   :  { %v5036_v32 = vrot.slane %v5022_v21, %v18343_v30  ;;  %v5037_v0 = vcombine.high %v5029_v31, %v5029_v31  ;;  %v10369_v62 = vrot.slane %v5029_v31, 9  ;;  %v18757_v47 = vrot.slane %v15581_v23, 2 }
 0x41c   :  { %v5055_v61 = vcombine.high %v5053_v40, %v5053_v40  ;;  %v10374_v55 = vrot.slane %v5054_v9, 9  ;;  %v10375_v25 = vrot.slane %v5053_v40, 9  ;;  %v6696_v33 = vmax.f32 %v5046_v58, %v10373_v46  ;;  %v18763_v46 = vld [vmem:[#allocation196_spill] sm:$0xff] }
 0x41d   :  { %v1752_v15 = vsel %vm1672_vm3, %v1749_v18, %v18757_v47  ;;  %v5038_v54 = vcombine.high %v5036_v32, %v5036_v32  ;;  %v10370_v19 = vrot.slane %v5037_v0, 9  ;;  %v10371_v52 = vrot.slane %v5036_v32, 9 }
 0x41e   :  { %v6692_v11 = vmax.f32 %v5029_v31, %v10369_v62  ;;  %v10376_v44 = vrot.slane %v5055_v61, 9  ;;  %v6697_v13 = vmax.f32 %v5054_v9, %v10374_v55  ;;  %v6698_v28 = vmax.f32 %v5053_v40, %v10375_v25 }
 0x41f   :  { %v10372_v21 = vrot.slane %v5038_v54, 9  ;;  %v6693_v37 = vmax.f32 %v5037_v0, %v10370_v19  ;;  %v6694_v26 = vmax.f32 %v5036_v32, %v10371_v52  ;;  %v6880_v23 = vmax.f32 %v16130_v16, %v6696_v33  ;;  %v3113_v0 = vpop.permute.xlu0 %3112  ;;  %v18764_v52 = vld [vmem:[#allocation42_spill] sm:$0xff]  ;;  %v18765_v33 = vld [vmem:[#allocation43_spill] sm:$0xff] }
 0x420   :  { %v6876_v22 = vmax.f32 %v16090_v14, %v6692_v11  ;;  %v6699_v18 = vmax.f32 %v5055_v61, %v10376_v44  ;;  %v6881_v24 = vmax.f32 %v16189_v3, %v6697_v13  ;;  %v6882_v31 = vmax.f32 %v16193_v63, %v6698_v28 }
 0x421   :  { %v6695_v6 = vmax.f32 %v5038_v54, %v10372_v21  ;;  %v6877_v47 = vmax.f32 %v16104_v7, %v6693_v37  ;;  %v6878_v5 = vmax.f32 %v16111_v10, %v6694_v26  ;;  %v1928_v32 = vadd.f32 %v1752_v15, %v1439_v48  ;;  %v18758_v10 = vld [vmem:[#allocation48_spill] sm:$0xff] }
 0x422   :  { %v7369_v58 = vrot.slane %v6876_v22, %v18123_v12  ;;  %v6883_v14 = vmax.f32 %v16202_v45, %v6699_v18  ;;  %v7385_v37 = vrot.slane %v6880_v23, %v18123_v12  ;;  %v3544_v7 = vrot.slane %v16229_v56, 1 }
 0x423   :  { %v6879_v25 = vmax.f32 %v16113_v8, %v6695_v6  ;;  %v7373_v16 = vrot.slane %v6877_v47, %v18123_v12  ;;  %v7377_v44 = vrot.slane %v6878_v5, %v18123_v12  ;;  %v3810_v13 = vmul.f32 %v16148_v51, %v3108_v42 }
 0x424   :  { %v18759_v28 = vrot.slane %v18758_v10, 1  ;;  %v18760_v63 = vrot.slane %v15651_v2, 1  ;;  %v7389_v45 = vrot.slane %v6881_v24, %v18123_v12  ;;  %v16259_v5 = vmul.f32 %v16139_v59, %v3113_v0 }
 0x425   :  { %v7381_v8 = vrot.slane %v6879_v25, %v18123_v12  ;;  %v7685_v48 = vsel %vm7622_vm4, %v7373_v16, %v7369_v58  ;;  %v7393_v40 = vrot.slane %v6882_v31, %v18123_v12  ;;  %v3069_v42 = vadd.f32 %v2892_v50, %v2581_v36  ;;  %v18766_v25 = vld [vmem:[#allocation186_spill] sm:$0xff]  ;;  %v18769_v16 = vld [vmem:[#allocation19_spill] sm:$0xff] }
 0x426   :  { %v2406_v3 = vsel %vm1183_vm2, %v18760_v63, %v18759_v28  ;;  %18761 = vst [vmem:[#allocation67_spill] sm:$0xff] %v16259_v5  ;;  %v7686_v56 = vsel %vm7624_vm5, %v7377_v44, %v7685_v48  ;;  %v16264_v9 = vmul.f32 %v16148_v51, %v3113_v0  ;;  %v7397_v2 = vrot.slane %v6883_v14, %v18123_v12  ;;  %v18768_v14 = vld [vmem:[#allocation202_spill] sm:$0xff] }
 0x427   :  { %v7687_v62 = vsel %vm7626_vm6, %v7381_v8, %v7686_v56  ;;  %v2084_v15 = vadd.f32 %v18763_v46, %v1928_v32  ;;  %v17877_v24 = vrot.slane %v16259_v5, 1  ;;  %v3225_v61 = vadd.f32 %v16215_v49, %v3069_v42  ;;  %v18774_v8 = vld [vmem:[#allocation205_spill] sm:$0xff] }
 0x428   :  { %18762 = vst [vmem:[#allocation61_spill] sm:$0xff] %v16264_v9  ;;  %v7688_v54 = vsel %vm7628_vm7, %v7385_v37, %v7687_v62  ;;  %v17876_v19 = vrot.slane %v16264_v9, 2  ;;  %v4935_v50 = vcombine.high %v18764_v52, %v18764_v52  ;;  %v4032_v55 = vrot.slane %v3810_v13, 2  ;;  %v18770_v37 = vld [vmem:[#allocation141_spill] sm:$0xff]  ;;  %v18778_v62 = vld [vmem:[#allocation24_spill] sm:$0xff] }
 0x429   :  { %v7689_v36 = vsel %vm7630_vm8, %v7389_v45, %v7688_v54  ;;  %v3546_v11 = vsel %vm1183_vm2, %v3544_v7, %v17877_v24  ;;  %v4936_v21 = vcombine.high %v18765_v33, %v18765_v33  ;;  %v2588_v26 = vadd.f32 %v16156_v20, %v16116_v43  ;;  %v18767_v43 = vld [vmem:[#allocation180_spill] sm:$0xff] }
 0x42a   :  { %v7690_v49 = vsel %vm7632_vm9, %v7393_v40, %v7689_v36  ;;  %v2582_v22 = vadd.f32 %v2406_v3, %v2084_v15  ;;  %v3723_v23 = vadd.f32 %v3546_v11, %v3225_v61  ;;  %v3162_v18 = vmul.f32 %v16126_v17, %v3113_v0 }
 0x42b   :  { %v7691_v6 = vsel %vm7634_vm10, %v7397_v2, %v7690_v49  ;;  %v4034_v47 = vsel %vm1672_vm3, %v4032_v55, %v17876_v19  ;;  %v10345_v31 = vrot.slane %v18764_v52, 9  ;;  %v10346_v32 = vrot.slane %v4935_v50, 9  ;;  %v10712_v19 = vld [vmem:[%s17604_s3 + $0x78] sm:$0xff]  }
 0x42c   :  { %7766 = vst.msk [vmem:[#allocation3 + $0xb1] sm:$0xff] %vm6940_vm11, %v7691_v6  ;;  %v4211_v58 = vadd.f32 %v4034_v47, %v3723_v23  ;;  %v7656_v20 = vsel %vm7634_vm10, %v18767_v43, %v18766_v25  ;;  %v7733_v44 = vsel %vm7634_vm10, %v18769_v16, %v18768_v14  ;;  %v1936_v0 = vadd.f32 %v16107_v35, %v16102_v38  ;;  %v18784_v25 = vld [vmem:[#allocation33_spill] sm:$0xff] }
 0x42d   :  { %v18771_v7 = vrot.slane %v18770_v37, 2  ;;  %v18772_v13 = vrot.slane %v15679_v34, 2  ;;  %v10347_v28 = vrot.slane %v18765_v33, 9  ;;  %v10348_v63 = vrot.slane %v4936_v21, 9  ;;  %7761 = vst.msk [vmem:[#allocation3 + $0x41] sm:$0xff] %vm6940_vm11, %v7656_v20  ;;  %7772 = vst.msk [vmem:[#allocation3 + $0x111] sm:$0xff] %vm6940_vm11, %v7733_v44 }
 0x42e   :  { %v18773_v3 = vrot.slane %v16099_v39, 2  ;;  %v18775_v45 = vrot.slane %v18774_v8, 2  ;;  %v18776_v38 = vrot.slane %v16120_v1, 2  ;;  %v4282_v56 = vadd.f32 %v16198_v41, %v4211_v58  ;;  %v18785_v16 = vld [vmem:[#allocation25_spill] sm:$0xff]  ;;  %v18787_v8 = vld [vmem:[#allocation200_spill] sm:$0xff] }
 0x42f   :  { %v2894_v10 = vsel %vm1672_vm3, %v18772_v13, %v18771_v7  ;;  %v1052_v46 = vmul.f32 %v16162_v29, %v18778_v62  ;;  %v16323_v15 = vmul.f32 %v15971_v57, %v18778_v62  ;;  %v16328_v39 = vmax.f32 %v18764_v52, %v10345_v31  ;;  %v18780_v52 = vld [vmem:[#allocation27_spill] sm:$0xff] }
 0x430   :  { %v2907_v48 = vsel %vm1672_vm3, %v18775_v45, %v18773_v3  ;;  %v18777_v35 = vmov %v18773_v3  ;;  %v3070_v40 = vadd.f32 %v2894_v10, %v2582_v22  ;;  %v4346_v1 = vmax.f32 %v4282_v56, 0.0  ;;  %v16384_v13 = vld [vmem:[#allocation3 + $0x70] sm:$0xff] }
 0x431   :  { %v2909_v34 = vsel %vm1672_vm3, %v18777_v35, %v18776_v38  ;;  %v3075_v42 = vadd.f32 %v2907_v48, %v16204_v27  ;;  %v16330_v61 = vmax.f32 %v4935_v50, %v10346_v32  ;;  %v16333_v36 = vmax.f32 %v18765_v33, %v10347_v28  ;;  %v18781_v50 = vld [vmem:[#allocation54_spill] sm:$0xff]  ;;  %v16350_v33 = vpop.permute.xlu1 %927  ;;  %18786 = vst [vmem:[#allocation60_spill] sm:$0xff] %v16384_v13 }
 0x432   :  { %v3076_v2 = vadd.f32 %v2909_v34, %v2588_v26  ;;  %v16325_v54 = vadd.f32 %v3162_v18, %v3070_v40  ;;  %v16335_v27 = vmax.f32 %v4936_v21, %v10348_v63  ;;  %v16339_v55 = vmul.f32 %v16019_v60, %v18778_v62  ;;  %7821 = vst.msk [vmem:[#allocation4 + $0xa8] sm:$0xff] %vm6940_vm11, %v16384_v13 }
 0x433   :  { %v2028_v11 = vmul.f32 %v16084_v53, %v18778_v62  ;;  %v4954_v26 = vcombine.high %v4346_v1, %v4346_v1  ;;  %v4961_v49 = vrot.slane %v4346_v1, %v18343_v30  ;;  %v2091_v22 = vadd.f32 %v18780_v52, %v16109_v4  ;;  %v18791_v1 = vld [vmem:[#allocation21_spill] sm:$0xff] }
 0x434   :  { %18779 = vst [vmem:[#allocation56_spill] sm:$0xff] %v16325_v54  ;;  %v16348_v23 = vmul.f32 %v18781_v50, %v18778_v62  ;;  %v1285_v21 = vrot.slane %v1052_v46, 1  ;;  %v1774_v6 = vrot.slane %v16323_v15, 2  ;;  %v16355_v18 = vmul.f32 %v16139_v59, %v18778_v62  ;;  %v16362_v58 = vld [vmem:[#allocation3 + $0x40] sm:$0xff]  ;;  %v16364_v32 = vld [vmem:[#allocation3 + $0x110] sm:$0xff]  ;;  %v18808_v15 = vld [vmem:[#allocation22_spill] sm:$0xff] }
 0x435   :  { %v16359_v47 = vmul.f32 %v16148_v51, %v18778_v62  ;;  %v4968_v31 = vrot.slane %v4954_v26, %v18343_v30  ;;  %v4969_v4 = vcombine.high %v4961_v49, %v4961_v49  ;;  %18782 = vst [vmem:[#allocation62_spill] sm:$0xff] %v16362_v58  ;;  %18783 = vst [vmem:[#allocation59_spill] sm:$0xff] %v16364_v32  ;;  %v10353_v14 = vrot.slane %v4961_v49, 9 }
 0x436   :  { %v16368_v43 = vmul.f32 %v18784_v25, %v18778_v62  ;;  %v3168_v20 = vmul.f32 %v16126_v17, %v18778_v62  ;;  %8271 = vrot.lane.b32.xlu0 %v16362_v58, %s10783_s14  ;;  %7818 = vst.msk [vmem:[#allocation4 + $0x60] sm:$0xff] %vm6940_vm11, %v16362_v58  ;;  %8293 = vrot.lane.b32.xlu1 %v16364_v32, %s10783_s14  ;;  %7829 = vst.msk [vmem:[#allocation4 + $0x168] sm:$0xff] %vm6940_vm11, %v16364_v32  ;;  %v3560_v37 = vrot.slane %v16355_v18, 1  ;;  %v16401_v18 = vpop.permute.xlu0 %932 }
 0x437   :  { %v3231_v44 = vadd.f32 %v18785_v16, %v3075_v42  ;;  %v1053_v7 = vmul.f32 %v16162_v29, %v16350_v33  ;;  %v4970_v10 = vcombine.high %v4968_v31, %v4968_v31  ;;  %v10354_v28 = vrot.slane %v4969_v4, 9  ;;  %v18789_v42 = vld [vmem:[#allocation208_spill] sm:$0xff] }
 0x438   :  { %v10355_v63 = vrot.slane %v4968_v31, 9  ;;  %v4048_v3 = vrot.slane %v16359_v47, 2  ;;  %v18788_v45 = vrot.slane %v18787_v8, 1  ;;  %v2092_v38 = vadd.f32 %v2028_v11, %v1936_v0 }
 0x439   :  { %v2423_v35 = vrot.slane %v16348_v23, 1  ;;  %v1287_v34 = vrot.slane %v1053_v7, 1  ;;  %v10356_v40 = vrot.slane %v4970_v10, 9  ;;  %v6677_v56 = vmax.f32 %v4969_v4, %v10354_v28  ;;  %v18793_v4 = vld [vmem:[#allocation20_spill] sm:$0xff]  ;;  %v18794_v7 = vld [vmem:[#allocation38_spill] sm:$0xff] }
 0x43a   :  { %v1286_v48 = vsel %vm1183_vm2, %v18788_v45, %v1285_v21  ;;  %v18790_v62 = vrot.slane %v18789_v42, 2  ;;  %v18792_v26 = vrot.slane %v18791_v1, 1  ;;  %v6676_v16 = vmax.f32 %v4961_v49, %v10353_v14  ;;  %8027 = vrot.lane.b32.xlu0 %v18793_v4, %s10783_s14  ;;  %8049 = vrot.lane.b32.xlu1 %v18794_v7, %s10783_s14  ;;  %v18795_v45 = vld [vmem:[#allocation44_spill] sm:$0xff]  ;;  %v16425_v7 = vpop.permute.xlu0 %8201 }
 0x43b   :  { %v2911_v0 = vrot.slane %v16368_v43, 2  ;;  %v2194_v23 = vmul.f32 %v18781_v50, %v16350_v33  ;;  %v6678_v28 = vmax.f32 %v4968_v31, %v10355_v63  ;;  %v3232_v8 = vadd.f32 %v3168_v20, %v3076_v2  ;;  %v18798_v31 = vld [vmem:[#allocation209_spill] sm:$0xff]  ;;  %18800 = vst [vmem:[#allocation53_spill] sm:$0xff] %v16425_v7 }
 0x43c   :  { %v1775_v46 = vsel %vm1672_vm3, %v18790_v62, %v1774_v6  ;;  %v3561_v52 = vsel %vm1183_vm2, %v18792_v26, %v3560_v37  ;;  %v18796_v42 = vrot.slane %v18795_v45, 2  ;;  %v1542_v43 = vmul.f32 %v15971_v57, %v16350_v33 }
 0x43d   :  { %v3729_v11 = vadd.f32 %v3561_v52, %v3231_v44  ;;  %v6679_v14 = vmax.f32 %v4970_v10, %v10356_v40  ;;  %v1288_v62 = vsel %vm1183_vm2, %v1285_v21, %v1287_v34  ;;  %v2425_v1 = vrot.slane %v2194_v23, 1  ;;  %v18797_v52 = vld [vmem:[#allocation210_spill] sm:$0xff] }
 0x43e   :  { %v4049_v49 = vsel %vm1672_vm3, %v18796_v42, %v4048_v3  ;;  %v6869_v26 = vmax.f32 %v16330_v61, %v6677_v56  ;;  %v1448_v4 = vadd.f32 %v1286_v48, %v18797_v52  ;;  %v18799_v2 = vrot.slane %v18798_v31, 1 }
 0x43f   :  { %v4217_v44 = vadd.f32 %v4049_v49, %v3729_v11  ;;  %v2682_v63 = vmul.f32 %v18784_v25, %v16350_v33  ;;  %v6868_v45 = vmax.f32 %v16328_v39, %v6676_v16  ;;  %v3333_v21 = vmul.f32 %v16139_v59, %v16350_v33  ;;  %v18801_v49 = vld [vmem:[#allocation207_spill] sm:$0xff] }
 0x440   :  { %v2424_v20 = vsel %vm1183_vm2, %v18799_v2, %v2423_v35  ;;  %v6870_v61 = vmax.f32 %v16333_v36, %v6678_v28  ;;  %v1449_v48 = vadd.f32 %v1288_v62, %v16339_v55  ;;  %v1776_v34 = vrot.slane %v1542_v43, 2  ;;  %v16441_v28 = vpop.permute.xlu0 %7910  ;;  %v18807_v2 = vld [vmem:[#allocation30_spill] sm:$0xff] }
 0x441   :  { %v2589_v10 = vadd.f32 %v2424_v20, %v2091_v22  ;;  %v4288_v40 = vadd.f32 %v16198_v41, %v4217_v44  ;;  %v2426_v56 = vsel %vm1183_vm2, %v2423_v35, %v2425_v1  ;;  %v6871_v11 = vmax.f32 %v16335_v27, %v6679_v14  ;;  %18803 = vst [vmem:[#allocation63_spill] sm:$0xff] %v16441_v28 }
 0x442   :  { %v3562_v42 = vrot.slane %v3333_v21, 1  ;;  %v3821_v39 = vmul.f32 %v16148_v51, %v16350_v33  ;;  %v7341_v22 = vrot.slane %v6869_v26, %v18123_v12  ;;  %v1937_v16 = vadd.f32 %v1775_v46, %v1448_v4 }
 0x443   :  { %v4352_v23 = vmax.f32 %v4288_v40, 0.0  ;;  %v18802_v44 = vrot.slane %v18801_v49, 2  ;;  %v2913_v36 = vrot.slane %v2682_v63, 2  ;;  %v7337_v55 = vrot.slane %v6868_v45, %v18123_v12  ;;  %v18809_v45 = vld [vmem:[#allocation41_spill] sm:$0xff]  ;;  %v18810_v40 = vld [vmem:[#allocation187_spill] sm:$0xff] }
 0x444   :  { %v2590_v27 = vadd.f32 %v2426_v56, %v2092_v38  ;;  %v3563_v43 = vsel %vm1183_vm2, %v3560_v37, %v3562_v42  ;;  %v16448_v14 = vrot.slane %v6870_v61, %v18123_v12  ;;  %v1777_v33 = vsel %vm1672_vm3, %v1774_v6, %v1776_v34  ;;  %v18814_v42 = vld [vmem:[#allocation46_spill] sm:$0xff] }
 0x445   :  { %v2912_v52 = vsel %vm1672_vm3, %v18802_v44, %v2911_v0  ;;  %v3730_v46 = vadd.f32 %v3563_v43, %v3232_v8  ;;  %v4050_v62 = vrot.slane %v3821_v39, 2  ;;  %v16454_v1 = vrot.slane %v6871_v11, %v18123_v12 }
 0x446   :  { %v16444_v35 = vadd.f32 %v2912_v52, %v2589_v10  ;;  %18804 = vst [vmem:[#allocation70_spill] sm:$0xff] %v16448_v14  ;;  %v5056_v26 = vcombine.high %v4352_v23, %v4352_v23  ;;  %v5063_v4 = vrot.slane %v4352_v23, %v18343_v30  ;;  %v1938_v31 = vadd.f32 %v1777_v33, %v1449_v48  ;;  %v18811_v48 = vld [vmem:[#allocation39_spill] sm:$0xff]  ;;  %v16477_v23 = vpop.permute.xlu0 %8267 }
 0x447   :  { %18805 = vst [vmem:[#allocation66_spill] sm:$0xff] %v16454_v1  ;;  %v16458_v38 = vsel %vm7622_vm4, %v7341_v22, %v7337_v55  ;;  %v2914_v37 = vsel %vm1672_vm3, %v2911_v0, %v2913_v36  ;;  %v737_v20 = vmul.f32 %v16019_v60, %v18807_v2  ;;  %v1289_v63 = vrot.slane %v18808_v15, 1  ;;  %v18812_v0 = vld [vmem:[#allocation203_spill] sm:$0xff]  ;;  %18813 = vst [vmem:[#allocation68_spill] sm:$0xff] %v16477_v23  ;;  %v18816_v2 = vld [vmem:[#allocation50_spill] sm:$0xff] }
 0x448   :  { %18806 = vst [vmem:[#allocation71_spill] sm:$0xff] %v16458_v38  ;;  %v16464_v6 = vadd.f32 %v2914_v37, %v2590_v27  ;;  %v4051_v8 = vsel %vm1672_vm3, %v4048_v3, %v4050_v62  ;;  %v1778_v10 = vrot.slane %v18809_v45, 2  ;;  %v2032_v21 = vmul.f32 %v16084_v53, %v18810_v40  ;;  %v18815_v33 = vld [vmem:[#allocation47_spill] sm:$0xff] }
 0x449   :  { %v4218_v61 = vadd.f32 %v4051_v8, %v3730_v46  ;;  %v2427_v34 = vrot.slane %v18811_v48, 1  ;;  %v1055_v56 = vmul.f32 %v16162_v29, %v18812_v0  ;;  %v1056_v11 = vmul.f32 %v16162_v29, %v16401_v18 }
 0x44a   :  { %v16480_v47 = vrot.slane %v5056_v26, %v18343_v30  ;;  %v16482_v3 = vcombine.high %v5063_v4, %v5063_v4  ;;  %v2915_v39 = vrot.slane %v18814_v42, 2  ;;  %v1544_v22 = vmul.f32 %v15971_v57, %v18812_v0 }
 0x44b   :  { %v4289_v49 = vadd.f32 %v16198_v41, %v4218_v61  ;;  %v1290_v44 = vrot.slane %v1055_v56, 1  ;;  %v1292_v52 = vrot.slane %v1056_v11, 1  ;;  %v1545_v36 = vmul.f32 %v15971_v57, %v16401_v18  ;;  %v16506_v56 = vpop.permute.xlu0 %8023 }
 0x44c   :  { %v10377_v29 = vrot.slane %v5063_v4, 9  ;;  %v16492_v55 = vmul.f32 %v16126_v17, %v18810_v40  ;;  %v738_v27 = vmul.f32 %v16019_v60, %v18812_v0  ;;  %v1779_v43 = vrot.slane %v1544_v22, 2  ;;  %18817 = vst [vmem:[#allocation78_spill] sm:$0xff] %v16506_v56 }
 0x44d   :  { %v3564_v46 = vrot.slane %v18815_v33, 1  ;;  %v1291_v62 = vsel %vm1183_vm2, %v1289_v63, %v1290_v44  ;;  %v1293_v26 = vsel %vm1183_vm2, %v1290_v44, %v1292_v52  ;;  %v1781_v37 = vrot.slane %v1545_v36, 2  ;;  %v18819_v36 = vld [vmem:[#allocation11_spill] sm:$0xff] }
 0x44e   :  { %v4052_v15 = vrot.slane %v18816_v2, 2  ;;  %v1450_v8 = vadd.f32 %v1291_v62, %v737_v20  ;;  %v1451_v57 = vadd.f32 %v1293_v26, %v738_v27  ;;  %v2030_v45 = vmul.f32 %v16084_v53, %v18812_v0  ;;  %v18818_v53 = vld [vmem:[#allocation37_spill] sm:$0xff] }
 0x44f   :  { %v4353_v40 = vmax.f32 %v4289_v49, 0.0  ;;  %v1780_v61 = vsel %vm1672_vm3, %v1778_v10, %v1779_v43  ;;  %v1782_v60 = vsel %vm1672_vm3, %v1779_v43, %v1781_v37  ;;  %v2196_v48 = vmul.f32 %v18781_v50, %v18812_v0  ;;  %v10698_v37 = vld [vmem:[%s17604_s3 + $0x40] sm:$0xff]  }
 0x450   :  { %v16510_v63 = vcombine.high %v16480_v47, %v16480_v47  ;;  %v1939_v11 = vadd.f32 %v1780_v61, %v1450_v8  ;;  %v1940_v20 = vadd.f32 %v1782_v60, %v1451_v57  ;;  %v2197_v22 = vmul.f32 %v18781_v50, %v16401_v18  ;;  %v18820_v8 = vld [vmem:[#allocation191_spill] sm:$0xff]  ;;  %v18821_v61 = vld [vmem:[#allocation32_spill] sm:$0xff]  ;;  %10580 = vmatprep.subr.bf16.mxu0 %v10698_v37  ;;  %v18839_v2 = vld [vmem:[#allocation149_spill] sm:$0xff] }
 0x451   :  { %v2093_v49 = vadd.f32 %v18818_v53, %v1937_v16  ;;  %v2094_v44 = vadd.f32 %v2030_v45, %v1938_v31  ;;  %v2428_v10 = vrot.slane %v2196_v48, 1  ;;  %v2684_v52 = vmul.f32 %v18784_v25, %v18812_v0  ;;  %v18822_v48 = vld [vmem:[#allocation150_spill] sm:$0xff]  ;;  %10674 = vmatprep.subr.bf16.mxu1 %v10698_v37 }
 0x452   :  { %v2095_v27 = vadd.f32 %v18819_v36, %v1939_v11  ;;  %v2096_v43 = vadd.f32 %v2032_v21, %v1940_v20  ;;  %v2430_v62 = vrot.slane %v2197_v22, 1  ;;  %v2685_v26 = vmul.f32 %v18784_v25, %v16401_v18  ;;  %v10699_v11 = vld [vmem:[%s17604_s3] sm:$0xff]  }
 0x453   :  { %v10378_v50 = vrot.slane %v16482_v3, 9  ;;  %v10379_v16 = vrot.slane %v16480_v47, 9  ;;  %v5073_v31 = vcombine.high %v4353_v40, %v4353_v40  ;;  %v3174_v57 = vmul.f32 %v16126_v17, %v18820_v8  ;;  %v18824_v8 = vld [vmem:[#allocation34_spill] sm:$0xff]  ;;  %10581 = vmatpush3.bf16.msra.mxu0 %v10699_v11  ;;  %10682 = vmatpush3.bf16.msra.mxu1 %v10699_v11 }
 0x454   :  { %v16527_v45 = vmax.f32 %v5063_v4, %v10377_v29  ;;  %v2429_v21 = vsel %vm1183_vm2, %v2427_v34, %v2428_v10  ;;  %v2593_v60 = vadd.f32 %v18821_v61, %v2095_v27  ;;  %v2594_v25 = vadd.f32 %v18822_v48, %v2096_v43  ;;  %v16540_v29 = vpop.permute.xlu0 %8339  ;;  %v10700_v34 = vld [vmem:[%s17604_s3 + $0x48] sm:$0xff]  }
 0x455   :  { %v10380_v20 = vrot.slane %v16510_v63, 9  ;;  %v16537_v22 = vrot.slane %v4353_v40, %v18343_v30  ;;  %v2431_v53 = vsel %vm1183_vm2, %v2428_v10, %v2430_v62  ;;  %v2591_v4 = vadd.f32 %v2429_v21, %v2093_v49  ;;  %18823 = vst [vmem:[#allocation69_spill] sm:$0xff] %v16540_v29  ;;  %v10701_v40 = vld [vmem:[%s17604_s3 + $0x8] sm:$0xff]   ;;  %v18825_v10 = vld [vmem:[#allocation153_spill] sm:$0xff]  ;;  %10582 = vmatprep.subr.bf16.mxu0 %v10700_v34 }
 0x456   :  { %v2592_v36 = vadd.f32 %v2431_v53, %v2094_v44  ;;  %v2916_v27 = vrot.slane %v2684_v52, 2  ;;  %v2918_v43 = vrot.slane %v2685_v26, 2  ;;  %v3081_v61 = vadd.f32 %v18824_v8, %v2593_v60  ;;  %v18826_v44 = vld [vmem:[#allocation51_spill] sm:$0xff]  ;;  %v18827_v60 = vld [vmem:[#allocation189_spill] sm:$0xff]  ;;  %10675 = vmatprep.subr.bf16.mxu1 %v10700_v34 }
 0x457   :  { %v16550_v49 = vrot.slane %v5073_v31, %v18343_v30  ;;  %v3082_v62 = vadd.f32 %v18825_v10, %v2594_v25  ;;  %v3170_v21 = vmul.f32 %v16126_v17, %v18812_v0  ;;  %v3233_v52 = vadd.f32 %v18826_v44, %v16444_v35  ;;  %v16565_v8 = vld [vmem:[#allocation3 + $0xb0] sm:$0xff]  ;;  %10583 = vmatpush3.bf16.msra.mxu0 %v10701_v40 }
 0x458   :  { %v2917_v26 = vsel %vm1672_vm3, %v2915_v39, %v2916_v27  ;;  %v2919_v37 = vsel %vm1672_vm3, %v2916_v27, %v2918_v43  ;;  %v3237_v48 = vadd.f32 %v18827_v60, %v3081_v61  ;;  %v3335_v31 = vmul.f32 %v16139_v59, %v18812_v0  ;;  %18828 = vst [vmem:[#allocation72_spill] sm:$0xff] %v16565_v8  ;;  %v10702_v35 = vld [vmem:[%s17604_s3 + $0x50] sm:$0xff]   ;;  %v18829_v27 = vld [vmem:[#allocation161_spill] sm:$0xff] }
 0x459   :  { %v3079_v25 = vadd.f32 %v2917_v26, %v2591_v4  ;;  %v3080_v11 = vadd.f32 %v2919_v37, %v2592_v36  ;;  %v3234_v17 = vadd.f32 %v3170_v21, %v16464_v6  ;;  %v3238_v53 = vadd.f32 %v3174_v57, %v3082_v62  ;;  %7823 = vst.msk [vmem:[#allocation4 + $0xd8] sm:$0xff] %vm6940_vm11, %v16565_v8  ;;  %v10703_v6 = vld [vmem:[%s17604_s3 + $0x10] sm:$0xff]   ;;  %v18830_v57 = vld [vmem:[#allocation182_spill] sm:$0xff]  ;;  %v16585_v62 = vpop.permute.xlu0 %8090  ;;  %v18834_v60 = vld [vmem:[#allocation29_spill] sm:$0xff] }
 0x45a   :  { %v3336_v42 = vmul.f32 %v16139_v59, %v16401_v18  ;;  %v3565_v39 = vrot.slane %v3335_v31, 1  ;;  %v3735_v43 = vadd.f32 %v18829_v27, %v3237_v48  ;;  %v3823_v34 = vmul.f32 %v16148_v51, %v18812_v0  ;;  %10683 = vmatpush3.bf16.msra.mxu1 %v10701_v40  ;;  %v18831_v59 = vld [vmem:[#allocation155_spill] sm:$0xff]  ;;  %18832 = vst [vmem:[#allocation73_spill] sm:$0xff] %v16585_v62  ;;  %v18833_v26 = vld [vmem:[#allocation158_spill] sm:$0xff]  ;;  %v10713_v8 = vld [vmem:[%s17604_s3 + $0x38] sm:$0xff]  }
 0x45b   :  { %v3235_v4 = vadd.f32 %v18830_v57, %v3079_v25  ;;  %v3236_v36 = vadd.f32 %v16492_v55, %v3080_v11  ;;  %v3736_v61 = vadd.f32 %v18831_v59, %v3238_v53  ;;  %v3824_v10 = vmul.f32 %v16148_v51, %v16401_v18  ;;  %10584 = vmatprep.subr.bf16.mxu0 %v10702_v35  ;;  %v18835_v48 = vld [vmem:[#allocation162_spill] sm:$0xff]  ;;  %v16593_v11 = vpop.permute.xlu1 %3263  ;;  %v16595_v51 = vld [vmem:[#allocation3 + $0xa0] sm:$0xff]  ;;  %v10704_v18 = vld [vmem:[%s17604_s3 + $0x58] sm:$0xff]  }
 0x45c   :  { %v3566_v0 = vsel %vm1183_vm2, %v3564_v46, %v3565_v39  ;;  %v3567_v21 = vrot.slane %v3336_v42, 1  ;;  %v4053_v44 = vrot.slane %v3823_v34, 2  ;;  %v4223_v40 = vadd.f32 %v18833_v26, %v3735_v43  ;;  %10676 = vmatprep.subr.bf16.mxu1 %v10702_v35  ;;  %18836 = vst [vmem:[#allocation175_spill] sm:$0xff] %v16593_v11  ;;  %18837 = vst [vmem:[#allocation173_spill] sm:$0xff] %v16595_v51  ;;  %v10705_v42 = vld [vmem:[%s17604_s3 + $0x18] sm:$0xff]  }
 0x45d   :  { %v3731_v37 = vadd.f32 %v3566_v0, %v3233_v52  ;;  %v3733_v55 = vadd.f32 %v18834_v60, %v3235_v4  ;;  %v3734_v31 = vadd.f32 %v18835_v48, %v3236_v36  ;;  %v4055_v25 = vrot.slane %v3824_v10, 2  ;;  %v18838_v52 = vld [vmem:[#allocation159_spill] sm:$0xff]  ;;  %10585 = vmatpush3.bf16.msra.mxu0 %v10703_v6  ;;  %7822 = vst.msk [vmem:[#allocation4 + $0xc0] sm:$0xff] %vm6940_vm11, %v16595_v51  ;;  %v18840_v57 = vld [vmem:[#allocation156_spill] sm:$0xff]  ;;  %v16626_v26 = vpop.permute.xlu0 %8225 }
 0x45e   :  { %v3568_v33 = vsel %vm1183_vm2, %v3565_v39, %v3567_v21  ;;  %v4054_v46 = vsel %vm1672_vm3, %v4052_v15, %v4053_v44  ;;  %v4224_v53 = vadd.f32 %v18838_v52, %v3736_v61  ;;  %v4294_v35 = vadd.f32 %v16198_v41, %v4223_v40  ;;  %10586 = vmatprep.subr.bf16.mxu0 %v10704_v18 }
 0x45f   :  { %v5088_v27 = vcombine.high %v16537_v22, %v16537_v22  ;;  %v3732_v39 = vadd.f32 %v3568_v33, %v3234_v17  ;;  %v4219_v43 = vadd.f32 %v4054_v46, %v3731_v37  ;;  %v4221_v34 = vadd.f32 %v18839_v2, %v3733_v55  ;;  %10684 = vmatpush3.bf16.msra.mxu1 %v10703_v6  ;;  %v16624_v21 = vpop.permute.xlu1 %8203  ;;  %v10707_v37 = vld [vmem:[%s17604_s3 + $0x20] sm:$0xff]  }
 0x460   :  { %v4056_v15 = vsel %vm1672_vm3, %v4053_v44, %v4055_v25  ;;  %v4222_v4 = vadd.f32 %v18840_v57, %v3734_v31  ;;  %v4295_v36 = vadd.f32 %v16198_v41, %v4224_v53  ;;  %v4358_v59 = vmax.f32 %v4294_v35, 0.0  ;;  %18841 = vst [vmem:[#allocation166_spill] sm:$0xff] %v16624_v21  ;;  %18842 = vst [vmem:[#allocation168_spill] sm:$0xff] %v16626_v26  ;;  %v10706_v44 = vld [vmem:[%s17604_s3 + $0x60] sm:$0xff]  }
 0x461   :  { %v16620_v61 = vmax.f32 %v16482_v3, %v10378_v50  ;;  %v4220_v10 = vadd.f32 %v4056_v15, %v3732_v39  ;;  %v4290_v17 = vadd.f32 %v16198_v41, %v4219_v43  ;;  %v4292_v0 = vadd.f32 %v16198_v41, %v4221_v34  ;;  %10677 = vmatprep.subr.bf16.mxu1 %v10704_v18  ;;  %v16650_v35 = vpop.permute.xlu0 %7934  ;;  %v10709_v43 = vld [vmem:[%s17604_s3 + $0x28] sm:$0xff]  }
 0x462   :  { %v16634_v6 = vmax.f32 %v16480_v47, %v10379_v16  ;;  %v5089_v3 = vcombine.high %v16550_v49, %v16550_v49  ;;  %v10381_v50 = vrot.slane %v16537_v22, 9  ;;  %v4293_v40 = vadd.f32 %v16198_v41, %v4222_v4  ;;  %10587 = vmatpush3.bf16.msra.mxu0 %v10705_v42  ;;  %18843 = vst [vmem:[#allocation157_spill] sm:$0xff] %v16650_v35 }
 0x463   :  { %v4291_v60 = vadd.f32 %v16198_v41, %v4220_v10  ;;  %v4354_v55 = vmax.f32 %v4290_v17, 0.0  ;;  %v4356_v48 = vmax.f32 %v4292_v0, 0.0  ;;  %v4359_v31 = vmax.f32 %v4295_v36, 0.0  ;;  %10588 = vmatprep.subr.bf16.mxu0 %v10706_v44  ;;  %10685 = vmatpush3.bf16.msra.mxu1 %v10705_v42  ;;  %v10708_v41 = vld [vmem:[%s17604_s3 + $0x68] sm:$0xff]   ;;  %v16670_v4 = vpop.permute.xlu1 %7912 }
 0x464   :  { %v16647_v47 = vmax.f32 %v16510_v63, %v10380_v20  ;;  %v10382_v16 = vrot.slane %v5088_v27, 9  ;;  %v4357_v25 = vmax.f32 %v4293_v40, 0.0  ;;  %v5158_v18 = vcombine.high %v4358_v59, %v4358_v59  ;;  %10678 = vmatprep.subr.bf16.mxu1 %v10706_v44  ;;  %18844 = vst [vmem:[#allocation169_spill] sm:$0xff] %v16670_v4 }
 0x465   :  { %v10383_v33 = vrot.slane %v16550_v49, 9  ;;  %v4355_v46 = vmax.f32 %v4291_v60, 0.0  ;;  %v5090_v52 = vcombine.high %v4354_v55, %v4354_v55  ;;  %v5124_v53 = vcombine.high %v4356_v48, %v4356_v48 }
 0x466   :  { %v10384_v39 = vrot.slane %v5089_v3, 9  ;;  %v16656_v63 = vmax.f32 %v16537_v22, %v10381_v50  ;;  %v16659_v20 = vrot.slane %v4354_v55, %v18343_v30  ;;  %v5141_v42 = vcombine.high %v4357_v25, %v4357_v25  ;;  %10589 = vmatpush3.bf16.msra.mxu0 %v10707_v37 }
 0x467   :  { %v16665_v2 = vrot.slane %v5090_v52, %v18343_v30  ;;  %v5107_v34 = vcombine.high %v4355_v46, %v4355_v46  ;;  %v16668_v15 = vrot.slane %v4355_v46, %v18343_v30  ;;  %v5175_v57 = vcombine.high %v4359_v31, %v4359_v31  ;;  %10590 = vmatprep.subr.bf16.mxu0 %v10708_v41 }
 0x468   :  { %v16672_v22 = vmax.f32 %v5088_v27, %v10382_v16  ;;  %v16675_v36 = vrot.slane %v4356_v48, %v18343_v30  ;;  %v16678_v10 = vrot.slane %v4358_v59, %v18343_v30  ;;  %v16681_v17 = vrot.slane %v5158_v18, %v18343_v30  ;;  %10686 = vmatpush3.bf16.msra.mxu1 %v10707_v37  ;;  %v10710_v59 = vld [vmem:[%s17604_s3 + $0x70] sm:$0xff]  }
 0x469   :  { %v16684_v0 = vrot.slane %v5107_v34, %v18343_v30  ;;  %v16687_v44 = vrot.slane %v5124_v53, %v18343_v30  ;;  %v16690_v50 = vrot.slane %v4357_v25, %v18343_v30  ;;  %v16693_v27 = vrot.slane %v5141_v42, %v18343_v30  ;;  %10679 = vmatprep.subr.bf16.mxu1 %v10708_v41  ;;  %v10711_v48 = vld [vmem:[%s17604_s3 + $0x30] sm:$0xff]  }
 0x46a   :  { %v16699_v40 = vmax.f32 %v16550_v49, %v10383_v33  ;;  %v16701_v37 = vmax.f32 %v5089_v3, %v10384_v39  ;;  %v5105_v60 = vcombine.high %v16659_v20, %v16659_v20  ;;  %v16706_v55 = vrot.slane %v4359_v31, %v18343_v30  ;;  %10591 = vmatpush3.bf16.msra.mxu0 %v10709_v43  ;;  %v16719_v33 = vpop.permute.xlu0 %8291  ;;  %v16721_v31 = vpop.permute.xlu1 %8269 }
 0x46b   :  { %v5106_v16 = vcombine.high %v16665_v2, %v16665_v2  ;;  %v5122_v49 = vcombine.high %v16668_v15, %v16668_v15  ;;  %v16716_v3 = vrot.slane %v5175_v57, %v18343_v30  ;;  %18849 = vst [vmem:[#allocation179_spill] sm:$0xff] %v16719_v33  ;;  %18850 = vst [vmem:[#allocation177_spill] sm:$0xff] %v16721_v31  ;;  %10592 = vmatprep.subr.bf16.mxu0 %v10710_v59 }
 0x46c   :  { %18845 = vst [vmem:[#allocation171_spill] sm:$0xff] %v16699_v40  ;;  %18846 = vst [vmem:[#allocation178_spill] sm:$0xff] %v16701_v37  ;;  %v5123_v46 = vcombine.high %v16684_v0, %v16684_v0  ;;  %v5139_v52 = vcombine.high %v16675_v36, %v16675_v36  ;;  %v5173_v53 = vcombine.high %v16678_v10, %v16678_v10  ;;  %10687 = vmatpush3.bf16.msra.mxu1 %v10709_v43 }
 0x46d   :  { %18847 = vst [vmem:[#allocation174_spill] sm:$0xff] %v16716_v3  ;;  %v5140_v42 = vcombine.high %v16687_v44, %v16687_v44  ;;  %v5156_v34 = vcombine.high %v16690_v50, %v16690_v50  ;;  %v16736_v57 = vcombine.high %v16693_v27, %v16693_v27  ;;  %v16740_v18 = vcombine.high %v16681_v17, %v16681_v17 }
 0x46e   :  { %10680 = vmatprep.subr.bf16.mxu1 %v10710_v59  ;;  %v16747_v43 = vcombine.high %v16706_v55, %v16706_v55  ;;  %v10385_v39 = vrot.slane %v16659_v20, 9  ;;  %v10386_v24 = vrot.slane %v5105_v60, 9  ;;  %v10387_v51 = vrot.slane %v16665_v2, 9  ;;  %10593 = vmatpush3.bf16.msra.mxu0 %v10711_v48  ;;  %v16763_v23 = vpop.permute.xlu0 %8047  ;;  %v16765_v13 = vpop.permute.xlu1 %8025 }
 0x46f   :  { %18852 = vst [vmem:[#allocation10_spill] sm:$0xff] %v16736_v57  ;;  %v16756_v1 = vcombine.high %v16716_v3, %v16716_v3  ;;  %v10388_v30 = vrot.slane %v5106_v16, 9  ;;  %v10389_v59 = vrot.slane %v16668_v15, 9  ;;  %v10390_v14 = vrot.slane %v5122_v49, 9  ;;  %10594 = vmatprep.subr.bf16.mxu0 %v10712_v19  ;;  %18854 = vst [vmem:[#allocation164_spill] sm:$0xff] %v16763_v23 }
 0x470   :  { %v10391_v38 = vrot.slane %v16684_v0, 9  ;;  %v10392_v41 = vrot.slane %v5123_v46, 9  ;;  %v10393_v62 = vrot.slane %v16675_v36, 9  ;;  %v10394_v29 = vrot.slane %v5139_v52, 9  ;;  %10688 = vmatpush3.bf16.msra.mxu1 %v10711_v48  ;;  %18855 = vst [vmem:[#allocation167_spill] sm:$0xff] %v16765_v13 }
 0x471   :  { %18853 = vst [vmem:[#allocation170_spill] sm:$0xff] %v16756_v1  ;;  %v10395_v25 = vrot.slane %v16687_v44, 9  ;;  %v10396_v31 = vrot.slane %v5140_v42, 9  ;;  %v10397_v33 = vrot.slane %v16690_v50, 9  ;;  %v10402_v56 = vrot.slane %v5173_v53, 9  ;;  %10681 = vmatprep.subr.bf16.mxu1 %v10712_v19 }
 0x472   :  { %v10398_v35 = vrot.slane %v5156_v34, 9  ;;  %v10399_v26 = vrot.slane %v16693_v27, 9  ;;  %v10400_v4 = vrot.slane %v16736_v57, 9  ;;  %v10401_v21 = vrot.slane %v16678_v10, 9  ;;  %10595 = vmatpush3.bf16.msra.mxu0 %v10713_v8 }
 0x473   :  { %v10403_v48 = vrot.slane %v16681_v17, 9  ;;  %v10404_v28 = vrot.slane %v16740_v18, 9  ;;  %v10405_v7 = vrot.slane %v16706_v55, 9  ;;  %v6709_v9 = vmax.f32 %v5105_v60, %v10386_v24 }
 0x474   :  { %v10406_v23 = vrot.slane %v16747_v43, 9  ;;  %v10407_v13 = vrot.slane %v16716_v3, 9  ;;  %v10408_v19 = vrot.slane %v16756_v1, 9  ;;  %v6710_v54 = vmax.f32 %v16665_v2, %v10387_v51  ;;  %10689 = vmatpush3.bf16.msra.mxu1 %v10713_v8  ;;  %v16784_v8 = vpop.permute.xlu0 %8363 }
 0x475   :  { %v6708_v5 = vmax.f32 %v16659_v20, %v10385_v39  ;;  %v6711_v32 = vmax.f32 %v5106_v16, %v10388_v30  ;;  %v6712_v58 = vmax.f32 %v16668_v15, %v10389_v59  ;;  %v6725_v11 = vmax.f32 %v5173_v53, %v10402_v56  ;;  %v16786_v20 = vpop.permute.xlu1 %8341 }
 0x476   :  { %v6713_v57 = vmax.f32 %v5122_v49, %v10390_v14  ;;  %v6714_v37 = vmax.f32 %v16684_v0, %v10391_v38  ;;  %v6715_v40 = vmax.f32 %v5123_v46, %v10392_v41  ;;  %v6716_v24 = vmax.f32 %v16675_v36, %v10393_v62  ;;  %v18860_v16 = vld [vmem:[#allocation10_spill] sm:$0xff] }
 0x477   :  { %v6717_v60 = vmax.f32 %v5139_v52, %v10394_v29  ;;  %v6718_v3 = vmax.f32 %v16687_v44, %v10395_v25  ;;  %v6724_v1 = vmax.f32 %v16678_v10, %v10401_v21  ;;  %v6885_v51 = vmax.f32 %v16620_v61, %v6709_v9  ;;  %v18861_v52 = vld [vmem:[#allocation49_spill] sm:$0xff] }
 0x478   :  { %v6719_v30 = vmax.f32 %v5140_v42, %v10396_v31  ;;  %v6720_v56 = vmax.f32 %v16690_v50, %v10397_v33  ;;  %v6726_v14 = vmax.f32 %v16681_v17, %v10403_v48  ;;  %v6886_v38 = vmax.f32 %v16634_v6, %v6710_v54  ;;  %v10776_v48 = vld [vmem:[%s17602_s1 + $0x7] ss:$0 sm:$0xff] }
 0x479   :  { %v6721_v2 = vmax.f32 %v5156_v34, %v10398_v35  ;;  %v6884_v29 = vmax.f32 %v16527_v45, %v6708_v5  ;;  %v6887_v62 = vmax.f32 %v16647_v47, %v6711_v32  ;;  %v6893_v15 = vmax.f32 %v6717_v60, %v6725_v11  ;;  %v18856_v5 = vld [vmem:[#allocation174_spill] sm:$0xff]  ;;  %v18857_v32 = vld [vmem:[#allocation171_spill] sm:$0xff]  ;;  %v7809_v60 = vld [vmem:[#allocation3 + $0x118] sm:$0x3] }
 0x47a   :  { %v16794_v21 = vmax.f32 %v16693_v27, %v10399_v26  ;;  %v6727_v9 = vmax.f32 %v16740_v18, %v10404_v28  ;;  %v6728_v61 = vmax.f32 %v16706_v55, %v10405_v7  ;;  %v6888_v36 = vmax.f32 %v16656_v63, %v6712_v58  ;;  %v18858_v28 = vld [vmem:[#allocation178_spill] sm:$0xff]  ;;  %v16811_v63 = vpop.permute.xlu0 %8114 }
 0x47b   :  { %v6729_v10 = vmax.f32 %v16747_v43, %v10406_v23  ;;  %v6889_v17 = vmax.f32 %v16672_v22, %v6713_v57  ;;  %v6892_v54 = vmax.f32 %v6716_v24, %v6724_v1  ;;  %v7405_v6 = vrot.slane %v6885_v51, %v18123_v12  ;;  %v16813_v1 = vpop.permute.xlu1 %8092  ;;  %v18859_v22 = vld [vmem:[#allocation170_spill] sm:$0xff] }
 0x47c   :  { %v16803_v45 = vmax.f32 %v18856_v5, %v10407_v13  ;;  %v6890_v11 = vmax.f32 %v18857_v32, %v6714_v37  ;;  %v6894_v26 = vmax.f32 %v6718_v3, %v6726_v14  ;;  %v7409_v47 = vrot.slane %v6886_v38, %v18123_v12  ;;  %v7783_v34 = vld [vmem:[#allocation3 + $0x48] sm:$0x3]  ;;  %v16864_v32 = vld [vmem:[#allocation3 + $0x120] sm:$0xff] }
 0x47d   :  { %v6891_v35 = vmax.f32 %v18858_v28, %v6715_v40  ;;  %v7401_v7 = vrot.slane %v6884_v29, %v18123_v12  ;;  %v7413_v58 = vrot.slane %v6887_v62, %v18123_v12  ;;  %v7437_v23 = vrot.slane %v6893_v15, %v18123_v12  ;;  %v10777_v38 = vld [vmem:[%s17602_s1 + $0x8] ss:$0 sm:$0xff] }
 0x47e   :  { %v16816_v13 = vmax.f32 %v18859_v22, %v10408_v19  ;;  %v6895_v0 = vmax.f32 %v6719_v30, %v6727_v9  ;;  %v6896_v44 = vmax.f32 %v6720_v56, %v6728_v61  ;;  %v7417_v50 = vrot.slane %v6888_v36, %v18123_v12  ;;  %v18862_v19 = vld [vmem:[#allocation175_spill] sm:$0xff]  ;;  %v16849_v51 = vpop.permute.xlu0 %8205  ;;  %v18863_v29 = vld [vmem:[#allocation62_spill] sm:$0xff] }
 0x47f   :  { %v6897_v27 = vmax.f32 %v6721_v2, %v6729_v10  ;;  %v7421_v40 = vrot.slane %v6889_v17, %v18123_v12  ;;  %v7433_v37 = vrot.slane %v6892_v54, %v18123_v12  ;;  %v7692_v55 = vsel %vm7622_vm4, %v7405_v6, %v7401_v7  ;;  %v16851_v30 = vpop.permute.xlu1 %8227  ;;  %v18864_v36 = vld [vmem:[#allocation59_spill] sm:$0xff]  ;;  %8251 = vst.msk [vmem:[#allocation4 + $0x38] sm:$0xff] %vm7958_vm13, %v16849_v51  ;;  %v18883_v51 = vld [vmem:[#allocation60_spill] sm:$0xff] }
 0x480   :  { %v16823_v49 = vmax.f32 %v18860_v16, %v10400_v4  ;;  %v7425_v3 = vrot.slane %v6890_v11, %v18123_v12  ;;  %v7441_v25 = vrot.slane %v6894_v26, %v18123_v12  ;;  %v7693_v18 = vsel %vm7624_vm5, %v7409_v47, %v7692_v55  ;;  %v18865_v11 = vld [vmem:[#allocation67_spill] sm:$0xff]  ;;  %v18870_v16 = vld [vmem:[#allocation193_spill] sm:$0xff]  ;;  %8262 = vst.msk [vmem:[#allocation4 + $0x140] sm:$0xff] %vm7958_vm13, %v16851_v30 }
 0x481   :  { %v7429_v33 = vrot.slane %v6891_v35, %v18123_v12  ;;  %v7694_v31 = vsel %vm7626_vm6, %v7413_v58, %v7693_v18  ;;  %v7699_v46 = vsel %vm7622_vm4, %v7437_v23, %v7433_v37  ;;  %v10351_v53 = vrot.slane %v18861_v52, 9  ;;  %v7811_v58 = vld [vmem:[#allocation3 + $0x128] sm:$0x3]  ;;  %v18867_v23 = vld [vmem:[#allocation56_spill] sm:$0xff]  ;;  %v16887_v37 = vld [vmem:[#allocation3 + $0x130] sm:$0xff] }
 0x482   :  { %v6898_v41 = vmax.f32 %v16794_v21, %v16803_v45  ;;  %v6899_v4 = vmax.f32 %v16823_v49, %v16816_v13  ;;  %v7445_v39 = vrot.slane %v6895_v0, %v18123_v12  ;;  %v7695_v42 = vsel %vm7628_vm7, %v7417_v50, %v7694_v31  ;;  %v18868_v0 = vld [vmem:[#allocation61_spill] sm:$0xff]  ;;  %v16903_v31 = vld [vmem:[#allocation3 + $0x138] sm:$0x3]  ;;  %v18894_v21 = vld [vmem:[#allocation55_spill] sm:$0xff] }
 0x483   :  { %v16839_v57 = vrot.slane %v6896_v44, %v18123_v12  ;;  %v16842_v43 = vrot.slane %v6897_v27, %v18123_v12  ;;  %v7696_v59 = vsel %vm7630_vm8, %v7421_v40, %v7695_v42  ;;  %v3324_v24 = vmul.f32 %v10776_v48, %v18862_v19  ;;  %v7937_v42 = vpop.permute.xlu1 %7936 }
 0x484   :  { %v7697_v56 = vsel %vm7632_vm9, %v7425_v3, %v7696_v59  ;;  %v7700_v14 = vsel %vm7624_vm5, %v7441_v25, %v7699_v46  ;;  %v3812_v2 = vmul.f32 %v10777_v38, %v18862_v19  ;;  %v7874_v62 = vrot.slane %v18863_v29, 1  ;;  %v18871_v3 = vld [vmem:[#allocation31_spill] sm:$0xff]  ;;  %v7915_v46 = vpop.permute.xlu0 %7914  ;;  %7972 = vst.msk [vmem:[#allocation4 + $0x138] sm:$0xff] %vm7958_vm13, %v7937_v42 }
 0x485   :  { %v7698_v15 = vsel %vm7634_vm10, %v7429_v33, %v7697_v56  ;;  %v3547_v9 = vrot.slane %v3324_v24, 1  ;;  %v7875_v61 = vrot.slane %v7783_v34, 1  ;;  %v7907_v10 = vrot.slane %v18864_v36, 1  ;;  %7961 = vst.msk [vmem:[#allocation4 + $0x30] sm:$0xff] %vm7958_vm13, %v7915_v46  ;;  %v18890_v46 = vld [vmem:[#allocation52_spill] sm:$0xff] }
 0x486   :  { %7767 = vst.msk [vmem:[#allocation3 + $0xc1] sm:$0xff] %vm6940_vm11, %v7698_v15  ;;  %v4035_v17 = vrot.slane %v3812_v2, 2  ;;  %v7908_v54 = vrot.slane %v7809_v60, 1  ;;  %v8020_v6 = vrot.slane %v18864_v36, 2  ;;  %v8021_v5 = vrot.slane %v7809_v60, 2  ;;  %v18873_v2 = vld [vmem:[#allocation211_spill] sm:$0xff] }
 0x487   :  { %v18866_v26 = vrot.slane %v18865_v11, 1  ;;  %v16870_v28 = vsel %vm1183_vm2, %v7874_v62, %v7875_v61  ;;  %v7987_v35 = vrot.slane %v18863_v29, 2  ;;  %v7988_v7 = vrot.slane %v7783_v34, 2  ;;  %v18872_v34 = vld [vmem:[#allocation65_spill] sm:$0xff]  ;;  %v16909_v60 = vld [vmem:[#allocation3 + $0x78] sm:$0x3] }
 0x488   :  { %v18869_v44 = vrot.slane %v18868_v0, 2  ;;  %8343 = vrot.lane.b32.xlu0 %v16870_v28, %s10784_s19  ;;  %8182 = vst.msk [vmem:[#allocation4 + $0x50] sm:$0xff] %vm6940_vm11, %v16870_v28  ;;  %v16882_v27 = vsel %vm1183_vm2, %v7907_v10, %v7908_v54  ;;  %v16885_v40 = vsel %vm1672_vm3, %v8020_v6, %v8021_v5  ;;  %v7663_v25 = vsel %vm7634_vm10, %v18871_v3, %v18870_v16  ;;  %v18874_v62 = vld [vmem:[#allocation198_spill] sm:$0xff]  ;;  %v18875_v10 = vld [vmem:[#allocation36_spill] sm:$0xff]  ;;  %v18877_v6 = vld [vmem:[#allocation63_spill] sm:$0xff] }
 0x489   :  { %v3548_v47 = vsel %vm1183_vm2, %v18866_v26, %v3547_v9  ;;  %8365 = vrot.lane.b32.xlu1 %v16882_v27, %s10784_s19  ;;  %8193 = vst.msk [vmem:[#allocation4 + $0x158] sm:$0xff] %vm6940_vm11, %v16882_v27  ;;  %8438 = vst.msk [vmem:[#allocation4 + $0x148] sm:$0xff] %vm6940_vm11, %v16885_v40  ;;  %v16896_v55 = vsel %vm1672_vm3, %v7987_v35, %v7988_v7  ;;  %v8160_v18 = vrot.slane %v16864_v32, 1  ;;  %v8198_v33 = vrot.slane %v16864_v32, 2  ;;  %v10778_v9 = vld [vmem:[%s17603_s2] ss:$0 sm:$0xff] }
 0x48a   :  { %v3724_v22 = vadd.f32 %v3548_v47, %v18867_v23  ;;  %v4036_v50 = vsel %vm1672_vm3, %v18869_v44, %v4035_v17  ;;  %v10352_v59 = vrot.slane %v18872_v34, 9  ;;  %8427 = vst.msk [vmem:[#allocation4 + $0x40] sm:$0xff] %vm6940_vm11, %v16896_v55  ;;  %7762 = vst.msk [vmem:[#allocation3 + $0x51] sm:$0xff] %vm6940_vm11, %v7663_v25  ;;  %v8161_v19 = vrot.slane %v7811_v58, 1  ;;  %v18878_v5 = vld [vmem:[#allocation166_spill] sm:$0xff]  ;;  %v18879_v11 = vld [vmem:[#allocation169_spill] sm:$0xff] }
 0x48b   :  { %v8199_v24 = vrot.slane %v7811_v58, 2  ;;  %v7701_v56 = vsel %vm7626_vm6, %v7445_v39, %v7700_v14  ;;  %v8406_v38 = vrot.slane %v16887_v37, 2  ;;  %v7670_v15 = vsel %vm7634_vm10, %v18874_v62, %v18873_v2  ;;  %v18876_v14 = vld [vmem:[#allocation53_spill] sm:$0xff]  ;;  %7959 = vst.msk [vmem:[#allocation4] sm:$0xff] %vm7958_vm13, %v18877_v6  ;;  %8250 = vst.msk [vmem:[#allocation4 + $0x20] sm:$0xff] %vm7958_vm13, %v18878_v5  ;;  %v18880_v26 = vld [vmem:[#allocation168_spill] sm:$0xff] }
 0x48c   :  { %v4212_v48 = vadd.f32 %v4036_v50, %v3724_v22  ;;  %8094 = vrot.lane.b32.xlu0 %v18875_v10, %s10784_s19  ;;  %v16922_v17 = vsel %vm1183_vm2, %v8160_v18, %v8161_v19  ;;  %7763 = vst.msk [vmem:[#allocation3 + $0x61] sm:$0xff] %vm6940_vm11, %v7670_v15  ;;  %v8407_v54 = vrot.slane %v16903_v31, 2  ;;  %v18881_v47 = vld [vmem:[#allocation157_spill] sm:$0xff]  ;;  %v7702_v35 = vsel %vm7628_vm7, %v16839_v57, %v7701_v56  ;;  %v18882_v7 = vld [vmem:[#allocation35_spill] sm:$0xff]  ;;  %v18884_v57 = vld [vmem:[#allocation68_spill] sm:$0xff] }
 0x48d   :  { %v16925_v39 = vsel %vm1672_vm3, %v8198_v33, %v8199_v24  ;;  %8249 = vst.msk [vmem:[#allocation4 + $0x8] sm:$0xff] %vm7958_vm13, %v18876_v14  ;;  %7960 = vst.msk [vmem:[#allocation4 + $0x18] sm:$0xff] %vm7958_vm13, %v18879_v11  ;;  %8116 = vrot.lane.b32.xlu1 %v18882_v7, %s10784_s19  ;;  %v7996_v58 = vrot.slane %v18883_v51, 2  ;;  %v7997_v30 = vrot.slane %v16909_v60, 2  ;;  %v16957_v23 = vld [vmem:[#allocation3 + $0xc0] sm:$0xff]  ;;  %v18885_v44 = vld [vmem:[#allocation78_spill] sm:$0xff]  ;;  %v16979_v33 = vrot.slane %v6898_v41, %v18123_v12 }
 0x48e   :  { %v4283_v61 = vadd.f32 %v10778_v9, %v4212_v48  ;;  %8261 = vst.msk [vmem:[#allocation4 + $0x128] sm:$0xff] %vm7958_vm13, %v18880_v26  ;;  %7971 = vst.msk [vmem:[#allocation4 + $0x120] sm:$0xff] %vm7958_vm13, %v18881_v47  ;;  %v8408_v0 = vsel %vm1672_vm3, %v8406_v38, %v8407_v54  ;;  %v7883_v50 = vrot.slane %v18883_v51, 1  ;;  %v18886_v16 = vld [vmem:[#allocation179_spill] sm:$0xff]  ;;  %v18887_v3 = vld [vmem:[#allocation177_spill] sm:$0xff]  ;;  %v18891_v42 = vrot.slane %v18890_v46, 9 }
 0x48f   :  { %8194 = vst.msk [vmem:[#allocation4 + $0x170] sm:$0xff] %vm6940_vm11, %v16922_v17  ;;  %8439 = vst.msk [vmem:[#allocation4 + $0x160] sm:$0xff] %vm6940_vm11, %v16925_v39  ;;  %v18888_v25 = vld [vmem:[#allocation164_spill] sm:$0xff]  ;;  %v18889_v18 = vld [vmem:[#allocation167_spill] sm:$0xff]  ;;  %v16986_v19 = vsel %vm1672_vm3, %v7996_v58, %v7997_v30  ;;  %v7884_v38 = vrot.slane %v16909_v60, 1  ;;  %v18895_v45 = vrot.slane %v18894_v21, 9 }
 0x490   :  { %v4347_v22 = vmax.f32 %v4283_v61, 0.0  ;;  %8315 = vst.msk [vmem:[#allocation4 + $0x8] sm:$0xff] %vm8071_vm14, %v18884_v57  ;;  %8072 = vst.msk [vmem:[#allocation4] sm:$0xff] %vm8071_vm14, %v18885_v44  ;;  %v6672_v48 = vmax.f32 %v18890_v46, %v18891_v42  ;;  %v18892_v24 = vld [vmem:[#allocation69_spill] sm:$0xff]  ;;  %v18896_v2 = vld [vmem:[#allocation71_spill] sm:$0xff]  ;;  %8229 = vrot.lane.b32.xlu0 %v16885_v40, %s10782_s0 }
 0x491   :  { %8327 = vst.msk [vmem:[#allocation4 + $0x128] sm:$0xff] %vm8071_vm14, %v18886_v16  ;;  %8316 = vst.msk [vmem:[#allocation4 + $0x20] sm:$0xff] %vm8071_vm14, %v18887_v3  ;;  %v18893_v56 = vld [vmem:[#allocation73_spill] sm:$0xff]  ;;  %v17004_v41 = vmax.f32 %v18894_v21, %v18895_v45  ;;  %v18897_v62 = vld [vmem:[#allocation70_spill] sm:$0xff]  ;;  %8207 = vrot.lane.b32.xlu1 %v16896_v55, %s10782_s0  ;;  %v17029_v14 = vsel %vm1183_vm2, %v7883_v50, %v7884_v38 }
 0x492   :  { %8084 = vst.msk [vmem:[#allocation4 + $0x120] sm:$0xff] %vm8071_vm14, %v18888_v25  ;;  %8073 = vst.msk [vmem:[#allocation4 + $0x18] sm:$0xff] %vm8071_vm14, %v18889_v18  ;;  %v7679_v60 = vsel %vm7624_vm5, %v18897_v62, %v18896_v2  ;;  %v4971_v15 = vcombine.high %v4347_v22, %v4347_v22  ;;  %v17026_v61 = vld [vmem:[#allocation3 + $0x50] sm:$0xff]  ;;  %v7785_v10 = vld [vmem:[#allocation3 + $0x58] sm:$0x3] }
 0x493   :  { %7824 = vst.msk [vmem:[#allocation4 + $0xf0] sm:$0xff] %vm6940_vm11, %v16957_v23  ;;  %8440 = vst.msk [vmem:[#allocation4 + $0x178] sm:$0xff] %vm6940_vm11, %v8408_v0  ;;  %v7990_v5 = vrot.slane %v17026_v61, 2  ;;  %v7991_v11 = vrot.slane %v7785_v10, 2  ;;  %v17040_v26 = vld [vmem:[#allocation3 + $0x60] sm:$0xff]  ;;  %v17046_v0 = vld [vmem:[#allocation3 + $0x90] sm:$0xff] }
 0x494   :  { %8387 = vst.msk [vmem:[#allocation4 + $0x8] sm:$0xff] %vm8138_vm15, %v18892_v24  ;;  %8139 = vst.msk [vmem:[#allocation4] sm:$0xff] %vm8138_vm15, %v18893_v56  ;;  %v7787_v47 = vld [vmem:[#allocation3 + $0x68] sm:$0x3]  ;;  %v18901_v57 = vld [vmem:[#allocation15_spill] sm:$0xff]  ;;  %v7880_v16 = vrot.slane %v17040_v26, 1 }
 0x495   :  { %8399 = vst.msk [vmem:[#allocation4 + $0x128] sm:$0xff] %vm8138_vm15, %v16784_v8  ;;  %8388 = vst.msk [vmem:[#allocation4 + $0x20] sm:$0xff] %vm8138_vm15, %v16786_v20  ;;  %v18898_v8 = vld [vmem:[#allocation5_spill] sm:$0xff]  ;;  %v7703_v20 = vsel %vm7630_vm8, %v16842_v43, %v7702_v35  ;;  %7916 = vrot.lane.b32.xlu1 %v18901_v57, %s10782_s0  ;;  %v17054_v50 = vsel %vm1672_vm3, %v7990_v5, %v7991_v11  ;;  %v7881_v3 = vrot.slane %v7787_v47, 1  ;;  %v17061_v24 = vld [vmem:[#allocation3 + $0x98] sm:$0x3] }
 0x496   :  { %8151 = vst.msk [vmem:[#allocation4 + $0x120] sm:$0xff] %vm8138_vm15, %v16811_v63  ;;  %8140 = vst.msk [vmem:[#allocation4 + $0x18] sm:$0xff] %vm8138_vm15, %v16813_v1  ;;  %v4978_v9 = vrot.slane %v4347_v22, %v18898_v8  ;;  %v6674_v63 = vmax.f32 %v18861_v52, %v10351_v53  ;;  %v17022_v1 = vmax.f32 %v18872_v34, %v10352_v59  ;;  %v7877_v52 = vrot.slane %v17026_v61, 1  ;;  %v18899_v53 = vld [vmem:[#allocation66_spill] sm:$0xff]  ;;  %v18900_v22 = vld [vmem:[#allocation45_spill] sm:$0xff] }
 0x497   :  { %8430 = vst.msk [vmem:[#allocation4 + $0x88] sm:$0xff] %vm6940_vm11, %v16986_v19  ;;  %v4985_v43 = vrot.slane %v4971_v15, %v18898_v8  ;;  %7819 = vst.msk [vmem:[#allocation4 + $0x78] sm:$0xff] %vm6940_vm11, %v17026_v61  ;;  %v7680_v34 = vsel %vm7626_vm6, %v18899_v53, %v7679_v60  ;;  %v7878_v59 = vrot.slane %v7785_v10, 1  ;;  %7938 = vrot.lane.b32.xlu0 %v18900_v22, %s10782_s0  ;;  %v7993_v38 = vrot.slane %v17040_v26, 2  ;;  %v7799_v10 = vld [vmem:[#allocation3 + $0xc8] sm:$0x3] }
 0x498   :  { %v4986_v54 = vcombine.high %v4978_v9, %v4978_v9  ;;  %v10357_v6 = vrot.slane %v4978_v9, 9  ;;  %8185 = vst.msk [vmem:[#allocation4 + $0x98] sm:$0xff] %vm6940_vm11, %v17029_v14  ;;  %7820 = vst.msk [vmem:[#allocation4 + $0x90] sm:$0xff] %vm6940_vm11, %v17040_v26  ;;  %v17064_v56 = vsel %vm1183_vm2, %v7880_v16, %v7881_v3  ;;  %v7994_v21 = vrot.slane %v7787_v47, 2  ;;  %v17098_v5 = vld [vmem:[#allocation3 + $0xb8] sm:$0x3] }
 0x499   :  { %v4987_v35 = vcombine.high %v4985_v43, %v4985_v43  ;;  %v10359_v58 = vrot.slane %v4985_v43, 9  ;;  %v17051_v44 = vsel %vm1183_vm2, %v7877_v52, %v7878_v59  ;;  %8428 = vst.msk [vmem:[#allocation4 + $0x58] sm:$0xff] %vm6940_vm11, %v17054_v50  ;;  %v8403_v45 = vrot.slane %v17046_v0, 2  ;;  %8184 = vst.msk [vmem:[#allocation4 + $0x80] sm:$0xff] %vm6940_vm11, %v17064_v56  ;;  %8273 = vrot.lane.b32.xlu1 %v17026_v61, %s10783_s14  ;;  %v18904_v3 = vld [vmem:[#allocation72_spill] sm:$0xff] }
 0x49a   :  { %v10358_v7 = vrot.slane %v4986_v54, 9  ;;  %v6680_v30 = vmax.f32 %v4978_v9, %v10357_v6  ;;  %8183 = vst.msk [vmem:[#allocation4 + $0x68] sm:$0xff] %vm6940_vm11, %v17051_v44  ;;  %v7461_v15 = vrot.slane %v6899_v4, %v18123_v12  ;;  %v7704_v9 = vsel %vm7632_vm9, %v16979_v33, %v7703_v20 }
 0x49b   :  { %v10360_v25 = vrot.slane %v4987_v35, 9  ;;  %v6682_v46 = vmax.f32 %v4985_v43, %v10359_v58  ;;  %8295 = vrot.lane.b32.xlu0 %v16864_v32, %s10783_s14  ;;  %v7892_v33 = vrot.slane %v16957_v23, 1  ;;  %v8442_v20 = vld [vmem:[#allocation4 + $0x8] sm:$0xff]  ;;  %v8006_v58 = vrot.slane %v7799_v10, 2 }
 0x49c   :  { %v6681_v18 = vmax.f32 %v4986_v54, %v10358_v7  ;;  %v6872_v42 = vmax.f32 %v6672_v48, %v6680_v30  ;;  %v8445_v43 = vld [vmem:[#allocation4 + $0x20] sm:$0xff]  ;;  %v8005_v7 = vrot.slane %v16957_v23, 2 }
 0x49d   :  { %v6683_v2 = vmax.f32 %v4987_v35, %v10360_v25  ;;  %v6874_v48 = vmax.f32 %v6674_v63, %v6682_v46  ;;  %v8404_v63 = vrot.slane %v17061_v24, 2  ;;  %v8444_v52 = vld [vmem:[#allocation4 + $0x18] sm:$0xff]  ;;  %v8490_v11 = vpack.c.bf16 %v8445_v43, %v8442_v20  ;;  %v18903_v35 = vld [vmem:[#allocation57_spill] sm:$0xff] }
 0x49e   :  { %v6873_v62 = vmax.f32 %v17004_v41, %v6681_v18  ;;  %v7353_v60 = vrot.slane %v6872_v42, %v18123_v12  ;;  %v17083_v41 = vsel %vm1672_vm3, %v7993_v38, %v7994_v21  ;;  %8029 = vrot.lane.b32.xlu1 %v18903_v35, %s10783_s14  ;;  %v8441_v30 = vld [vmem:[#allocation4] sm:$0xff]  ;;  %v7889_v25 = vrot.slane %v18904_v3, 1 }
 0x49f   :  { %v6875_v54 = vmax.f32 %v17022_v1, %v6683_v2  ;;  %v7361_v13 = vrot.slane %v6874_v48, %v18123_v12  ;;  %8429 = vst.msk [vmem:[#allocation4 + $0x70] sm:$0xff] %vm6940_vm11, %v17083_v41  ;;  %v8405_v4 = vsel %vm1672_vm3, %v8403_v45, %v8404_v63  ;;  %v18902_v1 = vld [vmem:[#allocation7_spill] sm:$0xff]  ;;  %8720 = vmatprep.mubr.bf16.mxu0 %v8490_v11  ;;  %v7890_v46 = vrot.slane %v17098_v5, 1 }
 0x4a0   :  { %v7357_v6 = vrot.slane %v6873_v62, %v18123_v12  ;;  %v7681_v49 = vsel %vm7628_vm7, %v7353_v60, %v7680_v34  ;;  %8051 = vrot.lane.b32.xlu0 %v18902_v1, %s10783_s14  ;;  %8432 = vst.msk [vmem:[#allocation4 + $0xb8] sm:$0xff] %vm6940_vm11, %v8405_v4  ;;  %v7893_v34 = vrot.slane %v7799_v10, 1  ;;  %v8489_v16 = vpack.c.bf16 %v8444_v52, %v8441_v30 }
 0x4a1   :  { %v7365_v53 = vrot.slane %v6875_v54, %v18123_v12  ;;  %v7705_v12 = vsel %vm7634_vm10, %v7461_v15, %v7704_v9  ;;  %v17116_v18 = vsel %vm1672_vm3, %v8005_v7, %v8006_v58  ;;  %v17126_v42 = vsel %vm1183_vm2, %v7889_v25, %v7890_v46  ;;  %v8477_v58 = vld [vmem:[#allocation4 + $0x120] sm:$0xff] }
 0x4a2   :  { %v7682_v59 = vsel %vm7630_vm8, %v7357_v6, %v7681_v49  ;;  %v17108_v57 = vsel %vm1183_vm2, %v7892_v33, %v7893_v34  ;;  %7768 = vst.msk [vmem:[#allocation3 + $0xd1] sm:$0xff] %vm6940_vm11, %v7705_v12  ;;  %8433 = vst.msk [vmem:[#allocation4 + $0xd0] sm:$0xff] %vm6940_vm11, %v17116_v18  ;;  %8721 = vmatmul.mubr.bf16.vlgmr.msra.gmra.mrb[0].mxu0 %v8489_v16  ;;  %8345 = vrot.lane.b32.xlu1 %v17051_v44, %s10784_s19  ;;  %v8336_v4 = vrot.slane %v16887_v37, 1  ;;  %v8478_v34 = vld [vmem:[#allocation4 + $0x128] sm:$0xff] }
 0x4a3   :  { %v7683_v47 = vsel %vm7632_vm9, %v7361_v13, %v7682_v59  ;;  %8188 = vst.msk [vmem:[#allocation4 + $0xe0] sm:$0xff] %vm6940_vm11, %v17108_v57  ;;  %8187 = vst.msk [vmem:[#allocation4 + $0xc8] sm:$0xff] %vm6940_vm11, %v17126_v42  ;;  %v8337_v33 = vrot.slane %v16903_v31, 1  ;;  %v8334_v20 = vrot.slane %v17061_v24, 1  ;;  %v18907_v59 = vld [vmem:[#allocation206_spill] sm:$0xff] }
 0x4a4   :  { %v7684_v22 = vsel %vm7634_vm10, %v7365_v53, %v7683_v47  ;;  %8367 = vrot.lane.b32.xlu0 %v16922_v17, %s10784_s19 }
 0x4a5   :  { %7765 = vst.msk [vmem:[#allocation3 + $0x81] sm:$0xff] %vm6940_vm11, %v7684_v22  ;;  %v10715_v22 = vld [vmem:[%s17604_s3 + $0x88] sm:$0xff]  }
 0x4a6   :  { %8096 = vrot.lane.b32.xlu1 %v18863_v29, %s10784_s19 }
 0x4a8   :  { %8118 = vrot.lane.b32.xlu0 %v18864_v36, %s10784_s19  ;;  %v8272_v54 = vpop.permute.xlu0 %8271  ;;  %v8294_v6 = vpop.permute.xlu1 %8293 }
 0x4a9   :  { %v17134_v17 = vld [vmem:[#allocation3 + $0xd0] sm:$0xff]  ;;  %v7801_v38 = vld [vmem:[#allocation3 + $0xd8] sm:$0x3]  ;;  %8317 = vst.msk [vmem:[#allocation4 + $0x38] sm:$0xff] %vm8071_vm14, %v8272_v54  ;;  %8328 = vst.msk [vmem:[#allocation4 + $0x140] sm:$0xff] %vm8071_vm14, %v8294_v6 }
 0x4aa   :  { %v8008_v2 = vrot.slane %v17134_v17, 2  ;;  %v8009_v62 = vrot.slane %v7801_v38, 2  ;;  %7825 = vst.msk [vmem:[#allocation4 + $0x108] sm:$0xff] %vm6940_vm11, %v17134_v17  ;;  %v7895_v48 = vrot.slane %v17134_v17, 1  ;;  %v7896_v63 = vrot.slane %v7801_v38, 1  ;;  %8231 = vrot.lane.b32.xlu1 %v16925_v39, %s10782_s0 }
 0x4ac   :  { %v17136_v21 = vld [vmem:[#allocation3 + $0x80] sm:$0xff]  ;;  %v7791_v45 = vld [vmem:[#allocation3 + $0x88] sm:$0x3]  ;;  %8209 = vrot.lane.b32.xlu0 %v17054_v50, %s10782_s0  ;;  %v17147_v9 = vsel %vm1672_vm3, %v8008_v2, %v8009_v62  ;;  %v17158_v13 = vsel %vm1183_vm2, %v7895_v48, %v7896_v63  ;;  %v8028_v39 = vpop.permute.xlu0 %8027  ;;  %v8050_v49 = vpop.permute.xlu1 %8049 }
 0x4ad   :  { %v8157_v60 = vrot.slane %v17136_v21, 1  ;;  %v8195_v36 = vrot.slane %v17136_v21, 2  ;;  %v8158_v15 = vrot.slane %v7791_v45, 1  ;;  %v8196_v29 = vrot.slane %v7791_v45, 2  ;;  %8434 = vst.msk [vmem:[#allocation4 + $0xe8] sm:$0xff] %vm6940_vm11, %v17147_v9  ;;  %8189 = vst.msk [vmem:[#allocation4 + $0xf8] sm:$0xff] %vm6940_vm11, %v17158_v13 }
 0x4ae   :  { %7940 = vrot.lane.b32.xlu1 %v16882_v27, %s10782_s0  ;;  %8074 = vst.msk [vmem:[#allocation4 + $0x30] sm:$0xff] %vm8071_vm14, %v8028_v39  ;;  %8085 = vst.msk [vmem:[#allocation4 + $0x138] sm:$0xff] %vm8071_vm14, %v8050_v49  ;;  %v17187_v27 = vld [vmem:[%s17604_s3 + $0x80] sm:$0xff]  }
 0x4af   :  { %v8159_v10 = vsel %vm1183_vm2, %v8157_v60, %v8158_v15  ;;  %v8197_v43 = vsel %vm1672_vm3, %v8195_v36, %v8196_v29  ;;  %10654 = vmatprep.subr.bf16.mxu1 %v17187_v27 }
 0x4b0   :  { %8186 = vst.msk [vmem:[#allocation4 + $0xb0] sm:$0xff] %vm6940_vm11, %v8159_v10  ;;  %8431 = vst.msk [vmem:[#allocation4 + $0xa0] sm:$0xff] %vm6940_vm11, %v8197_v43  ;;  %7918 = vrot.lane.b32.xlu0 %v16870_v28, %s10782_s0  ;;  %v8338_v28 = vsel %vm1183_vm2, %v8336_v4, %v8337_v33 }
 0x4b2   :  { %8297 = vrot.lane.b32.xlu1 %v16887_v37, %s10783_s14  ;;  %v8003_v37 = vrot.slane %v17098_v5, 2 }
 0x4b4   :  { %8275 = vrot.lane.b32.xlu0 %v17040_v26, %s10783_s14 }
 0x4b6   :  { %8053 = vrot.lane.b32.xlu1 %v16885_v40, %s10783_s14  ;;  %v8002_v40 = vrot.slane %v18904_v3, 2 }
 0x4b8   :  { %8031 = vrot.lane.b32.xlu0 %v16896_v55, %s10783_s14  ;;  %v18905_v55 = vld [vmem:[#allocation173_spill] sm:$0xff] }
 0x4b9   :  { %v7886_v31 = vrot.slane %v18905_v55, 1 }
 0x4ba   :  { %8369 = vrot.lane.b32.xlu1 %v8338_v28, %s10784_s19 }
 0x4bc   :  { %8347 = vrot.lane.b32.xlu0 %v17064_v56, %s10784_s19 }
 0x4be   :  { %8120 = vrot.lane.b32.xlu1 %v16864_v32, %s10784_s19  ;;  %v7795_v32 = vld [vmem:[#allocation3 + $0xa8] sm:$0x3] }
 0x4c0   :  { %8098 = vrot.lane.b32.xlu0 %v17026_v61, %s10784_s19  ;;  %v7887_v61 = vrot.slane %v7795_v32, 1 }
 0x4c2   :  { %8211 = vrot.lane.b32.xlu1 %v17083_v41, %s10782_s0 }
 0x4c4   :  { %8213 = vrot.lane.b32.xlu0 %v16986_v19, %s10782_s0 }
 0x4c6   :  { %7920 = vrot.lane.b32.xlu1 %v17051_v44, %s10782_s0  ;;  %v8004_v44 = vsel %vm1672_vm3, %v8002_v40, %v8003_v37 }
 0x4c8   :  { %7922 = vrot.lane.b32.xlu0 %v17064_v56, %s10782_s0  ;;  %v8000_v56 = vrot.slane %v7795_v32, 2 }
 0x4ca   :  { %8277 = vrot.lane.b32.xlu1 %v18883_v51, %s10783_s14 }
 0x4cc   :  { %8279 = vrot.lane.b32.xlu0 %v17136_v21, %s10783_s14 }
 0x4ce   :  { %8033 = vrot.lane.b32.xlu1 %v17054_v50, %s10783_s14  ;;  %v7888_v50 = vsel %vm1183_vm2, %v7886_v31, %v7887_v61 }
 0x4d0   :  { %8035 = vrot.lane.b32.xlu0 %v17083_v41, %s10783_s14  ;;  %v8333_v41 = vrot.slane %v17046_v0, 1 }
 0x4d2   :  { %8349 = vrot.lane.b32.xlu1 %v17029_v14, %s10784_s19 }
 0x4d4   :  { %8351 = vrot.lane.b32.xlu0 %v8159_v10, %s10784_s19 }
 0x4d6   :  { %8100 = vrot.lane.b32.xlu1 %v17040_v26, %s10784_s19 }
 0x4d8   :  { %8102 = vrot.lane.b32.xlu0 %v18883_v51, %s10784_s19  ;;  %v7999_v51 = vrot.slane %v18905_v55, 2  ;;  %v8446_v55 = vld [vmem:[#allocation4 + $0x28] sm:$0xff] }
 0x4da   :  { %8215 = vrot.lane.b32.xlu1 %v8197_v43, %s10782_s0  ;;  %v8001_v26 = vsel %vm1672_vm3, %v7999_v51, %v8000_v56  ;;  %v8443_v51 = vld [vmem:[#allocation4 + $0x10] sm:$0xff] }
 0x4db   :  { %v8491_v56 = vpack.c.bf16 %v8446_v55, %v8443_v51 }
 0x4dc   :  { %8217 = vrot.lane.b32.xlu0 %v8004_v44, %s10782_s0 }
 0x4de   :  { %7924 = vrot.lane.b32.xlu1 %v17029_v14, %s10782_s0  ;;  %v8335_v14 = vsel %vm1183_vm2, %v8333_v41, %v8334_v20  ;;  %v8452_v20 = vld [vmem:[#allocation4 + $0x58] sm:$0xff] }
 0x4e0   :  { %7926 = vrot.lane.b32.xlu0 %v7888_v50, %s10782_s0 }
 0x4e2   :  { %8281 = vrot.lane.b32.xlu1 %v17046_v0, %s10783_s14 }
 0x4e4   :  { %8283 = vrot.lane.b32.xlu0 %v16957_v23, %s10783_s14 }
 0x4e6   :  { %8037 = vrot.lane.b32.xlu1 %v16986_v19, %s10783_s14  ;;  %v18906_v19 = vld [vmem:[#allocation199_spill] sm:$0xff] }
 0x4e8   :  { %8039 = vrot.lane.b32.xlu0 %v8001_v26, %s10783_s14 }
 0x4ea   :  { %8353 = vrot.lane.b32.xlu1 %v8335_v14, %s10784_s19 }
 0x4ec   :  { %8355 = vrot.lane.b32.xlu0 %v17108_v57, %s10784_s19 }
 0x4ee   :  { %8104 = vrot.lane.b32.xlu1 %v17136_v21, %s10784_s19  ;;  %v18910_v21 = vld [vmem:[#allocation58_spill] sm:$0xff] }
 0x4f0   :  { %8106 = vrot.lane.b32.xlu0 %v18904_v3, %s10784_s19 }
 0x4f2   :  { %8219 = vrot.lane.b32.xlu1 %v17116_v18, %s10782_s0 }
 0x4f4   :  { %8221 = vrot.lane.b32.xlu0 %v17147_v9, %s10782_s0 }
 0x4f6   :  { %7928 = vrot.lane.b32.xlu1 %v17126_v42, %s10782_s0 }
 0x4f8   :  { %7930 = vrot.lane.b32.xlu0 %v17108_v57, %s10782_s0  ;;  %v18908_v57 = vld [vmem:[#allocation40_spill] sm:$0xff] }
 0x4fa   :  { %8285 = vrot.lane.b32.xlu1 %v17134_v17, %s10783_s14  ;;  %v8344_v0 = vpop.permute.xlu0 %8343 }
 0x4fb   :  { %8389 = vst.msk [vmem:[#allocation4 + $0x38] sm:$0xff] %vm8138_vm15, %v8344_v0  ;;  %v8366_v24 = vpop.permute.xlu1 %8365 }
 0x4fc   :  { %8287 = vrot.lane.b32.xlu0 %v18906_v19, %s10783_s14  ;;  %8400 = vst.msk [vmem:[#allocation4 + $0x140] sm:$0xff] %vm8138_vm15, %v8366_v24  ;;  %v8449_v24 = vld [vmem:[#allocation4 + $0x40] sm:$0xff] }
 0x4fe   :  { %8041 = vrot.lane.b32.xlu1 %v8004_v44, %s10783_s14  ;;  %v8095_v52 = vpop.permute.xlu0 %8094 }
 0x4ff   :  { %8141 = vst.msk [vmem:[#allocation4 + $0x30] sm:$0xff] %vm8138_vm15, %v8095_v52  ;;  %v8117_v53 = vpop.permute.xlu1 %8116  ;;  %v8494_v52 = vpack.c.bf16 %v8452_v20, %v8449_v24 }
 0x500   :  { %8043 = vrot.lane.b32.xlu0 %v17116_v18, %s10783_s14  ;;  %8152 = vst.msk [vmem:[#allocation4 + $0x138] sm:$0xff] %vm8138_vm15, %v8117_v53  ;;  %v18909_v18 = vld [vmem:[#allocation201_spill] sm:$0xff]  ;;  %v8455_v53 = vld [vmem:[#allocation4 + $0x70] sm:$0xff] }
 0x502   :  { %8357 = vrot.lane.b32.xlu1 %v17158_v13, %s10784_s19  ;;  %v8230_v1 = vpop.permute.xlu0 %8229  ;;  %v8448_v62 = vld [vmem:[#allocation4 + $0x38] sm:$0xff] }
 0x503   :  { %8263 = vst.msk [vmem:[#allocation4 + $0x158] sm:$0xff] %vm7958_vm13, %v8230_v1  ;;  %v8208_v5 = vpop.permute.xlu1 %8207  ;;  %v8481_v11 = vld [vmem:[#allocation4 + $0x140] sm:$0xff] }
 0x504   :  { %8359 = vrot.lane.b32.xlu0 %v18907_v59, %s10784_s19  ;;  %8252 = vst.msk [vmem:[#allocation4 + $0x50] sm:$0xff] %vm7958_vm13, %v8208_v5  ;;  %v8508_v47 = vpack.c.bf16 %v8481_v11, %v8478_v34  ;;  %v8461_v34 = vld [vmem:[#allocation4 + $0xa0] sm:$0xff]  ;;  %v8464_v11 = vld [vmem:[#allocation4 + $0xb8] sm:$0xff] }
 0x506   :  { %8108 = vrot.lane.b32.xlu1 %v16957_v23, %s10784_s19  ;;  %8768 = vmatprep.mubr.bf16.mxu1 %v8508_v47  ;;  %v8447_v29 = vld [vmem:[#allocation4 + $0x30] sm:$0xff] }
 0x507   :  { %v7917_v7 = vpop.permute.xlu1 %7916  ;;  %v8480_v12 = vld [vmem:[#allocation4 + $0x138] sm:$0xff] }
 0x508   :  { %8110 = vrot.lane.b32.xlu0 %v17134_v17, %s10784_s19  ;;  %7962 = vst.msk [vmem:[#allocation4 + $0x48] sm:$0xff] %vm7958_vm13, %v7917_v7  ;;  %v8507_v30 = vpack.c.bf16 %v8480_v12, %v8477_v58  ;;  %v8500_v58 = vpack.c.bf16 %v8464_v11, %v8461_v34  ;;  %v8467_v12 = vld [vmem:[#allocation4 + $0xd0] sm:$0xff] }
 0x509   :  { %v7939_v35 = vpop.permute.xlu0 %7938 }
 0x50a   :  { %7973 = vst.msk [vmem:[#allocation4 + $0x150] sm:$0xff] %vm7958_vm13, %v7939_v35  ;;  %8223 = vrot.lane.b32.xlu1 %v18908_v57, %s10782_s0  ;;  %8769 = vmatmul.mubr.bf16.vlgmr.msra.gmra.mrb[0].mxu1 %v8507_v30  ;;  %v8470_v35 = vld [vmem:[#allocation4 + $0xe8] sm:$0xff] }
 0x50b   :  { %v8274_v23 = vpop.permute.xlu1 %8273  ;;  %10655 = vmatpush3.bf16.msra.mxu1 %v17187_v27  ;;  %v8503_v30 = vpack.c.bf16 %v8470_v35, %v8467_v12 }
 0x50c   :  { %8318 = vst.msk [vmem:[#allocation4 + $0x50] sm:$0xff] %vm8071_vm14, %v8274_v23  ;;  %10656 = vmatprep.subr.bf16.mxu1 %v10715_v22 }
 0x50d   :  { %v8296_v16 = vpop.permute.xlu0 %8295 }
 0x50e   :  { %8329 = vst.msk [vmem:[#allocation4 + $0x158] sm:$0xff] %vm8071_vm14, %v8296_v16  ;;  %7932 = vrot.lane.b32.xlu1 %v17158_v13, %s10782_s0 }
 0x50f   :  { %10657 = vmatpush3.bf16.msra.mxu1 %v10715_v22 }
 0x510   :  { %v8030_v25 = vpop.permute.xlu1 %8029 }
 0x511   :  { %8075 = vst.msk [vmem:[#allocation4 + $0x48] sm:$0xff] %vm8071_vm14, %v8030_v25  ;;  %v8473_v25 = vld [vmem:[#allocation4 + $0x100] sm:$0xff] }
 0x512   :  { %v8052_v3 = vpop.permute.xlu0 %8051  ;;  %8289 = vrot.lane.b32.xlu1 %v18909_v18, %s10783_s14 }
 0x513   :  { %8086 = vst.msk [vmem:[#allocation4 + $0x150] sm:$0xff] %vm8071_vm14, %v8052_v3 }
 0x514   :  { %v8346_v42 = vpop.permute.xlu1 %8345 }
 0x515   :  { %8390 = vst.msk [vmem:[#allocation4 + $0x50] sm:$0xff] %vm8138_vm15, %v8346_v42 }
 0x516   :  { %v8368_v46 = vpop.permute.xlu0 %8367  ;;  %8045 = vrot.lane.b32.xlu1 %v17147_v9, %s10783_s14 }
 0x517   :  { %8401 = vst.msk [vmem:[#allocation4 + $0x158] sm:$0xff] %vm8138_vm15, %v8368_v46  ;;  %v8482_v46 = vld [vmem:[#allocation4 + $0x148] sm:$0xff] }
 0x518   :  { %v8097_v38 = vpop.permute.xlu1 %8096 }
 0x519   :  { %8142 = vst.msk [vmem:[#allocation4 + $0x48] sm:$0xff] %vm8138_vm15, %v8097_v38 }
 0x51a   :  { %v8119_v17 = vpop.permute.xlu0 %8118  ;;  %8361 = vrot.lane.b32.xlu1 %v18910_v21, %s10784_s19  ;;  %v8476_v21 = vld [vmem:[#allocation4 + $0x118] sm:$0xff] }
 0x51b   :  { %8153 = vst.msk [vmem:[#allocation4 + $0x150] sm:$0xff] %vm8138_vm15, %v8119_v17 }
 0x51c   :  { %v8232_v2 = vpop.permute.xlu1 %8231  ;;  %v8451_v48 = vld [vmem:[#allocation4 + $0x50] sm:$0xff] }
 0x51d   :  { %8264 = vst.msk [vmem:[#allocation4 + $0x170] sm:$0xff] %vm7958_vm13, %v8232_v2  ;;  %v8493_v60 = vpack.c.bf16 %v8451_v48, %v8448_v62  ;;  %v8506_v2 = vpack.c.bf16 %v8476_v21, %v8473_v25  ;;  %v8479_v62 = vld [vmem:[#allocation4 + $0x130] sm:$0xff] }
 0x51e   :  { %v8210_v45 = vpop.permute.xlu0 %8209  ;;  %8112 = vrot.lane.b32.xlu1 %v18906_v19, %s10784_s19  ;;  %v8484_v27 = vld [vmem:[#allocation4 + $0x158] sm:$0xff]  ;;  %v8458_v19 = vld [vmem:[#allocation4 + $0x88] sm:$0xff]  ;;  %v8509_v48 = vpack.c.bf16 %v8482_v46, %v8479_v62 }
 0x51f   :  { %8253 = vst.msk [vmem:[#allocation4 + $0x68] sm:$0xff] %vm7958_vm13, %v8210_v45  ;;  %8728 = vmatprep.mubr.bf16.mxu0 %v8493_v60  ;;  %v8497_v59 = vpack.c.bf16 %v8458_v19, %v8455_v53 }
 0x520   :  { %v7941_v15 = vpop.permute.xlu1 %7940  ;;  %v8450_v9 = vld [vmem:[#allocation4 + $0x48] sm:$0xff] }
 0x521   :  { %7974 = vst.msk [vmem:[#allocation4 + $0x168] sm:$0xff] %vm7958_vm13, %v7941_v15  ;;  %v8492_v63 = vpack.c.bf16 %v8450_v9, %v8447_v29  ;;  %v8485_v15 = vld [vmem:[#allocation4 + $0x160] sm:$0xff]  ;;  %v8488_v29 = vld [vmem:[#allocation4 + $0x178] sm:$0xff] }
 0x522   :  { %v7919_v36 = vpop.permute.xlu0 %7918  ;;  %v8483_v61 = vld [vmem:[#allocation4 + $0x150] sm:$0xff] }
 0x523   :  { %7963 = vst.msk [vmem:[#allocation4 + $0x60] sm:$0xff] %vm7958_vm13, %v7919_v36  ;;  %8729 = vmatmul.mubr.bf16.gmra.mrb[4].mxu0 %v8492_v63 }
 0x524   :  { %v8298_v43 = vpop.permute.xlu1 %8297 }
 0x525   :  { %8330 = vst.msk [vmem:[#allocation4 + $0x170] sm:$0xff] %vm8071_vm14, %v8298_v43 }
 0x526   :  { %v8276_v10 = vpop.permute.xlu0 %8275 }
 0x527   :  { %8319 = vst.msk [vmem:[#allocation4 + $0x68] sm:$0xff] %vm8071_vm14, %v8276_v10  ;;  %v8512_v10 = vpack.c.bf16 %v8488_v29, %v8485_v15 }
 0x528   :  { %v8054_v6 = vpop.permute.xlu1 %8053 }
 0x529   :  { %8087 = vst.msk [vmem:[#allocation4 + $0x168] sm:$0xff] %vm8071_vm14, %v8054_v6 }
 0x52a   :  { %v8032_v54 = vpop.permute.xlu0 %8031 }
 0x52b   :  { %8076 = vst.msk [vmem:[#allocation4 + $0x60] sm:$0xff] %vm8071_vm14, %v8032_v54 }
 0x52c   :  { %v8370_v39 = vpop.permute.xlu1 %8369 }
 0x52d   :  { %8402 = vst.msk [vmem:[#allocation4 + $0x170] sm:$0xff] %vm8138_vm15, %v8370_v39 }
 0x52e   :  { %v8348_v13 = vpop.permute.xlu0 %8347 }
 0x52f   :  { %8391 = vst.msk [vmem:[#allocation4 + $0x68] sm:$0xff] %vm8138_vm15, %v8348_v13 }
 0x530   :  { %v8121_v4 = vpop.permute.xlu1 %8120 }
 0x531   :  { %8154 = vst.msk [vmem:[#allocation4 + $0x168] sm:$0xff] %vm8138_vm15, %v8121_v4 }
 0x532   :  { %v8099_v49 = vpop.permute.xlu0 %8098 }
 0x533   :  { %8143 = vst.msk [vmem:[#allocation4 + $0x60] sm:$0xff] %vm8138_vm15, %v8099_v49 }
 0x534   :  { %v8212_v28 = vpop.permute.xlu1 %8211  ;;  %v8487_v32 = vld [vmem:[#allocation4 + $0x170] sm:$0xff] }
 0x535   :  { %8254 = vst.msk [vmem:[#allocation4 + $0x80] sm:$0xff] %vm7958_vm13, %v8212_v28  ;;  %v8511_v40 = vpack.c.bf16 %v8487_v32, %v8484_v27 }
 0x536   :  { %v8214_v33 = vpop.permute.xlu0 %8213  ;;  %v8454_v16 = vld [vmem:[#allocation4 + $0x68] sm:$0xff] }
 0x537   :  { %8255 = vst.msk [vmem:[#allocation4 + $0x98] sm:$0xff] %vm7958_vm13, %v8214_v33  ;;  %8776 = vmatprep.mubr.bf16.mxu1 %v8511_v40 }
 0x538   :  { %v7921_v31 = vpop.permute.xlu1 %7920  ;;  %v8486_v44 = vld [vmem:[#allocation4 + $0x168] sm:$0xff] }
 0x539   :  { %7964 = vst.msk [vmem:[#allocation4 + $0x78] sm:$0xff] %vm7958_vm13, %v7921_v31  ;;  %v8510_v50 = vpack.c.bf16 %v8486_v44, %v8483_v61 }
 0x53a   :  { %v7923_v37 = vpop.permute.xlu0 %7922  ;;  %v8453_v17 = vld [vmem:[#allocation4 + $0x60] sm:$0xff] }
 0x53b   :  { %7965 = vst.msk [vmem:[#allocation4 + $0x90] sm:$0xff] %vm7958_vm13, %v7923_v37  ;;  %8777 = vmatmul.mubr.bf16.gmra.mrb[4].mxu1 %v8510_v50 }
 0x53c   :  { %10658 = vmatprep.mubr.msk.bf16.mxu1 %vm6940_vm11, %v8491_v56  ;;  %v8278_v41 = vpop.permute.xlu1 %8277 }
 0x53d   :  { %8320 = vst.msk [vmem:[#allocation4 + $0x80] sm:$0xff] %vm8071_vm14, %v8278_v41 }
 0x53e   :  { %v8280_v26 = vpop.permute.xlu0 %8279 }
 0x53f   :  { %8321 = vst.msk [vmem:[#allocation4 + $0x98] sm:$0xff] %vm8071_vm14, %v8280_v26 }
 0x540   :  { %v8034_v0 = vpop.permute.xlu1 %8033 }
 0x541   :  { %8077 = vst.msk [vmem:[#allocation4 + $0x78] sm:$0xff] %vm8071_vm14, %v8034_v0 }
 0x542   :  { %v8036_v14 = vpop.permute.xlu0 %8035 }
 0x543   :  { %8078 = vst.msk [vmem:[#allocation4 + $0x90] sm:$0xff] %vm8071_vm14, %v8036_v14  ;;  %10659 = vmatmul.mubr.msk.bf16.vlgmr.msra.gmra.mrb[8].mxu1 %vm6940_vm11, %v8494_v52 }
 0x544   :  { %10662 = vmatprep.mubr.msk.bf16.mxu1 %vm6940_vm11, %v8497_v59  ;;  %v8350_v5 = vpop.permute.xlu1 %8349 }
 0x545   :  { %8392 = vst.msk [vmem:[#allocation4 + $0x80] sm:$0xff] %vm8138_vm15, %v8350_v5 }
 0x546   :  { %v8352_v1 = vpop.permute.xlu0 %8351 }
 0x547   :  { %8393 = vst.msk [vmem:[#allocation4 + $0x98] sm:$0xff] %vm8138_vm15, %v8352_v1 }
 0x548   :  { %v8101_v7 = vpop.permute.xlu1 %8100 }
 0x549   :  { %8144 = vst.msk [vmem:[#allocation4 + $0x78] sm:$0xff] %vm8138_vm15, %v8101_v7 }
 0x54a   :  { %v8103_v47 = vpop.permute.xlu0 %8102 }
 0x54b   :  { %8145 = vst.msk [vmem:[#allocation4 + $0x90] sm:$0xff] %vm8138_vm15, %v8103_v47  ;;  %10663 = vmatmul.mubr.msk.bf16.gmra.mrb[12].mxu1 %vm6940_vm11, %v8500_v58 }
 0x54c   :  { %10666 = vmatprep.mubr.msk.bf16.mxu1 %vm6940_vm11, %v8503_v30  ;;  %v8216_v57 = vpop.permute.xlu1 %8215  ;;  %v8457_v23 = vld [vmem:[#allocation4 + $0x80] sm:$0xff] }
 0x54d   :  { %8256 = vst.msk [vmem:[#allocation4 + $0xb0] sm:$0xff] %vm7958_vm13, %v8216_v57  ;;  %v8496_v3 = vpack.c.bf16 %v8457_v23, %v8454_v16 }
 0x54e   :  { %v8218_v22 = vpop.permute.xlu0 %8217  ;;  %v8460_v4 = vld [vmem:[#allocation4 + $0x98] sm:$0xff] }
 0x54f   :  { %8257 = vst.msk [vmem:[#allocation4 + $0xc8] sm:$0xff] %vm7958_vm13, %v8218_v22  ;;  %8736 = vmatprep.mubr.bf16.mxu0 %v8496_v3 }
 0x550   :  { %v7925_v42 = vpop.permute.xlu1 %7924  ;;  %v8456_v38 = vld [vmem:[#allocation4 + $0x78] sm:$0xff] }
 0x551   :  { %7966 = vst.msk [vmem:[#allocation4 + $0xa8] sm:$0xff] %vm7958_vm13, %v7925_v42  ;;  %v8495_v45 = vpack.c.bf16 %v8456_v38, %v8453_v17 }
 0x552   :  { %v7927_v18 = vpop.permute.xlu0 %7926  ;;  %v8459_v40 = vld [vmem:[#allocation4 + $0x90] sm:$0xff] }
 0x553   :  { %7967 = vst.msk [vmem:[#allocation4 + $0xc0] sm:$0xff] %vm7958_vm13, %v7927_v18  ;;  %8737 = vmatmul.mubr.bf16.gmra.mrb[8].mxu0 %v8495_v45  ;;  %10667 = vmatmul.mubr.msk.bf16.gmra.mrb[16].mxu1 %vm6940_vm11, %v8506_v2 }
 0x554   :  { %10670 = vmatprep.mubr.msk.bf16.mxu1 %vm6940_vm11, %v8509_v48  ;;  %v8282_v36 = vpop.permute.xlu1 %8281 }
 0x555   :  { %8322 = vst.msk [vmem:[#allocation4 + $0xb0] sm:$0xff] %vm8071_vm14, %v8282_v36 }
 0x556   :  { %v8284_v60 = vpop.permute.xlu0 %8283 }
 0x557   :  { %8323 = vst.msk [vmem:[#allocation4 + $0xc8] sm:$0xff] %vm8071_vm14, %v8284_v60 }
 0x558   :  { %v8038_v63 = vpop.permute.xlu1 %8037 }
 0x559   :  { %8079 = vst.msk [vmem:[#allocation4 + $0xa8] sm:$0xff] %vm8071_vm14, %v8038_v63 }
 0x55a   :  { %v8040_v9 = vpop.permute.xlu0 %8039 }
 0x55b   :  { %8080 = vst.msk [vmem:[#allocation4 + $0xc0] sm:$0xff] %vm8071_vm14, %v8040_v9  ;;  %10671 = vmatmul.mubr.msk.bf16.gmra.mrb[20].mxu1 %vm6940_vm11, %v8512_v10 }
 0x55c   :  { %v8354_v54 = vpop.permute.xlu1 %8353 }
 0x55d   :  { %8394 = vst.msk [vmem:[#allocation4 + $0xb0] sm:$0xff] %vm8138_vm15, %v8354_v54  ;;  %v17366_v54 = vld [vmem:[%s17605_s4] ss:$0 sm:$0xff] }
 0x55e   :  { %v8356_v43 = vpop.permute.xlu0 %8355 }
 0x55f   :  { %8395 = vst.msk [vmem:[#allocation4 + $0xc8] sm:$0xff] %vm8138_vm15, %v8356_v43 }
 0x560   :  { %v8105_v13 = vpop.permute.xlu1 %8104 }
 0x561   :  { %8146 = vst.msk [vmem:[#allocation4 + $0xa8] sm:$0xff] %vm8138_vm15, %v8105_v13 }
 0x562   :  { %v8107_v6 = vpop.permute.xlu0 %8106 }
 0x563   :  { %8147 = vst.msk [vmem:[#allocation4 + $0xc0] sm:$0xff] %vm8138_vm15, %v8107_v6 }
 0x564   :  { %v8220_v49 = vpop.permute.xlu1 %8219  ;;  %v8463_v33 = vld [vmem:[#allocation4 + $0xb0] sm:$0xff] }
 0x565   :  { %8258 = vst.msk [vmem:[#allocation4 + $0xe0] sm:$0xff] %vm7958_vm13, %v8220_v49  ;;  %v8499_v28 = vpack.c.bf16 %v8463_v33, %v8460_v4 }
 0x566   :  { %v8222_v39 = vpop.permute.xlu0 %8221  ;;  %v8466_v59 = vld [vmem:[#allocation4 + $0xc8] sm:$0xff] }
 0x567   :  { %8259 = vst.msk [vmem:[#allocation4 + $0xf8] sm:$0xff] %vm7958_vm13, %v8222_v39  ;;  %8744 = vmatprep.mubr.bf16.mxu0 %v8499_v28 }
 0x568   :  { %v7929_v32 = vpop.permute.xlu1 %7928  ;;  %v8462_v37 = vld [vmem:[#allocation4 + $0xa8] sm:$0xff] }
 0x569   :  { %7968 = vst.msk [vmem:[#allocation4 + $0xd8] sm:$0xff] %vm7958_vm13, %v7929_v32  ;;  %v8498_v55 = vpack.c.bf16 %v8462_v37, %v8459_v40 }
 0x56a   :  { %v7931_v27 = vpop.permute.xlu0 %7930  ;;  %v8465_v11 = vld [vmem:[#allocation4 + $0xc0] sm:$0xff] }
 0x56b   :  { %7969 = vst.msk [vmem:[#allocation4 + $0xf0] sm:$0xff] %vm7958_vm13, %v7931_v27  ;;  %8745 = vmatmul.mubr.bf16.gmra.mrb[12].mxu0 %v8498_v55 }
 0x56c   :  { %v8286_v61 = vpop.permute.xlu1 %8285 }
 0x56d   :  { %8324 = vst.msk [vmem:[#allocation4 + $0xe0] sm:$0xff] %vm8071_vm14, %v8286_v61 }
 0x56e   :  { %v8288_v31 = vpop.permute.xlu0 %8287 }
 0x56f   :  { %8325 = vst.msk [vmem:[#allocation4 + $0xf8] sm:$0xff] %vm8071_vm14, %v8288_v31 }
 0x570   :  { %v8042_v50 = vpop.permute.xlu1 %8041 }
 0x571   :  { %8081 = vst.msk [vmem:[#allocation4 + $0xd8] sm:$0xff] %vm8071_vm14, %v8042_v50 }
 0x572   :  { %v8044_v44 = vpop.permute.xlu0 %8043 }
 0x573   :  { %8082 = vst.msk [vmem:[#allocation4 + $0xf0] sm:$0xff] %vm8071_vm14, %v8044_v44 }
 0x574   :  { %v8358_v56 = vpop.permute.xlu1 %8357 }
 0x575   :  { %v10596_v26 = vpop.f32.mrb[0].mxu0  ;;  %8396 = vst.msk [vmem:[#allocation4 + $0xe0] sm:$0xff] %vm8138_vm15, %v8358_v56 }
 0x576   :  { %v8360_v51 = vpop.permute.xlu0 %8359  ;;  %v10597_v41 = vpop.f32.mrb[1].mxu0 }
 0x577   :  { %8397 = vst.msk [vmem:[#allocation4 + $0xf8] sm:$0xff] %vm8138_vm15, %v8360_v51  ;;  %v10598_v20 = vadd.f32 %v10597_v41, %v10596_v26  ;;  %v10599_v14 = vpop.f32.mrb[2].mxu0 }
 0x578   :  { %v10600_v0 = vpop.f32.mrb[3].mxu0  ;;  %v8109_v24 = vpop.permute.xlu1 %8108 }
 0x579   :  { %v10601_v52 = vadd.f32 %v10600_v0, %v10599_v14  ;;  %8148 = vst.msk [vmem:[#allocation4 + $0xd8] sm:$0xff] %vm8138_vm15, %v8109_v24  ;;  %v8723_v39 = vadd.f32 %v10598_v20, %v17366_v54 }
 0x57a   :  { %v8111_v19 = vpop.permute.xlu0 %8110 }
 0x57b   :  { %8149 = vst.msk [vmem:[#allocation4 + $0xf0] sm:$0xff] %vm8138_vm15, %v8111_v19  ;;  %v8726_v32 = vadd.f32 %v10601_v52, %v17366_v54 }
 0x57c   :  { %v8224_v53 = vpop.permute.xlu1 %8223  ;;  %v8469_v1 = vld [vmem:[#allocation4 + $0xe0] sm:$0xff] }
 0x57d   :  { %8260 = vst.msk [vmem:[#allocation4 + $0x110] sm:$0xff] %vm7958_vm13, %v8224_v53  ;;  %v8502_v5 = vpack.c.bf16 %v8469_v1, %v8466_v59 }
 0x57e   :  { %v8472_v22 = vld [vmem:[#allocation4 + $0xf8] sm:$0xff] }
 0x57f   :  { %8752 = vmatprep.mubr.bf16.mxu0 %v8502_v5 }
 0x580   :  { %v7933_v34 = vpop.permute.xlu1 %7932  ;;  %v8468_v47 = vld [vmem:[#allocation4 + $0xd8] sm:$0xff] }
 0x581   :  { %7970 = vst.msk [vmem:[#allocation4 + $0x108] sm:$0xff] %vm7958_vm13, %v7933_v34  ;;  %v8501_v35 = vpack.c.bf16 %v8468_v47, %v8465_v11 }
 0x582   :  { %v8471_v23 = vld [vmem:[#allocation4 + $0xf0] sm:$0xff] }
 0x583   :  { %8753 = vmatmul.mubr.bf16.gmra.mrb[16].mxu0 %v8501_v35 }
 0x584   :  { %v8290_v7 = vpop.permute.xlu1 %8289 }
 0x585   :  { %8326 = vst.msk [vmem:[#allocation4 + $0x110] sm:$0xff] %vm8071_vm14, %v8290_v7 }
 0x588   :  { %v8046_v58 = vpop.permute.xlu1 %8045 }
 0x589   :  { %8083 = vst.msk [vmem:[#allocation4 + $0x108] sm:$0xff] %vm8071_vm14, %v8046_v58 }
 0x58c   :  { %v8362_v12 = vpop.permute.xlu1 %8361 }
 0x58d   :  { %8398 = vst.msk [vmem:[#allocation4 + $0x110] sm:$0xff] %vm8138_vm15, %v8362_v12 }
 0x590   :  { %v8113_v30 = vpop.permute.xlu1 %8112 }
 0x591   :  { %8150 = vst.msk [vmem:[#allocation4 + $0x108] sm:$0xff] %vm8138_vm15, %v8113_v30 }
 0x594   :  { %v8475_v57 = vld [vmem:[#allocation4 + $0x110] sm:$0xff] }
 0x595   :  { %v8505_v16 = vpack.c.bf16 %v8475_v57, %v8472_v22 }
 0x597   :  { %8760 = vmatprep.mubr.bf16.mxu0 %v8505_v16 }
 0x598   :  { %v8474_v3 = vld [vmem:[#allocation4 + $0x108] sm:$0xff] }
 0x599   :  { %v8504_v25 = vpack.c.bf16 %v8474_v3, %v8471_v23 }
 0x59b   :  { %8761 = vmatmul.mubr.bf16.gmra.mrb[20].mxu0 %v8504_v25 }
 0x5dd   :  { %v10632_v18 = vpop.f32.mrb[0].mxu1 }
 0x5de   :  { %v10633_v46 = vpop.f32.mrb[1].mxu1 }
 0x5df   :  { %v10634_v42 = vadd.f32 %v10633_v46, %v10632_v18  ;;  %v10635_v17 = vpop.f32.mrb[2].mxu1 }
 0x5e0   :  { %v10636_v38 = vpop.f32.mrb[3].mxu1 }
 0x5e1   :  { %v10637_v21 = vadd.f32 %v10636_v38, %v10635_v17  ;;  %v17374_v56 = vadd.f32 %v10634_v42, %v17366_v54 }
 0x5e3   :  { %v17381_v14 = vadd.f32 %v10637_v21, %v17366_v54 }
 0x5f6   :  { %v10602_v45 = vpop.f32.mrb[4].mxu0 }
 0x5f7   :  { %v10603_v2 = vpop.f32.mrb[5].mxu0 }
 0x5f8   :  { %v10604_v62 = vadd.f32 %v10603_v2, %v10602_v45  ;;  %v10605_v48 = vpop.f32.mrb[6].mxu0 }
 0x5f9   :  { %v10606_v60 = vpop.f32.mrb[7].mxu0 }
 0x5fa   :  { %v10607_v36 = vadd.f32 %v10606_v60, %v10605_v48  ;;  %v8731_v6 = vadd.f32 %v10604_v62, %v17366_v54 }
 0x5fc   :  { %v8734_v33 = vadd.f32 %v10607_v36, %v17366_v54 }
 0x60e   :  { %v10638_v15 = vpop.f32.mrb[4].mxu1 }
 0x60f   :  { %v10639_v29 = vpop.f32.mrb[5].mxu1 }
 0x610   :  { %v10640_v9 = vadd.f32 %v10639_v29, %v10638_v15  ;;  %v10641_v63 = vpop.f32.mrb[6].mxu1 }
 0x611   :  { %v10642_v10 = vpop.f32.mrb[7].mxu1 }
 0x612   :  { %v10643_v43 = vadd.f32 %v10642_v10, %v10641_v63  ;;  %v17378_v20 = vadd.f32 %v10640_v9, %v17366_v54 }
 0x614   :  { %v17391_v58 = vadd.f32 %v10643_v43, %v17366_v54 }
 0x616   :  { %v10660_v13 = vpop.f32.mrb[8].mxu1 }
 0x617   :  { %v8828_v49 = vadd.f32 %v10660_v13, %v8731_v6  ;;  %v8819_v4 = vpop.f32.mrb[9].mxu1 }
 0x618   :  { %v8820_v28 = vadd.f32 %v8819_v4, %v8723_v39  ;;  %v10661_v27 = vpop.f32.mrb[10].mxu1 }
 0x619   :  { %v8884_v40 = vmax.f32 %v8828_v49, 0.0  ;;  %v8831_v37 = vadd.f32 %v10661_v27, %v8734_v33  ;;  %v8822_v55 = vpop.f32.mrb[11].mxu1 }
 0x61a   :  { %v8882_v31 = vmax.f32 %v8820_v28, 0.0  ;;  %v8823_v61 = vadd.f32 %v8822_v55, %v8726_v32 }
 0x61b   :  { %v8948_v44 = vcombine.high %v8884_v40, %v8884_v40  ;;  %v8955_v50 = vrot.slane %v8884_v40, %v18898_v8  ;;  %v8885_v51 = vmax.f32 %v8831_v37, 0.0 }
 0x61c   :  { %v8914_v26 = vcombine.high %v8882_v31, %v8882_v31  ;;  %v8921_v41 = vrot.slane %v8882_v31, %v18898_v8  ;;  %v8883_v57 = vmax.f32 %v8823_v61, 0.0 }
 0x61d   :  { %v8962_v19 = vrot.slane %v8948_v44, %v18898_v8  ;;  %v8963_v0 = vcombine.high %v8955_v50, %v8955_v50  ;;  %v10524_v24 = vrot.slane %v8955_v50, 9  ;;  %v8965_v52 = vcombine.high %v8885_v51, %v8885_v51 }
 0x61e   :  { %v8928_v53 = vrot.slane %v8914_v26, %v18898_v8  ;;  %v8929_v59 = vcombine.high %v8921_v41, %v8921_v41  ;;  %v10516_v1 = vrot.slane %v8921_v41, 9  ;;  %v8972_v5 = vrot.slane %v8885_v51, %v18898_v8  ;;  %v17386_v34 = vpop.f32.mrb[12].mxu1 }
 0x61f   :  { %v8964_v11 = vcombine.high %v8962_v19, %v8962_v19  ;;  %v10525_v47 = vrot.slane %v8963_v0, 9  ;;  %v10526_v35 = vrot.slane %v8962_v19, 9  ;;  %v17388_v7 = vpop.f32.mrb[13].mxu1  ;;  %v9450_v3 = vmax.f32 %v8955_v50, %v10524_v24 }
 0x620   :  { %v8930_v12 = vcombine.high %v8928_v53, %v8928_v53  ;;  %v10517_v30 = vrot.slane %v8929_v59, 9  ;;  %v10518_v22 = vrot.slane %v8928_v53, 9  ;;  %v17393_v16 = vpop.f32.mrb[14].mxu1  ;;  %v9442_v25 = vmax.f32 %v8921_v41, %v10516_v1 }
 0x621   :  { %v10527_v23 = vrot.slane %v8964_v11, 9  ;;  %v8979_v18 = vrot.slane %v8965_v52, %v18898_v8  ;;  %v17396_v46 = vpop.f32.mrb[15].mxu1  ;;  %v9451_v42 = vmax.f32 %v8963_v0, %v10525_v47  ;;  %v9452_v17 = vmax.f32 %v8962_v19, %v10526_v35 }
 0x622   :  { %v10519_v38 = vrot.slane %v8930_v12, 9  ;;  %v8980_v21 = vcombine.high %v8972_v5, %v8972_v5  ;;  %v9443_v45 = vmax.f32 %v8929_v59, %v10517_v30  ;;  %v10528_v62 = vrot.slane %v8972_v5, 9 }
 0x623   :  { %v8981_v2 = vcombine.high %v8979_v18, %v8979_v18  ;;  %v10530_v48 = vrot.slane %v8979_v18, 9  ;;  %v9444_v60 = vmax.f32 %v8928_v53, %v10518_v22  ;;  %v8931_v15 = vcombine.high %v8883_v57, %v8883_v57 }
 0x624   :  { %v10529_v36 = vrot.slane %v8980_v21, 9  ;;  %v8938_v29 = vrot.slane %v8883_v57, %v18898_v8  ;;  %v9453_v9 = vmax.f32 %v8964_v11, %v10527_v23  ;;  %v9454_v10 = vmax.f32 %v8972_v5, %v10528_v62 }
 0x625   :  { %v10531_v63 = vrot.slane %v8981_v2, 9  ;;  %v9456_v43 = vmax.f32 %v8979_v18, %v10530_v48  ;;  %v8945_v13 = vrot.slane %v8931_v15, %v18898_v8  ;;  %v9445_v28 = vmax.f32 %v8930_v12, %v10519_v38 }
 0x626   :  { %v9455_v6 = vmax.f32 %v8980_v21, %v10529_v36  ;;  %v8946_v39 = vcombine.high %v8938_v29, %v8938_v29  ;;  %v10520_v49 = vrot.slane %v8938_v29, 9  ;;  %v10608_v4 = vpop.f32.mrb[8].mxu0  ;;  %v17400_v33 = vpop.f32.mrb[16].mxu1  ;;  %v9510_v32 = vmax.f32 %v9450_v3, %v9454_v10 }
 0x627   :  { %v9457_v27 = vmax.f32 %v8981_v2, %v10531_v63  ;;  %v9512_v40 = vmax.f32 %v9452_v17, %v9456_v43  ;;  %v10609_v37 = vpop.f32.mrb[9].mxu0  ;;  %v17402_v55 = vpop.f32.mrb[17].mxu1  ;;  %v8947_v61 = vcombine.high %v8945_v13, %v8945_v13  ;;  %v10522_v50 = vrot.slane %v8945_v13, 9 }
 0x628   :  { %v9511_v31 = vmax.f32 %v9451_v42, %v9455_v6  ;;  %v10521_v44 = vrot.slane %v8946_v39, 9  ;;  %v10611_v51 = vpop.f32.mrb[10].mxu0  ;;  %v17404_v26 = vpop.f32.mrb[18].mxu1  ;;  %v9542_v19 = vpack.c.bf16 %v9510_v32, %v9510_v32  ;;  %v9446_v24 = vmax.f32 %v8938_v29, %v10520_v49 }
 0x629   :  { %v9513_v41 = vmax.f32 %v9453_v9, %v9457_v27  ;;  %v9544_v0 = vpack.c.bf16 %v9512_v40, %v9512_v40  ;;  %v10612_v52 = vpop.f32.mrb[11].mxu0  ;;  %v17406_v53 = vpop.f32.mrb[19].mxu1  ;;  %v10523_v1 = vrot.slane %v8947_v61, 9  ;;  %v9448_v11 = vmax.f32 %v8945_v13, %v10522_v50 }
 0x62a   :  { %v9543_v59 = vpack.c.bf16 %v9511_v31, %v9511_v31  ;;  %v9447_v5 = vmax.f32 %v8946_v39, %v10521_v44  ;;  %v9636_v35 = vrot.slane %v9542_v19, %v18898_v8  ;;  %v9506_v30 = vmax.f32 %v9442_v25, %v9446_v24 }
 0x62b   :  { %v9545_v47 = vpack.c.bf16 %v9513_v41, %v9513_v41  ;;  %v9650_v12 = vrot.slane %v9544_v0, %v18898_v8  ;;  %v9449_v57 = vmax.f32 %v8947_v61, %v10523_v1  ;;  %v9508_v3 = vmax.f32 %v9444_v60, %v9448_v11 }
 0x62c   :  { %v9643_v22 = vrot.slane %v9543_v59, %v18898_v8  ;;  %v9507_v23 = vmax.f32 %v9443_v45, %v9447_v5  ;;  %v9860_v42 = vrot.slane %v9636_v35, %v18898_v8  ;;  %v9538_v38 = vpack.c.bf16 %v9506_v30, %v9506_v30 }
 0x62d   :  { %v9657_v18 = vrot.slane %v9545_v47, %v18898_v8  ;;  %v9874_v17 = vrot.slane %v9650_v12, %v18898_v8  ;;  %v9509_v2 = vmax.f32 %v9445_v28, %v9449_v57  ;;  %v9540_v48 = vpack.c.bf16 %v9508_v3, %v9508_v3 }
 0x62e   :  { %v9867_v21 = vrot.slane %v9643_v22, %v18898_v8  ;;  %v9539_v62 = vpack.c.bf16 %v9507_v23, %v9507_v23  ;;  %v10672_v36 = vpop.f32.mrb[20].mxu1  ;;  %v10054_v15 = vunpack.c.l.b16 %v9860_v42  ;;  %v9608_v45 = vrot.slane %v9538_v38, %v18898_v8 }
 0x62f   :  { %v9881_v25 = vrot.slane %v9657_v18, %v18898_v8  ;;  %v10056_v29 = vunpack.c.l.b16 %v9874_v17  ;;  %v8867_v60 = vpop.f32.mrb[21].mxu1  ;;  %v9541_v63 = vpack.c.bf16 %v9509_v2, %v9509_v2  ;;  %v9622_v43 = vrot.slane %v9540_v48, %v18898_v8 }
 0x630   :  { %v10055_v9 = vunpack.c.l.b16 %v9867_v21  ;;  %v9615_v10 = vrot.slane %v9539_v62, %v18898_v8  ;;  %v10673_v6 = vpop.f32.mrb[22].mxu1  ;;  %v9832_v49 = vrot.slane %v9608_v45, %v18898_v8  ;;  %v10610_v28 = vadd.f32 %v10609_v37, %v10608_v4 }
 0x631   :  { %v10057_v13 = vunpack.c.l.b16 %v9881_v25  ;;  %v10090_v39 = vrot.slane %v10056_v29, 6  ;;  %v17420_v27 = vpop.f32.mrb[23].mxu1  ;;  %v9629_v40 = vrot.slane %v9541_v63, %v18898_v8  ;;  %v9846_v61 = vrot.slane %v9622_v43, %v18898_v8 }
 0x632   :  { %v10088_v32 = vrot.slane %v10055_v9, 7  ;;  %v9839_v31 = vrot.slane %v9615_v10, %v18898_v8  ;;  %v10050_v50 = vunpack.c.l.b16 %v9832_v49  ;;  %v8739_v41 = vadd.f32 %v10610_v28, %v17366_v54 }
 0x633   :  { %v10092_v44 = vrot.slane %v10057_v13, 5  ;;  %v10613_v19 = vadd.f32 %v10612_v52, %v10611_v51  ;;  %v9853_v24 = vrot.slane %v9629_v40, %v18898_v8  ;;  %v10052_v4 = vunpack.c.l.b16 %v9846_v61 }
 0x634   :  { %v10089_v0 = vsel %vm7622_vm4, %v10088_v32, %v10054_v15  ;;  %v10051_v59 = vunpack.c.l.b16 %v9839_v31  ;;  %v8836_v1 = vadd.f32 %v17388_v7, %v8739_v41  ;;  %v8876_v11 = vadd.f32 %v10672_v36, %v17378_v20 }
 0x635   :  { %v10091_v37 = vsel %vm7624_vm5, %v10090_v39, %v10089_v0  ;;  %v8742_v5 = vadd.f32 %v10613_v19, %v17366_v54  ;;  %v10053_v35 = vunpack.c.l.b16 %v9853_v24  ;;  %v10084_v30 = vrot.slane %v10052_v4, 6 }
 0x636   :  { %v10093_v47 = vsel %vm7626_vm6, %v10092_v44, %v10091_v37  ;;  %v10082_v12 = vrot.slane %v10051_v59, 7  ;;  %v8886_v52 = vmax.f32 %v8836_v1, 0.0  ;;  %v8896_v57 = vmax.f32 %v8876_v11, 0.0 }
 0x637   :  { %v10131_v51 = vpack.c.b16 %v10093_v47, %v10093_v47  ;;  %v8839_v22 = vadd.f32 %v17396_v46, %v8742_v5  ;;  %v10086_v3 = vrot.slane %v10053_v35, 5  ;;  %v8868_v18 = vadd.f32 %v8867_v60, %v17374_v56 }
 0x638   :  { %v10083_v23 = vsel %vm7622_vm4, %v10082_v12, %v10050_v50  ;;  %v8879_v7 = vadd.f32 %v10673_v6, %v17391_v58  ;;  %v8982_v17 = vcombine.high %v8886_v52, %v8886_v52  ;;  %v8989_v38 = vrot.slane %v8886_v52, %v18898_v8 }
 0x639   :  { %v10151_v42 = vrot.slane %v10131_v51, %v18898_v8  ;;  %v10085_v20 = vsel %vm7624_vm5, %v10084_v30, %v10083_v23  ;;  %v8887_v2 = vmax.f32 %v8839_v22, 0.0  ;;  %v9152_v62 = vcombine.high %v8896_v57, %v8896_v57 }
 0x63a   :  { %v10087_v21 = vsel %vm7626_vm6, %v10086_v3, %v10085_v20  ;;  %v9159_v46 = vrot.slane %v8896_v57, %v18898_v8  ;;  %v8996_v58 = vrot.slane %v8982_v17, %v18898_v8  ;;  %v8997_v48 = vcombine.high %v8989_v38, %v8989_v38 }
 0x63b   :  { %10204 = vst.msk [vmem:[%s17606_s5 + $0x2] sm:$0x3] %vm10202_vm0, %v10151_v42  ;;  %v10130_v56 = vpack.c.b16 %v10087_v21, %v10087_v21  ;;  %v10532_v36 = vrot.slane %v8989_v38, 9  ;;  %v8999_v25 = vcombine.high %v8887_v2, %v8887_v2  ;;  %v9006_v15 = vrot.slane %v8887_v2, %v18898_v8 }
 0x63c   :  { %v9166_v29 = vrot.slane %v9152_v62, %v18898_v8  ;;  %v9167_v45 = vcombine.high %v9159_v46, %v9159_v46  ;;  %v8998_v9 = vcombine.high %v8996_v58, %v8996_v58  ;;  %v10533_v63 = vrot.slane %v8997_v48, 9 }
 0x63d   :  { %v10144_v60 = vrot.slane %v10130_v56, %v18898_v8  ;;  %v10534_v10 = vrot.slane %v8996_v58, 9  ;;  %v9458_v43 = vmax.f32 %v8989_v38, %v10532_v36  ;;  %v9013_v6 = vrot.slane %v8999_v25, %v18898_v8 }
 0x63e   :  { %v9014_v13 = vcombine.high %v9006_v15, %v9006_v15  ;;  %v10536_v39 = vrot.slane %v9006_v15, 9  ;;  %v17451_v49 = vpop.f32.mrb[12].mxu0  ;;  %v10535_v28 = vrot.slane %v8998_v9, 9  ;;  %v9459_v32 = vmax.f32 %v8997_v48, %v10533_v63 }
 0x63f   :  { %10203 = vst.msk [vmem:[%s17606_s5] sm:$0x3] %vm10202_vm0, %v10144_v60  ;;  %v9460_v40 = vmax.f32 %v8996_v58, %v10534_v10  ;;  %v9168_v31 = vcombine.high %v9166_v29, %v9166_v29  ;;  %v17457_v61 = vpop.f32.mrb[13].mxu0  ;;  %v9015_v44 = vcombine.high %v9013_v6, %v9013_v6  ;;  %v10538_v41 = vrot.slane %v9013_v6, 9 }
 0x640   :  { %v10537_v50 = vrot.slane %v9014_v13, 9  ;;  %v9462_v19 = vmax.f32 %v9006_v15, %v10536_v39  ;;  %v17459_v0 = vpop.f32.mrb[14].mxu0  ;;  %v9461_v24 = vmax.f32 %v8998_v9, %v10535_v28  ;;  %v10572_v59 = vrot.slane %v9159_v46, 9 }
 0x641   :  { %v10573_v4 = vrot.slane %v9167_v45, 9  ;;  %v10574_v37 = vrot.slane %v9166_v29, 9  ;;  %v17461_v1 = vpop.f32.mrb[15].mxu0  ;;  %v10539_v5 = vrot.slane %v9015_v44, 9  ;;  %v9464_v47 = vmax.f32 %v9013_v6, %v10538_v41 }
 0x642   :  { %v9463_v11 = vmax.f32 %v9014_v13, %v10537_v50  ;;  %v9514_v35 = vmax.f32 %v9458_v43, %v9462_v19  ;;  %v10575_v12 = vrot.slane %v9168_v31, 9  ;;  %v9498_v30 = vmax.f32 %v9159_v46, %v10572_v59 }
 0x643   :  { %v17463_v51 = vmax.f32 %v9167_v45, %v10573_v4  ;;  %v17465_v52 = vmax.f32 %v9166_v29, %v10574_v37  ;;  %v9465_v22 = vmax.f32 %v9015_v44, %v10539_v5  ;;  %v9516_v23 = vmax.f32 %v9460_v40, %v9464_v47 }
 0x644   :  { %v9515_v57 = vmax.f32 %v9459_v32, %v9463_v11  ;;  %v9546_v3 = vpack.c.bf16 %v9514_v35, %v9514_v35  ;;  %v9501_v42 = vmax.f32 %v9168_v31, %v10575_v12  ;;  %v8894_v20 = vmax.f32 %v8868_v18, 0.0 }
 0x645   :  { %v8897_v17 = vmax.f32 %v8879_v7, 0.0  ;;  %v8871_v38 = vadd.f32 %v17420_v27, %v17381_v14  ;;  %v9517_v21 = vmax.f32 %v9461_v24, %v9465_v22  ;;  %v9548_v62 = vpack.c.bf16 %v9516_v23, %v9516_v23 }
 0x646   :  { %v9547_v2 = vpack.c.bf16 %v9515_v57, %v9515_v57  ;;  %v9664_v56 = vrot.slane %v9546_v3, %v18898_v8  ;;  %v9118_v46 = vcombine.high %v8894_v20, %v8894_v20  ;;  %v9125_v58 = vrot.slane %v8894_v20, %v18898_v8 }
 0x647   :  { %v9169_v48 = vcombine.high %v8897_v17, %v8897_v17  ;;  %v9176_v36 = vrot.slane %v8897_v17, %v18898_v8  ;;  %v9549_v25 = vpack.c.bf16 %v9517_v21, %v9517_v21  ;;  %v9678_v18 = vrot.slane %v9548_v62, %v18898_v8 }
 0x648   :  { %v9671_v15 = vrot.slane %v9547_v2, %v18898_v8  ;;  %v9888_v7 = vrot.slane %v9664_v56, %v18898_v8  ;;  %v9132_v14 = vrot.slane %v9118_v46, %v18898_v8  ;;  %v9133_v27 = vcombine.high %v9125_v58, %v9125_v58 }
 0x649   :  { %v10564_v29 = vrot.slane %v9125_v58, 9  ;;  %v9183_v45 = vrot.slane %v9169_v48, %v18898_v8  ;;  %v9685_v60 = vrot.slane %v9549_v25, %v18898_v8  ;;  %v9902_v63 = vrot.slane %v9678_v18, %v18898_v8 }
 0x64a   :  { %v9895_v9 = vrot.slane %v9671_v15, %v18898_v8  ;;  %v10058_v10 = vunpack.c.l.b16 %v9888_v7  ;;  %v9134_v43 = vcombine.high %v9132_v14, %v9132_v14  ;;  %v10565_v6 = vrot.slane %v9133_v27, 9 }
 0x64b   :  { %v10566_v13 = vrot.slane %v9132_v14, 9  ;;  %v9490_v39 = vmax.f32 %v9125_v58, %v10564_v29  ;;  %v9909_v28 = vrot.slane %v9685_v60, %v18898_v8  ;;  %v10060_v40 = vunpack.c.l.b16 %v9902_v63 }
 0x64c   :  { %v10059_v32 = vunpack.c.l.b16 %v9895_v9  ;;  %v9184_v31 = vcombine.high %v9176_v36, %v9176_v36  ;;  %v10567_v44 = vrot.slane %v9134_v43, 9  ;;  %v9491_v50 = vmax.f32 %v9133_v27, %v10565_v6 }
 0x64d   :  { %v9492_v41 = vmax.f32 %v9132_v14, %v10566_v13  ;;  %v9185_v19 = vcombine.high %v9183_v45, %v9183_v45  ;;  %v10061_v24 = vunpack.c.l.b16 %v9909_v28  ;;  %v10096_v4 = vrot.slane %v10060_v40, 6 }
 0x64e   :  { %v10094_v59 = vrot.slane %v10059_v32, 7  ;;  %v10576_v37 = vrot.slane %v9176_v36, 9  ;;  %v9493_v5 = vmax.f32 %v9134_v43, %v10567_v44  ;;  %v10577_v11 = vrot.slane %v9184_v31, 9 }
 0x64f   :  { %v10578_v47 = vrot.slane %v9183_v45, 9  ;;  %v10579_v35 = vrot.slane %v9185_v19, 9  ;;  %v10098_v22 = vrot.slane %v10061_v24, 5  ;;  %v8895_v23 = vmax.f32 %v8871_v38, 0.0 }
 0x650   :  { %v10095_v12 = vsel %vm7622_vm4, %v10094_v59, %v10058_v10  ;;  %v9502_v57 = vmax.f32 %v9176_v36, %v10576_v37  ;;  %v9503_v20 = vmax.f32 %v9184_v31, %v10577_v11 }
 0x651   :  { %v10097_v3 = vsel %vm7624_vm5, %v10096_v4, %v10095_v12  ;;  %v9504_v17 = vmax.f32 %v9183_v45, %v10578_v47  ;;  %v9505_v21 = vmax.f32 %v9185_v19, %v10579_v35  ;;  %v9135_v56 = vcombine.high %v8895_v23, %v8895_v23 }
 0x652   :  { %v10099_v2 = vsel %vm7626_vm6, %v10098_v22, %v10097_v3  ;;  %v9534_v62 = vmax.f32 %v9498_v30, %v9502_v57  ;;  %v9142_v46 = vrot.slane %v8895_v23, %v18898_v8  ;;  %v9535_v48 = vmax.f32 %v17463_v51, %v9503_v20 }
 0x653   :  { %v10132_v58 = vpack.c.b16 %v10099_v2, %v10099_v2  ;;  %v9536_v25 = vmax.f32 %v17465_v52, %v9504_v17  ;;  %v9537_v15 = vmax.f32 %v9501_v42, %v9505_v21  ;;  %v9149_v38 = vrot.slane %v9135_v56, %v18898_v8 }
 0x654   :  { %v9566_v18 = vpack.c.bf16 %v9534_v62, %v9534_v62  ;;  %v9150_v36 = vcombine.high %v9142_v46, %v9142_v46  ;;  %v10568_v7 = vrot.slane %v9142_v46, 9  ;;  %v9567_v27 = vpack.c.bf16 %v9535_v48, %v9535_v48 }
 0x655   :  { %v10158_v14 = vrot.slane %v10132_v58, %v18898_v8  ;;  %v9568_v29 = vpack.c.bf16 %v9536_v25, %v9536_v25  ;;  %v9569_v45 = vpack.c.bf16 %v9537_v15, %v9537_v15  ;;  %v9151_v60 = vcombine.high %v9149_v38, %v9149_v38 }
 0x656   :  { %v9804_v30 = vrot.slane %v9566_v18, %v18898_v8  ;;  %v10569_v9 = vrot.slane %v9150_v36, 9  ;;  %v10570_v63 = vrot.slane %v9149_v38, 9  ;;  %v10620_v10 = vpop.f32.mrb[16].mxu0  ;;  %v9811_v51 = vrot.slane %v9567_v27, %v18898_v8 }
 0x657   :  { %10205 = vst.msk [vmem:[%s17606_s5 + $0x4] sm:$0x3] %vm10202_vm0, %v10158_v14  ;;  %v9818_v52 = vrot.slane %v9568_v29, %v18898_v8  ;;  %v9825_v42 = vrot.slane %v9569_v45, %v18898_v8  ;;  %v9494_v43 = vmax.f32 %v9142_v46, %v10568_v7  ;;  %v10621_v6 = vpop.f32.mrb[17].mxu0  ;;  %v10571_v28 = vrot.slane %v9151_v60, 9 }
 0x658   :  { %v10028_v13 = vrot.slane %v9804_v30, %v18898_v8  ;;  %v9495_v32 = vmax.f32 %v9150_v36, %v10569_v9  ;;  %v9496_v40 = vmax.f32 %v9149_v38, %v10570_v63  ;;  %v10623_v31 = vpop.f32.mrb[18].mxu0  ;;  %v10035_v44 = vrot.slane %v9811_v51, %v18898_v8 }
 0x659   :  { %v10042_v19 = vrot.slane %v9818_v52, %v18898_v8  ;;  %v10049_v24 = vrot.slane %v9825_v42, %v18898_v8  ;;  %v9530_v59 = vmax.f32 %v9490_v39, %v9494_v43  ;;  %v10624_v4 = vpop.f32.mrb[19].mxu0  ;;  %v9497_v11 = vmax.f32 %v9151_v60, %v10571_v28 }
 0x65a   :  { %v10078_v37 = vunpack.c.l.b16 %v10028_v13  ;;  %v9531_v47 = vmax.f32 %v9491_v50, %v9495_v32  ;;  %v9532_v35 = vmax.f32 %v9492_v41, %v9496_v40  ;;  %v10079_v12 = vunpack.c.l.b16 %v10035_v44 }
 0x65b   :  { %v10080_v22 = vunpack.c.l.b16 %v10042_v19  ;;  %v10081_v57 = vunpack.c.l.b16 %v10049_v24  ;;  %v9562_v23 = vpack.c.bf16 %v9530_v59, %v9530_v59  ;;  %v9533_v3 = vmax.f32 %v9493_v5, %v9497_v11 }
 0x65c   :  { %v9563_v20 = vpack.c.bf16 %v9531_v47, %v9531_v47  ;;  %v9564_v17 = vpack.c.bf16 %v9532_v35, %v9532_v35  ;;  %v10616_v21 = vadd.f32 %v17457_v61, %v17451_v49  ;;  %v10124_v2 = vrot.slane %v10079_v12, 7 }
 0x65d   :  { %v10126_v62 = vrot.slane %v10080_v22, 6  ;;  %v10128_v56 = vrot.slane %v10081_v57, 5  ;;  %v9776_v39 = vrot.slane %v9562_v23, %v18898_v8  ;;  %v9565_v46 = vpack.c.bf16 %v9533_v3, %v9533_v3 }
 0x65e   :  { %v9783_v58 = vrot.slane %v9563_v20, %v18898_v8  ;;  %v9790_v50 = vrot.slane %v9564_v17, %v18898_v8  ;;  %v8747_v41 = vadd.f32 %v10616_v21, %v17366_v54  ;;  %v10125_v48 = vsel %vm7622_vm4, %v10124_v2, %v10078_v37 }
 0x65f   :  { %v10000_v5 = vrot.slane %v9776_v39, %v18898_v8  ;;  %v10619_v25 = vadd.f32 %v17461_v1, %v17459_v0  ;;  %v10622_v49 = vadd.f32 %v10621_v6, %v10620_v10  ;;  %v10127_v61 = vsel %vm7624_vm5, %v10126_v62, %v10125_v48 }
 0x660   :  { %v9797_v15 = vrot.slane %v9565_v46, %v18898_v8  ;;  %v10007_v18 = vrot.slane %v9783_v58, %v18898_v8  ;;  %v10014_v38 = vrot.slane %v9790_v50, %v18898_v8  ;;  %v10129_v36 = vsel %vm7626_vm6, %v10128_v56, %v10127_v61 }
 0x661   :  { %v10074_v7 = vunpack.c.l.b16 %v10000_v5  ;;  %v8844_v14 = vadd.f32 %v17386_v34, %v8747_v41  ;;  %v8750_v27 = vadd.f32 %v10619_v25, %v17366_v54  ;;  %v10137_v29 = vpack.c.b16 %v10129_v36, %v10129_v36 }
 0x662   :  { %v10021_v45 = vrot.slane %v9797_v15, %v18898_v8  ;;  %v10075_v0 = vunpack.c.l.b16 %v10007_v18  ;;  %v10076_v1 = vunpack.c.l.b16 %v10014_v38  ;;  %v8755_v9 = vadd.f32 %v10622_v49, %v17366_v54 }
 0x663   :  { %v8888_v30 = vmax.f32 %v8844_v14, 0.0  ;;  %v8847_v60 = vadd.f32 %v17393_v16, %v8750_v27  ;;  %v10625_v63 = vadd.f32 %v10624_v4, %v10623_v31  ;;  %v10193_v10 = vrot.slane %v10137_v29, %v18898_v8 }
 0x664   :  { %v10077_v51 = vunpack.c.l.b16 %v10021_v45  ;;  %v10118_v52 = vrot.slane %v10075_v0, 7  ;;  %v10120_v42 = vrot.slane %v10076_v1, 6  ;;  %v8852_v13 = vadd.f32 %v17402_v55, %v8755_v9 }
 0x665   :  { %v9016_v43 = vcombine.high %v8888_v30, %v8888_v30  ;;  %v9023_v34 = vrot.slane %v8888_v30, %v18898_v8  ;;  %v8889_v6 = vmax.f32 %v8847_v60, 0.0  ;;  %10210 = vst.msk [vmem:[%s17606_s5 + $0xe] sm:$0x3] %vm10202_vm0, %v10193_v10  ;;  %v8758_v32 = vadd.f32 %v10625_v63, %v17366_v54 }
 0x666   :  { %v10119_v16 = vsel %vm7622_vm4, %v10118_v52, %v10074_v7  ;;  %v10122_v28 = vrot.slane %v10077_v51, 5  ;;  %v8890_v4 = vmax.f32 %v8852_v13, 0.0 }
 0x667   :  { %v10121_v40 = vsel %vm7624_vm5, %v10120_v42, %v10119_v16  ;;  %v9030_v31 = vrot.slane %v9016_v43, %v18898_v8  ;;  %v9031_v44 = vcombine.high %v9023_v34, %v9023_v34  ;;  %v10540_v19 = vrot.slane %v9023_v34, 9 }
 0x668   :  { %v10123_v24 = vsel %vm7626_vm6, %v10122_v28, %v10121_v40  ;;  %v9033_v59 = vcombine.high %v8889_v6, %v8889_v6  ;;  %v9040_v55 = vrot.slane %v8889_v6, %v18898_v8  ;;  %v9050_v58 = vcombine.high %v8890_v4, %v8890_v4 }
 0x669   :  { %v10136_v37 = vpack.c.b16 %v10123_v24, %v10123_v24  ;;  %v9032_v11 = vcombine.high %v9030_v31, %v9030_v31  ;;  %v10541_v47 = vrot.slane %v9031_v44, 9  ;;  %v10542_v35 = vrot.slane %v9030_v31, 9 }
 0x66a   :  { %v9466_v12 = vmax.f32 %v9023_v34, %v10540_v19  ;;  %v9047_v22 = vrot.slane %v9033_v59, %v18898_v8  ;;  %v9048_v57 = vcombine.high %v9040_v55, %v9040_v55  ;;  %v10544_v23 = vrot.slane %v9040_v55, 9 }
 0x66b   :  { %v10186_v3 = vrot.slane %v10136_v37, %v18898_v8  ;;  %v10543_v20 = vrot.slane %v9032_v11, 9  ;;  %v9467_v17 = vmax.f32 %v9031_v44, %v10541_v47  ;;  %v9468_v21 = vmax.f32 %v9030_v31, %v10542_v35 }
 0x66c   :  { %v9049_v2 = vcombine.high %v9047_v22, %v9047_v22  ;;  %v10545_v62 = vrot.slane %v9048_v57, 9  ;;  %v10546_v56 = vrot.slane %v9047_v22, 9  ;;  %v9470_v39 = vmax.f32 %v9040_v55, %v10544_v23 }
 0x66d   :  { %10209 = vst.msk [vmem:[%s17606_s5 + $0xc] sm:$0x3] %vm10202_vm0, %v10186_v3  ;;  %v9469_v46 = vmax.f32 %v9032_v11, %v10543_v20  ;;  %v9057_v50 = vrot.slane %v8890_v4, %v18898_v8  ;;  %v8855_v41 = vadd.f32 %v17406_v53, %v8758_v32  ;;  %v9064_v15 = vrot.slane %v9050_v58, %v18898_v8 }
 0x66e   :  { %v10547_v48 = vrot.slane %v9049_v2, 9  ;;  %v9471_v5 = vmax.f32 %v9048_v57, %v10545_v62  ;;  %v9472_v25 = vmax.f32 %v9047_v22, %v10546_v56  ;;  %v9518_v49 = vmax.f32 %v9466_v12, %v9470_v39  ;;  %v10626_v61 = vpop.f32.mrb[20].mxu0 }
 0x66f   :  { %v9065_v18 = vcombine.high %v9057_v50, %v9057_v50  ;;  %v10548_v38 = vrot.slane %v9057_v50, 9  ;;  %v8891_v36 = vmax.f32 %v8855_v41, 0.0  ;;  %v10627_v7 = vpop.f32.mrb[21].mxu0  ;;  %v9066_v1 = vcombine.high %v9064_v15, %v9064_v15 }
 0x670   :  { %v9473_v14 = vmax.f32 %v9049_v2, %v10547_v48  ;;  %v9519_v27 = vmax.f32 %v9467_v17, %v9471_v5  ;;  %v9520_v29 = vmax.f32 %v9468_v21, %v9472_v25  ;;  %v9550_v45 = vpack.c.bf16 %v9518_v49, %v9518_v49  ;;  %v10629_v0 = vpop.f32.mrb[22].mxu0 }
 0x671   :  { %v10549_v30 = vrot.slane %v9065_v18, 9  ;;  %v10550_v60 = vrot.slane %v9064_v15, 9  ;;  %v9474_v53 = vmax.f32 %v9057_v50, %v10548_v38  ;;  %v10630_v9 = vpop.f32.mrb[23].mxu0  ;;  %v10551_v42 = vrot.slane %v9066_v1, 9 }
 0x672   :  { %v9521_v63 = vmax.f32 %v9469_v46, %v9473_v14  ;;  %v9551_v10 = vpack.c.bf16 %v9519_v27, %v9519_v27  ;;  %v9552_v51 = vpack.c.bf16 %v9520_v29, %v9520_v29  ;;  %v9692_v52 = vrot.slane %v9550_v45, %v18898_v8 }
 0x673   :  { %v9475_v43 = vmax.f32 %v9065_v18, %v10549_v30  ;;  %v9476_v34 = vmax.f32 %v9064_v15, %v10550_v60  ;;  %v9067_v6 = vcombine.high %v8891_v36, %v8891_v36  ;;  %v9477_v40 = vmax.f32 %v9066_v1, %v10551_v42 }
 0x674   :  { %v9553_v13 = vpack.c.bf16 %v9521_v63, %v9521_v63  ;;  %v9699_v16 = vrot.slane %v9551_v10, %v18898_v8  ;;  %v9706_v28 = vrot.slane %v9552_v51, %v18898_v8  ;;  %v9916_v32 = vrot.slane %v9692_v52, %v18898_v8 }
 0x675   :  { %v9074_v31 = vrot.slane %v8891_v36, %v18898_v8  ;;  %v9081_v44 = vrot.slane %v9067_v6, %v18898_v8  ;;  %v10628_v19 = vadd.f32 %v10627_v7, %v10626_v61  ;;  %v10631_v25 = vadd.f32 %v10630_v9, %v10629_v0 }
 0x676   :  { %v9713_v24 = vrot.slane %v9553_v13, %v18898_v8  ;;  %v9923_v59 = vrot.slane %v9699_v16, %v18898_v8  ;;  %v9930_v55 = vrot.slane %v9706_v28, %v18898_v8  ;;  %v10062_v4 = vunpack.c.l.b16 %v9916_v32 }
 0x677   :  { %v9082_v37 = vcombine.high %v9074_v31, %v9074_v31  ;;  %v9083_v11 = vcombine.high %v9081_v44, %v9081_v44  ;;  %v10552_v47 = vrot.slane %v9074_v31, 9  ;;  %v10554_v35 = vrot.slane %v9081_v44, 9 }
 0x678   :  { %v9937_v12 = vrot.slane %v9713_v24, %v18898_v8  ;;  %v10063_v22 = vunpack.c.l.b16 %v9923_v59  ;;  %v10064_v57 = vunpack.c.l.b16 %v9930_v55  ;;  %v8763_v23 = vadd.f32 %v10628_v19, %v17366_v54 }
 0x679   :  { %v10553_v3 = vrot.slane %v9082_v37, 9  ;;  %v10555_v20 = vrot.slane %v9083_v11, 9  ;;  %v9478_v17 = vmax.f32 %v9074_v31, %v10552_v47  ;;  %v9480_v21 = vmax.f32 %v9081_v44, %v10554_v35 }
 0x67a   :  { %v10065_v2 = vunpack.c.l.b16 %v9937_v12  ;;  %v10100_v62 = vrot.slane %v10063_v22, 7  ;;  %v10102_v56 = vrot.slane %v10064_v57, 6  ;;  %v8860_v39 = vadd.f32 %v17400_v33, %v8763_v23 }
 0x67b   :  { %v9479_v46 = vmax.f32 %v9082_v37, %v10553_v3  ;;  %v9481_v58 = vmax.f32 %v9083_v11, %v10555_v20  ;;  %v9522_v50 = vmax.f32 %v9474_v53, %v9478_v17  ;;  %v9524_v41 = vmax.f32 %v9476_v34, %v9480_v21 }
 0x67c   :  { %v10101_v48 = vsel %vm7622_vm4, %v10100_v62, %v10062_v4  ;;  %v10104_v5 = vrot.slane %v10065_v2, 5  ;;  %v8892_v7 = vmax.f32 %v8860_v39, 0.0  ;;  %v8766_v34 = vadd.f32 %v10631_v25, %v17366_v54 }
 0x67d   :  { %v10103_v49 = vsel %vm7624_vm5, %v10102_v56, %v10101_v48  ;;  %v9523_v61 = vmax.f32 %v9475_v43, %v9479_v46  ;;  %v9525_v15 = vmax.f32 %v9477_v40, %v9481_v58  ;;  %v9554_v18 = vpack.c.bf16 %v9522_v50, %v9522_v50 }
 0x67e   :  { %v10105_v38 = vsel %vm7626_vm6, %v10104_v5, %v10103_v49  ;;  %v9556_v36 = vpack.c.bf16 %v9524_v41, %v9524_v41  ;;  %v9084_v53 = vcombine.high %v8892_v7, %v8892_v7  ;;  %v9091_v52 = vrot.slane %v8892_v7, %v18898_v8 }
 0x67f   :  { %v10133_v14 = vpack.c.b16 %v10105_v38, %v10105_v38  ;;  %v9555_v27 = vpack.c.bf16 %v9523_v61, %v9523_v61  ;;  %v9557_v33 = vpack.c.bf16 %v9525_v15, %v9525_v15  ;;  %v9720_v29 = vrot.slane %v9554_v18, %v18898_v8 }
 0x680   :  { %v9734_v45 = vrot.slane %v9556_v36, %v18898_v8  ;;  %v9098_v13 = vrot.slane %v9084_v53, %v18898_v8  ;;  %v8863_v40 = vadd.f32 %v17404_v26, %v8766_v34  ;;  %v9099_v31 = vcombine.high %v9091_v52, %v9091_v52 }
 0x681   :  { %v10165_v1 = vrot.slane %v10133_v14, %v18898_v8  ;;  %v9727_v0 = vrot.slane %v9555_v27, %v18898_v8  ;;  %v9741_v30 = vrot.slane %v9557_v33, %v18898_v8  ;;  %v9944_v9 = vrot.slane %v9720_v29, %v18898_v8 }
 0x682   :  { %v9958_v60 = vrot.slane %v9734_v45, %v18898_v8  ;;  %v8893_v19 = vmax.f32 %v8863_v40, 0.0  ;;  %v9100_v59 = vcombine.high %v9098_v13, %v9098_v13  ;;  %v10556_v55 = vrot.slane %v9091_v52, 9 }
 0x683   :  { %10206 = vst.msk [vmem:[%s17606_s5 + $0x6] sm:$0x3] %vm10202_vm0, %v10165_v1  ;;  %v9951_v63 = vrot.slane %v9727_v0, %v18898_v8  ;;  %v9965_v10 = vrot.slane %v9741_v30, %v18898_v8  ;;  %v10066_v16 = vunpack.c.l.b16 %v9944_v9  ;;  %v10557_v47 = vrot.slane %v9099_v31, 9 }
 0x684   :  { %v10068_v51 = vunpack.c.l.b16 %v9958_v60  ;;  %v9101_v37 = vcombine.high %v8893_v19, %v8893_v19  ;;  %v9108_v54 = vrot.slane %v8893_v19, %v18898_v8  ;;  %v10558_v35 = vrot.slane %v9098_v13, 9 }
 0x685   :  { %v10067_v42 = vunpack.c.l.b16 %v9951_v63  ;;  %v10069_v43 = vunpack.c.l.b16 %v9965_v10  ;;  %v10559_v23 = vrot.slane %v9100_v59, 9  ;;  %v9482_v3 = vmax.f32 %v9091_v52, %v10556_v55 }
 0x686   :  { %v10108_v6 = vrot.slane %v10068_v51, 6  ;;  %v9115_v12 = vrot.slane %v9101_v37, %v18898_v8  ;;  %v9116_v22 = vcombine.high %v9108_v54, %v9108_v54  ;;  %v10560_v26 = vrot.slane %v9108_v54, 9 }
 0x687   :  { %v10106_v28 = vrot.slane %v10067_v42, 7  ;;  %v10110_v32 = vrot.slane %v10069_v43, 5  ;;  %v9483_v62 = vmax.f32 %v9099_v31, %v10557_v47  ;;  %v9484_v56 = vmax.f32 %v9098_v13, %v10558_v35 }
 0x688   :  { %v9117_v20 = vcombine.high %v9115_v12, %v9115_v12  ;;  %v10561_v17 = vrot.slane %v9116_v22, 9  ;;  %v10562_v21 = vrot.slane %v9115_v12, 9  ;;  %v9486_v2 = vmax.f32 %v9108_v54, %v10560_v26 }
 0x689   :  { %v10107_v44 = vsel %vm7622_vm4, %v10106_v28, %v10066_v16  ;;  %v9485_v41 = vmax.f32 %v9100_v59, %v10559_v23 }
 0x68a   :  { %v10109_v24 = vsel %vm7624_vm5, %v10108_v6, %v10107_v44  ;;  %v10563_v39 = vrot.slane %v9117_v20, 9  ;;  %v9487_v46 = vmax.f32 %v9116_v22, %v10561_v17  ;;  %v9488_v58 = vmax.f32 %v9115_v12, %v10562_v21 }
 0x68b   :  { %v10111_v4 = vsel %vm7626_vm6, %v10110_v32, %v10109_v24  ;;  %v9526_v50 = vmax.f32 %v9482_v3, %v9486_v2 }
 0x68c   :  { %v10134_v11 = vpack.c.b16 %v10111_v4, %v10111_v4  ;;  %v9489_v48 = vmax.f32 %v9117_v20, %v10563_v39  ;;  %v9527_v5 = vmax.f32 %v9483_v62, %v9487_v46  ;;  %v9528_v25 = vmax.f32 %v9484_v56, %v9488_v58 }
 0x68d   :  { %v9558_v49 = vpack.c.bf16 %v9526_v50, %v9526_v50 }
 0x68e   :  { %v10172_v57 = vrot.slane %v10134_v11, %v18898_v8  ;;  %v9529_v61 = vmax.f32 %v9485_v41, %v9489_v48  ;;  %v9559_v15 = vpack.c.bf16 %v9527_v5, %v9527_v5  ;;  %v9560_v18 = vpack.c.bf16 %v9528_v25, %v9528_v25 }
 0x68f   :  { %v9748_v38 = vrot.slane %v9558_v49, %v18898_v8 }
 0x690   :  { %10207 = vst.msk [vmem:[%s17606_s5 + $0x8] sm:$0x3] %vm10202_vm0, %v10172_v57  ;;  %v9561_v36 = vpack.c.bf16 %v9529_v61, %v9529_v61  ;;  %v9755_v7 = vrot.slane %v9559_v15, %v18898_v8  ;;  %v9762_v14 = vrot.slane %v9560_v18, %v18898_v8 }
 0x691   :  { %v9972_v33 = vrot.slane %v9748_v38, %v18898_v8 }
 0x692   :  { %v9769_v27 = vrot.slane %v9561_v36, %v18898_v8  ;;  %v9979_v29 = vrot.slane %v9755_v7, %v18898_v8  ;;  %v9986_v45 = vrot.slane %v9762_v14, %v18898_v8 }
 0x693   :  { %v10070_v60 = vunpack.c.l.b16 %v9972_v33 }
 0x694   :  { %v9993_v1 = vrot.slane %v9769_v27, %v18898_v8  ;;  %v10071_v0 = vunpack.c.l.b16 %v9979_v29  ;;  %v10072_v30 = vunpack.c.l.b16 %v9986_v45 }
 0x696   :  { %v10073_v53 = vunpack.c.l.b16 %v9993_v1  ;;  %v10112_v9 = vrot.slane %v10071_v0, 7  ;;  %v10114_v63 = vrot.slane %v10072_v30, 6 }
 0x698   :  { %v10113_v10 = vsel %vm7622_vm4, %v10112_v9, %v10070_v60  ;;  %v10116_v51 = vrot.slane %v10073_v53, 5 }
 0x699   :  { %v10115_v52 = vsel %vm7624_vm5, %v10114_v63, %v10113_v10 }
 0x69a   :  { %v10117_v42 = vsel %vm7626_vm6, %v10116_v51, %v10115_v52 }
 0x69b   :  { %v10135_v43 = vpack.c.b16 %v10117_v42, %v10117_v42 }
 0x69d   :  { %v10179_v34 = vrot.slane %v10135_v43, %v18898_v8 }
 0x69f   :  { %10208 = vst.msk [vmem:[%s17606_s5 + $0xa] sm:$0x3] %vm10202_vm0, %v10179_v34 }

</bundles_post_ra>
